<compile_context>
chip_gen: v7x
topology: tpu7x:2x2x1
jax: 0.10.0
libtpu: 0.0.40
codegen_flags: <defaults>
</compile_context>

<pallas_src>
import functools
import math

import jax
import jax.numpy as jnp
from jax.experimental import pallas as pl
from jax.experimental.pallas import tpu as pltpu


# ----------------------------- Pallas kernels ------------------------------

def _matmul_kernel(x_ref, w_ref, o_ref):
    o_ref[...] = jnp.dot(x_ref[...].astype(jnp.bfloat16), w_ref[...],
                         preferred_element_type=jnp.float32).astype(o_ref.dtype)


def pallas_matmul(x, w, *, out_dtype=jnp.float32, tile_rows=512):
    """y = x @ w (no bias).  bf16 MXU inputs, f32 accumulation.
    Row-tiled with a ragged last block (no host-side pad / slice)."""
    R, K = x.shape
    Kw, Nw = w.shape
    assert K == Kw
    tile = min(tile_rows, R)
    grid = (pl.cdiv(R, tile),)
    return pl.pallas_call(
        _matmul_kernel,
        out_shape=jax.ShapeDtypeStruct((R, Nw), out_dtype),
        grid_spec=pltpu.PrefetchScalarGridSpec(
            num_scalar_prefetch=0,
            grid=grid,
            in_specs=[pl.BlockSpec((tile, K), lambda i: (i, 0)),
                      pl.BlockSpec((Kw, Nw), lambda i: (0, 0))],
            out_specs=pl.BlockSpec((tile, Nw), lambda i: (i, 0)),
        ),
        compiler_params=pltpu.CompilerParams(
            dimension_semantics=("parallel",)),
    )(x, w.astype(jnp.bfloat16))


def _linear_kernel(x_ref, w_ref, b_ref, o_ref, *, relu):
    acc = jnp.dot(x_ref[...].astype(jnp.bfloat16), w_ref[...],
                  preferred_element_type=jnp.float32)
    acc = acc + b_ref[...]
    if relu:
        acc = jnp.maximum(acc, 0.0)
    o_ref[...] = acc.astype(o_ref.dtype)


def pallas_linear(x, w, b, *, relu=False, out_dtype=jnp.float32, tile_rows=512):
    """y = x @ w + b (+ relu).  Used for the input projection."""
    R, K = x.shape
    Kw, Nw = w.shape
    assert K == Kw
    tile = min(tile_rows, R)
    grid = (pl.cdiv(R, tile),)
    return pl.pallas_call(
        functools.partial(_linear_kernel, relu=relu),
        out_shape=jax.ShapeDtypeStruct((R, Nw), out_dtype),
        grid_spec=pltpu.PrefetchScalarGridSpec(
            num_scalar_prefetch=0,
            grid=grid,
            in_specs=[pl.BlockSpec((tile, K), lambda i: (i, 0)),
                      pl.BlockSpec((Kw, Nw), lambda i: (0, 0)),
                      pl.BlockSpec((1, Nw), lambda i: (0, 0))],
            out_specs=pl.BlockSpec((tile, Nw), lambda i: (i, 0)),
        ),
        compiler_params=pltpu.CompilerParams(
            dimension_semantics=("parallel",)),
    )(x, w.astype(jnp.bfloat16), b.reshape(1, Nw).astype(jnp.float32))


def _ff_residual_kernel(xy_ref, xx_ref, h_ref, w1_ref, b1_ref, w2_ref, b2_ref,
                        o_ref, *, add_residual):
    # s = xx + xy  -> Linear -> ReLU -> Linear  (-> + residual h)
    s = xy_ref[...].astype(jnp.float32) + xx_ref[...].astype(jnp.float32)
    h1 = jnp.dot(s.astype(jnp.bfloat16), w1_ref[...],
                 preferred_element_type=jnp.float32) + b1_ref[...]
    h1 = jnp.maximum(h1, 0.0)                      # ReLU (dropout = identity)
    h2 = jnp.dot(h1.astype(jnp.bfloat16), w2_ref[...],
                 preferred_element_type=jnp.float32) + b2_ref[...]
    if add_residual:
        h2 = h2 + h_ref[...].astype(jnp.float32)
    o_ref[...] = h2.astype(o_ref.dtype)


def pallas_ff_residual(xy, xx, h, w1, b1, w2, b2, *, add_residual,
                       tile_rows=512):
    """Fused FeedForward + (xx+xy) add + residual.  All operands (rows, C)."""
    R, C = h.shape
    F = w1.shape[1]
    tile = min(tile_rows, R)
    grid = (pl.cdiv(R, tile),)
    return pl.pallas_call(
        functools.partial(_ff_residual_kernel, add_residual=add_residual),
        out_shape=jax.ShapeDtypeStruct((R, C), jnp.float32),
        grid_spec=pltpu.PrefetchScalarGridSpec(
            num_scalar_prefetch=0,
            grid=grid,
            in_specs=[pl.BlockSpec((tile, C), lambda i: (i, 0)),
                      pl.BlockSpec((tile, C), lambda i: (i, 0)),
                      pl.BlockSpec((tile, C), lambda i: (i, 0)),
                      pl.BlockSpec((C, F), lambda i: (0, 0)),
                      pl.BlockSpec((1, F), lambda i: (0, 0)),
                      pl.BlockSpec((F, C), lambda i: (0, 0)),
                      pl.BlockSpec((1, C), lambda i: (0, 0))],
            out_specs=pl.BlockSpec((tile, C), lambda i: (i, 0)),
        ),
        compiler_params=pltpu.CompilerParams(
            dimension_semantics=("parallel",)),
    )(xy, xx, h,
      w1.astype(jnp.bfloat16), b1.reshape(1, F).astype(jnp.float32),
      w2.astype(jnp.bfloat16), b2.reshape(1, C).astype(jnp.float32))


def _head_kernel(x_ref, w1_ref, b1_ref, w2_ref, b2_ref, o_ref):
    h1 = jnp.dot(x_ref[...].astype(jnp.bfloat16), w1_ref[...],
                 preferred_element_type=jnp.float32) + b1_ref[...]
    h2 = jnp.dot(h1.astype(jnp.bfloat16), w2_ref[...],
                 preferred_element_type=jnp.float32) + b2_ref[...]
    o_ref[...] = h2.astype(o_ref.dtype)


def pallas_head(x, w1, b1, w2, b2, *, tile_rows=512):
    """Fused output head: WNLinear(width,128) -> WNLinear(128,out_dim)."""
    R, C = x.shape
    H = w1.shape[1]
    O = w2.shape[1]
    tile = min(tile_rows, R)
    grid = (pl.cdiv(R, tile),)
    return pl.pallas_call(
        _head_kernel,
        out_shape=jax.ShapeDtypeStruct((R, O), jnp.float32),
        grid_spec=pltpu.PrefetchScalarGridSpec(
            num_scalar_prefetch=0,
            grid=grid,
            in_specs=[pl.BlockSpec((tile, C), lambda i: (i, 0)),
                      pl.BlockSpec((C, H), lambda i: (0, 0)),
                      pl.BlockSpec((1, H), lambda i: (0, 0)),
                      pl.BlockSpec((H, O), lambda i: (0, 0)),
                      pl.BlockSpec((1, O), lambda i: (0, 0))],
            out_specs=pl.BlockSpec((tile, O), lambda i: (i, 0)),
        ),
        compiler_params=pltpu.CompilerParams(
            dimension_semantics=("parallel",)),
    )(x, w1.astype(jnp.bfloat16), b1.reshape(1, H).astype(jnp.float32),
      w2.astype(jnp.bfloat16), b2.reshape(1, O).astype(jnp.float32))


# ------------------------- DFT / mix weight matrices ------------------------

def make_dft_mats(n, m0, m1):
    """Ortho rfft restricted to modes [m0, m1), packed [real | imag].

    Returns:
      fwd: (n, 2K) — x @ fwd = [Re(rfft(x))[m0:m1] | Im(rfft(x))[m0:m1]]
      inv: (2K, n) — [Re | Im] @ inv = irfft(mode-masked half spectrum), n pts
    (matches torch.fft.rfft / irfft with norm='ortho' on a mode-masked
    spectrum: 1x weight for k in {0, n/2}, 2x otherwise).
    """
    k = jnp.arange(m0, m1, dtype=jnp.float32)
    nn = jnp.arange(n, dtype=jnp.float32)
    ang = 2.0 * math.pi * nn[:, None] * k[None, :] / n          # (n, K)
    scale = 1.0 / math.sqrt(n)
    fc = jnp.cos(ang) * scale
    fs = -jnp.sin(ang) * scale
    cond = (k == 0)
    if n % 2 == 0:
        cond = cond | (k == n // 2)
    a = jnp.where(cond, 1.0, 2.0)
    gc = fc * a[None, :]
    gs = fs * a[None, :]
    fwd = jnp.concatenate([fc, fs], axis=1)                      # (n, 2K)
    inv = jnp.concatenate([gc, gs], axis=1).T                    # (2K, n)
    return fwd, inv


def make_mix_matrix(wr, wi):
    """Dense (2KC, 2KC) matrix implementing the per-mode complex channel mix
    out[o,k] = sum_i ft[i,k] * (wr + j*wi)[k,i,o] on row vectors flattened as
    (channel, {re,im}, mode).  Block-diagonal over modes, materialized dense so
    the mix is a single transpose-free matmul (2KC = 512 at these sizes)."""
    K, I, O = wr.shape

    def dk(w):                                # (K,I,O) -> (I,K,O,K) with δ_kq
        return jnp.einsum('kio,kq->ikoq', w, jnp.eye(K, dtype=w.dtype))

    A, Bm = dk(wr), dk(wi)
    w_out_r = jnp.stack([A, -Bm], axis=1)     # (I, 2, K, O, K)   -> Re output
    w_out_i = jnp.stack([Bm, A], axis=1)      # (I, 2, K, O, K)   -> Im output
    W6 = jnp.stack([w_out_r, w_out_i], axis=4)  # (I, 2, K, O, 2, K)
    return W6.reshape(2 * K * I, 2 * K * O)


# ------------------------------ FFNO forward --------------------------------

def _spectral_axis(rows, fwd, inv, w_mix, n_groups):
    """rows: (n_groups*C, L); C consecutive rows = channels of one (batch,line)
    group.  Returns irfft(mode-mixed rfft(rows)) along the last axis.
    All reshapes between the three matmuls are free contiguous views."""
    C = rows.shape[0] // n_groups
    two_k = fwd.shape[1]
    ft = pallas_matmul(rows, fwd, out_dtype=jnp.bfloat16)        # (G*C, 2K)
    ft = ft.reshape(n_groups, C * two_k)                         # free view
    mixed = pallas_matmul(ft, w_mix, out_dtype=jnp.bfloat16)     # (G, 2KC)
    mixed = mixed.reshape(n_groups * C, two_k)                   # free view
    return pallas_matmul(mixed, inv, out_dtype=jnp.bfloat16)     # (G*C, L)


def ffno_layer(h, w_mix_x, w_mix_y, dft_x, dft_y, lp, *, add_residual):
    """One SpectralConv2d ('full') + backcast FeedForward (+ residual)."""
    B, M, N, C = h.shape
    fwd_y, inv_y = dft_y
    fwd_x, inv_x = dft_x

    # ---- y direction: groups = (b, m), spatial axis N last ----
    hy = jnp.transpose(h, (0, 1, 3, 2)).reshape(B * M * C, N)
    xy = _spectral_axis(hy, fwd_y, inv_y, w_mix_y, B * M)
    xy = xy.reshape(B, M, C, N).transpose(0, 1, 3, 2)            # (B,M,N,C)

    # ---- x direction: groups = (b, n), spatial axis M last ----
    hx = jnp.transpose(h, (0, 2, 3, 1)).reshape(B * N * C, M)
    xx = _spectral_axis(hx, fwd_x, inv_x, w_mix_x, B * N)
    xx = xx.reshape(B, N, C, M).transpose(0, 3, 1, 2)            # (B,M,N,C)

    # ---- fused (xx + xy) -> FeedForward -> (+ residual) ----
    out = pallas_ff_residual(
        xy.reshape(B * M * N, C), xx.reshape(B * M * N, C),
        h.reshape(B * M * N, C),
        lp["w1"], lp["b1"], lp["w2"], lp["b2"],
        add_residual=add_residual)
    return out.reshape(B, M, N, C)


def ffno_forward(x, params, *, modes_x, modes_y, padding=8):
    B, Sx, Sy, Ci = x.shape
    W = params["in_proj_w"].shape[1]

    # grid features (coordinates), concatenated on the channel axis
    gx = jnp.linspace(0.0, 1.0, Sx, dtype=jnp.float32).reshape(1, Sx, 1, 1)
    gx = jnp.broadcast_to(gx, (B, Sx, Sy, 1))
    gy = jnp.linspace(0.0, 1.0, Sy, dtype=jnp.float32).reshape(1, 1, Sy, 1)
    gy = jnp.broadcast_to(gy, (B, Sx, Sy, 1))
    x = jnp.concatenate([x, gx, gy], axis=-1)                    # (B,Sx,Sy,Ci+2)

    # input projection
    h = pallas_linear(x.reshape(B * Sx * Sy, Ci + 2),
                      params["in_proj_w"], params["in_proj_b"])
    h = h.reshape(B, Sx, Sy, W)

    # zero-pad right side of both spatial axes (== F.pad([0,p,0,p]) in NCHW)
    h = jnp.pad(h, ((0, 0), (0, padding), (0, padding), (0, 0)))
    M, N = Sx + padding, Sy + padding

    dft_y = make_dft_mats(N, modes_y[0], modes_y[1])
    dft_x = make_dft_mats(M, modes_x[0], modes_x[1])
    w_mix_y = make_mix_matrix(params["wyr"], params["wyi"])
    w_mix_x = make_mix_matrix(params["wxr"], params["wxi"])

    n_layers = len(params["layers"])
    b = None
    for li, lp in enumerate(params["layers"]):
        is_last = (li == n_layers - 1)
        out = ffno_layer(h, w_mix_x, w_mix_y, dft_x, dft_y, lp,
                         add_residual=not is_last)
        if is_last:
            b = out        # head consumes the last backcast WITHOUT residual
        else:
            h = out        # residual stream for the next layer

    b = b[:, :Sx, :Sy, :]                                        # crop padding

    # fused output head: WNLinear(width,128) -> WNLinear(128,output_dim)
    o = pallas_head(b.reshape(B * Sx * Sy, W),
                    params["out1_w"], params["out1_b"],
                    params["out2_w"], params["out2_b"])
    return o.reshape(B, Sx, Sy, params["out2_w"].shape[1])


# ------------------------------ parameter init -------------------------------

def _linear_init(key, fan_in, fan_out):
    kw, kb = jax.random.split(key)
    s = 1.0 / math.sqrt(fan_in)
    w = jax.random.uniform(kw, (fan_in, fan_out), jnp.float32, -s, s)
    b = jax.random.uniform(kb, (fan_out,), jnp.float32, -s, s)
    return w, b


def _xavier_normal(key, shape):
    receptive = 1
    for s in shape[2:]:
        receptive *= s
    fan_in = shape[1] * receptive
    fan_out = shape[0] * receptive
    std = math.sqrt(2.0 / (fan_in + fan_out))
    return jax.random.normal(key, shape, jnp.float32) * std


def init_params(key, input_dim, output_dim, width, modes_x, modes_y,
                n_layers, factor):
    keys = jax.random.split(key, 5 + 2 * n_layers)
    params = {}
    params["in_proj_w"], params["in_proj_b"] = _linear_init(
        keys[0], input_dim + 2, width)

    kx_modes = modes_x[1] - modes_x[0]
    ky_modes = modes_y[1] - modes_y[0]
    wx = _xavier_normal(keys[1], (width, width, kx_modes, 2))    # (I, O, Km, 2)
    wy = _xavier_normal(keys[2], (width, width, ky_modes, 2))
    params["wxr"] = jnp.transpose(wx[..., 0], (2, 0, 1))         # (Km, I, O)
    params["wxi"] = jnp.transpose(wx[..., 1], (2, 0, 1))
    params["wyr"] = jnp.transpose(wy[..., 0], (2, 0, 1))
    params["wyi"] = jnp.transpose(wy[..., 1], (2, 0, 1))

    layers = []
    for i in range(n_layers):
        w1, b1 = _linear_init(keys[5 + 2 * i], width, width * factor)
        w2, b2 = _linear_init(keys[5 + 2 * i + 1], width * factor, width)
        layers.append({"w1": w1, "b1": b1, "w2": w2, "b2": b2})
    params["layers"] = layers

    params["out1_w"], params["out1_b"] = _linear_init(keys[3], width, 128)
    params["out2_w"], params["out2_b"] = _linear_init(keys[4], 128, output_dim)
    return params


# ---------------------------------- main -------------------------------------

if __name__ == "__main__":
    B, Sx, Sy = 2, 16, 16
    input_dim, output_dim, width = 3, 1, 32
    modes_x, modes_y = (0, 8), (0, 8)
    n_layers, factor = 2, 4

    key = jax.random.PRNGKey(0)
    kx, kp = jax.random.split(key)
    x = jax.random.normal(kx, (B, Sx, Sy, input_dim), jnp.float32)
    params = init_params(kp, input_dim, output_dim, width,
                         modes_x, modes_y, n_layers, factor)

    fwd = jax.jit(functools.partial(ffno_forward,
                                    modes_x=modes_x, modes_y=modes_y))
    out = fwd(x, params)
    jax.block_until_ready(out)
    assert out.shape == (B, Sx, Sy, output_dim), out.shape
    assert bool(jnp.all(jnp.isfinite(out)))
    print("KERNEL_OK")
</pallas_src>

<mosaic_0001>
module attributes {stable_mosaic.version = 11 : i64} {
  func.func @_linear_kernel(%arg0: i32, %arg1: memref<512x5xf32, #tpu.memory_space<vmem>>, %arg2: memref<5x32xbf16, #tpu.memory_space<vmem>>, %arg3: memref<1x32xf32, #tpu.memory_space<vmem>>, %arg4: memref<512x32xf32, #tpu.memory_space<vmem>>) attributes {dimension_semantics = [#tpu.dimension_semantics<parallel>], iteration_bounds = array<i64: 1>, scalar_prefetch = 0 : i64, scratch_operands = 0 : i64, tpu.core_type = #tpu.core_type<tc>, window_params = [{transform_indices = @transform_0, window_bounds = array<i64: 512, 5>}, {pipeline_mode = #tpu.pipeline_mode<synchronous>, transform_indices = @transform_1, window_bounds = array<i64: 5, 32>}, {pipeline_mode = #tpu.pipeline_mode<synchronous>, transform_indices = @transform_2, window_bounds = array<i64: 1, 32>}, {transform_indices = @transform_3, window_bounds = array<i64: 512, 32>}]} {
    %c0 = arith.constant 0 : index
    %c0_0 = arith.constant 0 : index
    %0 = vector.load %arg1[%c0, %c0_0] : memref<512x5xf32, #tpu.memory_space<vmem>>, vector<512x5xf32>
    %1 = arith.truncf %0 : vector<512x5xf32> to vector<512x5xbf16>
    %c0_1 = arith.constant 0 : index
    %c0_2 = arith.constant 0 : index
    %2 = vector.load %arg2[%c0_1, %c0_2] : memref<5x32xbf16, #tpu.memory_space<vmem>>, vector<5x32xbf16>
    %cst = arith.constant dense<0.000000e+00> : vector<512x32xf32>
    %3 = tpu.matmul %1, %2, %cst {dimension_numbers = #tpu.dot_dimension_numbers<[1], [0], [0], [1], [0, 0, 1, 1], [], []>} : vector<512x5xbf16>, vector<5x32xbf16>, vector<512x32xf32> -> vector<512x32xf32>
    %c0_3 = arith.constant 0 : index
    %c0_4 = arith.constant 0 : index
    %4 = vector.load %arg3[%c0_3, %c0_4] : memref<1x32xf32, #tpu.memory_space<vmem>>, vector<1x32xf32>
    %5 = vector.broadcast %4 : vector<1x32xf32> to vector<512x32xf32>
    %6 = arith.addf %3, %5 : vector<512x32xf32>
    %c0_5 = arith.constant 0 : index
    %c0_6 = arith.constant 0 : index
    %7 = vector.load %arg4[%c0_5, %c0_6] : memref<512x32xf32, #tpu.memory_space<vmem>>, vector<512x32xf32>
    tpu.vector_store %arg4[%c0_5, %c0_6], %6 {strides = array<i32>} : memref<512x32xf32, #tpu.memory_space<vmem>>, vector<512x32xf32>,
    return
  }
  func.func @transform_0(%arg0: i32) -> (i32, i32) {
    %c0_i32 = arith.constant 0 : i32
    %c0_i32_0 = arith.constant 0 : i32
    return %arg0, %c0_i32 : i32, i32
  }
  func.func @transform_1(%arg0: i32) -> (i32, i32) {
    %c0_i32 = arith.constant 0 : i32
    %c0_i32_0 = arith.constant 0 : i32
    %c0_i32_1 = arith.constant 0 : i32
    return %c0_i32, %c0_i32_0 : i32, i32
  }
  func.func @transform_2(%arg0: i32) -> (i32, i32) {
    %c0_i32 = arith.constant 0 : i32
    %c0_i32_0 = arith.constant 0 : i32
    %c0_i32_1 = arith.constant 0 : i32
    return %c0_i32, %c0_i32_0 : i32, i32
  }
  func.func @transform_3(%arg0: i32) -> (i32, i32) {
    %c0_i32 = arith.constant 0 : i32
    %c0_i32_0 = arith.constant 0 : i32
    return %arg0, %c0_i32 : i32, i32
  }
}

module attributes {stable_mosaic.version = 11 : i64} {
  func.func @_matmul_kernel(%arg0: i32, %arg1: memref<512x24xf32, #tpu.memory_space<vmem>>, %arg2: memref<24x16xbf16, #tpu.memory_space<vmem>>, %arg3: memref<512x16xbf16, #tpu.memory_space<vmem>>) attributes {dimension_semantics = [#tpu.dimension_semantics<parallel>], iteration_bounds = array<i64: 3>, scalar_prefetch = 0 : i64, scratch_operands = 0 : i64, tpu.core_type = #tpu.core_type<tc>, window_params = [{transform_indices = @transform_0, window_bounds = array<i64: 512, 24>}, {pipeline_mode = #tpu.pipeline_mode<synchronous>, transform_indices = @transform_1, window_bounds = array<i64: 24, 16>}, {transform_indices = @transform_2, window_bounds = array<i64: 512, 16>}]} {
    %c0 = arith.constant 0 : index
    %c0_0 = arith.constant 0 : index
    %0 = vector.load %arg1[%c0, %c0_0] : memref<512x24xf32, #tpu.memory_space<vmem>>, vector<512x24xf32>
    %1 = arith.truncf %0 : vector<512x24xf32> to vector<512x24xbf16>
    %c0_1 = arith.constant 0 : index
    %c0_2 = arith.constant 0 : index
    %2 = vector.load %arg2[%c0_1, %c0_2] : memref<24x16xbf16, #tpu.memory_space<vmem>>, vector<24x16xbf16>
    %cst = arith.constant dense<0.000000e+00> : vector<512x16xf32>
    %3 = tpu.matmul %1, %2, %cst {dimension_numbers = #tpu.dot_dimension_numbers<[1], [0], [0], [1], [0, 0, 1, 1], [], []>} : vector<512x24xbf16>, vector<24x16xbf16>, vector<512x16xf32> -> vector<512x16xf32>
    %4 = arith.truncf %3 : vector<512x16xf32> to vector<512x16xbf16>
    %c0_3 = arith.constant 0 : index
    %c0_4 = arith.constant 0 : index
    %5 = vector.load %arg3[%c0_3, %c0_4] : memref<512x16xbf16, #tpu.memory_space<vmem>>, vector<512x16xbf16>
    tpu.vector_store %arg3[%c0_3, %c0_4], %4 {strides = array<i32>} : memref<512x16xbf16, #tpu.memory_space<vmem>>, vector<512x16xbf16>,
    return
  }
  func.func @transform_0(%arg0: i32) -> (i32, i32) {
    %c0_i32 = arith.constant 0 : i32
    %c0_i32_0 = arith.constant 0 : i32
    return %arg0, %c0_i32 : i32, i32
  }
  func.func @transform_1(%arg0: i32) -> (i32, i32) {
    %c0_i32 = arith.constant 0 : i32
    %c0_i32_0 = arith.constant 0 : i32
    %c0_i32_1 = arith.constant 0 : i32
    return %c0_i32, %c0_i32_0 : i32, i32
  }
  func.func @transform_2(%arg0: i32) -> (i32, i32) {
    %c0_i32 = arith.constant 0 : i32
    %c0_i32_0 = arith.constant 0 : i32
    return %arg0, %c0_i32 : i32, i32
  }
}

module attributes {stable_mosaic.version = 11 : i64} {
  func.func @_matmul_kernel(%arg0: i32, %arg1: memref<48x512xbf16, #tpu.memory_space<vmem>>, %arg2: memref<512x512xbf16, #tpu.memory_space<vmem>>, %arg3: memref<48x512xbf16, #tpu.memory_space<vmem>>) attributes {dimension_semantics = [#tpu.dimension_semantics<parallel>], iteration_bounds = array<i64: 1>, scalar_prefetch = 0 : i64, scratch_operands = 0 : i64, tpu.core_type = #tpu.core_type<tc>, window_params = [{transform_indices = @transform_0, window_bounds = array<i64: 48, 512>}, {pipeline_mode = #tpu.pipeline_mode<synchronous>, transform_indices = @transform_1, window_bounds = array<i64: 512, 512>}, {transform_indices = @transform_2, window_bounds = array<i64: 48, 512>}]} {
    %c0 = arith.constant 0 : index
    %c0_0 = arith.constant 0 : index
    %0 = vector.load %arg1[%c0, %c0_0] : memref<48x512xbf16, #tpu.memory_space<vmem>>, vector<48x512xbf16>
    %c0_1 = arith.constant 0 : index
    %c0_2 = arith.constant 0 : index
    %1 = vector.load %arg2[%c0_1, %c0_2] : memref<512x512xbf16, #tpu.memory_space<vmem>>, vector<512x512xbf16>
    %cst = arith.constant dense<0.000000e+00> : vector<48x512xf32>
    %2 = tpu.matmul %0, %1, %cst {dimension_numbers = #tpu.dot_dimension_numbers<[1], [0], [0], [1], [0, 0, 1, 1], [], []>} : vector<48x512xbf16>, vector<512x512xbf16>, vector<48x512xf32> -> vector<48x512xf32>
    %3 = arith.truncf %2 : vector<48x512xf32> to vector<48x512xbf16>
    %c0_3 = arith.constant 0 : index
    %c0_4 = arith.constant 0 : index
    %4 = vector.load %arg3[%c0_3, %c0_4] : memref<48x512xbf16, #tpu.memory_space<vmem>>, vector<48x512xbf16>
    tpu.vector_store %arg3[%c0_3, %c0_4], %3 {strides = array<i32>} : memref<48x512xbf16, #tpu.memory_space<vmem>>, vector<48x512xbf16>,
    return
  }
  func.func @transform_0(%arg0: i32) -> (i32, i32) {
    %c0_i32 = arith.constant 0 : i32
    %c0_i32_0 = arith.constant 0 : i32
    return %arg0, %c0_i32 : i32, i32
  }
  func.func @transform_1(%arg0: i32) -> (i32, i32) {
    %c0_i32 = arith.constant 0 : i32
    %c0_i32_0 = arith.constant 0 : i32
    %c0_i32_1 = arith.constant 0 : i32
    return %c0_i32, %c0_i32_0 : i32, i32
  }
  func.func @transform_2(%arg0: i32) -> (i32, i32) {
    %c0_i32 = arith.constant 0 : i32
    %c0_i32_0 = arith.constant 0 : i32
    return %arg0, %c0_i32 : i32, i32
  }
}

module attributes {stable_mosaic.version = 11 : i64} {
  func.func @_matmul_kernel(%arg0: i32, %arg1: memref<512x16xbf16, #tpu.memory_space<vmem>>, %arg2: memref<16x24xbf16, #tpu.memory_space<vmem>>, %arg3: memref<512x24xbf16, #tpu.memory_space<vmem>>) attributes {dimension_semantics = [#tpu.dimension_semantics<parallel>], iteration_bounds = array<i64: 3>, scalar_prefetch = 0 : i64, scratch_operands = 0 : i64, tpu.core_type = #tpu.core_type<tc>, window_params = [{transform_indices = @transform_0, window_bounds = array<i64: 512, 16>}, {pipeline_mode = #tpu.pipeline_mode<synchronous>, transform_indices = @transform_1, window_bounds = array<i64: 16, 24>}, {transform_indices = @transform_2, window_bounds = array<i64: 512, 24>}]} {
    %c0 = arith.constant 0 : index
    %c0_0 = arith.constant 0 : index
    %0 = vector.load %arg1[%c0, %c0_0] : memref<512x16xbf16, #tpu.memory_space<vmem>>, vector<512x16xbf16>
    %c0_1 = arith.constant 0 : index
    %c0_2 = arith.constant 0 : index
    %1 = vector.load %arg2[%c0_1, %c0_2] : memref<16x24xbf16, #tpu.memory_space<vmem>>, vector<16x24xbf16>
    %cst = arith.constant dense<0.000000e+00> : vector<512x24xf32>
    %2 = tpu.matmul %0, %1, %cst {dimension_numbers = #tpu.dot_dimension_numbers<[1], [0], [0], [1], [0, 0, 1, 1], [], []>} : vector<512x16xbf16>, vector<16x24xbf16>, vector<512x24xf32> -> vector<512x24xf32>
    %3 = arith.truncf %2 : vector<512x24xf32> to vector<512x24xbf16>
    %c0_3 = arith.constant 0 : index
    %c0_4 = arith.constant 0 : index
    %4 = vector.load %arg3[%c0_3, %c0_4] : memref<512x24xbf16, #tpu.memory_space<vmem>>, vector<512x24xbf16>
    tpu.vector_store %arg3[%c0_3, %c0_4], %3 {strides = array<i32>} : memref<512x24xbf16, #tpu.memory_space<vmem>>, vector<512x24xbf16>,
    return
  }
  func.func @transform_0(%arg0: i32) -> (i32, i32) {
    %c0_i32 = arith.constant 0 : i32
    %c0_i32_0 = arith.constant 0 : i32
    return %arg0, %c0_i32 : i32, i32
  }
  func.func @transform_1(%arg0: i32) -> (i32, i32) {
    %c0_i32 = arith.constant 0 : i32
    %c0_i32_0 = arith.constant 0 : i32
    %c0_i32_1 = arith.constant 0 : i32
    return %c0_i32, %c0_i32_0 : i32, i32
  }
  func.func @transform_2(%arg0: i32) -> (i32, i32) {
    %c0_i32 = arith.constant 0 : i32
    %c0_i32_0 = arith.constant 0 : i32
    return %arg0, %c0_i32 : i32, i32
  }
}

module attributes {stable_mosaic.version = 11 : i64} {
  func.func @_ff_residual_kernel(%arg0: i32, %arg1: memref<512x32xbf16, #tpu.memory_space<vmem>>, %arg2: memref<512x32xbf16, #tpu.memory_space<vmem>>, %arg3: memref<512x32xf32, #tpu.memory_space<vmem>>, %arg4: memref<32x128xbf16, #tpu.memory_space<vmem>>, %arg5: memref<1x128xf32, #tpu.memory_space<vmem>>, %arg6: memref<128x32xbf16, #tpu.memory_space<vmem>>, %arg7: memref<1x32xf32, #tpu.memory_space<vmem>>, %arg8: memref<512x32xf32, #tpu.memory_space<vmem>>) attributes {dimension_semantics = [#tpu.dimension_semantics<parallel>], iteration_bounds = array<i64: 3>, scalar_prefetch = 0 : i64, scratch_operands = 0 : i64, tpu.core_type = #tpu.core_type<tc>, window_params = [{transform_indices = @transform_0, window_bounds = array<i64: 512, 32>}, {transform_indices = @transform_1, window_bounds = array<i64: 512, 32>}, {transform_indices = @transform_2, window_bounds = array<i64: 512, 32>}, {pipeline_mode = #tpu.pipeline_mode<synchronous>, transform_indices = @transform_3, window_bounds = array<i64: 32, 128>}, {pipeline_mode = #tpu.pipeline_mode<synchronous>, transform_indices = @transform_4, window_bounds = array<i64: 1, 128>}, {pipeline_mode = #tpu.pipeline_mode<synchronous>, transform_indices = @transform_5, window_bounds = array<i64: 128, 32>}, {pipeline_mode = #tpu.pipeline_mode<synchronous>, transform_indices = @transform_6, window_bounds = array<i64: 1, 32>}, {transform_indices = @transform_7, window_bounds = array<i64: 512, 32>}]} {
    %c0 = arith.constant 0 : index
    %c0_0 = arith.constant 0 : index
    %0 = vector.load %arg1[%c0, %c0_0] : memref<512x32xbf16, #tpu.memory_space<vmem>>, vector<512x32xbf16>
    %1 = arith.extf %0 : vector<512x32xbf16> to vector<512x32xf32>
    %c0_1 = arith.constant 0 : index
    %c0_2 = arith.constant 0 : index
    %2 = vector.load %arg2[%c0_1, %c0_2] : memref<512x32xbf16, #tpu.memory_space<vmem>>, vector<512x32xbf16>
    %3 = arith.extf %2 : vector<512x32xbf16> to vector<512x32xf32>
    %4 = arith.addf %1, %3 : vector<512x32xf32>
    %5 = arith.truncf %4 : vector<512x32xf32> to vector<512x32xbf16>
    %c0_3 = arith.constant 0 : index
    %c0_4 = arith.constant 0 : index
    %6 = vector.load %arg4[%c0_3, %c0_4] : memref<32x128xbf16, #tpu.memory_space<vmem>>, vector<32x128xbf16>
    %cst = arith.constant dense<0.000000e+00> : vector<512x128xf32>
    %7 = tpu.matmul %5, %6, %cst {dimension_numbers = #tpu.dot_dimension_numbers<[1], [0], [0], [1], [0, 0, 1, 1], [], []>} : vector<512x32xbf16>, vector<32x128xbf16>, vector<512x128xf32> -> vector<512x128xf32>
    %c0_5 = arith.constant 0 : index
    %c0_6 = arith.constant 0 : index
    %8 = vector.load %arg5[%c0_5, %c0_6] : memref<1x128xf32, #tpu.memory_space<vmem>>, vector<1x128xf32>
    %9 = vector.broadcast %8 : vector<1x128xf32> to vector<512x128xf32>
    %10 = arith.addf %7, %9 : vector<512x128xf32>
    %cst_7 = arith.constant 0.000000e+00 : f32
    %11 = vector.broadcast %cst_7 : f32 to vector<512x128xf32>
    %12 = arith.maximumf %10, %11 : vector<512x128xf32>
    %13 = arith.truncf %12 : vector<512x128xf32> to vector<512x128xbf16>
    %c0_8 = arith.constant 0 : index
    %c0_9 = arith.constant 0 : index
    %14 = vector.load %arg6[%c0_8, %c0_9] : memref<128x32xbf16, #tpu.memory_space<vmem>>, vector<128x32xbf16>
    %cst_10 = arith.constant dense<0.000000e+00> : vector<512x32xf32>
    %15 = tpu.matmul %13, %14, %cst_10 {dimension_numbers = #tpu.dot_dimension_numbers<[1], [0], [0], [1], [0, 0, 1, 1], [], []>} : vector<512x128xbf16>, vector<128x32xbf16>, vector<512x32xf32> -> vector<512x32xf32>
    %c0_11 = arith.constant 0 : index
    %c0_12 = arith.constant 0 : index
    %16 = vector.load %arg7[%c0_11, %c0_12] : memref<1x32xf32, #tpu.memory_space<vmem>>, vector<1x32xf32>
    %17 = vector.broadcast %16 : vector<1x32xf32> to vector<512x32xf32>
    %18 = arith.addf %15, %17 : vector<512x32xf32>
    %c0_13 = arith.constant 0 : index
    %c0_14 = arith.constant 0 : index
    %19 = vector.load %arg3[%c0_13, %c0_14] : memref<512x32xf32, #tpu.memory_space<vmem>>, vector<512x32xf32>
    %20 = arith.addf %18, %19 : vector<512x32xf32>
    %c0_15 = arith.constant 0 : index
    %c0_16 = arith.constant 0 : index
    %21 = vector.load %arg8[%c0_15, %c0_16] : memref<512x32xf32, #tpu.memory_space<vmem>>, vector<512x32xf32>
    tpu.vector_store %arg8[%c0_15, %c0_16], %20 {strides = array<i32>} : memref<512x32xf32, #tpu.memory_space<vmem>>, vector<512x32xf32>,
    return
  }
  func.func @transform_0(%arg0: i32) -> (i32, i32) {
    %c0_i32 = arith.constant 0 : i32
    %c0_i32_0 = arith.constant 0 : i32
    return %arg0, %c0_i32 : i32, i32
  }
  func.func @transform_1(%arg0: i32) -> (i32, i32) {
    %c0_i32 = arith.constant 0 : i32
    %c0_i32_0 = arith.constant 0 : i32
    return %arg0, %c0_i32 : i32, i32
  }
  func.func @transform_2(%arg0: i32) -> (i32, i32) {
    %c0_i32 = arith.constant 0 : i32
    %c0_i32_0 = arith.constant 0 : i32
    return %arg0, %c0_i32 : i32, i32
  }
  func.func @transform_3(%arg0: i32) -> (i32, i32) {
    %c0_i32 = arith.constant 0 : i32
    %c0_i32_0 = arith.constant 0 : i32
    %c0_i32_1 = arith.constant 0 : i32
    return %c0_i32, %c0_i32_0 : i32, i32
  }
  func.func @transform_4(%arg0: i32) -> (i32, i32) {
    %c0_i32 = arith.constant 0 : i32
    %c0_i32_0 = arith.constant 0 : i32
    %c0_i32_1 = arith.constant 0 : i32
    return %c0_i32, %c0_i32_0 : i32, i32
  }
  func.func @transform_5(%arg0: i32) -> (i32, i32) {
    %c0_i32 = arith.constant 0 : i32
    %c0_i32_0 = arith.constant 0 : i32
    %c0_i32_1 = arith.constant 0 : i32
    return %c0_i32, %c0_i32_0 : i32, i32
  }
  func.func @transform_6(%arg0: i32) -> (i32, i32) {
    %c0_i32 = arith.constant 0 : i32
    %c0_i32_0 = arith.constant 0 : i32
    %c0_i32_1 = arith.constant 0 : i32
    return %c0_i32, %c0_i32_0 : i32, i32
  }
  func.func @transform_7(%arg0: i32) -> (i32, i32) {
    %c0_i32 = arith.constant 0 : i32
    %c0_i32_0 = arith.constant 0 : i32
    return %arg0, %c0_i32 : i32, i32
  }
}

module attributes {stable_mosaic.version = 11 : i64} {
  func.func @_ff_residual_kernel(%arg0: i32, %arg1: memref<512x32xbf16, #tpu.memory_space<vmem>>, %arg2: memref<512x32xbf16, #tpu.memory_space<vmem>>, %arg3: memref<512x32xf32, #tpu.memory_space<vmem>>, %arg4: memref<32x128xbf16, #tpu.memory_space<vmem>>, %arg5: memref<1x128xf32, #tpu.memory_space<vmem>>, %arg6: memref<128x32xbf16, #tpu.memory_space<vmem>>, %arg7: memref<1x32xf32, #tpu.memory_space<vmem>>, %arg8: memref<512x32xf32, #tpu.memory_space<vmem>>) attributes {dimension_semantics = [#tpu.dimension_semantics<parallel>], iteration_bounds = array<i64: 3>, scalar_prefetch = 0 : i64, scratch_operands = 0 : i64, tpu.core_type = #tpu.core_type<tc>, window_params = [{transform_indices = @transform_0, window_bounds = array<i64: 512, 32>}, {transform_indices = @transform_1, window_bounds = array<i64: 512, 32>}, {transform_indices = @transform_2, window_bounds = array<i64: 512, 32>}, {pipeline_mode = #tpu.pipeline_mode<synchronous>, transform_indices = @transform_3, window_bounds = array<i64: 32, 128>}, {pipeline_mode = #tpu.pipeline_mode<synchronous>, transform_indices = @transform_4, window_bounds = array<i64: 1, 128>}, {pipeline_mode = #tpu.pipeline_mode<synchronous>, transform_indices = @transform_5, window_bounds = array<i64: 128, 32>}, {pipeline_mode = #tpu.pipeline_mode<synchronous>, transform_indices = @transform_6, window_bounds = array<i64: 1, 32>}, {transform_indices = @transform_7, window_bounds = array<i64: 512, 32>}]} {
    %c0 = arith.constant 0 : index
    %c0_0 = arith.constant 0 : index
    %0 = vector.load %arg1[%c0, %c0_0] : memref<512x32xbf16, #tpu.memory_space<vmem>>, vector<512x32xbf16>
    %1 = arith.extf %0 : vector<512x32xbf16> to vector<512x32xf32>
    %c0_1 = arith.constant 0 : index
    %c0_2 = arith.constant 0 : index
    %2 = vector.load %arg2[%c0_1, %c0_2] : memref<512x32xbf16, #tpu.memory_space<vmem>>, vector<512x32xbf16>
    %3 = arith.extf %2 : vector<512x32xbf16> to vector<512x32xf32>
    %4 = arith.addf %1, %3 : vector<512x32xf32>
    %5 = arith.truncf %4 : vector<512x32xf32> to vector<512x32xbf16>
    %c0_3 = arith.constant 0 : index
    %c0_4 = arith.constant 0 : index
    %6 = vector.load %arg4[%c0_3, %c0_4] : memref<32x128xbf16, #tpu.memory_space<vmem>>, vector<32x128xbf16>
    %cst = arith.constant dense<0.000000e+00> : vector<512x128xf32>
    %7 = tpu.matmul %5, %6, %cst {dimension_numbers = #tpu.dot_dimension_numbers<[1], [0], [0], [1], [0, 0, 1, 1], [], []>} : vector<512x32xbf16>, vector<32x128xbf16>, vector<512x128xf32> -> vector<512x128xf32>
    %c0_5 = arith.constant 0 : index
    %c0_6 = arith.constant 0 : index
    %8 = vector.load %arg5[%c0_5, %c0_6] : memref<1x128xf32, #tpu.memory_space<vmem>>, vector<1x128xf32>
    %9 = vector.broadcast %8 : vector<1x128xf32> to vector<512x128xf32>
    %10 = arith.addf %7, %9 : vector<512x128xf32>
    %cst_7 = arith.constant 0.000000e+00 : f32
    %11 = vector.broadcast %cst_7 : f32 to vector<512x128xf32>
    %12 = arith.maximumf %10, %11 : vector<512x128xf32>
    %13 = arith.truncf %12 : vector<512x128xf32> to vector<512x128xbf16>
    %c0_8 = arith.constant 0 : index
    %c0_9 = arith.constant 0 : index
    %14 = vector.load %arg6[%c0_8, %c0_9] : memref<128x32xbf16, #tpu.memory_space<vmem>>, vector<128x32xbf16>
    %cst_10 = arith.constant dense<0.000000e+00> : vector<512x32xf32>
    %15 = tpu.matmul %13, %14, %cst_10 {dimension_numbers = #tpu.dot_dimension_numbers<[1], [0], [0], [1], [0, 0, 1, 1], [], []>} : vector<512x128xbf16>, vector<128x32xbf16>, vector<512x32xf32> -> vector<512x32xf32>
    %c0_11 = arith.constant 0 : index
    %c0_12 = arith.constant 0 : index
    %16 = vector.load %arg7[%c0_11, %c0_12] : memref<1x32xf32, #tpu.memory_space<vmem>>, vector<1x32xf32>
    %17 = vector.broadcast %16 : vector<1x32xf32> to vector<512x32xf32>
    %18 = arith.addf %15, %17 : vector<512x32xf32>
    %c0_13 = arith.constant 0 : index
    %c0_14 = arith.constant 0 : index
    %19 = vector.load %arg8[%c0_13, %c0_14] : memref<512x32xf32, #tpu.memory_space<vmem>>, vector<512x32xf32>
    tpu.vector_store %arg8[%c0_13, %c0_14], %18 {strides = array<i32>} : memref<512x32xf32, #tpu.memory_space<vmem>>, vector<512x32xf32>,
    return
  }
  func.func @transform_0(%arg0: i32) -> (i32, i32) {
    %c0_i32 = arith.constant 0 : i32
    %c0_i32_0 = arith.constant 0 : i32
    return %arg0, %c0_i32 : i32, i32
  }
  func.func @transform_1(%arg0: i32) -> (i32, i32) {
    %c0_i32 = arith.constant 0 : i32
    %c0_i32_0 = arith.constant 0 : i32
    return %arg0, %c0_i32 : i32, i32
  }
  func.func @transform_2(%arg0: i32) -> (i32, i32) {
    %c0_i32 = arith.constant 0 : i32
    %c0_i32_0 = arith.constant 0 : i32
    return %arg0, %c0_i32 : i32, i32
  }
  func.func @transform_3(%arg0: i32) -> (i32, i32) {
    %c0_i32 = arith.constant 0 : i32
    %c0_i32_0 = arith.constant 0 : i32
    %c0_i32_1 = arith.constant 0 : i32
    return %c0_i32, %c0_i32_0 : i32, i32
  }
  func.func @transform_4(%arg0: i32) -> (i32, i32) {
    %c0_i32 = arith.constant 0 : i32
    %c0_i32_0 = arith.constant 0 : i32
    %c0_i32_1 = arith.constant 0 : i32
    return %c0_i32, %c0_i32_0 : i32, i32
  }
  func.func @transform_5(%arg0: i32) -> (i32, i32) {
    %c0_i32 = arith.constant 0 : i32
    %c0_i32_0 = arith.constant 0 : i32
    %c0_i32_1 = arith.constant 0 : i32
    return %c0_i32, %c0_i32_0 : i32, i32
  }
  func.func @transform_6(%arg0: i32) -> (i32, i32) {
    %c0_i32 = arith.constant 0 : i32
    %c0_i32_0 = arith.constant 0 : i32
    %c0_i32_1 = arith.constant 0 : i32
    return %c0_i32, %c0_i32_0 : i32, i32
  }
  func.func @transform_7(%arg0: i32) -> (i32, i32) {
    %c0_i32 = arith.constant 0 : i32
    %c0_i32_0 = arith.constant 0 : i32
    return %arg0, %c0_i32 : i32, i32
  }
}

module attributes {stable_mosaic.version = 11 : i64} {
  func.func @_head_kernel(%arg0: i32, %arg1: memref<512x32xf32, #tpu.memory_space<vmem>>, %arg2: memref<32x128xbf16, #tpu.memory_space<vmem>>, %arg3: memref<1x128xf32, #tpu.memory_space<vmem>>, %arg4: memref<128x1xbf16, #tpu.memory_space<vmem>>, %arg5: memref<1x1xf32, #tpu.memory_space<vmem>>, %arg6: memref<512x1xf32, #tpu.memory_space<vmem>>) attributes {dimension_semantics = [#tpu.dimension_semantics<parallel>], iteration_bounds = array<i64: 1>, scalar_prefetch = 0 : i64, scratch_operands = 0 : i64, tpu.core_type = #tpu.core_type<tc>, window_params = [{transform_indices = @transform_0, window_bounds = array<i64: 512, 32>}, {pipeline_mode = #tpu.pipeline_mode<synchronous>, transform_indices = @transform_1, window_bounds = array<i64: 32, 128>}, {pipeline_mode = #tpu.pipeline_mode<synchronous>, transform_indices = @transform_2, window_bounds = array<i64: 1, 128>}, {pipeline_mode = #tpu.pipeline_mode<synchronous>, transform_indices = @transform_3, window_bounds = array<i64: 128, 1>}, {pipeline_mode = #tpu.pipeline_mode<synchronous>, transform_indices = @transform_4, window_bounds = array<i64: 1, 1>}, {transform_indices = @transform_5, window_bounds = array<i64: 512, 1>}]} {
    %c0 = arith.constant 0 : index
    %c0_0 = arith.constant 0 : index
    %0 = vector.load %arg1[%c0, %c0_0] : memref<512x32xf32, #tpu.memory_space<vmem>>, vector<512x32xf32>
    %1 = arith.truncf %0 : vector<512x32xf32> to vector<512x32xbf16>
    %c0_1 = arith.constant 0 : index
    %c0_2 = arith.constant 0 : index
    %2 = vector.load %arg2[%c0_1, %c0_2] : memref<32x128xbf16, #tpu.memory_space<vmem>>, vector<32x128xbf16>
    %cst = arith.constant dense<0.000000e+00> : vector<512x128xf32>
    %3 = tpu.matmul %1, %2, %cst {dimension_numbers = #tpu.dot_dimension_numbers<[1], [0], [0], [1], [0, 0, 1, 1], [], []>} : vector<512x32xbf16>, vector<32x128xbf16>, vector<512x128xf32> -> vector<512x128xf32>
    %c0_3 = arith.constant 0 : index
    %c0_4 = arith.constant 0 : index
    %4 = vector.load %arg3[%c0_3, %c0_4] : memref<1x128xf32, #tpu.memory_space<vmem>>, vector<1x128xf32>
    %5 = vector.broadcast %4 : vector<1x128xf32> to vector<512x128xf32>
    %6 = arith.addf %3, %5 : vector<512x128xf32>
    %7 = arith.truncf %6 : vector<512x128xf32> to vector<512x128xbf16>
    %c0_5 = arith.constant 0 : index
    %c0_6 = arith.constant 0 : index
    %8 = vector.load %arg4[%c0_5, %c0_6] : memref<128x1xbf16, #tpu.memory_space<vmem>>, vector<128x1xbf16>
    %cst_7 = arith.constant dense<0.000000e+00> : vector<512x1xf32>
    %9 = tpu.matmul %7, %8, %cst_7 {dimension_numbers = #tpu.dot_dimension_numbers<[1], [0], [0], [1], [0, 0, 1, 1], [], []>} : vector<512x128xbf16>, vector<128x1xbf16>, vector<512x1xf32> -> vector<512x1xf32>
    %c0_8 = arith.constant 0 : index
    %c0_9 = arith.constant 0 : index
    %10 = vector.load %arg5[%c0_8, %c0_9] : memref<1x1xf32, #tpu.memory_space<vmem>>, vector<1x1xf32>
    %11 = vector.broadcast %10 : vector<1x1xf32> to vector<512x1xf32>
    %12 = arith.addf %9, %11 : vector<512x1xf32>
    %c0_10 = arith.constant 0 : index
    %c0_11 = arith.constant 0 : index
    %13 = vector.load %arg6[%c0_10, %c0_11] : memref<512x1xf32, #tpu.memory_space<vmem>>, vector<512x1xf32>
    tpu.vector_store %arg6[%c0_10, %c0_11], %12 {strides = array<i32>} : memref<512x1xf32, #tpu.memory_space<vmem>>, vector<512x1xf32>,
    return
  }
  func.func @transform_0(%arg0: i32) -> (i32, i32) {
    %c0_i32 = arith.constant 0 : i32
    %c0_i32_0 = arith.constant 0 : i32
    return %arg0, %c0_i32 : i32, i32
  }
  func.func @transform_1(%arg0: i32) -> (i32, i32) {
    %c0_i32 = arith.constant 0 : i32
    %c0_i32_0 = arith.constant 0 : i32
    %c0_i32_1 = arith.constant 0 : i32
    return %c0_i32, %c0_i32_0 : i32, i32
  }
  func.func @transform_2(%arg0: i32) -> (i32, i32) {
    %c0_i32 = arith.constant 0 : i32
    %c0_i32_0 = arith.constant 0 : i32
    %c0_i32_1 = arith.constant 0 : i32
    return %c0_i32, %c0_i32_0 : i32, i32
  }
  func.func @transform_3(%arg0: i32) -> (i32, i32) {
    %c0_i32 = arith.constant 0 : i32
    %c0_i32_0 = arith.constant 0 : i32
    %c0_i32_1 = arith.constant 0 : i32
    return %c0_i32, %c0_i32_0 : i32, i32
  }
  func.func @transform_4(%arg0: i32) -> (i32, i32) {
    %c0_i32 = arith.constant 0 : i32
    %c0_i32_0 = arith.constant 0 : i32
    %c0_i32_1 = arith.constant 0 : i32
    return %c0_i32, %c0_i32_0 : i32, i32
  }
  func.func @transform_5(%arg0: i32) -> (i32, i32) {
    %c0_i32 = arith.constant 0 : i32
    %c0_i32_0 = arith.constant 0 : i32
    return %arg0, %c0_i32 : i32, i32
  }
}

</mosaic_0001>

<bundles_post_ra>
// kernel: ffno_forward.16
= control target key start
LH: loop header
LB: loop body
LE: loop exit
PB: predicated region body
PF: predicated region fallthrough
CT: control target
= control target key end

     0   :  { %vm216_vm0 = vcmask 1041408   ;;  %vm217_vm1 = vcmask 1042432   ;;  %v716_v1 = vmov 65535   ;;  %vm119_vm2 = vcmask 39936   ;;  %s1289_s1 = inlined_call_operand.vmem [shape: bf16[5,32], index: 1, kind: input, shape index: {}]   ;;  %s1290_s0 = inlined_call_operand.vmem [shape: f32[512,5], index: 0, kind: input, shape index: {}]   ;;  %s1291_s2 = inlined_call_operand.vmem [shape: f32[1,32], index: 2, kind: input, shape index: {}]   ;;  %s1292_s3 = inlined_call_operand.vmem [shape: f32[512,32], index: 3, kind: output, shape index: {}]  }
   0x1   :  { %v111_v0 = vld [vmem:[%s1289_s1] sm:$0x7]  ;;  %v218_v2 = vsel %vm216_vm0, 4294967295, %v716_v1  ;;  %v16_v4 = vld [vmem:[%s1290_s0 + $0x8] sm:$0xff]  ;;  %v17_v9 = vld [vmem:[%s1290_s0 + $0x10] sm:$0xff]  ;;  %vm512_vm3 = vcmask 261120  }
   0x2   :  { %v15_v3 = vld [vmem:[%s1290_s0] sm:$0xff]  ;;  %v219_v5 = vsel %vm217_vm1, %v218_v2, 0  ;;  %v48_v8 = vld [vmem:[%s1290_s0 + $0x108] sm:$0xff]  ;;  %v18_v12 = vld [vmem:[%s1290_s0 + $0x18] sm:$0xff] }
   0x3   :  { %v79_v6 = vpack.c.bf16 %v16_v4, %v15_v3  ;;  %v47_v7 = vld [vmem:[%s1290_s0 + $0x100] sm:$0xff]  ;;  %v221_v10 = vand.u32 %v219_v5, %v111_v0  ;;  %v49_v13 = vld [vmem:[%s1290_s0 + $0x110] sm:$0xff]  ;;  %v50_v14 = vld [vmem:[%s1290_s0 + $0x118] sm:$0xff]  ;;  %v80_v18 = vpack.c.bf16 %v18_v12, %v17_v9 }
   0x4   :  { %v95_v11 = vpack.c.bf16 %v48_v8, %v47_v7  ;;  %v19_v15 = vld [vmem:[%s1290_s0 + $0x20] sm:$0xff]  ;;  %v20_v16 = vld [vmem:[%s1290_s0 + $0x28] sm:$0xff]  ;;  %v96_v19 = vpack.c.bf16 %v50_v14, %v49_v13  ;;  %v21_v23 = vld [vmem:[%s1290_s0 + $0x30] sm:$0xff] }
   0x5   :  { %649 = vmatprep.mubr.msk.bf16.mxu0 %vm119_vm2, %v79_v6  ;;  %v51_v17 = vld [vmem:[%s1290_s0 + $0x120] sm:$0xff]  ;;  %647 = vmatprep.subr.bf16.mxu0 %v221_v10  ;;  %v52_v20 = vld [vmem:[%s1290_s0 + $0x128] sm:$0xff]  ;;  %v81_v21 = vpack.c.bf16 %v20_v16, %v19_v15  ;;  %v22_v24 = vld [vmem:[%s1290_s0 + $0x38] sm:$0xff] }
   0x6   :  { %713 = vmatprep.subr.bf16.mxu1 %v221_v10  ;;  %648 = vmatpush3.bf16.msra.mxu0 %v221_v10  ;;  %v97_v22 = vpack.c.bf16 %v52_v20, %v51_v17  ;;  %v53_v25 = vld [vmem:[%s1290_s0 + $0x130] sm:$0xff]  ;;  %v54_v26 = vld [vmem:[%s1290_s0 + $0x138] sm:$0xff]  ;;  %v23_v27 = vld [vmem:[%s1290_s0 + $0x40] sm:$0xff]  ;;  %v82_v31 = vpack.c.bf16 %v22_v24, %v21_v23 }
   0x7   :  { %714 = vmatpush3.bf16.msra.mxu1 %v221_v10  ;;  %681 = vmatprep.mubr.msk.bf16.mxu1 %vm119_vm2, %v95_v11  ;;  %v24_v28 = vld [vmem:[%s1290_s0 + $0x48] sm:$0xff]  ;;  %v55_v29 = vld [vmem:[%s1290_s0 + $0x140] sm:$0xff]  ;;  %v98_v32 = vpack.c.bf16 %v54_v26, %v53_v25  ;;  %v25_v35 = vld [vmem:[%s1290_s0 + $0x50] sm:$0xff] }
   0x8   :  { %v56_v30 = vld [vmem:[%s1290_s0 + $0x148] sm:$0xff]  ;;  %v83_v33 = vpack.c.bf16 %v24_v28, %v23_v27  ;;  %v26_v36 = vld [vmem:[%s1290_s0 + $0x58] sm:$0xff]  ;;  %v57_v37 = vld [vmem:[%s1290_s0 + $0x150] sm:$0xff] }
   0x9   :  { %650 = vmatmul.mubr.msk.bf16.vlgmr.msra.gmra.mrb[0].mxu0 %vm119_vm2, %v80_v18  ;;  %v99_v34 = vpack.c.bf16 %v56_v30, %v55_v29  ;;  %v58_v38 = vld [vmem:[%s1290_s0 + $0x158] sm:$0xff]  ;;  %v27_v39 = vld [vmem:[%s1290_s0 + $0x60] sm:$0xff]  ;;  %v28_v40 = vld [vmem:[%s1290_s0 + $0x68] sm:$0xff]  ;;  %v84_v43 = vpack.c.bf16 %v26_v36, %v25_v35 }
   0xa   :  { %682 = vmatmul.mubr.msk.bf16.vlgmr.msra.gmra.mrb[0].mxu1 %vm119_vm2, %v96_v19  ;;  %653 = vmatprep.mubr.msk.bf16.mxu0 %vm119_vm2, %v81_v21  ;;  %v59_v41 = vld [vmem:[%s1290_s0 + $0x160] sm:$0xff]  ;;  %v60_v42 = vld [vmem:[%s1290_s0 + $0x168] sm:$0xff]  ;;  %v100_v44 = vpack.c.bf16 %v58_v38, %v57_v37  ;;  %v85_v45 = vpack.c.bf16 %v28_v40, %v27_v39  ;;  %v29_v47 = vld [vmem:[%s1290_s0 + $0x70] sm:$0xff] }
   0xb   :  { %685 = vmatprep.mubr.msk.bf16.mxu1 %vm119_vm2, %v97_v22  ;;  %v101_v46 = vpack.c.bf16 %v60_v42, %v59_v41  ;;  %v30_v48 = vld [vmem:[%s1290_s0 + $0x78] sm:$0xff]  ;;  %v61_v49 = vld [vmem:[%s1290_s0 + $0x170] sm:$0xff]  ;;  %v31_v51 = vld [vmem:[%s1290_s0 + $0x80] sm:$0xff] }
   0xc   :  { %v62_v50 = vld [vmem:[%s1290_s0 + $0x178] sm:$0xff]  ;;  %v32_v52 = vld [vmem:[%s1290_s0 + $0x88] sm:$0xff]  ;;  %v63_v53 = vld [vmem:[%s1290_s0 + $0x180] sm:$0xff]  ;;  %v86_v55 = vpack.c.bf16 %v30_v48, %v29_v47 }
   0xd   :  { %v64_v54 = vld [vmem:[%s1290_s0 + $0x188] sm:$0xff]  ;;  %v102_v56 = vpack.c.bf16 %v62_v50, %v61_v49  ;;  %v87_v57 = vpack.c.bf16 %v32_v52, %v31_v51  ;;  %v33_v59 = vld [vmem:[%s1290_s0 + $0x90] sm:$0xff]  ;;  %v34_v60 = vld [vmem:[%s1290_s0 + $0x98] sm:$0xff] }
   0xe   :  { %v103_v58 = vpack.c.bf16 %v64_v54, %v63_v53  ;;  %v65_v61 = vld [vmem:[%s1290_s0 + $0x190] sm:$0xff]  ;;  %v66_v62 = vld [vmem:[%s1290_s0 + $0x198] sm:$0xff]  ;;  %v35_v63 = vld [vmem:[%s1290_s0 + $0xa0] sm:$0xff]  ;;  %v88_v3 = vpack.c.bf16 %v34_v60, %v33_v59 }
   0xf   :  { %v36_v0 = vld [vmem:[%s1290_s0 + $0xa8] sm:$0xff]  ;;  %v67_v1 = vld [vmem:[%s1290_s0 + $0x1a0] sm:$0xff]  ;;  %v104_v4 = vpack.c.bf16 %v66_v62, %v65_v61  ;;  %v37_v7 = vld [vmem:[%s1290_s0 + $0xb0] sm:$0xff] }
  0x10   :  { %v68_v2 = vld [vmem:[%s1290_s0 + $0x1a8] sm:$0xff]  ;;  %v89_v5 = vpack.c.bf16 %v36_v0, %v35_v63  ;;  %v38_v8 = vld [vmem:[%s1290_s0 + $0xb8] sm:$0xff]  ;;  %v69_v9 = vld [vmem:[%s1290_s0 + $0x1b0] sm:$0xff] }
  0x11   :  { %654 = vmatmul.mubr.msk.bf16.gmra.mrb[4].mxu0 %vm119_vm2, %v82_v31  ;;  %v105_v6 = vpack.c.bf16 %v68_v2, %v67_v1  ;;  %v70_v10 = vld [vmem:[%s1290_s0 + $0x1b8] sm:$0xff]  ;;  %v39_v11 = vld [vmem:[%s1290_s0 + $0xc0] sm:$0xff]  ;;  %v40_v12 = vld [vmem:[%s1290_s0 + $0xc8] sm:$0xff]  ;;  %v90_v15 = vpack.c.bf16 %v38_v8, %v37_v7 }
  0x12   :  { %686 = vmatmul.mubr.msk.bf16.gmra.mrb[4].mxu1 %vm119_vm2, %v98_v32  ;;  %657 = vmatprep.mubr.msk.bf16.mxu0 %vm119_vm2, %v83_v33  ;;  %v71_v13 = vld [vmem:[%s1290_s0 + $0x1c0] sm:$0xff]  ;;  %v72_v14 = vld [vmem:[%s1290_s0 + $0x1c8] sm:$0xff]  ;;  %v106_v16 = vpack.c.bf16 %v70_v10, %v69_v9  ;;  %v91_v17 = vpack.c.bf16 %v40_v12, %v39_v11  ;;  %v41_v19 = vld [vmem:[%s1290_s0 + $0xd0] sm:$0xff] }
  0x13   :  { %689 = vmatprep.mubr.msk.bf16.mxu1 %vm119_vm2, %v99_v34  ;;  %v107_v18 = vpack.c.bf16 %v72_v14, %v71_v13  ;;  %v42_v20 = vld [vmem:[%s1290_s0 + $0xd8] sm:$0xff]  ;;  %v73_v21 = vld [vmem:[%s1290_s0 + $0x1d0] sm:$0xff]  ;;  %v43_v23 = vld [vmem:[%s1290_s0 + $0xe0] sm:$0xff] }
  0x14   :  { %v74_v22 = vld [vmem:[%s1290_s0 + $0x1d8] sm:$0xff]  ;;  %v44_v24 = vld [vmem:[%s1290_s0 + $0xe8] sm:$0xff]  ;;  %v75_v25 = vld [vmem:[%s1290_s0 + $0x1e0] sm:$0xff]  ;;  %v92_v27 = vpack.c.bf16 %v42_v20, %v41_v19 }
  0x15   :  { %v76_v26 = vld [vmem:[%s1290_s0 + $0x1e8] sm:$0xff]  ;;  %v108_v28 = vpack.c.bf16 %v74_v22, %v73_v21  ;;  %v93_v29 = vpack.c.bf16 %v44_v24, %v43_v23  ;;  %v45_v31 = vld [vmem:[%s1290_s0 + $0xf0] sm:$0xff]  ;;  %v46_v32 = vld [vmem:[%s1290_s0 + $0xf8] sm:$0xff] }
  0x16   :  { %v109_v30 = vpack.c.bf16 %v76_v26, %v75_v25  ;;  %v77_v33 = vld [vmem:[%s1290_s0 + $0x1f0] sm:$0xff]  ;;  %v78_v34 = vld [vmem:[%s1290_s0 + $0x1f8] sm:$0xff]  ;;  %v94_v35 = vpack.c.bf16 %v46_v32, %v45_v31  ;;  %v967_v37 = vld [vmem:[%s1291_s2] ss:$0 sm:$0xff] }
  0x17   :  { %v110_v36 = vpack.c.bf16 %v78_v34, %v77_v33 }
  0x19   :  { %658 = vmatmul.mubr.msk.bf16.gmra.mrb[8].mxu0 %vm119_vm2, %v84_v43 }
  0x1a   :  { %690 = vmatmul.mubr.msk.bf16.gmra.mrb[8].mxu1 %vm119_vm2, %v100_v44  ;;  %661 = vmatprep.mubr.msk.bf16.mxu0 %vm119_vm2, %v85_v45 }
  0x1b   :  { %693 = vmatprep.mubr.msk.bf16.mxu1 %vm119_vm2, %v101_v46 }
  0x21   :  { %662 = vmatmul.mubr.msk.bf16.gmra.mrb[12].mxu0 %vm119_vm2, %v86_v55 }
  0x22   :  { %694 = vmatmul.mubr.msk.bf16.gmra.mrb[12].mxu1 %vm119_vm2, %v102_v56  ;;  %665 = vmatprep.mubr.msk.bf16.mxu0 %vm119_vm2, %v87_v57 }
  0x23   :  { %697 = vmatprep.mubr.msk.bf16.mxu1 %vm119_vm2, %v103_v58 }
  0x29   :  { %666 = vmatmul.mubr.msk.bf16.gmra.mrb[16].mxu0 %vm119_vm2, %v88_v3 }
  0x2a   :  { %698 = vmatmul.mubr.msk.bf16.gmra.mrb[16].mxu1 %vm119_vm2, %v104_v4  ;;  %669 = vmatprep.mubr.msk.bf16.mxu0 %vm119_vm2, %v89_v5 }
  0x2b   :  { %701 = vmatprep.mubr.msk.bf16.mxu1 %vm119_vm2, %v105_v6 }
  0x31   :  { %670 = vmatmul.mubr.msk.bf16.gmra.mrb[20].mxu0 %vm119_vm2, %v90_v15 }
  0x32   :  { %702 = vmatmul.mubr.msk.bf16.gmra.mrb[20].mxu1 %vm119_vm2, %v106_v16  ;;  %673 = vmatprep.mubr.msk.bf16.mxu0 %vm119_vm2, %v91_v17 }
  0x33   :  { %705 = vmatprep.mubr.msk.bf16.mxu1 %vm119_vm2, %v107_v18 }
  0x39   :  { %674 = vmatmul.mubr.msk.bf16.gmra.mrb[24].mxu0 %vm119_vm2, %v92_v27 }
  0x3a   :  { %706 = vmatmul.mubr.msk.bf16.gmra.mrb[24].mxu1 %vm119_vm2, %v108_v28  ;;  %677 = vmatprep.mubr.msk.bf16.mxu0 %vm119_vm2, %v93_v29 }
  0x3b   :  { %709 = vmatprep.mubr.msk.bf16.mxu1 %vm119_vm2, %v109_v30 }
  0x41   :  { %678 = vmatmul.mubr.msk.bf16.gmra.mrb[28].mxu0 %vm119_vm2, %v94_v35 }
  0x42   :  { %710 = vmatmul.mubr.msk.bf16.gmra.mrb[28].mxu1 %vm119_vm2, %v110_v36 }
  0xdc   :  { %v651_v38 = vpop.f32.mrb[0].mxu0 }
  0xdd   :  { %v683_v39 = vpop.f32.mrb[0].mxu1  ;;  %v266_v40 = vadd.f32 %v651_v38, %v967_v37  ;;  %v257_v42 = vpop.f32.mrb[1].mxu0 }
  0xde   :  { %v394_v41 = vadd.f32 %v683_v39, %v967_v37  ;;  %v385_v43 = vpop.f32.mrb[1].mxu1  ;;  %v258_v44 = vadd.f32 %v967_v37, %v257_v42  ;;  %v652_v46 = vpop.f32.mrb[2].mxu0 }
  0xdf   :  { %v386_v45 = vadd.f32 %v967_v37, %v385_v43  ;;  %v684_v47 = vpop.f32.mrb[2].mxu1  ;;  %515 = vst.msk [vmem:[%s1292_s3 + $0x10] sm:$0xff] %vm512_vm3, %v266_v40  ;;  %v269_v48 = vadd.f32 %v652_v46, %v967_v37  ;;  %v260_v50 = vpop.f32.mrb[3].mxu0 }
  0xe0   :  { %547 = vst.msk [vmem:[%s1292_s3 + $0x110] sm:$0xff] %vm512_vm3, %v394_v41  ;;  %v397_v49 = vadd.f32 %v684_v47, %v967_v37  ;;  %v388_v51 = vpop.f32.mrb[3].mxu1  ;;  %513 = vst.msk [vmem:[%s1292_s3] sm:$0xff] %vm512_vm3, %v258_v44  ;;  %v261_v52 = vadd.f32 %v967_v37, %v260_v50 }
  0xe1   :  { %545 = vst.msk [vmem:[%s1292_s3 + $0x100] sm:$0xff] %vm512_vm3, %v386_v45  ;;  %v389_v53 = vadd.f32 %v967_v37, %v388_v51  ;;  %516 = vst.msk [vmem:[%s1292_s3 + $0x18] sm:$0xff] %vm512_vm3, %v269_v48 }
  0xe2   :  { %548 = vst.msk [vmem:[%s1292_s3 + $0x118] sm:$0xff] %vm512_vm3, %v397_v49  ;;  %514 = vst.msk [vmem:[%s1292_s3 + $0x8] sm:$0xff] %vm512_vm3, %v261_v52 }
  0xe3   :  { %546 = vst.msk [vmem:[%s1292_s3 + $0x108] sm:$0xff] %vm512_vm3, %v389_v53 }
  0xe4   :  { %v655_v54 = vpop.f32.mrb[4].mxu0 }
  0xe5   :  { %v687_v55 = vpop.f32.mrb[4].mxu1  ;;  %v282_v56 = vadd.f32 %v655_v54, %v967_v37  ;;  %v273_v58 = vpop.f32.mrb[5].mxu0 }
  0xe6   :  { %v410_v57 = vadd.f32 %v687_v55, %v967_v37  ;;  %v401_v59 = vpop.f32.mrb[5].mxu1  ;;  %v274_v60 = vadd.f32 %v967_v37, %v273_v58  ;;  %v656_v62 = vpop.f32.mrb[6].mxu0 }
  0xe7   :  { %v402_v61 = vadd.f32 %v967_v37, %v401_v59  ;;  %v688_v63 = vpop.f32.mrb[6].mxu1  ;;  %519 = vst.msk [vmem:[%s1292_s3 + $0x30] sm:$0xff] %vm512_vm3, %v282_v56  ;;  %v285_v0 = vadd.f32 %v656_v62, %v967_v37  ;;  %v276_v2 = vpop.f32.mrb[7].mxu0 }
  0xe8   :  { %551 = vst.msk [vmem:[%s1292_s3 + $0x130] sm:$0xff] %vm512_vm3, %v410_v57  ;;  %v413_v1 = vadd.f32 %v688_v63, %v967_v37  ;;  %v404_v3 = vpop.f32.mrb[7].mxu1  ;;  %517 = vst.msk [vmem:[%s1292_s3 + $0x20] sm:$0xff] %vm512_vm3, %v274_v60  ;;  %v277_v4 = vadd.f32 %v967_v37, %v276_v2 }
  0xe9   :  { %549 = vst.msk [vmem:[%s1292_s3 + $0x120] sm:$0xff] %vm512_vm3, %v402_v61  ;;  %v405_v5 = vadd.f32 %v967_v37, %v404_v3  ;;  %520 = vst.msk [vmem:[%s1292_s3 + $0x38] sm:$0xff] %vm512_vm3, %v285_v0 }
  0xea   :  { %552 = vst.msk [vmem:[%s1292_s3 + $0x138] sm:$0xff] %vm512_vm3, %v413_v1  ;;  %518 = vst.msk [vmem:[%s1292_s3 + $0x28] sm:$0xff] %vm512_vm3, %v277_v4 }
  0xeb   :  { %550 = vst.msk [vmem:[%s1292_s3 + $0x128] sm:$0xff] %vm512_vm3, %v405_v5 }
  0xec   :  { %v659_v6 = vpop.f32.mrb[8].mxu0 }
  0xed   :  { %v691_v7 = vpop.f32.mrb[8].mxu1  ;;  %v298_v8 = vadd.f32 %v659_v6, %v967_v37  ;;  %v289_v10 = vpop.f32.mrb[9].mxu0 }
  0xee   :  { %v426_v9 = vadd.f32 %v691_v7, %v967_v37  ;;  %v417_v11 = vpop.f32.mrb[9].mxu1  ;;  %v290_v12 = vadd.f32 %v967_v37, %v289_v10  ;;  %v660_v14 = vpop.f32.mrb[10].mxu0 }
  0xef   :  { %v418_v13 = vadd.f32 %v967_v37, %v417_v11  ;;  %v692_v15 = vpop.f32.mrb[10].mxu1  ;;  %523 = vst.msk [vmem:[%s1292_s3 + $0x50] sm:$0xff] %vm512_vm3, %v298_v8  ;;  %v301_v16 = vadd.f32 %v660_v14, %v967_v37  ;;  %v292_v18 = vpop.f32.mrb[11].mxu0 }
  0xf0   :  { %555 = vst.msk [vmem:[%s1292_s3 + $0x150] sm:$0xff] %vm512_vm3, %v426_v9  ;;  %v429_v17 = vadd.f32 %v692_v15, %v967_v37  ;;  %v420_v19 = vpop.f32.mrb[11].mxu1  ;;  %521 = vst.msk [vmem:[%s1292_s3 + $0x40] sm:$0xff] %vm512_vm3, %v290_v12  ;;  %v293_v20 = vadd.f32 %v967_v37, %v292_v18 }
  0xf1   :  { %553 = vst.msk [vmem:[%s1292_s3 + $0x140] sm:$0xff] %vm512_vm3, %v418_v13  ;;  %v421_v21 = vadd.f32 %v967_v37, %v420_v19  ;;  %524 = vst.msk [vmem:[%s1292_s3 + $0x58] sm:$0xff] %vm512_vm3, %v301_v16 }
  0xf2   :  { %556 = vst.msk [vmem:[%s1292_s3 + $0x158] sm:$0xff] %vm512_vm3, %v429_v17  ;;  %522 = vst.msk [vmem:[%s1292_s3 + $0x48] sm:$0xff] %vm512_vm3, %v293_v20 }
  0xf3   :  { %554 = vst.msk [vmem:[%s1292_s3 + $0x148] sm:$0xff] %vm512_vm3, %v421_v21 }
  0xf4   :  { %v663_v22 = vpop.f32.mrb[12].mxu0 }
  0xf5   :  { %v695_v23 = vpop.f32.mrb[12].mxu1  ;;  %v314_v24 = vadd.f32 %v663_v22, %v967_v37  ;;  %v305_v26 = vpop.f32.mrb[13].mxu0 }
  0xf6   :  { %v442_v25 = vadd.f32 %v695_v23, %v967_v37  ;;  %v433_v27 = vpop.f32.mrb[13].mxu1  ;;  %v306_v28 = vadd.f32 %v967_v37, %v305_v26  ;;  %v664_v30 = vpop.f32.mrb[14].mxu0 }
  0xf7   :  { %v434_v29 = vadd.f32 %v967_v37, %v433_v27  ;;  %v696_v31 = vpop.f32.mrb[14].mxu1  ;;  %527 = vst.msk [vmem:[%s1292_s3 + $0x70] sm:$0xff] %vm512_vm3, %v314_v24  ;;  %v317_v32 = vadd.f32 %v664_v30, %v967_v37  ;;  %v308_v34 = vpop.f32.mrb[15].mxu0 }
  0xf8   :  { %559 = vst.msk [vmem:[%s1292_s3 + $0x170] sm:$0xff] %vm512_vm3, %v442_v25  ;;  %v445_v33 = vadd.f32 %v696_v31, %v967_v37  ;;  %v436_v35 = vpop.f32.mrb[15].mxu1  ;;  %525 = vst.msk [vmem:[%s1292_s3 + $0x60] sm:$0xff] %vm512_vm3, %v306_v28  ;;  %v309_v36 = vadd.f32 %v967_v37, %v308_v34 }
  0xf9   :  { %557 = vst.msk [vmem:[%s1292_s3 + $0x160] sm:$0xff] %vm512_vm3, %v434_v29  ;;  %v437_v38 = vadd.f32 %v967_v37, %v436_v35  ;;  %528 = vst.msk [vmem:[%s1292_s3 + $0x78] sm:$0xff] %vm512_vm3, %v317_v32 }
  0xfa   :  { %560 = vst.msk [vmem:[%s1292_s3 + $0x178] sm:$0xff] %vm512_vm3, %v445_v33  ;;  %526 = vst.msk [vmem:[%s1292_s3 + $0x68] sm:$0xff] %vm512_vm3, %v309_v36 }
  0xfb   :  { %558 = vst.msk [vmem:[%s1292_s3 + $0x168] sm:$0xff] %vm512_vm3, %v437_v38 }
  0xfc   :  { %v667_v39 = vpop.f32.mrb[16].mxu0 }
  0xfd   :  { %v699_v40 = vpop.f32.mrb[16].mxu1  ;;  %v330_v41 = vadd.f32 %v667_v39, %v967_v37  ;;  %v321_v43 = vpop.f32.mrb[17].mxu0 }
  0xfe   :  { %v458_v42 = vadd.f32 %v699_v40, %v967_v37  ;;  %v449_v44 = vpop.f32.mrb[17].mxu1  ;;  %v322_v45 = vadd.f32 %v967_v37, %v321_v43  ;;  %v668_v47 = vpop.f32.mrb[18].mxu0 }
  0xff   :  { %v450_v46 = vadd.f32 %v967_v37, %v449_v44  ;;  %v700_v48 = vpop.f32.mrb[18].mxu1  ;;  %531 = vst.msk [vmem:[%s1292_s3 + $0x90] sm:$0xff] %vm512_vm3, %v330_v41  ;;  %v333_v49 = vadd.f32 %v668_v47, %v967_v37  ;;  %v324_v51 = vpop.f32.mrb[19].mxu0 }
 0x100   :  { %563 = vst.msk [vmem:[%s1292_s3 + $0x190] sm:$0xff] %vm512_vm3, %v458_v42  ;;  %v461_v50 = vadd.f32 %v700_v48, %v967_v37  ;;  %v452_v52 = vpop.f32.mrb[19].mxu1  ;;  %529 = vst.msk [vmem:[%s1292_s3 + $0x80] sm:$0xff] %vm512_vm3, %v322_v45  ;;  %v325_v53 = vadd.f32 %v967_v37, %v324_v51 }
 0x101   :  { %561 = vst.msk [vmem:[%s1292_s3 + $0x180] sm:$0xff] %vm512_vm3, %v450_v46  ;;  %v453_v54 = vadd.f32 %v967_v37, %v452_v52  ;;  %532 = vst.msk [vmem:[%s1292_s3 + $0x98] sm:$0xff] %vm512_vm3, %v333_v49 }
 0x102   :  { %564 = vst.msk [vmem:[%s1292_s3 + $0x198] sm:$0xff] %vm512_vm3, %v461_v50  ;;  %530 = vst.msk [vmem:[%s1292_s3 + $0x88] sm:$0xff] %vm512_vm3, %v325_v53 }
 0x103   :  { %562 = vst.msk [vmem:[%s1292_s3 + $0x188] sm:$0xff] %vm512_vm3, %v453_v54 }
 0x104   :  { %v671_v55 = vpop.f32.mrb[20].mxu0 }
 0x105   :  { %v703_v56 = vpop.f32.mrb[20].mxu1  ;;  %v346_v57 = vadd.f32 %v671_v55, %v967_v37  ;;  %v337_v59 = vpop.f32.mrb[21].mxu0 }
 0x106   :  { %v474_v58 = vadd.f32 %v703_v56, %v967_v37  ;;  %v465_v60 = vpop.f32.mrb[21].mxu1  ;;  %v338_v61 = vadd.f32 %v967_v37, %v337_v59  ;;  %v672_v63 = vpop.f32.mrb[22].mxu0 }
 0x107   :  { %v466_v62 = vadd.f32 %v967_v37, %v465_v60  ;;  %v704_v0 = vpop.f32.mrb[22].mxu1  ;;  %535 = vst.msk [vmem:[%s1292_s3 + $0xb0] sm:$0xff] %vm512_vm3, %v346_v57  ;;  %v349_v1 = vadd.f32 %v672_v63, %v967_v37  ;;  %v340_v3 = vpop.f32.mrb[23].mxu0 }
 0x108   :  { %567 = vst.msk [vmem:[%s1292_s3 + $0x1b0] sm:$0xff] %vm512_vm3, %v474_v58  ;;  %v477_v2 = vadd.f32 %v704_v0, %v967_v37  ;;  %v468_v4 = vpop.f32.mrb[23].mxu1  ;;  %533 = vst.msk [vmem:[%s1292_s3 + $0xa0] sm:$0xff] %vm512_vm3, %v338_v61  ;;  %v341_v5 = vadd.f32 %v967_v37, %v340_v3 }
 0x109   :  { %565 = vst.msk [vmem:[%s1292_s3 + $0x1a0] sm:$0xff] %vm512_vm3, %v466_v62  ;;  %v469_v6 = vadd.f32 %v967_v37, %v468_v4  ;;  %536 = vst.msk [vmem:[%s1292_s3 + $0xb8] sm:$0xff] %vm512_vm3, %v349_v1 }
 0x10a   :  { %568 = vst.msk [vmem:[%s1292_s3 + $0x1b8] sm:$0xff] %vm512_vm3, %v477_v2  ;;  %534 = vst.msk [vmem:[%s1292_s3 + $0xa8] sm:$0xff] %vm512_vm3, %v341_v5 }
 0x10b   :  { %566 = vst.msk [vmem:[%s1292_s3 + $0x1a8] sm:$0xff] %vm512_vm3, %v469_v6 }
 0x10c   :  { %v675_v7 = vpop.f32.mrb[24].mxu0 }
 0x10d   :  { %v707_v8 = vpop.f32.mrb[24].mxu1  ;;  %v362_v9 = vadd.f32 %v675_v7, %v967_v37  ;;  %v353_v11 = vpop.f32.mrb[25].mxu0 }
 0x10e   :  { %v490_v10 = vadd.f32 %v707_v8, %v967_v37  ;;  %v481_v12 = vpop.f32.mrb[25].mxu1  ;;  %v354_v13 = vadd.f32 %v967_v37, %v353_v11  ;;  %v676_v15 = vpop.f32.mrb[26].mxu0 }
 0x10f   :  { %v482_v14 = vadd.f32 %v967_v37, %v481_v12  ;;  %v708_v16 = vpop.f32.mrb[26].mxu1  ;;  %539 = vst.msk [vmem:[%s1292_s3 + $0xd0] sm:$0xff] %vm512_vm3, %v362_v9  ;;  %v365_v17 = vadd.f32 %v676_v15, %v967_v37  ;;  %v356_v19 = vpop.f32.mrb[27].mxu0 }
 0x110   :  { %571 = vst.msk [vmem:[%s1292_s3 + $0x1d0] sm:$0xff] %vm512_vm3, %v490_v10  ;;  %v493_v18 = vadd.f32 %v708_v16, %v967_v37  ;;  %v484_v20 = vpop.f32.mrb[27].mxu1  ;;  %537 = vst.msk [vmem:[%s1292_s3 + $0xc0] sm:$0xff] %vm512_vm3, %v354_v13  ;;  %v357_v21 = vadd.f32 %v967_v37, %v356_v19 }
 0x111   :  { %569 = vst.msk [vmem:[%s1292_s3 + $0x1c0] sm:$0xff] %vm512_vm3, %v482_v14  ;;  %v485_v22 = vadd.f32 %v967_v37, %v484_v20  ;;  %540 = vst.msk [vmem:[%s1292_s3 + $0xd8] sm:$0xff] %vm512_vm3, %v365_v17 }
 0x112   :  { %572 = vst.msk [vmem:[%s1292_s3 + $0x1d8] sm:$0xff] %vm512_vm3, %v493_v18  ;;  %538 = vst.msk [vmem:[%s1292_s3 + $0xc8] sm:$0xff] %vm512_vm3, %v357_v21 }
 0x113   :  { %570 = vst.msk [vmem:[%s1292_s3 + $0x1c8] sm:$0xff] %vm512_vm3, %v485_v22 }
 0x114   :  { %v679_v23 = vpop.f32.mrb[28].mxu0 }
 0x115   :  { %v711_v24 = vpop.f32.mrb[28].mxu1  ;;  %v378_v25 = vadd.f32 %v679_v23, %v967_v37  ;;  %v369_v27 = vpop.f32.mrb[29].mxu0 }
 0x116   :  { %v506_v26 = vadd.f32 %v711_v24, %v967_v37  ;;  %v497_v28 = vpop.f32.mrb[29].mxu1  ;;  %v370_v29 = vadd.f32 %v967_v37, %v369_v27  ;;  %v680_v31 = vpop.f32.mrb[30].mxu0 }
 0x117   :  { %v498_v30 = vadd.f32 %v967_v37, %v497_v28  ;;  %v712_v32 = vpop.f32.mrb[30].mxu1  ;;  %543 = vst.msk [vmem:[%s1292_s3 + $0xf0] sm:$0xff] %vm512_vm3, %v378_v25  ;;  %v381_v33 = vadd.f32 %v680_v31, %v967_v37  ;;  %v372_v35 = vpop.f32.mrb[31].mxu0 }
 0x118   :  { %575 = vst.msk [vmem:[%s1292_s3 + $0x1f0] sm:$0xff] %vm512_vm3, %v506_v26  ;;  %v509_v34 = vadd.f32 %v712_v32, %v967_v37  ;;  %v500_v36 = vpop.f32.mrb[31].mxu1  ;;  %541 = vst.msk [vmem:[%s1292_s3 + $0xe0] sm:$0xff] %vm512_vm3, %v370_v29  ;;  %v373_v38 = vadd.f32 %v967_v37, %v372_v35 }
 0x119   :  { %573 = vst.msk [vmem:[%s1292_s3 + $0x1e0] sm:$0xff] %vm512_vm3, %v498_v30  ;;  %v501_v39 = vadd.f32 %v967_v37, %v500_v36  ;;  %544 = vst.msk [vmem:[%s1292_s3 + $0xf8] sm:$0xff] %vm512_vm3, %v381_v33 }
 0x11a   :  { %576 = vst.msk [vmem:[%s1292_s3 + $0x1f8] sm:$0xff] %vm512_vm3, %v509_v34  ;;  %542 = vst.msk [vmem:[%s1292_s3 + $0xe8] sm:$0xff] %vm512_vm3, %v373_v38 }
 0x11b   :  { %574 = vst.msk [vmem:[%s1292_s3 + $0x1e8] sm:$0xff] %vm512_vm3, %v501_v39 }

// kernel: ffno_forward.20
= control target key start
LH: loop header
LB: loop body
LE: loop exit
PB: predicated region body
PF: predicated region fallthrough
CT: control target
= control target key end

     0   :  { %s1337_s9 = smov 0   ;;  %s1592_s0 = inlined_call_operand.vmem [shape: f32[1536,24], index: 0, kind: input, shape index: {}]   ;;  %s1593_s1 = inlined_call_operand.vmem [shape: bf16[24,16], index: 1, kind: input, shape index: {}]   ;;  %s1594_s2 = inlined_call_operand.vmem [shape: bf16[1536,16], index: 2, kind: output, shape index: {}]  }
   0x1 LB: > { %s1023_s10 = sadd.s32 4294967295, %s1320_s9   ;;  %p1027_p0 = scmp.ge.s32.totalorder %s1320_s9, 1  ;;  %s1320_s9 = sphi %s1337_s9, %s12_s9  }
   0x2   : > { %p113_p1 = scmp.lt.s32.totalorder %s1320_s9, 4 }
   0x4   : > { %p114_p2 = pnand %p1027_p0, %p113_p1 }
   0x5   : > { %v1312_v0 = vld [vmem:[%s1593_s1] sm:$0xff] (!%p114_p2)   ;;  %v1313_v1 = vld [vmem:[%s1593_s1 + $0x8] ss:$0 sps:$4 sm:$0xff] (!%p114_p2)   ;;  %vm353_vm0 = vcmask (!%p114_p2), 1043456   ;;  %s1028_s15 = sshll.u32 (!%p114_p2), %s1023_s10, 6  ;;  %vm256_vm1 = vcmask (!%p114_p2), 195584  }
   0x6   : > { %117 = sbr.rel (%p114_p2) target bundleno = 295 (0x127), region = 28  ;;  %1230 = vmatprep.subr.bf16.mxu0 (!%p114_p2), %v1312_v0  ;;  %1298 = vmatprep.subr.bf16.mxu1 (!%p114_p2), %v1312_v0  ;;  %p136_p3 = scmp.lt.s32.totalorder (!%p114_p2), %s1028_s15, 191  ;;  %v355_v2 = vsel (!%p114_p2), %vm353_vm0, %v1313_v1, 0  ;;  %vm902_vm2 = vcmask (!%p114_p2), 125952  }
   0x7   : > { %1231 = vmatpush3.bf16.msra.mxu0 (!%p114_p2), %v1312_v0  ;;  %1300 = vmatpush3.bf16.msra.mxu1 (!%p114_p2), %v1312_v0 }
   0x8   : > { %1302 = vmatprep.subr.msk.bf16.mxu0 (!%p114_p2), %vm353_vm0, %v1313_v1  ;;  %1303 = vmatprep.subr.msk.bf16.mxu1 (!%p114_p2), %vm353_vm0, %v1313_v1 }
   0xb   : > { %1233 = vmatpush3.bf16.msra.mxu0 (!%p114_p2), %v355_v2  ;;  %1301 = vmatpush3.bf16.msra.mxu1 (!%p114_p2), %v355_v2 }
   0xd   : > { %s1596_s15 = smov (!%p136_p3, %s1028_s15), 191 }
   0xe   : > { %s1029_s16 = sshll.u32 %s1596_s15, 3  ;;  %s1031_s20 = sshll.u32 %s1596_s15, 2 }
   0xf   : > { %s1357_s19 = scalar_lea.vmem %s1592_s0, %s1029_s16  ;;  %s1459_s23 = scalar_lea.vmem %s1594_s2, %s1031_s20 }
  0x10   : > { %v148_v3 = vld [vmem:[%s1357_s19] sm:$0xff]  ;;  %v149_v4 = vld [vmem:[%s1357_s19 + $0x8] sm:$0xff]  ;;  %v150_v8 = vld [vmem:[%s1357_s19 + $0x10] sm:$0xff] }
  0x11   : > { %v180_v5 = vld [vmem:[%s1357_s19 + $0x100] sm:$0xff]  ;;  %v212_v6 = vpack.c.bf16 %v149_v4, %v148_v3  ;;  %v181_v7 = vld [vmem:[%s1357_s19 + $0x108] sm:$0xff]  ;;  %v151_v9 = vld [vmem:[%s1357_s19 + $0x18] sm:$0xff] }
  0x12   : > { %v228_v10 = vpack.c.bf16 %v181_v7, %v180_v5  ;;  %v213_v11 = vpack.c.bf16 %v151_v9, %v150_v8  ;;  %v182_v12 = vld [vmem:[%s1357_s19 + $0x110] sm:$0xff]  ;;  %v183_v13 = vld [vmem:[%s1357_s19 + $0x118] sm:$0xff]  ;;  %v152_v14 = vld [vmem:[%s1357_s19 + $0x20] sm:$0xff] }
  0x13   : > { %1234 = vmatprep.mubr.msk.bf16.mxu0 %vm256_vm1, %v212_v6  ;;  %v229_v15 = vpack.c.bf16 %v183_v13, %v182_v12  ;;  %v153_v16 = vld [vmem:[%s1357_s19 + $0x28] sm:$0xff]  ;;  %v184_v17 = vld [vmem:[%s1357_s19 + $0x120] sm:$0xff]  ;;  %v154_v21 = vld [vmem:[%s1357_s19 + $0x30] sm:$0xff] }
  0x14   : > { %v185_v18 = vld [vmem:[%s1357_s19 + $0x128] sm:$0xff]  ;;  %1266 = vmatprep.mubr.msk.bf16.mxu1 %vm256_vm1, %v228_v10  ;;  %1235 = vmatmul.mubr.msk.bf16.vlgmr.msra.gmra.mrb[0].mxu0 %vm256_vm1, %v213_v11  ;;  %v214_v19 = vpack.c.bf16 %v153_v16, %v152_v14  ;;  %v155_v22 = vld [vmem:[%s1357_s19 + $0x38] sm:$0xff]  ;;  %v186_v23 = vld [vmem:[%s1357_s19 + $0x130] sm:$0xff] }
  0x15   : > { %v230_v20 = vpack.c.bf16 %v185_v18, %v184_v17  ;;  %1267 = vmatmul.mubr.msk.bf16.vlgmr.msra.gmra.mrb[0].mxu1 %vm256_vm1, %v229_v15  ;;  %v187_v24 = vld [vmem:[%s1357_s19 + $0x138] sm:$0xff]  ;;  %v156_v25 = vld [vmem:[%s1357_s19 + $0x40] sm:$0xff]  ;;  %v157_v26 = vld [vmem:[%s1357_s19 + $0x48] sm:$0xff]  ;;  %v215_v29 = vpack.c.bf16 %v155_v22, %v154_v21 }
  0x16   : > { %1238 = vmatprep.mubr.msk.bf16.mxu0 %vm256_vm1, %v214_v19  ;;  %v188_v27 = vld [vmem:[%s1357_s19 + $0x140] sm:$0xff]  ;;  %v189_v28 = vld [vmem:[%s1357_s19 + $0x148] sm:$0xff]  ;;  %v231_v30 = vpack.c.bf16 %v187_v24, %v186_v23  ;;  %v216_v31 = vpack.c.bf16 %v157_v26, %v156_v25  ;;  %v158_v33 = vld [vmem:[%s1357_s19 + $0x50] sm:$0xff] }
  0x17   : > { %1270 = vmatprep.mubr.msk.bf16.mxu1 %vm256_vm1, %v230_v20  ;;  %v232_v32 = vpack.c.bf16 %v189_v28, %v188_v27  ;;  %v159_v34 = vld [vmem:[%s1357_s19 + $0x58] sm:$0xff]  ;;  %v190_v35 = vld [vmem:[%s1357_s19 + $0x150] sm:$0xff]  ;;  %v160_v37 = vld [vmem:[%s1357_s19 + $0x60] sm:$0xff] }
  0x18   : > { %v191_v36 = vld [vmem:[%s1357_s19 + $0x158] sm:$0xff]  ;;  %v161_v38 = vld [vmem:[%s1357_s19 + $0x68] sm:$0xff]  ;;  %v192_v39 = vld [vmem:[%s1357_s19 + $0x160] sm:$0xff]  ;;  %v217_v41 = vpack.c.bf16 %v159_v34, %v158_v33 }
  0x19   : > { %v193_v40 = vld [vmem:[%s1357_s19 + $0x168] sm:$0xff]  ;;  %v233_v42 = vpack.c.bf16 %v191_v36, %v190_v35  ;;  %v218_v43 = vpack.c.bf16 %v161_v38, %v160_v37  ;;  %v162_v45 = vld [vmem:[%s1357_s19 + $0x70] sm:$0xff]  ;;  %v163_v46 = vld [vmem:[%s1357_s19 + $0x78] sm:$0xff] }
  0x1a   : > { %v234_v44 = vpack.c.bf16 %v193_v40, %v192_v39  ;;  %v194_v47 = vld [vmem:[%s1357_s19 + $0x170] sm:$0xff]  ;;  %v195_v48 = vld [vmem:[%s1357_s19 + $0x178] sm:$0xff]  ;;  %v164_v49 = vld [vmem:[%s1357_s19 + $0x80] sm:$0xff]  ;;  %v219_v53 = vpack.c.bf16 %v163_v46, %v162_v45 }
  0x1b   : > { %v165_v50 = vld [vmem:[%s1357_s19 + $0x88] sm:$0xff]  ;;  %v196_v51 = vld [vmem:[%s1357_s19 + $0x180] sm:$0xff]  ;;  %v235_v54 = vpack.c.bf16 %v195_v48, %v194_v47  ;;  %v166_v57 = vld [vmem:[%s1357_s19 + $0x90] sm:$0xff] }
  0x1c   : > { %1239 = vmatmul.mubr.msk.bf16.gmra.mrb[4].mxu0 %vm256_vm1, %v215_v29  ;;  %v197_v52 = vld [vmem:[%s1357_s19 + $0x188] sm:$0xff]  ;;  %v220_v55 = vpack.c.bf16 %v165_v50, %v164_v49  ;;  %v167_v58 = vld [vmem:[%s1357_s19 + $0x98] sm:$0xff]  ;;  %v198_v59 = vld [vmem:[%s1357_s19 + $0x190] sm:$0xff] }
  0x1d   : > { %1271 = vmatmul.mubr.msk.bf16.gmra.mrb[4].mxu1 %vm256_vm1, %v231_v30  ;;  %1242 = vmatprep.mubr.msk.bf16.mxu0 %vm256_vm1, %v216_v31  ;;  %v236_v56 = vpack.c.bf16 %v197_v52, %v196_v51  ;;  %v199_v60 = vld [vmem:[%s1357_s19 + $0x198] sm:$0xff]  ;;  %v168_v61 = vld [vmem:[%s1357_s19 + $0xa0] sm:$0xff]  ;;  %v169_v62 = vld [vmem:[%s1357_s19 + $0xa8] sm:$0xff]  ;;  %v221_v1 = vpack.c.bf16 %v167_v58, %v166_v57 }
  0x1e   : > { %1274 = vmatprep.mubr.msk.bf16.mxu1 %vm256_vm1, %v232_v32  ;;  %v200_v63 = vld [vmem:[%s1357_s19 + $0x1a0] sm:$0xff]  ;;  %v201_v0 = vld [vmem:[%s1357_s19 + $0x1a8] sm:$0xff]  ;;  %v237_v2 = vpack.c.bf16 %v199_v60, %v198_v59  ;;  %v222_v3 = vpack.c.bf16 %v169_v62, %v168_v61  ;;  %v170_v5 = vld [vmem:[%s1357_s19 + $0xb0] sm:$0xff] }
  0x1f   : > { %v238_v4 = vpack.c.bf16 %v201_v0, %v200_v63  ;;  %v171_v6 = vld [vmem:[%s1357_s19 + $0xb8] sm:$0xff]  ;;  %v202_v7 = vld [vmem:[%s1357_s19 + $0x1b0] sm:$0xff]  ;;  %v172_v9 = vld [vmem:[%s1357_s19 + $0xc0] sm:$0xff] }
  0x20   : > { %v203_v8 = vld [vmem:[%s1357_s19 + $0x1b8] sm:$0xff]  ;;  %v173_v10 = vld [vmem:[%s1357_s19 + $0xc8] sm:$0xff]  ;;  %v204_v11 = vld [vmem:[%s1357_s19 + $0x1c0] sm:$0xff]  ;;  %v223_v13 = vpack.c.bf16 %v171_v6, %v170_v5 }
  0x21   : > { %v205_v12 = vld [vmem:[%s1357_s19 + $0x1c8] sm:$0xff]  ;;  %v239_v14 = vpack.c.bf16 %v203_v8, %v202_v7  ;;  %v224_v15 = vpack.c.bf16 %v173_v10, %v172_v9  ;;  %v174_v17 = vld [vmem:[%s1357_s19 + $0xd0] sm:$0xff]  ;;  %v175_v18 = vld [vmem:[%s1357_s19 + $0xd8] sm:$0xff] }
  0x22   : > { %v240_v16 = vpack.c.bf16 %v205_v12, %v204_v11  ;;  %v206_v19 = vld [vmem:[%s1357_s19 + $0x1d0] sm:$0xff]  ;;  %v207_v20 = vld [vmem:[%s1357_s19 + $0x1d8] sm:$0xff]  ;;  %v176_v21 = vld [vmem:[%s1357_s19 + $0xe0] sm:$0xff]  ;;  %v225_v25 = vpack.c.bf16 %v175_v18, %v174_v17 }
  0x23   : > { %v177_v22 = vld [vmem:[%s1357_s19 + $0xe8] sm:$0xff]  ;;  %v208_v23 = vld [vmem:[%s1357_s19 + $0x1e0] sm:$0xff]  ;;  %v241_v26 = vpack.c.bf16 %v207_v20, %v206_v19  ;;  %v178_v29 = vld [vmem:[%s1357_s19 + $0xf0] sm:$0xff] }
  0x24   : > { %1243 = vmatmul.mubr.msk.bf16.gmra.mrb[8].mxu0 %vm256_vm1, %v217_v41  ;;  %v209_v24 = vld [vmem:[%s1357_s19 + $0x1e8] sm:$0xff]  ;;  %v226_v27 = vpack.c.bf16 %v177_v22, %v176_v21  ;;  %v179_v30 = vld [vmem:[%s1357_s19 + $0xf8] sm:$0xff]  ;;  %v210_v31 = vld [vmem:[%s1357_s19 + $0x1f0] sm:$0xff] }
  0x25   : > { %1275 = vmatmul.mubr.msk.bf16.gmra.mrb[8].mxu1 %vm256_vm1, %v233_v42  ;;  %1246 = vmatprep.mubr.msk.bf16.mxu0 %vm256_vm1, %v218_v43  ;;  %v242_v28 = vpack.c.bf16 %v209_v24, %v208_v23  ;;  %v211_v32 = vld [vmem:[%s1357_s19 + $0x1f8] sm:$0xff]  ;;  %v227_v33 = vpack.c.bf16 %v179_v30, %v178_v29 }
  0x26   : > { %1278 = vmatprep.mubr.msk.bf16.mxu1 %vm256_vm1, %v234_v44  ;;  %v243_v34 = vpack.c.bf16 %v211_v32, %v210_v31 }
  0x2c   : > { %1247 = vmatmul.mubr.msk.bf16.gmra.mrb[12].mxu0 %vm256_vm1, %v219_v53 }
  0x2d   : > { %1279 = vmatmul.mubr.msk.bf16.gmra.mrb[12].mxu1 %vm256_vm1, %v235_v54  ;;  %1250 = vmatprep.mubr.msk.bf16.mxu0 %vm256_vm1, %v220_v55 }
  0x2e   : > { %1282 = vmatprep.mubr.msk.bf16.mxu1 %vm256_vm1, %v236_v56 }
  0x34   : > { %1251 = vmatmul.mubr.msk.bf16.gmra.mrb[16].mxu0 %vm256_vm1, %v221_v1 }
  0x35   : > { %1283 = vmatmul.mubr.msk.bf16.gmra.mrb[16].mxu1 %vm256_vm1, %v237_v2  ;;  %1254 = vmatprep.mubr.msk.bf16.mxu0 %vm256_vm1, %v222_v3 }
  0x36   : > { %1286 = vmatprep.mubr.msk.bf16.mxu1 %vm256_vm1, %v238_v4 }
  0x3c   : > { %1255 = vmatmul.mubr.msk.bf16.gmra.mrb[20].mxu0 %vm256_vm1, %v223_v13 }
  0x3d   : > { %1287 = vmatmul.mubr.msk.bf16.gmra.mrb[20].mxu1 %vm256_vm1, %v239_v14  ;;  %1258 = vmatprep.mubr.msk.bf16.mxu0 %vm256_vm1, %v224_v15 }
  0x3e   : > { %1290 = vmatprep.mubr.msk.bf16.mxu1 %vm256_vm1, %v240_v16 }
  0x44   : > { %1259 = vmatmul.mubr.msk.bf16.gmra.mrb[24].mxu0 %vm256_vm1, %v225_v25 }
  0x45   : > { %1291 = vmatmul.mubr.msk.bf16.gmra.mrb[24].mxu1 %vm256_vm1, %v241_v26  ;;  %1262 = vmatprep.mubr.msk.bf16.mxu0 %vm256_vm1, %v226_v27 }
  0x46   : > { %1294 = vmatprep.mubr.msk.bf16.mxu1 %vm256_vm1, %v242_v28 }
  0x4c   : > { %1263 = vmatmul.mubr.msk.bf16.gmra.mrb[28].mxu0 %vm256_vm1, %v227_v33 }
  0x4d   : > { %1295 = vmatmul.mubr.msk.bf16.gmra.mrb[28].mxu1 %vm256_vm1, %v243_v34 }
  0xe7   : > { %v1236_v35 = vpop.f32.mrb[0].mxu0 }
  0xe8   : > { %v1134_v36 = vpack.c.bf16 %v1236_v35, %v1236_v35  ;;  %v1268_v37 = vpop.f32.mrb[0].mxu1  ;;  %v391_v38 = vpop.f32.mrb[1].mxu0 }
  0xe9   : > { %v1166_v39 = vpack.c.bf16 %v1268_v37, %v1268_v37  ;;  %v1132_v40 = vpack.c.bf16 %v391_v38, %v391_v38  ;;  %v519_v41 = vpop.f32.mrb[1].mxu1  ;;  %v1237_v42 = vpop.f32.mrb[2].mxu0 }
  0xea   : > { %905 = vst.msk [vmem:[%s1459_s23 + $0x8] sm:$0xf] %vm902_vm2, %v1134_v36  ;;  %v1164_v43 = vpack.c.bf16 %v519_v41, %v519_v41  ;;  %v1135_v44 = vpack.c.bf16 %v1237_v42, %v1237_v42  ;;  %v1269_v45 = vpop.f32.mrb[2].mxu1  ;;  %v394_v46 = vpop.f32.mrb[3].mxu0 }
  0xeb   : > { %937 = vst.msk [vmem:[%s1459_s23 + $0x88] sm:$0xf] %vm902_vm2, %v1166_v39  ;;  %903 = vst.msk [vmem:[%s1459_s23] sm:$0xf] %vm902_vm2, %v1132_v40  ;;  %v1167_v47 = vpack.c.bf16 %v1269_v45, %v1269_v45  ;;  %v1133_v48 = vpack.c.bf16 %v394_v46, %v394_v46  ;;  %v522_v49 = vpop.f32.mrb[3].mxu1 }
  0xec   : > { %935 = vst.msk [vmem:[%s1459_s23 + $0x80] sm:$0xf] %vm902_vm2, %v1164_v43  ;;  %906 = vst.msk [vmem:[%s1459_s23 + $0xc] sm:$0xf] %vm902_vm2, %v1135_v44  ;;  %v1165_v50 = vpack.c.bf16 %v522_v49, %v522_v49 }
  0xed   : > { %938 = vst.msk [vmem:[%s1459_s23 + $0x8c] sm:$0xf] %vm902_vm2, %v1167_v47  ;;  %904 = vst.msk [vmem:[%s1459_s23 + $0x4] sm:$0xf] %vm902_vm2, %v1133_v48 }
  0xee   : > { %936 = vst.msk [vmem:[%s1459_s23 + $0x84] sm:$0xf] %vm902_vm2, %v1165_v50 }
  0xef   : > { %v1240_v51 = vpop.f32.mrb[4].mxu0 }
  0xf0   : > { %v1138_v52 = vpack.c.bf16 %v1240_v51, %v1240_v51  ;;  %v1272_v53 = vpop.f32.mrb[4].mxu1  ;;  %v407_v54 = vpop.f32.mrb[5].mxu0 }
  0xf1   : > { %v1170_v55 = vpack.c.bf16 %v1272_v53, %v1272_v53  ;;  %v1136_v56 = vpack.c.bf16 %v407_v54, %v407_v54  ;;  %v535_v57 = vpop.f32.mrb[5].mxu1  ;;  %v1241_v58 = vpop.f32.mrb[6].mxu0 }
  0xf2   : > { %909 = vst.msk [vmem:[%s1459_s23 + $0x18] sm:$0xf] %vm902_vm2, %v1138_v52  ;;  %v1168_v59 = vpack.c.bf16 %v535_v57, %v535_v57  ;;  %v1139_v60 = vpack.c.bf16 %v1241_v58, %v1241_v58  ;;  %v1273_v61 = vpop.f32.mrb[6].mxu1  ;;  %v410_v62 = vpop.f32.mrb[7].mxu0 }
  0xf3   : > { %941 = vst.msk [vmem:[%s1459_s23 + $0x98] sm:$0xf] %vm902_vm2, %v1170_v55  ;;  %907 = vst.msk [vmem:[%s1459_s23 + $0x10] sm:$0xf] %vm902_vm2, %v1136_v56  ;;  %v1171_v63 = vpack.c.bf16 %v1273_v61, %v1273_v61  ;;  %v1137_v0 = vpack.c.bf16 %v410_v62, %v410_v62  ;;  %v538_v1 = vpop.f32.mrb[7].mxu1 }
  0xf4   : > { %939 = vst.msk [vmem:[%s1459_s23 + $0x90] sm:$0xf] %vm902_vm2, %v1168_v59  ;;  %910 = vst.msk [vmem:[%s1459_s23 + $0x1c] sm:$0xf] %vm902_vm2, %v1139_v60  ;;  %v1169_v2 = vpack.c.bf16 %v538_v1, %v538_v1 }
  0xf5   : > { %942 = vst.msk [vmem:[%s1459_s23 + $0x9c] sm:$0xf] %vm902_vm2, %v1171_v63  ;;  %908 = vst.msk [vmem:[%s1459_s23 + $0x14] sm:$0xf] %vm902_vm2, %v1137_v0 }
  0xf6   : > { %940 = vst.msk [vmem:[%s1459_s23 + $0x94] sm:$0xf] %vm902_vm2, %v1169_v2 }
  0xf7   : > { %v1244_v3 = vpop.f32.mrb[8].mxu0 }
  0xf8   : > { %v1142_v4 = vpack.c.bf16 %v1244_v3, %v1244_v3  ;;  %v1276_v5 = vpop.f32.mrb[8].mxu1  ;;  %v423_v6 = vpop.f32.mrb[9].mxu0 }
  0xf9   : > { %v1174_v7 = vpack.c.bf16 %v1276_v5, %v1276_v5  ;;  %v1140_v8 = vpack.c.bf16 %v423_v6, %v423_v6  ;;  %v551_v9 = vpop.f32.mrb[9].mxu1  ;;  %v1245_v10 = vpop.f32.mrb[10].mxu0 }
  0xfa   : > { %913 = vst.msk [vmem:[%s1459_s23 + $0x28] sm:$0xf] %vm902_vm2, %v1142_v4  ;;  %v1172_v11 = vpack.c.bf16 %v551_v9, %v551_v9  ;;  %v1143_v12 = vpack.c.bf16 %v1245_v10, %v1245_v10  ;;  %v1277_v13 = vpop.f32.mrb[10].mxu1  ;;  %v426_v14 = vpop.f32.mrb[11].mxu0 }
  0xfb   : > { %945 = vst.msk [vmem:[%s1459_s23 + $0xa8] sm:$0xf] %vm902_vm2, %v1174_v7  ;;  %911 = vst.msk [vmem:[%s1459_s23 + $0x20] sm:$0xf] %vm902_vm2, %v1140_v8  ;;  %v1175_v15 = vpack.c.bf16 %v1277_v13, %v1277_v13  ;;  %v1141_v16 = vpack.c.bf16 %v426_v14, %v426_v14  ;;  %v554_v17 = vpop.f32.mrb[11].mxu1 }
  0xfc   : > { %943 = vst.msk [vmem:[%s1459_s23 + $0xa0] sm:$0xf] %vm902_vm2, %v1172_v11  ;;  %914 = vst.msk [vmem:[%s1459_s23 + $0x2c] sm:$0xf] %vm902_vm2, %v1143_v12  ;;  %v1173_v18 = vpack.c.bf16 %v554_v17, %v554_v17 }
  0xfd   : > { %946 = vst.msk [vmem:[%s1459_s23 + $0xac] sm:$0xf] %vm902_vm2, %v1175_v15  ;;  %912 = vst.msk [vmem:[%s1459_s23 + $0x24] sm:$0xf] %vm902_vm2, %v1141_v16 }
  0xfe   : > { %944 = vst.msk [vmem:[%s1459_s23 + $0xa4] sm:$0xf] %vm902_vm2, %v1173_v18 }
  0xff   : > { %v1248_v19 = vpop.f32.mrb[12].mxu0 }
 0x100   : > { %v1146_v20 = vpack.c.bf16 %v1248_v19, %v1248_v19  ;;  %v1280_v21 = vpop.f32.mrb[12].mxu1  ;;  %v439_v22 = vpop.f32.mrb[13].mxu0 }
 0x101   : > { %v1178_v23 = vpack.c.bf16 %v1280_v21, %v1280_v21  ;;  %v1144_v24 = vpack.c.bf16 %v439_v22, %v439_v22  ;;  %v567_v25 = vpop.f32.mrb[13].mxu1  ;;  %v1249_v26 = vpop.f32.mrb[14].mxu0 }
 0x102   : > { %917 = vst.msk [vmem:[%s1459_s23 + $0x38] sm:$0xf] %vm902_vm2, %v1146_v20  ;;  %v1176_v27 = vpack.c.bf16 %v567_v25, %v567_v25  ;;  %v1147_v28 = vpack.c.bf16 %v1249_v26, %v1249_v26  ;;  %v1281_v29 = vpop.f32.mrb[14].mxu1  ;;  %v442_v30 = vpop.f32.mrb[15].mxu0 }
 0x103   : > { %949 = vst.msk [vmem:[%s1459_s23 + $0xb8] sm:$0xf] %vm902_vm2, %v1178_v23  ;;  %915 = vst.msk [vmem:[%s1459_s23 + $0x30] sm:$0xf] %vm902_vm2, %v1144_v24  ;;  %v1179_v31 = vpack.c.bf16 %v1281_v29, %v1281_v29  ;;  %v1145_v32 = vpack.c.bf16 %v442_v30, %v442_v30  ;;  %v570_v33 = vpop.f32.mrb[15].mxu1 }
 0x104   : > { %947 = vst.msk [vmem:[%s1459_s23 + $0xb0] sm:$0xf] %vm902_vm2, %v1176_v27  ;;  %918 = vst.msk [vmem:[%s1459_s23 + $0x3c] sm:$0xf] %vm902_vm2, %v1147_v28  ;;  %v1177_v34 = vpack.c.bf16 %v570_v33, %v570_v33 }
 0x105   : > { %950 = vst.msk [vmem:[%s1459_s23 + $0xbc] sm:$0xf] %vm902_vm2, %v1179_v31  ;;  %916 = vst.msk [vmem:[%s1459_s23 + $0x34] sm:$0xf] %vm902_vm2, %v1145_v32 }
 0x106   : > { %948 = vst.msk [vmem:[%s1459_s23 + $0xb4] sm:$0xf] %vm902_vm2, %v1177_v34 }
 0x107   : > { %v1252_v35 = vpop.f32.mrb[16].mxu0 }
 0x108   : > { %v1150_v36 = vpack.c.bf16 %v1252_v35, %v1252_v35  ;;  %v1284_v37 = vpop.f32.mrb[16].mxu1  ;;  %v455_v38 = vpop.f32.mrb[17].mxu0 }
 0x109   : > { %v1182_v39 = vpack.c.bf16 %v1284_v37, %v1284_v37  ;;  %v1148_v40 = vpack.c.bf16 %v455_v38, %v455_v38  ;;  %v583_v41 = vpop.f32.mrb[17].mxu1  ;;  %v1253_v42 = vpop.f32.mrb[18].mxu0 }
 0x10a   : > { %921 = vst.msk [vmem:[%s1459_s23 + $0x48] sm:$0xf] %vm902_vm2, %v1150_v36  ;;  %v1180_v43 = vpack.c.bf16 %v583_v41, %v583_v41  ;;  %v1151_v44 = vpack.c.bf16 %v1253_v42, %v1253_v42  ;;  %v1285_v45 = vpop.f32.mrb[18].mxu1  ;;  %v458_v46 = vpop.f32.mrb[19].mxu0 }
 0x10b   : > { %953 = vst.msk [vmem:[%s1459_s23 + $0xc8] sm:$0xf] %vm902_vm2, %v1182_v39  ;;  %919 = vst.msk [vmem:[%s1459_s23 + $0x40] sm:$0xf] %vm902_vm2, %v1148_v40  ;;  %v1183_v47 = vpack.c.bf16 %v1285_v45, %v1285_v45  ;;  %v1149_v48 = vpack.c.bf16 %v458_v46, %v458_v46  ;;  %v586_v49 = vpop.f32.mrb[19].mxu1 }
 0x10c   : > { %951 = vst.msk [vmem:[%s1459_s23 + $0xc0] sm:$0xf] %vm902_vm2, %v1180_v43  ;;  %922 = vst.msk [vmem:[%s1459_s23 + $0x4c] sm:$0xf] %vm902_vm2, %v1151_v44  ;;  %v1181_v50 = vpack.c.bf16 %v586_v49, %v586_v49 }
 0x10d   : > { %954 = vst.msk [vmem:[%s1459_s23 + $0xcc] sm:$0xf] %vm902_vm2, %v1183_v47  ;;  %920 = vst.msk [vmem:[%s1459_s23 + $0x44] sm:$0xf] %vm902_vm2, %v1149_v48 }
 0x10e   : > { %952 = vst.msk [vmem:[%s1459_s23 + $0xc4] sm:$0xf] %vm902_vm2, %v1181_v50 }
 0x10f   : > { %v1256_v51 = vpop.f32.mrb[20].mxu0 }
 0x110   : > { %v1154_v52 = vpack.c.bf16 %v1256_v51, %v1256_v51  ;;  %v1288_v53 = vpop.f32.mrb[20].mxu1  ;;  %v471_v54 = vpop.f32.mrb[21].mxu0 }
 0x111   : > { %v1186_v55 = vpack.c.bf16 %v1288_v53, %v1288_v53  ;;  %v1152_v56 = vpack.c.bf16 %v471_v54, %v471_v54  ;;  %v599_v57 = vpop.f32.mrb[21].mxu1  ;;  %v1257_v58 = vpop.f32.mrb[22].mxu0 }
 0x112   : > { %925 = vst.msk [vmem:[%s1459_s23 + $0x58] sm:$0xf] %vm902_vm2, %v1154_v52  ;;  %v1184_v59 = vpack.c.bf16 %v599_v57, %v599_v57  ;;  %v1155_v60 = vpack.c.bf16 %v1257_v58, %v1257_v58  ;;  %v1289_v61 = vpop.f32.mrb[22].mxu1  ;;  %v474_v62 = vpop.f32.mrb[23].mxu0 }
 0x113   : > { %957 = vst.msk [vmem:[%s1459_s23 + $0xd8] sm:$0xf] %vm902_vm2, %v1186_v55  ;;  %923 = vst.msk [vmem:[%s1459_s23 + $0x50] sm:$0xf] %vm902_vm2, %v1152_v56  ;;  %v1187_v63 = vpack.c.bf16 %v1289_v61, %v1289_v61  ;;  %v1153_v0 = vpack.c.bf16 %v474_v62, %v474_v62  ;;  %v602_v1 = vpop.f32.mrb[23].mxu1 }
 0x114   : > { %955 = vst.msk [vmem:[%s1459_s23 + $0xd0] sm:$0xf] %vm902_vm2, %v1184_v59  ;;  %926 = vst.msk [vmem:[%s1459_s23 + $0x5c] sm:$0xf] %vm902_vm2, %v1155_v60  ;;  %v1185_v2 = vpack.c.bf16 %v602_v1, %v602_v1 }
 0x115   : > { %958 = vst.msk [vmem:[%s1459_s23 + $0xdc] sm:$0xf] %vm902_vm2, %v1187_v63  ;;  %924 = vst.msk [vmem:[%s1459_s23 + $0x54] sm:$0xf] %vm902_vm2, %v1153_v0 }
 0x116   : > { %956 = vst.msk [vmem:[%s1459_s23 + $0xd4] sm:$0xf] %vm902_vm2, %v1185_v2 }
 0x117   : > { %v1260_v3 = vpop.f32.mrb[24].mxu0 }
 0x118   : > { %v1158_v4 = vpack.c.bf16 %v1260_v3, %v1260_v3  ;;  %v1292_v5 = vpop.f32.mrb[24].mxu1  ;;  %v487_v6 = vpop.f32.mrb[25].mxu0 }
 0x119   : > { %v1190_v7 = vpack.c.bf16 %v1292_v5, %v1292_v5  ;;  %v1156_v8 = vpack.c.bf16 %v487_v6, %v487_v6  ;;  %v615_v9 = vpop.f32.mrb[25].mxu1  ;;  %v1261_v10 = vpop.f32.mrb[26].mxu0 }
 0x11a   : > { %929 = vst.msk [vmem:[%s1459_s23 + $0x68] sm:$0xf] %vm902_vm2, %v1158_v4  ;;  %v1188_v11 = vpack.c.bf16 %v615_v9, %v615_v9  ;;  %v1159_v12 = vpack.c.bf16 %v1261_v10, %v1261_v10  ;;  %v1293_v13 = vpop.f32.mrb[26].mxu1  ;;  %v490_v14 = vpop.f32.mrb[27].mxu0 }
 0x11b   : > { %961 = vst.msk [vmem:[%s1459_s23 + $0xe8] sm:$0xf] %vm902_vm2, %v1190_v7  ;;  %927 = vst.msk [vmem:[%s1459_s23 + $0x60] sm:$0xf] %vm902_vm2, %v1156_v8  ;;  %v1191_v15 = vpack.c.bf16 %v1293_v13, %v1293_v13  ;;  %v1157_v16 = vpack.c.bf16 %v490_v14, %v490_v14  ;;  %v618_v17 = vpop.f32.mrb[27].mxu1 }
 0x11c   : > { %959 = vst.msk [vmem:[%s1459_s23 + $0xe0] sm:$0xf] %vm902_vm2, %v1188_v11  ;;  %930 = vst.msk [vmem:[%s1459_s23 + $0x6c] sm:$0xf] %vm902_vm2, %v1159_v12  ;;  %v1189_v18 = vpack.c.bf16 %v618_v17, %v618_v17 }
 0x11d   : > { %962 = vst.msk [vmem:[%s1459_s23 + $0xec] sm:$0xf] %vm902_vm2, %v1191_v15  ;;  %928 = vst.msk [vmem:[%s1459_s23 + $0x64] sm:$0xf] %vm902_vm2, %v1157_v16 }
 0x11e   : > { %960 = vst.msk [vmem:[%s1459_s23 + $0xe4] sm:$0xf] %vm902_vm2, %v1189_v18 }
 0x11f   : > { %v1264_v19 = vpop.f32.mrb[28].mxu0 }
 0x120   : > { %v1162_v20 = vpack.c.bf16 %v1264_v19, %v1264_v19  ;;  %v1296_v21 = vpop.f32.mrb[28].mxu1  ;;  %v503_v22 = vpop.f32.mrb[29].mxu0 }
 0x121   : > { %v1194_v23 = vpack.c.bf16 %v1296_v21, %v1296_v21  ;;  %v1160_v24 = vpack.c.bf16 %v503_v22, %v503_v22  ;;  %v631_v25 = vpop.f32.mrb[29].mxu1  ;;  %v1265_v26 = vpop.f32.mrb[30].mxu0 }
 0x122   : > { %933 = vst.msk [vmem:[%s1459_s23 + $0x78] sm:$0xf] %vm902_vm2, %v1162_v20  ;;  %v1192_v27 = vpack.c.bf16 %v631_v25, %v631_v25  ;;  %v1163_v28 = vpack.c.bf16 %v1265_v26, %v1265_v26  ;;  %v1297_v29 = vpop.f32.mrb[30].mxu1  ;;  %v506_v30 = vpop.f32.mrb[31].mxu0 }
 0x123   : > { %965 = vst.msk [vmem:[%s1459_s23 + $0xf8] sm:$0xf] %vm902_vm2, %v1194_v23  ;;  %931 = vst.msk [vmem:[%s1459_s23 + $0x70] sm:$0xf] %vm902_vm2, %v1160_v24  ;;  %v1195_v31 = vpack.c.bf16 %v1297_v29, %v1297_v29  ;;  %v1161_v32 = vpack.c.bf16 %v506_v30, %v506_v30  ;;  %v634_v33 = vpop.f32.mrb[31].mxu1 }
 0x124   : > { %963 = vst.msk [vmem:[%s1459_s23 + $0xf0] sm:$0xf] %vm902_vm2, %v1192_v27  ;;  %934 = vst.msk [vmem:[%s1459_s23 + $0x7c] sm:$0xf] %vm902_vm2, %v1163_v28  ;;  %v1193_v34 = vpack.c.bf16 %v634_v33, %v634_v33 }
 0x125   : > { %966 = vst.msk [vmem:[%s1459_s23 + $0xfc] sm:$0xf] %vm902_vm2, %v1195_v31  ;;  %932 = vst.msk [vmem:[%s1459_s23 + $0x74] sm:$0xf] %vm902_vm2, %v1161_v32 }
 0x126   : > { %964 = vst.msk [vmem:[%s1459_s23 + $0xf4] sm:$0xf] %vm902_vm2, %v1193_v34 }
 0x127 PF: > { %s12_s9 = sadd.s32 1, %s1320_s9  }
 0x128   : > { %p9_p4 = scmp.ge.s32.totalorder %s12_s9, 5  }
 0x12a   :  { %11 = sbr.rel (!%p9_p4) target bundleno = 1 (0x1), region = 58 }

// kernel: ffno_forward.21
= control target key start
LH: loop header
LB: loop body
LE: loop exit
PB: predicated region body
PF: predicated region fallthrough
CT: control target
= control target key end

     0   :  { %s2060_s1 = inlined_call_operand.vmem [shape: bf16[512,512], index: 1, kind: input, shape index: {}]   ;;  %s2061_s0 = inlined_call_operand.vmem [shape: bf16[48,512], index: 0, kind: input, shape index: {}]   ;;  %s2062_s2 = inlined_call_operand.vmem [shape: bf16[48,512], index: 2, kind: output, shape index: {}]  }
   0x1   :  { %v1379_v0 = vld [vmem:[%s2060_s1 + $0x4] ss:$16 sps:$4 sm:$0xff]   ;;  %v1381_v1 = vld [vmem:[%s2060_s1 + $0xc] ss:$16 sps:$4 sm:$0xff]   ;;  %v1383_v2 = vld [vmem:[%s2060_s1] ss:$16 sps:$4 sm:$0xff]  }
   0x2   :  { %851 = vmatprep.subr.bf16.mxu0 %v1379_v0  ;;  %v1384_v3 = vld [vmem:[%s2060_s1 + $0x8] ss:$16 sps:$4 sm:$0xff]   ;;  %977 = vmatprep.subr.bf16.mxu1 %v1381_v1  ;;  %v1385_v4 = vld [vmem:[%s2060_s1 + $0x24] ss:$16 sps:$4 sm:$0xff]   ;;  %v1387_v5 = vld [vmem:[%s2060_s1 + $0x2c] ss:$16 sps:$4 sm:$0xff]  }
   0x3   :  { %852 = vmatpush1.bf16.msra.mxu0 %v1383_v2  ;;  %978 = vmatpush1.bf16.msra.mxu1 %v1384_v3  ;;  %v1389_v6 = vld [vmem:[%s2060_s1 + $0x20] ss:$16 sps:$4 sm:$0xff]   ;;  %v1390_v7 = vld [vmem:[%s2060_s1 + $0x28] ss:$16 sps:$4 sm:$0xff]   ;;  %v1391_v8 = vld [vmem:[%s2060_s1 + $0x44] ss:$16 sps:$4 sm:$0xff]  }
   0x4   :  { %853 = vmatprep.subr.bf16.mxu0 %v1385_v4  ;;  %979 = vmatprep.subr.bf16.mxu1 %v1387_v5  ;;  %v1393_v9 = vld [vmem:[%s2060_s1 + $0x4c] ss:$16 sps:$4 sm:$0xff]   ;;  %v1395_v10 = vld [vmem:[%s2060_s1 + $0x40] ss:$16 sps:$4 sm:$0xff]   ;;  %v1396_v11 = vld [vmem:[%s2060_s1 + $0x48] ss:$16 sps:$4 sm:$0xff]  }
   0x5   :  { %v1397_v12 = vld [vmem:[%s2060_s1 + $0x64] ss:$16 sps:$4 sm:$0xff]   ;;  %v1399_v13 = vld [vmem:[%s2060_s1 + $0x6c] ss:$16 sps:$4 sm:$0xff]   ;;  %v1401_v14 = vld [vmem:[%s2060_s1 + $0x60] ss:$16 sps:$4 sm:$0xff]  }
   0x6   :  { %v1402_v15 = vld [vmem:[%s2060_s1 + $0x68] ss:$16 sps:$4 sm:$0xff]   ;;  %v1403_v16 = vld [vmem:[%s2060_s1 + $0x84] ss:$16 sps:$4 sm:$0xff]   ;;  %v1405_v17 = vld [vmem:[%s2060_s1 + $0x8c] ss:$16 sps:$4 sm:$0xff]  }
   0x7   :  { %854 = vmatpush1.bf16.msra.mxu0 %v1389_v6  ;;  %980 = vmatpush1.bf16.msra.mxu1 %v1390_v7  ;;  %v1407_v18 = vld [vmem:[%s2060_s1 + $0x80] ss:$16 sps:$4 sm:$0xff]   ;;  %v1408_v19 = vld [vmem:[%s2060_s1 + $0x88] ss:$16 sps:$4 sm:$0xff]   ;;  %v1409_v20 = vld [vmem:[%s2060_s1 + $0xa4] ss:$16 sps:$4 sm:$0xff]  }
   0x8   :  { %855 = vmatprep.subr.bf16.mxu0 %v1391_v8  ;;  %981 = vmatprep.subr.bf16.mxu1 %v1393_v9  ;;  %v1411_v21 = vld [vmem:[%s2060_s1 + $0xac] ss:$16 sps:$4 sm:$0xff]   ;;  %v1413_v22 = vld [vmem:[%s2060_s1 + $0xa0] ss:$16 sps:$4 sm:$0xff]   ;;  %v1414_v23 = vld [vmem:[%s2060_s1 + $0xa8] ss:$16 sps:$4 sm:$0xff]  }
   0x9   :  { %v1415_v24 = vld [vmem:[%s2060_s1 + $0xc4] ss:$16 sps:$4 sm:$0xff]   ;;  %v1417_v25 = vld [vmem:[%s2060_s1 + $0xcc] ss:$16 sps:$4 sm:$0xff]   ;;  %v1419_v26 = vld [vmem:[%s2060_s1 + $0xc0] ss:$16 sps:$4 sm:$0xff]  }
   0xa   :  { %v1420_v27 = vld [vmem:[%s2060_s1 + $0xc8] ss:$16 sps:$4 sm:$0xff]   ;;  %v1421_v28 = vld [vmem:[%s2060_s1 + $0xe4] ss:$16 sps:$4 sm:$0xff]   ;;  %v1423_v29 = vld [vmem:[%s2060_s1 + $0xec] ss:$16 sps:$4 sm:$0xff]  }
   0xb   :  { %856 = vmatpush1.bf16.msra.mxu0 %v1395_v10  ;;  %982 = vmatpush1.bf16.msra.mxu1 %v1396_v11  ;;  %v1425_v30 = vld [vmem:[%s2060_s1 + $0xe0] ss:$16 sps:$4 sm:$0xff]   ;;  %v1426_v31 = vld [vmem:[%s2060_s1 + $0xe8] ss:$16 sps:$4 sm:$0xff]   ;;  %v1427_v32 = vld [vmem:[%s2060_s1 + $0x104] ss:$16 sps:$4 sm:$0xff]  }
   0xc   :  { %857 = vmatprep.subr.bf16.mxu0 %v1397_v12  ;;  %983 = vmatprep.subr.bf16.mxu1 %v1399_v13  ;;  %v1429_v33 = vld [vmem:[%s2060_s1 + $0x10c] ss:$16 sps:$4 sm:$0xff]   ;;  %v1431_v34 = vld [vmem:[%s2060_s1 + $0x100] ss:$16 sps:$4 sm:$0xff]   ;;  %v1432_v35 = vld [vmem:[%s2060_s1 + $0x108] ss:$16 sps:$4 sm:$0xff]  }
   0xd   :  { %v1433_v36 = vld [vmem:[%s2060_s1 + $0x124] ss:$16 sps:$4 sm:$0xff]   ;;  %v1435_v37 = vld [vmem:[%s2060_s1 + $0x12c] ss:$16 sps:$4 sm:$0xff]   ;;  %v1437_v38 = vld [vmem:[%s2060_s1 + $0x120] ss:$16 sps:$4 sm:$0xff]  }
   0xe   :  { %v1438_v39 = vld [vmem:[%s2060_s1 + $0x128] ss:$16 sps:$4 sm:$0xff]   ;;  %v1439_v40 = vld [vmem:[%s2060_s1 + $0x144] ss:$16 sps:$4 sm:$0xff]   ;;  %v1441_v41 = vld [vmem:[%s2060_s1 + $0x14c] ss:$16 sps:$4 sm:$0xff]  }
   0xf   :  { %858 = vmatpush1.bf16.msra.mxu0 %v1401_v14  ;;  %984 = vmatpush1.bf16.msra.mxu1 %v1402_v15  ;;  %v1443_v42 = vld [vmem:[%s2060_s1 + $0x140] ss:$16 sps:$4 sm:$0xff]   ;;  %v1444_v43 = vld [vmem:[%s2060_s1 + $0x148] ss:$16 sps:$4 sm:$0xff]   ;;  %v1445_v44 = vld [vmem:[%s2060_s1 + $0x164] ss:$16 sps:$4 sm:$0xff]  }
  0x10   :  { %859 = vmatprep.subr.bf16.mxu0 %v1403_v16  ;;  %985 = vmatprep.subr.bf16.mxu1 %v1405_v17  ;;  %v1447_v45 = vld [vmem:[%s2060_s1 + $0x16c] ss:$16 sps:$4 sm:$0xff]   ;;  %v1449_v46 = vld [vmem:[%s2060_s1 + $0x160] ss:$16 sps:$4 sm:$0xff]   ;;  %v1450_v47 = vld [vmem:[%s2060_s1 + $0x168] ss:$16 sps:$4 sm:$0xff]  }
  0x11   :  { %v1477_v48 = vld [vmem:[%s2061_s0 + $0x4] ss:$16 sps:$4 sm:$0xff]   ;;  %v1453_v50 = vld [vmem:[%s2060_s1 + $0x18c] ss:$16 sps:$4 sm:$0xff]   ;;  %v1455_v51 = vld [vmem:[%s2060_s1 + $0x180] ss:$16 sps:$4 sm:$0xff]  }
  0x12   :  { %v1451_v49 = vld [vmem:[%s2060_s1 + $0x184] ss:$16 sps:$4 sm:$0xff]   ;;  %883 = vmatprep.mubr.bf16.mxu0 %v1477_v48  ;;  %1009 = vmatprep.mubr.bf16.mxu1 %v1477_v48  ;;  %v1456_v52 = vld [vmem:[%s2060_s1 + $0x188] ss:$16 sps:$4 sm:$0xff]   ;;  %v1459_v54 = vld [vmem:[%s2060_s1 + $0x1ac] ss:$16 sps:$4 sm:$0xff]  }
  0x13   :  { %860 = vmatpush1.bf16.msra.mxu0 %v1407_v18  ;;  %986 = vmatpush1.bf16.msra.mxu1 %v1408_v19  ;;  %v1457_v53 = vld [vmem:[%s2060_s1 + $0x1a4] ss:$16 sps:$4 sm:$0xff]   ;;  %v1461_v55 = vld [vmem:[%s2060_s1 + $0x1a0] ss:$16 sps:$4 sm:$0xff]   ;;  %v1462_v56 = vld [vmem:[%s2060_s1 + $0x1a8] ss:$16 sps:$4 sm:$0xff]  }
  0x14   :  { %861 = vmatprep.subr.bf16.mxu0 %v1409_v20  ;;  %987 = vmatprep.subr.bf16.mxu1 %v1411_v21  ;;  %v1463_v57 = vld [vmem:[%s2060_s1 + $0x1c4] ss:$16 sps:$4 sm:$0xff]   ;;  %v1465_v58 = vld [vmem:[%s2060_s1 + $0x1cc] ss:$16 sps:$4 sm:$0xff]   ;;  %v1467_v59 = vld [vmem:[%s2060_s1 + $0x1c0] ss:$16 sps:$4 sm:$0xff]  }
  0x15   :  { %v1468_v60 = vld [vmem:[%s2060_s1 + $0x1c8] ss:$16 sps:$4 sm:$0xff]   ;;  %v1469_v61 = vld [vmem:[%s2060_s1 + $0x1e4] ss:$16 sps:$4 sm:$0xff]   ;;  %v1471_v62 = vld [vmem:[%s2060_s1 + $0x1ec] ss:$16 sps:$4 sm:$0xff]  }
  0x16   :  { %v1473_v63 = vld [vmem:[%s2060_s1 + $0x1e0] ss:$16 sps:$4 sm:$0xff]   ;;  %v1474_v0 = vld [vmem:[%s2060_s1 + $0x1e8] ss:$16 sps:$4 sm:$0xff]   ;;  %v1480_v1 = vld [vmem:[%s2060_s1 + $0x204] ss:$16 sps:$4 sm:$0xff]  }
  0x17   :  { %862 = vmatpush1.bf16.msra.mxu0 %v1413_v22  ;;  %988 = vmatpush1.bf16.msra.mxu1 %v1414_v23  ;;  %v1483_v2 = vld [vmem:[%s2060_s1 + $0x20c] ss:$16 sps:$4 sm:$0xff]   ;;  %v1475_v3 = vld [vmem:[%s2061_s0] ss:$16 sps:$4 sm:$0xff]   ;;  %v1481_v5 = vld [vmem:[%s2060_s1 + $0x208] ss:$16 sps:$4 sm:$0xff]  }
  0x18   :  { %863 = vmatprep.subr.bf16.mxu0 %v1415_v24  ;;  %989 = vmatprep.subr.bf16.mxu1 %v1417_v25  ;;  %v1478_v4 = vld [vmem:[%s2060_s1 + $0x200] ss:$16 sps:$4 sm:$0xff]   ;;  %v1486_v6 = vld [vmem:[%s2060_s1 + $0x224] ss:$16 sps:$4 sm:$0xff]   ;;  %v1489_v7 = vld [vmem:[%s2060_s1 + $0x22c] ss:$16 sps:$4 sm:$0xff]  }
  0x19   :  { %v1484_v8 = vld [vmem:[%s2060_s1 + $0x220] ss:$16 sps:$4 sm:$0xff]   ;;  %v1487_v9 = vld [vmem:[%s2060_s1 + $0x228] ss:$16 sps:$4 sm:$0xff]   ;;  %v1492_v10 = vld [vmem:[%s2060_s1 + $0x244] ss:$16 sps:$4 sm:$0xff]  }
  0x1a   :  { %v1495_v11 = vld [vmem:[%s2060_s1 + $0x24c] ss:$16 sps:$4 sm:$0xff]   ;;  %v1490_v12 = vld [vmem:[%s2060_s1 + $0x240] ss:$16 sps:$4 sm:$0xff]   ;;  %v1493_v13 = vld [vmem:[%s2060_s1 + $0x248] ss:$16 sps:$4 sm:$0xff]  }
  0x1b   :  { %864 = vmatpush1.bf16.msra.mxu0 %v1419_v26  ;;  %990 = vmatpush1.bf16.msra.mxu1 %v1420_v27  ;;  %v1498_v14 = vld [vmem:[%s2060_s1 + $0x264] ss:$16 sps:$4 sm:$0xff]   ;;  %v1501_v15 = vld [vmem:[%s2060_s1 + $0x26c] ss:$16 sps:$4 sm:$0xff]   ;;  %v1496_v16 = vld [vmem:[%s2060_s1 + $0x260] ss:$16 sps:$4 sm:$0xff]  }
  0x1c   :  { %865 = vmatprep.subr.bf16.mxu0 %v1421_v28  ;;  %991 = vmatprep.subr.bf16.mxu1 %v1423_v29  ;;  %v1499_v17 = vld [vmem:[%s2060_s1 + $0x268] ss:$16 sps:$4 sm:$0xff]   ;;  %v1504_v18 = vld [vmem:[%s2060_s1 + $0x284] ss:$16 sps:$4 sm:$0xff]   ;;  %v1507_v19 = vld [vmem:[%s2060_s1 + $0x28c] ss:$16 sps:$4 sm:$0xff]  }
  0x1d   :  { %v1550_v20 = vld [vmem:[%s2061_s0 + $0x24] ss:$16 sps:$4 sm:$0xff]   ;;  %v1552_v21 = vld [vmem:[%s2061_s0 + $0x20] ss:$16 sps:$4 sm:$0xff]   ;;  %v1505_v23 = vld [vmem:[%s2060_s1 + $0x288] ss:$16 sps:$4 sm:$0xff]  }
  0x1e   :  { %v1502_v22 = vld [vmem:[%s2060_s1 + $0x280] ss:$16 sps:$4 sm:$0xff]   ;;  %v1510_v24 = vld [vmem:[%s2060_s1 + $0x2a4] ss:$16 sps:$4 sm:$0xff]   ;;  %v1513_v25 = vld [vmem:[%s2060_s1 + $0x2ac] ss:$16 sps:$4 sm:$0xff]  }
  0x1f   :  { %866 = vmatpush1.bf16.msra.mxu0 %v1425_v30  ;;  %992 = vmatpush1.bf16.msra.mxu1 %v1426_v31  ;;  %v1508_v26 = vld [vmem:[%s2060_s1 + $0x2a0] ss:$16 sps:$4 sm:$0xff]   ;;  %v1511_v27 = vld [vmem:[%s2060_s1 + $0x2a8] ss:$16 sps:$4 sm:$0xff]   ;;  %v1565_v28 = vld [vmem:[%s2061_s0 + $0x44] ss:$16 sps:$4 sm:$0xff]  }
  0x20   :  { %867 = vmatprep.subr.bf16.mxu0 %v1427_v32  ;;  %993 = vmatprep.subr.bf16.mxu1 %v1429_v33  ;;  %v1567_v29 = vld [vmem:[%s2061_s0 + $0x40] ss:$16 sps:$4 sm:$0xff]   ;;  %v1516_v30 = vld [vmem:[%s2060_s1 + $0x2c4] ss:$16 sps:$4 sm:$0xff]   ;;  %v1519_v31 = vld [vmem:[%s2060_s1 + $0x2cc] ss:$16 sps:$4 sm:$0xff]  }
  0x21   :  { %v1514_v32 = vld [vmem:[%s2060_s1 + $0x2c0] ss:$16 sps:$4 sm:$0xff]   ;;  %v1517_v33 = vld [vmem:[%s2060_s1 + $0x2c8] ss:$16 sps:$4 sm:$0xff]   ;;  %v1543_v48 = vld [vmem:[%s2060_s1 + $0x34c] ss:$16 sps:$4 sm:$0xff]  }
  0x23   :  { %868 = vmatpush1.bf16.msra.mxu0 %v1431_v34  ;;  %994 = vmatpush1.bf16.msra.mxu1 %v1432_v35  ;;  %v1522_v34 = vld [vmem:[%s2060_s1 + $0x2e4] ss:$16 sps:$4 sm:$0xff]   ;;  %v1525_v35 = vld [vmem:[%s2060_s1 + $0x2ec] ss:$16 sps:$4 sm:$0xff]  }
  0x24   :  { %869 = vmatprep.subr.bf16.mxu0 %v1433_v36  ;;  %995 = vmatprep.subr.bf16.mxu1 %v1435_v37  ;;  %v1582_v36 = vld [vmem:[%s2061_s0 + $0xc] ss:$16 sps:$4 sm:$0xff]   ;;  %v1520_v37 = vld [vmem:[%s2060_s1 + $0x2e0] ss:$16 sps:$4 sm:$0xff]  }
  0x27   :  { %870 = vmatpush1.bf16.msra.mxu0 %v1437_v38  ;;  %996 = vmatpush1.bf16.msra.mxu1 %v1438_v39  ;;  %v1523_v38 = vld [vmem:[%s2060_s1 + $0x2e8] ss:$16 sps:$4 sm:$0xff]   ;;  %v1528_v39 = vld [vmem:[%s2060_s1 + $0x304] ss:$16 sps:$4 sm:$0xff]  }
  0x28   :  { %871 = vmatprep.subr.bf16.mxu0 %v1439_v40  ;;  %997 = vmatprep.subr.bf16.mxu1 %v1441_v41  ;;  %v1531_v40 = vld [vmem:[%s2060_s1 + $0x30c] ss:$16 sps:$4 sm:$0xff]   ;;  %v1526_v41 = vld [vmem:[%s2060_s1 + $0x300] ss:$16 sps:$4 sm:$0xff]  }
  0x2b   :  { %872 = vmatpush1.bf16.msra.mxu0 %v1443_v42  ;;  %998 = vmatpush1.bf16.msra.mxu1 %v1444_v43  ;;  %v1529_v42 = vld [vmem:[%s2060_s1 + $0x308] ss:$16 sps:$4 sm:$0xff]   ;;  %v1534_v43 = vld [vmem:[%s2060_s1 + $0x324] ss:$16 sps:$4 sm:$0xff]  }
  0x2c   :  { %873 = vmatprep.subr.bf16.mxu0 %v1445_v44  ;;  %999 = vmatprep.subr.bf16.mxu1 %v1447_v45  ;;  %v1537_v44 = vld [vmem:[%s2060_s1 + $0x32c] ss:$16 sps:$4 sm:$0xff]   ;;  %v1532_v45 = vld [vmem:[%s2060_s1 + $0x320] ss:$16 sps:$4 sm:$0xff]  }
  0x2f   :  { %874 = vmatpush1.bf16.msra.mxu0 %v1449_v46  ;;  %1000 = vmatpush1.bf16.msra.mxu1 %v1450_v47  ;;  %v1535_v46 = vld [vmem:[%s2060_s1 + $0x328] ss:$16 sps:$4 sm:$0xff]   ;;  %v1540_v47 = vld [vmem:[%s2060_s1 + $0x344] ss:$16 sps:$4 sm:$0xff]  }
  0x30   :  { %875 = vmatprep.subr.bf16.mxu0 %v1451_v49  ;;  %1001 = vmatprep.subr.bf16.mxu1 %v1453_v50  ;;  %v1538_v49 = vld [vmem:[%s2060_s1 + $0x340] ss:$16 sps:$4 sm:$0xff]   ;;  %v1541_v50 = vld [vmem:[%s2060_s1 + $0x348] ss:$16 sps:$4 sm:$0xff]  }
  0x33   :  { %876 = vmatpush1.bf16.msra.mxu0 %v1455_v51  ;;  %1002 = vmatpush1.bf16.msra.mxu1 %v1456_v52  ;;  %v1546_v51 = vld [vmem:[%s2060_s1 + $0x364] ss:$16 sps:$4 sm:$0xff]   ;;  %v1549_v52 = vld [vmem:[%s2060_s1 + $0x36c] ss:$16 sps:$4 sm:$0xff]  }
  0x34   :  { %877 = vmatprep.subr.bf16.mxu0 %v1457_v53  ;;  %1003 = vmatprep.subr.bf16.mxu1 %v1459_v54  ;;  %v1544_v53 = vld [vmem:[%s2060_s1 + $0x360] ss:$16 sps:$4 sm:$0xff]   ;;  %v1547_v54 = vld [vmem:[%s2060_s1 + $0x368] ss:$16 sps:$4 sm:$0xff]  }
  0x37   :  { %878 = vmatpush1.bf16.msra.mxu0 %v1461_v55  ;;  %1004 = vmatpush1.bf16.msra.mxu1 %v1462_v56  ;;  %v1555_v55 = vld [vmem:[%s2060_s1 + $0x384] ss:$16 sps:$4 sm:$0xff]   ;;  %v1558_v56 = vld [vmem:[%s2060_s1 + $0x38c] ss:$16 sps:$4 sm:$0xff]  }
  0x38   :  { %879 = vmatprep.subr.bf16.mxu0 %v1463_v57  ;;  %1005 = vmatprep.subr.bf16.mxu1 %v1465_v58  ;;  %v1553_v57 = vld [vmem:[%s2060_s1 + $0x380] ss:$16 sps:$4 sm:$0xff]   ;;  %v1556_v58 = vld [vmem:[%s2060_s1 + $0x388] ss:$16 sps:$4 sm:$0xff]  }
  0x3b   :  { %880 = vmatpush1.bf16.msra.mxu0 %v1467_v59  ;;  %1006 = vmatpush1.bf16.msra.mxu1 %v1468_v60  ;;  %v1561_v59 = vld [vmem:[%s2060_s1 + $0x3a4] ss:$16 sps:$4 sm:$0xff]   ;;  %v1564_v60 = vld [vmem:[%s2060_s1 + $0x3ac] ss:$16 sps:$4 sm:$0xff]  }
  0x3c   :  { %881 = vmatprep.subr.bf16.mxu0 %v1469_v61  ;;  %1007 = vmatprep.subr.bf16.mxu1 %v1471_v62  ;;  %v1559_v61 = vld [vmem:[%s2060_s1 + $0x3a0] ss:$16 sps:$4 sm:$0xff]   ;;  %v1562_v62 = vld [vmem:[%s2060_s1 + $0x3a8] ss:$16 sps:$4 sm:$0xff]  }
  0x3f   :  { %882 = vmatpush1.bf16.msra.mxu0 %v1473_v63  ;;  %1008 = vmatpush1.bf16.msra.mxu1 %v1474_v0  ;;  %v1570_v63 = vld [vmem:[%s2060_s1 + $0x3c4] ss:$16 sps:$4 sm:$0xff]   ;;  %v1573_v0 = vld [vmem:[%s2060_s1 + $0x3cc] ss:$16 sps:$4 sm:$0xff]  }
  0x40   :  { %914 = vmatprep.subr.bf16.mxu0 %v1480_v1  ;;  %1040 = vmatprep.subr.bf16.mxu1 %v1483_v2  ;;  %v1568_v1 = vld [vmem:[%s2060_s1 + $0x3c0] ss:$16 sps:$4 sm:$0xff]   ;;  %v1571_v2 = vld [vmem:[%s2060_s1 + $0x3c8] ss:$16 sps:$4 sm:$0xff]  }
  0x42   :  { %884 = vmatmul.mubr.bf16.vlgmr.msra.gmra.mrb[0].mxu0 %v1475_v3  ;;  %1010 = vmatmul.mubr.bf16.vlgmr.msra.gmra.mrb[0].mxu1 %v1475_v3  ;;  %v1576_v3 = vld [vmem:[%s2060_s1 + $0x3e4] ss:$16 sps:$4 sm:$0xff]  }
  0x43   :  { %915 = vmatpush1.bf16.msra.mxu0 %v1478_v4  ;;  %1041 = vmatpush1.bf16.msra.mxu1 %v1481_v5  ;;  %v1579_v4 = vld [vmem:[%s2060_s1 + $0x3ec] ss:$16 sps:$4 sm:$0xff]   ;;  %v1574_v5 = vld [vmem:[%s2060_s1 + $0x3e0] ss:$16 sps:$4 sm:$0xff]  }
  0x44   :  { %916 = vmatprep.subr.bf16.mxu0 %v1486_v6  ;;  %1042 = vmatprep.subr.bf16.mxu1 %v1489_v7  ;;  %v1577_v6 = vld [vmem:[%s2060_s1 + $0x3e8] ss:$16 sps:$4 sm:$0xff]  }
  0x45   :  { %893 = vmatprep.mubr.bf16.mxu0 %v1550_v20  ;;  %1019 = vmatprep.mubr.bf16.mxu1 %v1550_v20  ;;  %v1580_v7 = vld [vmem:[%s2061_s0 + $0x8] ss:$16 sps:$4 sm:$0xff]  }
  0x47   :  { %917 = vmatpush1.bf16.msra.mxu0 %v1484_v8  ;;  %1043 = vmatpush1.bf16.msra.mxu1 %v1487_v9  ;;  %v1583_v8 = vld [vmem:[%s2061_s0 + $0x2c] ss:$16 sps:$4 sm:$0xff]   ;;  %v1585_v9 = vld [vmem:[%s2061_s0 + $0x28] ss:$16 sps:$4 sm:$0xff]  }
  0x48   :  { %918 = vmatprep.subr.bf16.mxu0 %v1492_v10  ;;  %1044 = vmatprep.subr.bf16.mxu1 %v1495_v11  ;;  %v1586_v10 = vld [vmem:[%s2061_s0 + $0x4c] ss:$16 sps:$4 sm:$0xff]   ;;  %v1588_v11 = vld [vmem:[%s2061_s0 + $0x48] ss:$16 sps:$4 sm:$0xff]  }
  0x4a   :  { %894 = vmatmul.mubr.bf16.gmra.mrb[4].mxu0 %v1552_v21  ;;  %1020 = vmatmul.mubr.bf16.gmra.mrb[4].mxu1 %v1552_v21 }
  0x4b   :  { %919 = vmatpush1.bf16.msra.mxu0 %v1490_v12  ;;  %1045 = vmatpush1.bf16.msra.mxu1 %v1493_v13 }
  0x4c   :  { %920 = vmatprep.subr.bf16.mxu0 %v1498_v14  ;;  %1046 = vmatprep.subr.bf16.mxu1 %v1501_v15 }
  0x4d   :  { %903 = vmatprep.mubr.bf16.mxu0 %v1565_v28  ;;  %1029 = vmatprep.mubr.bf16.mxu1 %v1565_v28 }
  0x4f   :  { %921 = vmatpush1.bf16.msra.mxu0 %v1496_v16  ;;  %1047 = vmatpush1.bf16.msra.mxu1 %v1499_v17 }
  0x50   :  { %922 = vmatprep.subr.bf16.mxu0 %v1504_v18  ;;  %1048 = vmatprep.subr.bf16.mxu1 %v1507_v19 }
  0x52   :  { %904 = vmatmul.mubr.bf16.gmra.mrb[8].mxu0 %v1567_v29  ;;  %1030 = vmatmul.mubr.bf16.gmra.mrb[8].mxu1 %v1567_v29 }
  0x53   :  { %923 = vmatpush1.bf16.msra.mxu0 %v1502_v22  ;;  %1049 = vmatpush1.bf16.msra.mxu1 %v1505_v23 }
  0x54   :  { %924 = vmatprep.subr.bf16.mxu0 %v1510_v24  ;;  %1050 = vmatprep.subr.bf16.mxu1 %v1513_v25 }
  0x55   :  { %946 = vmatprep.mubr.bf16.mxu0 %v1582_v36  ;;  %1072 = vmatprep.mubr.bf16.mxu1 %v1582_v36 }
  0x57   :  { %925 = vmatpush1.bf16.msra.mxu0 %v1508_v26  ;;  %1051 = vmatpush1.bf16.msra.mxu1 %v1511_v27 }
  0x58   :  { %926 = vmatprep.subr.bf16.mxu0 %v1516_v30  ;;  %1052 = vmatprep.subr.bf16.mxu1 %v1519_v31 }
  0x5b   :  { %927 = vmatpush1.bf16.msra.mxu0 %v1514_v32  ;;  %1053 = vmatpush1.bf16.msra.mxu1 %v1517_v33 }
  0x5c   :  { %928 = vmatprep.subr.bf16.mxu0 %v1522_v34  ;;  %1054 = vmatprep.subr.bf16.mxu1 %v1525_v35 }
  0x5f   :  { %929 = vmatpush1.bf16.msra.mxu0 %v1520_v37  ;;  %1055 = vmatpush1.bf16.msra.mxu1 %v1523_v38 }
  0x60   :  { %930 = vmatprep.subr.bf16.mxu0 %v1528_v39  ;;  %1056 = vmatprep.subr.bf16.mxu1 %v1531_v40 }
  0x63   :  { %931 = vmatpush1.bf16.msra.mxu0 %v1526_v41  ;;  %1057 = vmatpush1.bf16.msra.mxu1 %v1529_v42 }
  0x64   :  { %932 = vmatprep.subr.bf16.mxu0 %v1534_v43  ;;  %1058 = vmatprep.subr.bf16.mxu1 %v1537_v44 }
  0x67   :  { %933 = vmatpush1.bf16.msra.mxu0 %v1532_v45  ;;  %1059 = vmatpush1.bf16.msra.mxu1 %v1535_v46 }
  0x68   :  { %934 = vmatprep.subr.bf16.mxu0 %v1540_v47  ;;  %1060 = vmatprep.subr.bf16.mxu1 %v1543_v48 }
  0x6b   :  { %935 = vmatpush1.bf16.msra.mxu0 %v1538_v49  ;;  %1061 = vmatpush1.bf16.msra.mxu1 %v1541_v50 }
  0x6c   :  { %936 = vmatprep.subr.bf16.mxu0 %v1546_v51  ;;  %1062 = vmatprep.subr.bf16.mxu1 %v1549_v52 }
  0x6f   :  { %937 = vmatpush1.bf16.msra.mxu0 %v1544_v53  ;;  %1063 = vmatpush1.bf16.msra.mxu1 %v1547_v54 }
  0x70   :  { %938 = vmatprep.subr.bf16.mxu0 %v1555_v55  ;;  %1064 = vmatprep.subr.bf16.mxu1 %v1558_v56 }
  0x73   :  { %939 = vmatpush1.bf16.msra.mxu0 %v1553_v57  ;;  %1065 = vmatpush1.bf16.msra.mxu1 %v1556_v58 }
  0x74   :  { %940 = vmatprep.subr.bf16.mxu0 %v1561_v59  ;;  %1066 = vmatprep.subr.bf16.mxu1 %v1564_v60 }
  0x77   :  { %941 = vmatpush1.bf16.msra.mxu0 %v1559_v61  ;;  %1067 = vmatpush1.bf16.msra.mxu1 %v1562_v62 }
  0x78   :  { %942 = vmatprep.subr.bf16.mxu0 %v1570_v63  ;;  %1068 = vmatprep.subr.bf16.mxu1 %v1573_v0 }
  0x7b   :  { %943 = vmatpush1.bf16.msra.mxu0 %v1568_v1  ;;  %1069 = vmatpush1.bf16.msra.mxu1 %v1571_v2 }
  0x7c   :  { %944 = vmatprep.subr.bf16.mxu0 %v1576_v3  ;;  %1070 = vmatprep.subr.bf16.mxu1 %v1579_v4 }
  0x7f   :  { %945 = vmatpush1.bf16.msra.mxu0 %v1574_v5  ;;  %1071 = vmatpush1.bf16.msra.mxu1 %v1577_v6 }
  0x82   :  { %947 = vmatmul.mubr.bf16.vlgmr.msra.gmra.mrb[0].mxu0 %v1580_v7  ;;  %1073 = vmatmul.mubr.bf16.vlgmr.msra.gmra.mrb[0].mxu1 %v1580_v7 }
  0x83   :  { %956 = vmatprep.mubr.bf16.mxu0 %v1583_v8  ;;  %1082 = vmatprep.mubr.bf16.mxu1 %v1583_v8 }
  0x8a   :  { %957 = vmatmul.mubr.bf16.gmra.mrb[4].mxu0 %v1585_v9  ;;  %1083 = vmatmul.mubr.bf16.gmra.mrb[4].mxu1 %v1585_v9 }
  0x8b   :  { %966 = vmatprep.mubr.bf16.mxu0 %v1586_v10  ;;  %1092 = vmatprep.mubr.bf16.mxu1 %v1586_v10 }
  0x92   :  { %967 = vmatmul.mubr.bf16.gmra.mrb[8].mxu0 %v1588_v11  ;;  %1093 = vmatmul.mubr.bf16.gmra.mrb[8].mxu1 %v1588_v11 }
 0x155   :  { %v948_v12 = vpop.f32.mrb[0].mxu0  ;;  %v1074_v13 = vpop.f32.mrb[0].mxu1 }
 0x156   :  { %v950_v14 = vpop.f32.mrb[1].mxu0  ;;  %v1076_v15 = vpop.f32.mrb[1].mxu1 }
 0x157   :  { %v1343_v16 = vpack.c.bf16 %v950_v14, %v948_v12  ;;  %v1344_v17 = vpack.c.bf16 %v1076_v15, %v1074_v13  ;;  %v952_v18 = vpop.f32.mrb[2].mxu0  ;;  %v1078_v19 = vpop.f32.mrb[2].mxu1 }
 0x158   :  { %v954_v20 = vpop.f32.mrb[3].mxu0  ;;  %v1080_v21 = vpop.f32.mrb[3].mxu1 }
 0x159   :  { %1175 = vst [vmem:[%s2062_s2] sm:$0xff] %v1343_v16  ;;  %1176 = vst [vmem:[%s2062_s2 + $0x8] sm:$0xff] %v1344_v17  ;;  %v1345_v22 = vpack.c.bf16 %v954_v20, %v952_v18  ;;  %v1346_v23 = vpack.c.bf16 %v1080_v21, %v1078_v19 }
 0x15b   :  { %1177 = vst [vmem:[%s2062_s2 + $0x10] sm:$0xff] %v1345_v22  ;;  %1178 = vst [vmem:[%s2062_s2 + $0x18] sm:$0xff] %v1346_v23 }
 0x15d   :  { %v958_v24 = vpop.f32.mrb[4].mxu0  ;;  %v1084_v25 = vpop.f32.mrb[4].mxu1 }
 0x15e   :  { %v960_v26 = vpop.f32.mrb[5].mxu0  ;;  %v1086_v27 = vpop.f32.mrb[5].mxu1 }
 0x15f   :  { %v1347_v28 = vpack.c.bf16 %v960_v26, %v958_v24  ;;  %v1348_v29 = vpack.c.bf16 %v1086_v27, %v1084_v25  ;;  %v962_v30 = vpop.f32.mrb[6].mxu0  ;;  %v1088_v31 = vpop.f32.mrb[6].mxu1 }
 0x160   :  { %v964_v32 = vpop.f32.mrb[7].mxu0  ;;  %v1090_v33 = vpop.f32.mrb[7].mxu1 }
 0x161   :  { %1179 = vst [vmem:[%s2062_s2 + $0x20] sm:$0xff] %v1347_v28  ;;  %1180 = vst [vmem:[%s2062_s2 + $0x28] sm:$0xff] %v1348_v29  ;;  %v1349_v34 = vpack.c.bf16 %v964_v32, %v962_v30  ;;  %v1350_v35 = vpack.c.bf16 %v1090_v33, %v1088_v31 }
 0x163   :  { %1181 = vst [vmem:[%s2062_s2 + $0x30] sm:$0xff] %v1349_v34  ;;  %1182 = vst [vmem:[%s2062_s2 + $0x38] sm:$0xff] %v1350_v35 }
 0x165   :  { %v968_v36 = vpop.f32.mrb[8].mxu0  ;;  %v1094_v37 = vpop.f32.mrb[8].mxu1 }
 0x166   :  { %v970_v38 = vpop.f32.mrb[9].mxu0  ;;  %v1096_v39 = vpop.f32.mrb[9].mxu1 }
 0x167   :  { %v1351_v40 = vpack.c.bf16 %v970_v38, %v968_v36  ;;  %v1352_v41 = vpack.c.bf16 %v1096_v39, %v1094_v37  ;;  %v972_v42 = vpop.f32.mrb[10].mxu0  ;;  %v1098_v43 = vpop.f32.mrb[10].mxu1 }
 0x168   :  { %v974_v44 = vpop.f32.mrb[11].mxu0  ;;  %v1100_v45 = vpop.f32.mrb[11].mxu1 }
 0x169   :  { %1183 = vst [vmem:[%s2062_s2 + $0x40] sm:$0xff] %v1351_v40  ;;  %1184 = vst [vmem:[%s2062_s2 + $0x48] sm:$0xff] %v1352_v41  ;;  %v1353_v46 = vpack.c.bf16 %v974_v44, %v972_v42  ;;  %v1354_v47 = vpack.c.bf16 %v1100_v45, %v1098_v43 }
 0x16b   :  { %1185 = vst [vmem:[%s2062_s2 + $0x50] sm:$0xff] %v1353_v46  ;;  %1186 = vst [vmem:[%s2062_s2 + $0x58] sm:$0xff] %v1354_v47 }

// kernel: ffno_forward.22
= control target key start
LH: loop header
LB: loop body
LE: loop exit
PB: predicated region body
PF: predicated region fallthrough
CT: control target
= control target key end

     0   :  { %s1512_s9 = smov 0   ;;  %s1735_s0 = inlined_call_operand.vmem [shape: bf16[1536,16], index: 0, kind: input, shape index: {}]   ;;  %s1736_s1 = inlined_call_operand.vmem [shape: bf16[16,24], index: 1, kind: input, shape index: {}]   ;;  %s1737_s2 = inlined_call_operand.vmem [shape: bf16[1536,24], index: 2, kind: output, shape index: {}]  }
   0x1 LB: > { %s1143_s10 = sadd.s32 4294967295, %s1495_s9   ;;  %p1147_p0 = scmp.ge.s32.totalorder %s1495_s9, 1  ;;  %s1495_s9 = sphi %s1512_s9, %s12_s9  }
   0x2   : > { %p113_p1 = scmp.lt.s32.totalorder %s1495_s9, 4 }
   0x4   : > { %p114_p2 = pnand %p1147_p0, %p113_p1 }
   0x5   : > { %v1456_v0 = vld [vmem:[%s1736_s1] sm:$0xff] (!%p114_p2)   ;;  %s1148_s13 = sshll.u32 (!%p114_p2), %s1143_s10, 6  ;;  %vm380_vm0 = vcmask (!%p114_p2), 130048   ;;  %vm1022_vm1 = vcmask (!%p114_p2), 191488  }
   0x6   : > { %117 = sbr.rel (%p114_p2) target bundleno = 293 (0x125), region = 28  ;;  %p136_p3 = scmp.lt.s32.totalorder (!%p114_p2), %s1148_s13, 191  ;;  %1380 = vmatprep.subr.bf16.mxu0 (!%p114_p2), %v1456_v0  ;;  %1446 = vmatprep.subr.bf16.mxu1 (!%p114_p2), %v1456_v0 }
   0x7   : > { %1381 = vmatpush3.bf16.msra.mxu0 (!%p114_p2), %v1456_v0  ;;  %1447 = vmatpush3.bf16.msra.mxu1 (!%p114_p2), %v1456_v0 }
   0xd   : > { %s1739_s13 = smov (!%p136_p3, %s1148_s13), 191 }
   0xe   : > { %s1149_s14 = sshll.u32 %s1739_s13, 2 }
   0xf   : > { %s1531_s17 = scalar_lea.vmem %s1735_s0, %s1149_s14  ;;  %s1602_s20 = scalar_lea.vmem %s1737_s2, %s1149_s14 }
  0x10   : > { %v1457_v1 = vld [vmem:[%s1531_s17] sm:$0xff]   ;;  %v1459_v3 = vld [vmem:[%s1531_s17 + $0x8] sm:$0xff]   ;;  %v1461_v5 = vld [vmem:[%s1531_s17 + $0x10] sm:$0xff]  }
  0x11   : > { %v1458_v2 = vld [vmem:[%s1531_s17 + $0x80] sm:$0xff]   ;;  %1382 = vmatprep.mubr.msk.bf16.mxu0 %vm380_vm0, %v1457_v1  ;;  %v1460_v4 = vld [vmem:[%s1531_s17 + $0x88] sm:$0xff]   ;;  %v1462_v6 = vld [vmem:[%s1531_s17 + $0x90] sm:$0xff]  }
  0x12   : > { %1414 = vmatprep.mubr.msk.bf16.mxu1 %vm380_vm0, %v1458_v2  ;;  %1383 = vmatmul.mubr.msk.bf16.vlgmr.msra.gmra.mrb[0].mxu0 %vm380_vm0, %v1459_v3  ;;  %v1463_v7 = vld [vmem:[%s1531_s17 + $0x18] sm:$0xff]   ;;  %v1465_v9 = vld [vmem:[%s1531_s17 + $0x20] sm:$0xff]   ;;  %v1467_v11 = vld [vmem:[%s1531_s17 + $0x28] sm:$0xff]  }
  0x13   : > { %1415 = vmatmul.mubr.msk.bf16.vlgmr.msra.gmra.mrb[0].mxu1 %vm380_vm0, %v1460_v4  ;;  %1386 = vmatprep.mubr.msk.bf16.mxu0 %vm380_vm0, %v1461_v5  ;;  %v1464_v8 = vld [vmem:[%s1531_s17 + $0x98] sm:$0xff]   ;;  %v1466_v10 = vld [vmem:[%s1531_s17 + $0xa0] sm:$0xff]   ;;  %v1468_v12 = vld [vmem:[%s1531_s17 + $0xa8] sm:$0xff]  }
  0x14   : > { %1418 = vmatprep.mubr.msk.bf16.mxu1 %vm380_vm0, %v1462_v6  ;;  %v1469_v13 = vld [vmem:[%s1531_s17 + $0x30] sm:$0xff]   ;;  %v1471_v15 = vld [vmem:[%s1531_s17 + $0x38] sm:$0xff]   ;;  %v1473_v17 = vld [vmem:[%s1531_s17 + $0x40] sm:$0xff]  }
  0x15   : > { %v1470_v14 = vld [vmem:[%s1531_s17 + $0xb0] sm:$0xff]   ;;  %v1472_v16 = vld [vmem:[%s1531_s17 + $0xb8] sm:$0xff]   ;;  %v1474_v18 = vld [vmem:[%s1531_s17 + $0xc0] sm:$0xff]  }
  0x16   : > { %v1475_v19 = vld [vmem:[%s1531_s17 + $0x48] sm:$0xff]   ;;  %v1477_v21 = vld [vmem:[%s1531_s17 + $0x50] sm:$0xff]   ;;  %v1479_v23 = vld [vmem:[%s1531_s17 + $0x58] sm:$0xff]  }
  0x17   : > { %v1476_v20 = vld [vmem:[%s1531_s17 + $0xc8] sm:$0xff]   ;;  %v1478_v22 = vld [vmem:[%s1531_s17 + $0xd0] sm:$0xff]   ;;  %v1480_v24 = vld [vmem:[%s1531_s17 + $0xd8] sm:$0xff]  }
  0x18   : > { %v1481_v25 = vld [vmem:[%s1531_s17 + $0x60] sm:$0xff]   ;;  %v1483_v27 = vld [vmem:[%s1531_s17 + $0x68] sm:$0xff]   ;;  %v1485_v29 = vld [vmem:[%s1531_s17 + $0x70] sm:$0xff]  }
  0x19   : > { %v1482_v26 = vld [vmem:[%s1531_s17 + $0xe0] sm:$0xff]   ;;  %v1484_v28 = vld [vmem:[%s1531_s17 + $0xe8] sm:$0xff]   ;;  %v1486_v30 = vld [vmem:[%s1531_s17 + $0xf0] sm:$0xff]  }
  0x1a   : > { %1387 = vmatmul.mubr.msk.bf16.gmra.mrb[4].mxu0 %vm380_vm0, %v1463_v7  ;;  %v1487_v31 = vld [vmem:[%s1531_s17 + $0x78] sm:$0xff]  }
  0x1b   : > { %1419 = vmatmul.mubr.msk.bf16.gmra.mrb[4].mxu1 %vm380_vm0, %v1464_v8  ;;  %1390 = vmatprep.mubr.msk.bf16.mxu0 %vm380_vm0, %v1465_v9  ;;  %v1488_v32 = vld [vmem:[%s1531_s17 + $0xf8] sm:$0xff]  }
  0x1c   : > { %1422 = vmatprep.mubr.msk.bf16.mxu1 %vm380_vm0, %v1466_v10 }
  0x22   : > { %1391 = vmatmul.mubr.msk.bf16.gmra.mrb[8].mxu0 %vm380_vm0, %v1467_v11 }
  0x23   : > { %1423 = vmatmul.mubr.msk.bf16.gmra.mrb[8].mxu1 %vm380_vm0, %v1468_v12  ;;  %1394 = vmatprep.mubr.msk.bf16.mxu0 %vm380_vm0, %v1469_v13 }
  0x24   : > { %1426 = vmatprep.mubr.msk.bf16.mxu1 %vm380_vm0, %v1470_v14 }
  0x2a   : > { %1395 = vmatmul.mubr.msk.bf16.gmra.mrb[12].mxu0 %vm380_vm0, %v1471_v15 }
  0x2b   : > { %1427 = vmatmul.mubr.msk.bf16.gmra.mrb[12].mxu1 %vm380_vm0, %v1472_v16  ;;  %1398 = vmatprep.mubr.msk.bf16.mxu0 %vm380_vm0, %v1473_v17 }
  0x2c   : > { %1430 = vmatprep.mubr.msk.bf16.mxu1 %vm380_vm0, %v1474_v18 }
  0x32   : > { %1399 = vmatmul.mubr.msk.bf16.gmra.mrb[16].mxu0 %vm380_vm0, %v1475_v19 }
  0x33   : > { %1431 = vmatmul.mubr.msk.bf16.gmra.mrb[16].mxu1 %vm380_vm0, %v1476_v20  ;;  %1402 = vmatprep.mubr.msk.bf16.mxu0 %vm380_vm0, %v1477_v21 }
  0x34   : > { %1434 = vmatprep.mubr.msk.bf16.mxu1 %vm380_vm0, %v1478_v22 }
  0x3a   : > { %1403 = vmatmul.mubr.msk.bf16.gmra.mrb[20].mxu0 %vm380_vm0, %v1479_v23 }
  0x3b   : > { %1435 = vmatmul.mubr.msk.bf16.gmra.mrb[20].mxu1 %vm380_vm0, %v1480_v24  ;;  %1406 = vmatprep.mubr.msk.bf16.mxu0 %vm380_vm0, %v1481_v25 }
  0x3c   : > { %1438 = vmatprep.mubr.msk.bf16.mxu1 %vm380_vm0, %v1482_v26 }
  0x42   : > { %1407 = vmatmul.mubr.msk.bf16.gmra.mrb[24].mxu0 %vm380_vm0, %v1483_v27 }
  0x43   : > { %1439 = vmatmul.mubr.msk.bf16.gmra.mrb[24].mxu1 %vm380_vm0, %v1484_v28  ;;  %1410 = vmatprep.mubr.msk.bf16.mxu0 %vm380_vm0, %v1485_v29 }
  0x44   : > { %1442 = vmatprep.mubr.msk.bf16.mxu1 %vm380_vm0, %v1486_v30 }
  0x4a   : > { %1411 = vmatmul.mubr.msk.bf16.gmra.mrb[28].mxu0 %vm380_vm0, %v1487_v31 }
  0x4b   : > { %1443 = vmatmul.mubr.msk.bf16.gmra.mrb[28].mxu1 %vm380_vm0, %v1488_v32 }
  0xe5   : > { %v1384_v33 = vpop.f32.mrb[0].mxu0 }
  0xe6   : > { %v1285_v34 = vpack.c.bf16 %v1384_v33, %v1384_v33  ;;  %v1416_v35 = vpop.f32.mrb[0].mxu1  ;;  %v511_v36 = vpop.f32.mrb[1].mxu0 }
  0xe7   : > { %v1317_v37 = vpack.c.bf16 %v1416_v35, %v1416_v35  ;;  %v1283_v38 = vpack.c.bf16 %v511_v36, %v511_v36  ;;  %v639_v39 = vpop.f32.mrb[1].mxu1  ;;  %v1385_v40 = vpop.f32.mrb[2].mxu0 }
  0xe8   : > { %1025 = vst.msk [vmem:[%s1602_s20 + $0x8] sm:$0xf] %vm1022_vm1, %v1285_v34  ;;  %v1315_v41 = vpack.c.bf16 %v639_v39, %v639_v39  ;;  %v1286_v42 = vpack.c.bf16 %v1385_v40, %v1385_v40  ;;  %v1417_v43 = vpop.f32.mrb[2].mxu1  ;;  %v514_v44 = vpop.f32.mrb[3].mxu0 }
  0xe9   : > { %1057 = vst.msk [vmem:[%s1602_s20 + $0x88] sm:$0xf] %vm1022_vm1, %v1317_v37  ;;  %1023 = vst.msk [vmem:[%s1602_s20] sm:$0xf] %vm1022_vm1, %v1283_v38  ;;  %v1318_v45 = vpack.c.bf16 %v1417_v43, %v1417_v43  ;;  %v1284_v46 = vpack.c.bf16 %v514_v44, %v514_v44  ;;  %v642_v47 = vpop.f32.mrb[3].mxu1 }
  0xea   : > { %1055 = vst.msk [vmem:[%s1602_s20 + $0x80] sm:$0xf] %vm1022_vm1, %v1315_v41  ;;  %1026 = vst.msk [vmem:[%s1602_s20 + $0xc] sm:$0xf] %vm1022_vm1, %v1286_v42  ;;  %v1316_v48 = vpack.c.bf16 %v642_v47, %v642_v47 }
  0xeb   : > { %1058 = vst.msk [vmem:[%s1602_s20 + $0x8c] sm:$0xf] %vm1022_vm1, %v1318_v45  ;;  %1024 = vst.msk [vmem:[%s1602_s20 + $0x4] sm:$0xf] %vm1022_vm1, %v1284_v46 }
  0xec   : > { %1056 = vst.msk [vmem:[%s1602_s20 + $0x84] sm:$0xf] %vm1022_vm1, %v1316_v48 }
  0xed   : > { %v1388_v49 = vpop.f32.mrb[4].mxu0 }
  0xee   : > { %v1289_v50 = vpack.c.bf16 %v1388_v49, %v1388_v49  ;;  %v1420_v51 = vpop.f32.mrb[4].mxu1  ;;  %v527_v52 = vpop.f32.mrb[5].mxu0 }
  0xef   : > { %v1321_v53 = vpack.c.bf16 %v1420_v51, %v1420_v51  ;;  %v1287_v54 = vpack.c.bf16 %v527_v52, %v527_v52  ;;  %v655_v55 = vpop.f32.mrb[5].mxu1  ;;  %v1389_v56 = vpop.f32.mrb[6].mxu0 }
  0xf0   : > { %1029 = vst.msk [vmem:[%s1602_s20 + $0x18] sm:$0xf] %vm1022_vm1, %v1289_v50  ;;  %v1319_v57 = vpack.c.bf16 %v655_v55, %v655_v55  ;;  %v1290_v58 = vpack.c.bf16 %v1389_v56, %v1389_v56  ;;  %v1421_v59 = vpop.f32.mrb[6].mxu1  ;;  %v530_v60 = vpop.f32.mrb[7].mxu0 }
  0xf1   : > { %1061 = vst.msk [vmem:[%s1602_s20 + $0x98] sm:$0xf] %vm1022_vm1, %v1321_v53  ;;  %1027 = vst.msk [vmem:[%s1602_s20 + $0x10] sm:$0xf] %vm1022_vm1, %v1287_v54  ;;  %v1322_v61 = vpack.c.bf16 %v1421_v59, %v1421_v59  ;;  %v1288_v62 = vpack.c.bf16 %v530_v60, %v530_v60  ;;  %v658_v63 = vpop.f32.mrb[7].mxu1 }
  0xf2   : > { %1059 = vst.msk [vmem:[%s1602_s20 + $0x90] sm:$0xf] %vm1022_vm1, %v1319_v57  ;;  %1030 = vst.msk [vmem:[%s1602_s20 + $0x1c] sm:$0xf] %vm1022_vm1, %v1290_v58  ;;  %v1320_v0 = vpack.c.bf16 %v658_v63, %v658_v63 }
  0xf3   : > { %1062 = vst.msk [vmem:[%s1602_s20 + $0x9c] sm:$0xf] %vm1022_vm1, %v1322_v61  ;;  %1028 = vst.msk [vmem:[%s1602_s20 + $0x14] sm:$0xf] %vm1022_vm1, %v1288_v62 }
  0xf4   : > { %1060 = vst.msk [vmem:[%s1602_s20 + $0x94] sm:$0xf] %vm1022_vm1, %v1320_v0 }
  0xf5   : > { %v1392_v1 = vpop.f32.mrb[8].mxu0 }
  0xf6   : > { %v1293_v2 = vpack.c.bf16 %v1392_v1, %v1392_v1  ;;  %v1424_v3 = vpop.f32.mrb[8].mxu1  ;;  %v543_v4 = vpop.f32.mrb[9].mxu0 }
  0xf7   : > { %v1325_v5 = vpack.c.bf16 %v1424_v3, %v1424_v3  ;;  %v1291_v6 = vpack.c.bf16 %v543_v4, %v543_v4  ;;  %v671_v7 = vpop.f32.mrb[9].mxu1  ;;  %v1393_v8 = vpop.f32.mrb[10].mxu0 }
  0xf8   : > { %1033 = vst.msk [vmem:[%s1602_s20 + $0x28] sm:$0xf] %vm1022_vm1, %v1293_v2  ;;  %v1323_v9 = vpack.c.bf16 %v671_v7, %v671_v7  ;;  %v1294_v10 = vpack.c.bf16 %v1393_v8, %v1393_v8  ;;  %v1425_v11 = vpop.f32.mrb[10].mxu1  ;;  %v546_v12 = vpop.f32.mrb[11].mxu0 }
  0xf9   : > { %1065 = vst.msk [vmem:[%s1602_s20 + $0xa8] sm:$0xf] %vm1022_vm1, %v1325_v5  ;;  %1031 = vst.msk [vmem:[%s1602_s20 + $0x20] sm:$0xf] %vm1022_vm1, %v1291_v6  ;;  %v1326_v13 = vpack.c.bf16 %v1425_v11, %v1425_v11  ;;  %v1292_v14 = vpack.c.bf16 %v546_v12, %v546_v12  ;;  %v674_v15 = vpop.f32.mrb[11].mxu1 }
  0xfa   : > { %1063 = vst.msk [vmem:[%s1602_s20 + $0xa0] sm:$0xf] %vm1022_vm1, %v1323_v9  ;;  %1034 = vst.msk [vmem:[%s1602_s20 + $0x2c] sm:$0xf] %vm1022_vm1, %v1294_v10  ;;  %v1324_v16 = vpack.c.bf16 %v674_v15, %v674_v15 }
  0xfb   : > { %1066 = vst.msk [vmem:[%s1602_s20 + $0xac] sm:$0xf] %vm1022_vm1, %v1326_v13  ;;  %1032 = vst.msk [vmem:[%s1602_s20 + $0x24] sm:$0xf] %vm1022_vm1, %v1292_v14 }
  0xfc   : > { %1064 = vst.msk [vmem:[%s1602_s20 + $0xa4] sm:$0xf] %vm1022_vm1, %v1324_v16 }
  0xfd   : > { %v1396_v17 = vpop.f32.mrb[12].mxu0 }
  0xfe   : > { %v1297_v18 = vpack.c.bf16 %v1396_v17, %v1396_v17  ;;  %v1428_v19 = vpop.f32.mrb[12].mxu1  ;;  %v559_v20 = vpop.f32.mrb[13].mxu0 }
  0xff   : > { %v1329_v21 = vpack.c.bf16 %v1428_v19, %v1428_v19  ;;  %v1295_v22 = vpack.c.bf16 %v559_v20, %v559_v20  ;;  %v687_v23 = vpop.f32.mrb[13].mxu1  ;;  %v1397_v24 = vpop.f32.mrb[14].mxu0 }
 0x100   : > { %1037 = vst.msk [vmem:[%s1602_s20 + $0x38] sm:$0xf] %vm1022_vm1, %v1297_v18  ;;  %v1327_v25 = vpack.c.bf16 %v687_v23, %v687_v23  ;;  %v1298_v26 = vpack.c.bf16 %v1397_v24, %v1397_v24  ;;  %v1429_v27 = vpop.f32.mrb[14].mxu1  ;;  %v562_v28 = vpop.f32.mrb[15].mxu0 }
 0x101   : > { %1069 = vst.msk [vmem:[%s1602_s20 + $0xb8] sm:$0xf] %vm1022_vm1, %v1329_v21  ;;  %1035 = vst.msk [vmem:[%s1602_s20 + $0x30] sm:$0xf] %vm1022_vm1, %v1295_v22  ;;  %v1330_v29 = vpack.c.bf16 %v1429_v27, %v1429_v27  ;;  %v1296_v30 = vpack.c.bf16 %v562_v28, %v562_v28  ;;  %v690_v31 = vpop.f32.mrb[15].mxu1 }
 0x102   : > { %1067 = vst.msk [vmem:[%s1602_s20 + $0xb0] sm:$0xf] %vm1022_vm1, %v1327_v25  ;;  %1038 = vst.msk [vmem:[%s1602_s20 + $0x3c] sm:$0xf] %vm1022_vm1, %v1298_v26  ;;  %v1328_v32 = vpack.c.bf16 %v690_v31, %v690_v31 }
 0x103   : > { %1070 = vst.msk [vmem:[%s1602_s20 + $0xbc] sm:$0xf] %vm1022_vm1, %v1330_v29  ;;  %1036 = vst.msk [vmem:[%s1602_s20 + $0x34] sm:$0xf] %vm1022_vm1, %v1296_v30 }
 0x104   : > { %1068 = vst.msk [vmem:[%s1602_s20 + $0xb4] sm:$0xf] %vm1022_vm1, %v1328_v32 }
 0x105   : > { %v1400_v33 = vpop.f32.mrb[16].mxu0 }
 0x106   : > { %v1301_v34 = vpack.c.bf16 %v1400_v33, %v1400_v33  ;;  %v1432_v35 = vpop.f32.mrb[16].mxu1  ;;  %v575_v36 = vpop.f32.mrb[17].mxu0 }
 0x107   : > { %v1333_v37 = vpack.c.bf16 %v1432_v35, %v1432_v35  ;;  %v1299_v38 = vpack.c.bf16 %v575_v36, %v575_v36  ;;  %v703_v39 = vpop.f32.mrb[17].mxu1  ;;  %v1401_v40 = vpop.f32.mrb[18].mxu0 }
 0x108   : > { %1041 = vst.msk [vmem:[%s1602_s20 + $0x48] sm:$0xf] %vm1022_vm1, %v1301_v34  ;;  %v1331_v41 = vpack.c.bf16 %v703_v39, %v703_v39  ;;  %v1302_v42 = vpack.c.bf16 %v1401_v40, %v1401_v40  ;;  %v1433_v43 = vpop.f32.mrb[18].mxu1  ;;  %v578_v44 = vpop.f32.mrb[19].mxu0 }
 0x109   : > { %1073 = vst.msk [vmem:[%s1602_s20 + $0xc8] sm:$0xf] %vm1022_vm1, %v1333_v37  ;;  %1039 = vst.msk [vmem:[%s1602_s20 + $0x40] sm:$0xf] %vm1022_vm1, %v1299_v38  ;;  %v1334_v45 = vpack.c.bf16 %v1433_v43, %v1433_v43  ;;  %v1300_v46 = vpack.c.bf16 %v578_v44, %v578_v44  ;;  %v706_v47 = vpop.f32.mrb[19].mxu1 }
 0x10a   : > { %1071 = vst.msk [vmem:[%s1602_s20 + $0xc0] sm:$0xf] %vm1022_vm1, %v1331_v41  ;;  %1042 = vst.msk [vmem:[%s1602_s20 + $0x4c] sm:$0xf] %vm1022_vm1, %v1302_v42  ;;  %v1332_v48 = vpack.c.bf16 %v706_v47, %v706_v47 }
 0x10b   : > { %1074 = vst.msk [vmem:[%s1602_s20 + $0xcc] sm:$0xf] %vm1022_vm1, %v1334_v45  ;;  %1040 = vst.msk [vmem:[%s1602_s20 + $0x44] sm:$0xf] %vm1022_vm1, %v1300_v46 }
 0x10c   : > { %1072 = vst.msk [vmem:[%s1602_s20 + $0xc4] sm:$0xf] %vm1022_vm1, %v1332_v48 }
 0x10d   : > { %v1404_v49 = vpop.f32.mrb[20].mxu0 }
 0x10e   : > { %v1305_v50 = vpack.c.bf16 %v1404_v49, %v1404_v49  ;;  %v1436_v51 = vpop.f32.mrb[20].mxu1  ;;  %v591_v52 = vpop.f32.mrb[21].mxu0 }
 0x10f   : > { %v1337_v53 = vpack.c.bf16 %v1436_v51, %v1436_v51  ;;  %v1303_v54 = vpack.c.bf16 %v591_v52, %v591_v52  ;;  %v719_v55 = vpop.f32.mrb[21].mxu1  ;;  %v1405_v56 = vpop.f32.mrb[22].mxu0 }
 0x110   : > { %1045 = vst.msk [vmem:[%s1602_s20 + $0x58] sm:$0xf] %vm1022_vm1, %v1305_v50  ;;  %v1335_v57 = vpack.c.bf16 %v719_v55, %v719_v55  ;;  %v1306_v58 = vpack.c.bf16 %v1405_v56, %v1405_v56  ;;  %v1437_v59 = vpop.f32.mrb[22].mxu1  ;;  %v594_v60 = vpop.f32.mrb[23].mxu0 }
 0x111   : > { %1077 = vst.msk [vmem:[%s1602_s20 + $0xd8] sm:$0xf] %vm1022_vm1, %v1337_v53  ;;  %1043 = vst.msk [vmem:[%s1602_s20 + $0x50] sm:$0xf] %vm1022_vm1, %v1303_v54  ;;  %v1338_v61 = vpack.c.bf16 %v1437_v59, %v1437_v59  ;;  %v1304_v62 = vpack.c.bf16 %v594_v60, %v594_v60  ;;  %v722_v63 = vpop.f32.mrb[23].mxu1 }
 0x112   : > { %1075 = vst.msk [vmem:[%s1602_s20 + $0xd0] sm:$0xf] %vm1022_vm1, %v1335_v57  ;;  %1046 = vst.msk [vmem:[%s1602_s20 + $0x5c] sm:$0xf] %vm1022_vm1, %v1306_v58  ;;  %v1336_v0 = vpack.c.bf16 %v722_v63, %v722_v63 }
 0x113   : > { %1078 = vst.msk [vmem:[%s1602_s20 + $0xdc] sm:$0xf] %vm1022_vm1, %v1338_v61  ;;  %1044 = vst.msk [vmem:[%s1602_s20 + $0x54] sm:$0xf] %vm1022_vm1, %v1304_v62 }
 0x114   : > { %1076 = vst.msk [vmem:[%s1602_s20 + $0xd4] sm:$0xf] %vm1022_vm1, %v1336_v0 }
 0x115   : > { %v1408_v1 = vpop.f32.mrb[24].mxu0 }
 0x116   : > { %v1309_v2 = vpack.c.bf16 %v1408_v1, %v1408_v1  ;;  %v1440_v3 = vpop.f32.mrb[24].mxu1  ;;  %v607_v4 = vpop.f32.mrb[25].mxu0 }
 0x117   : > { %v1341_v5 = vpack.c.bf16 %v1440_v3, %v1440_v3  ;;  %v1307_v6 = vpack.c.bf16 %v607_v4, %v607_v4  ;;  %v735_v7 = vpop.f32.mrb[25].mxu1  ;;  %v1409_v8 = vpop.f32.mrb[26].mxu0 }
 0x118   : > { %1049 = vst.msk [vmem:[%s1602_s20 + $0x68] sm:$0xf] %vm1022_vm1, %v1309_v2  ;;  %v1339_v9 = vpack.c.bf16 %v735_v7, %v735_v7  ;;  %v1310_v10 = vpack.c.bf16 %v1409_v8, %v1409_v8  ;;  %v1441_v11 = vpop.f32.mrb[26].mxu1  ;;  %v610_v12 = vpop.f32.mrb[27].mxu0 }
 0x119   : > { %1081 = vst.msk [vmem:[%s1602_s20 + $0xe8] sm:$0xf] %vm1022_vm1, %v1341_v5  ;;  %1047 = vst.msk [vmem:[%s1602_s20 + $0x60] sm:$0xf] %vm1022_vm1, %v1307_v6  ;;  %v1342_v13 = vpack.c.bf16 %v1441_v11, %v1441_v11  ;;  %v1308_v14 = vpack.c.bf16 %v610_v12, %v610_v12  ;;  %v738_v15 = vpop.f32.mrb[27].mxu1 }
 0x11a   : > { %1079 = vst.msk [vmem:[%s1602_s20 + $0xe0] sm:$0xf] %vm1022_vm1, %v1339_v9  ;;  %1050 = vst.msk [vmem:[%s1602_s20 + $0x6c] sm:$0xf] %vm1022_vm1, %v1310_v10  ;;  %v1340_v16 = vpack.c.bf16 %v738_v15, %v738_v15 }
 0x11b   : > { %1082 = vst.msk [vmem:[%s1602_s20 + $0xec] sm:$0xf] %vm1022_vm1, %v1342_v13  ;;  %1048 = vst.msk [vmem:[%s1602_s20 + $0x64] sm:$0xf] %vm1022_vm1, %v1308_v14 }
 0x11c   : > { %1080 = vst.msk [vmem:[%s1602_s20 + $0xe4] sm:$0xf] %vm1022_vm1, %v1340_v16 }
 0x11d   : > { %v1412_v17 = vpop.f32.mrb[28].mxu0 }
 0x11e   : > { %v1313_v18 = vpack.c.bf16 %v1412_v17, %v1412_v17  ;;  %v1444_v19 = vpop.f32.mrb[28].mxu1  ;;  %v623_v20 = vpop.f32.mrb[29].mxu0 }
 0x11f   : > { %v1345_v21 = vpack.c.bf16 %v1444_v19, %v1444_v19  ;;  %v1311_v22 = vpack.c.bf16 %v623_v20, %v623_v20  ;;  %v751_v23 = vpop.f32.mrb[29].mxu1  ;;  %v1413_v24 = vpop.f32.mrb[30].mxu0 }
 0x120   : > { %1053 = vst.msk [vmem:[%s1602_s20 + $0x78] sm:$0xf] %vm1022_vm1, %v1313_v18  ;;  %v1343_v25 = vpack.c.bf16 %v751_v23, %v751_v23  ;;  %v1314_v26 = vpack.c.bf16 %v1413_v24, %v1413_v24  ;;  %v1445_v27 = vpop.f32.mrb[30].mxu1  ;;  %v626_v28 = vpop.f32.mrb[31].mxu0 }
 0x121   : > { %1085 = vst.msk [vmem:[%s1602_s20 + $0xf8] sm:$0xf] %vm1022_vm1, %v1345_v21  ;;  %1051 = vst.msk [vmem:[%s1602_s20 + $0x70] sm:$0xf] %vm1022_vm1, %v1311_v22  ;;  %v1346_v29 = vpack.c.bf16 %v1445_v27, %v1445_v27  ;;  %v1312_v30 = vpack.c.bf16 %v626_v28, %v626_v28  ;;  %v754_v31 = vpop.f32.mrb[31].mxu1 }
 0x122   : > { %1083 = vst.msk [vmem:[%s1602_s20 + $0xf0] sm:$0xf] %vm1022_vm1, %v1343_v25  ;;  %1054 = vst.msk [vmem:[%s1602_s20 + $0x7c] sm:$0xf] %vm1022_vm1, %v1314_v26  ;;  %v1344_v32 = vpack.c.bf16 %v754_v31, %v754_v31 }
 0x123   : > { %1086 = vst.msk [vmem:[%s1602_s20 + $0xfc] sm:$0xf] %vm1022_vm1, %v1346_v29  ;;  %1052 = vst.msk [vmem:[%s1602_s20 + $0x74] sm:$0xf] %vm1022_vm1, %v1312_v30 }
 0x124   : > { %1084 = vst.msk [vmem:[%s1602_s20 + $0xf4] sm:$0xf] %vm1022_vm1, %v1344_v32 }
 0x125 PF: > { %s12_s9 = sadd.s32 1, %s1495_s9  }
 0x126   : > { %p9_p4 = scmp.ge.s32.totalorder %s12_s9, 5  }
 0x128   :  { %11 = sbr.rel (!%p9_p4) target bundleno = 1 (0x1), region = 58 }

// kernel: ffno_forward.23
= control target key start
LH: loop header
LB: loop body
LE: loop exit
PB: predicated region body
PF: predicated region fallthrough
CT: control target
= control target key end

     0   :  { %s3142_s24 = smov 0   ;;  %s3144_s25 = smov 0   ;;  %s4060_s0 = inlined_call_operand.vmem [shape: bf16[1152,32], index: 0, kind: input, shape index: {}]   ;;  %s4061_s1 = inlined_call_operand.vmem [shape: bf16[1152,32], index: 1, kind: input, shape index: {}]   ;;  %s4062_s2 = inlined_call_operand.vmem [shape: f32[1152,32], index: 2, kind: input, shape index: {}]   ;;  %s4063_s3 = inlined_call_operand.vmem [shape: bf16[32,128], index: 3, kind: input, shape index: {}]   ;;  %s4064_s4 = inlined_call_operand.vmem [shape: f32[1,128], index: 4, kind: input, shape index: {}]   ;;  %s4065_s5 = inlined_call_operand.vmem [shape: bf16[128,32], index: 5, kind: input, shape index: {}]   ;;  %s4066_s6 = inlined_call_operand.vmem [shape: f32[1,32], index: 6, kind: input, shape index: {}]   ;;  %s4067_s7 = inlined_call_operand.vmem [shape: f32[1152,32], index: 7, kind: output, shape index: {}]  }
   0x1   :  { %s3146_s26 = smov 0  }
   0x2 LB: > { %s3155_s27 = sadd.s32 4294967295, %s3068_s26   ;;  %s3157_s28 = sadd.s32 1, %s3068_s26   ;;  %s3068_s26 = sphi %s3146_s26, %s4088_s26   ;;  %s3064_s25 = sphi %s3144_s25, %s4087_s25   ;;  %s3060_s24 = sphi %s3142_s24, %s4086_s24  }
   0x3   : > { %s183_s29 = ssub.s32 %s3068_s26, %s3157_s28  ;;  %s186_s30 = sadd.s32 1, %s3064_s25 }
   0x4   : > { %p184_p0 = scmp.eq.s32.totalorder %s183_s29, 0  ;;  %p196_p1 = scmp.ne.s32.totalorder %s3064_s25, %s3060_s24 }
   0x5   : > { %p197_p2 = scmp.eq.s32.totalorder %s3155_s27, 2  ;;  %p2288_p3 = scmp.ge.s32.totalorder %s3068_s26, 1 }
   0x6   : > { %s3165_s8 = scalar_select %p184_p0, %s3064_s25, %s186_s30  }
   0x7   : > { %p3167_p4 = por %p197_p2, %p196_p1  ;;  %p284_p5 = scmp.lt.s32.totalorder %s3068_s26, 4 }
   0x9   : > { %p285_p6 = pnand %p2288_p3, %p284_p5 }
   0xa   : > { %v3004_v0 = vld [vmem:[%s4063_s3] sm:$0xff] (!%p285_p6)   ;;  %s3175_s12 = sshll.u32 (!%p285_p6), %s3155_s27, 6  ;;  %v3005_v1 = vld [vmem:[%s4063_s3 + $0x8] sm:$0xff] (!%p285_p6)   ;;  %vm760_vm0 = vcmask (!%p285_p6), 261120   ;;  %s334_s10 = sand.u32 (!%p285_p6), 1, %s3060_s24  }
   0xb   : > { %288 = sbr.rel (%p285_p6) target bundleno = 665 (0x299), region = 48  ;;  %p342_p7 = scmp.lt.s32.totalorder (!%p285_p6), %s3175_s12, 143  ;;  %2752 = vmatprep.subr.bf16.mxu0 (!%p285_p6), %v3004_v0 }
   0xc   : > { %2753 = vmatpush3.bf16.msra.mxu0 (!%p285_p6), %v3004_v0  ;;  %s2289_s18 = sshll.u32 (!%p285_p6), %s334_s10, 9 }
   0xd   : > { %2754 = vmatprep.subr.bf16.mxu0 (!%p285_p6), %v3005_v1  ;;  %s3604_s24 = scalar_lea.vmem (!%p285_p6), [#allocation2], %s2289_s18  }
  0x10   : > { %2755 = vmatpush3.bf16.msra.mxu0 (!%p285_p6), %v3005_v1 }
  0x12   : > { %s3182_s15 = scalar_select %p342_p7, %s3175_s12, 143 }
  0x13   : > { %s2357_s20 = sshll.u32 (%p3167_p4), %s3155_s27, 9 }
  0x14   : > { %s2291_s16 = sshll.u32 %s3182_s15, 2  ;;  %s2295_s30 = sshll.u32 %s3182_s15, 3 }
  0x15   : > { %s3188_s19 = scalar_lea.vmem %s4060_s0, %s2291_s16  ;;  %s3193_s22 = scalar_lea.vmem %s4061_s1, %s2291_s16 }
  0x16   : > { %v2361_v2 = vld [vmem:[%s3188_s19] sm:$0xff]   ;;  %v2616_v4 = vld [vmem:[%s3188_s19 + $0x8] sm:$0xff]   ;;  %v2617_v10 = vld [vmem:[%s3188_s19 + $0x10] sm:$0xff]   ;;  %s3589_s14 = scalar_lea.vmem %s4062_s2, %s2295_s30  ;;  %s1802_s15 = ssub.s32 (%p3167_p4), 144, %s3175_s12 }
  0x17   : > { %v2489_v3 = vld [vmem:[%s3193_s22] sm:$0xff]   ;;  %v2362_v5 = vunpack.c.l.bf16 %v2361_v2  ;;  %v2363_v6 = vunpack.c.h.bf16 %v2361_v2  ;;  %v2647_v9 = vld [vmem:[%s3193_s22 + $0x8] sm:$0xff]   ;;  %v2648_v11 = vld [vmem:[%s3193_s22 + $0x10] sm:$0xff]   ;;  %v2366_v12 = vunpack.c.l.bf16 %v2616_v4  ;;  %v2367_v13 = vunpack.c.h.bf16 %v2616_v4  ;;  %p1803_p8 = scmp.lt.s32.totalorder (%p3167_p4), %s1802_s15, 64 }
  0x18   : > { %v2490_v7 = vunpack.c.l.bf16 %v2489_v3  ;;  %v2491_v8 = vunpack.c.h.bf16 %v2489_v3  ;;  %v2494_v14 = vunpack.c.l.bf16 %v2647_v9  ;;  %v2495_v15 = vunpack.c.h.bf16 %v2647_v9  ;;  %v2618_v16 = vld [vmem:[%s3188_s19 + $0x18] sm:$0xff]   ;;  %v2619_v26 = vld [vmem:[%s3188_s19 + $0x20] sm:$0xff]   ;;  %v2620_v32 = vld [vmem:[%s3188_s19 + $0x28] sm:$0xff]  }
  0x19   : > { %v2649_v17 = vld [vmem:[%s3193_s22 + $0x18] sm:$0xff]   ;;  %v2370_v20 = vunpack.c.l.bf16 %v2617_v10  ;;  %v2371_v21 = vunpack.c.h.bf16 %v2617_v10  ;;  %v2498_v24 = vunpack.c.l.bf16 %v2648_v11  ;;  %v2499_v25 = vunpack.c.h.bf16 %v2648_v11  ;;  %v2650_v27 = vld [vmem:[%s3193_s22 + $0x20] sm:$0xff]   ;;  %v2651_v37 = vld [vmem:[%s3193_s22 + $0x28] sm:$0xff]  }
  0x1a   : > { %v641_v18 = vadd.f32 %v2490_v7, %v2362_v5  ;;  %v642_v19 = vadd.f32 %v2491_v8, %v2363_v6  ;;  %v643_v22 = vadd.f32 %v2494_v14, %v2366_v12  ;;  %v644_v23 = vadd.f32 %v2495_v15, %v2367_v13  ;;  %v2621_v42 = vld [vmem:[%s3188_s19 + $0x30] sm:$0xff]   ;;  %v2622_v55 = vld [vmem:[%s3188_s19 + $0x38] sm:$0xff]   ;;  %v2623_v63 = vld [vmem:[%s3188_s19 + $0x40] sm:$0xff]  }
  0x1b   : > { %v2374_v29 = vunpack.c.l.bf16 %v2618_v16  ;;  %v2375_v30 = vunpack.c.h.bf16 %v2618_v16  ;;  %v2502_v31 = vunpack.c.l.bf16 %v2649_v17  ;;  %v645_v34 = vadd.f32 %v2498_v24, %v2370_v20  ;;  %v2652_v47 = vld [vmem:[%s3193_s22 + $0x30] sm:$0xff]   ;;  %v2653_v56 = vld [vmem:[%s3193_s22 + $0x38] sm:$0xff]   ;;  %v2654_v0 = vld [vmem:[%s3193_s22 + $0x40] sm:$0xff]  }
  0x1c   : > { %v705_v28 = vpack.c.bf16 %v642_v19, %v641_v18  ;;  %v706_v33 = vpack.c.bf16 %v644_v23, %v643_v22  ;;  %v646_v35 = vadd.f32 %v2499_v25, %v2371_v21  ;;  %v2503_v36 = vunpack.c.h.bf16 %v2649_v17  ;;  %v2624_v5 = vld [vmem:[%s3188_s19 + $0x48] sm:$0xff]   ;;  %v2625_v9 = vld [vmem:[%s3188_s19 + $0x50] sm:$0xff]   ;;  %v2626_v19 = vld [vmem:[%s3188_s19 + $0x58] sm:$0xff]  }
  0x1d   : > { %v647_v38 = vadd.f32 %v2502_v31, %v2374_v29  ;;  %v2378_v39 = vunpack.c.l.bf16 %v2619_v26  ;;  %v2379_v40 = vunpack.c.h.bf16 %v2619_v26  ;;  %v2506_v41 = vunpack.c.l.bf16 %v2650_v27  ;;  %v2655_v6 = vld [vmem:[%s3193_s22 + $0x48] sm:$0xff]   ;;  %v2656_v14 = vld [vmem:[%s3193_s22 + $0x50] sm:$0xff]   ;;  %v2657_v20 = vld [vmem:[%s3193_s22 + $0x58] sm:$0xff]  }
  0x1e   : > { %2756 = vmatprep.mubr.msk.bf16.mxu0 %vm760_vm0, %v705_v28  ;;  %v707_v43 = vpack.c.bf16 %v646_v35, %v645_v34  ;;  %v648_v44 = vadd.f32 %v2503_v36, %v2375_v30  ;;  %v2507_v45 = vunpack.c.h.bf16 %v2650_v27  ;;  %v2382_v46 = vunpack.c.l.bf16 %v2620_v32  ;;  %v2627_v29 = vld [vmem:[%s3188_s19 + $0x60] sm:$0xff]   ;;  %v2628_v35 = vld [vmem:[%s3188_s19 + $0x68] sm:$0xff]  }
  0x1f   : > { %2757 = vmatmul.mubr.msk.bf16.vlgmr.msra.gmra.mrb[0].mxu0 %vm760_vm0, %v706_v33  ;;  %v649_v48 = vadd.f32 %v2506_v41, %v2378_v39  ;;  %v2383_v49 = vunpack.c.h.bf16 %v2620_v32  ;;  %v2510_v50 = vunpack.c.l.bf16 %v2651_v37  ;;  %v2511_v51 = vunpack.c.h.bf16 %v2651_v37  ;;  %v2658_v30 = vld [vmem:[%s3193_s22 + $0x60] sm:$0xff]  }
  0x20   : > { %2760 = vmatprep.mubr.msk.bf16.mxu0 %vm760_vm0, %v707_v43  ;;  %v650_v52 = vadd.f32 %v2507_v45, %v2379_v40  ;;  %v2386_v53 = vunpack.c.l.bf16 %v2621_v42  ;;  %v2387_v54 = vunpack.c.h.bf16 %v2621_v42  ;;  %v2514_v57 = vunpack.c.l.bf16 %v2652_v47  ;;  %v2659_v40 = vld [vmem:[%s3193_s22 + $0x68] sm:$0xff]   ;;  %v2629_v45 = vld [vmem:[%s3188_s19 + $0x70] sm:$0xff]  }
  0x21   : > { %v2515_v58 = vunpack.c.h.bf16 %v2652_v47  ;;  %v708_v59 = vpack.c.bf16 %v648_v44, %v647_v38  ;;  %v3214_v61 = vadd.f32 %v2510_v50, %v2382_v46  ;;  %v3216_v62 = vadd.f32 %v2511_v51, %v2383_v49  ;;  %v3006_v46 = vld [vmem:[%s4065_s5] sm:$0xff]   ;;  %v2660_v51 = vld [vmem:[%s3193_s22 + $0x70] sm:$0xff]  }
  0x22   : > { %v709_v60 = vpack.c.bf16 %v650_v52, %v649_v48  ;;  %v3220_v1 = vadd.f32 %v2514_v57, %v2386_v53  ;;  %v2390_v3 = vunpack.c.l.bf16 %v2622_v55  ;;  %v2518_v4 = vunpack.c.l.bf16 %v2653_v56  ;;  %v3007_v52 = vld [vmem:[%s4065_s5 + $0x8] sm:$0xff]   ;;  %2820 = vmatprep.subr.bf16.mxu0 %v3006_v46  ;;  %2900 = vmatprep.subr.bf16.mxu1 %v3006_v46 }
  0x23   : > { %v3222_v2 = vadd.f32 %v2515_v58, %v2387_v54  ;;  %v2391_v7 = vunpack.c.h.bf16 %v2622_v55  ;;  %v2519_v8 = vunpack.c.h.bf16 %v2653_v56  ;;  %v2394_v10 = vunpack.c.l.bf16 %v2623_v63  ;;  %2908 = vmatpush3.bf16.msra.mxu1 %v3006_v46  ;;  %2821 = vmatpush3.bf16.msra.mxu0 %v3006_v46 }
  0x24   : > { %v2395_v11 = vunpack.c.h.bf16 %v2623_v63  ;;  %v2522_v12 = vunpack.c.l.bf16 %v2654_v0  ;;  %v2523_v13 = vunpack.c.h.bf16 %v2654_v0  ;;  %v2398_v15 = vunpack.c.l.bf16 %v2624_v5  ;;  %2822 = vmatprep.subr.bf16.mxu0 %v3007_v52  ;;  %2901 = vmatprep.subr.bf16.mxu1 %v3007_v52 }
  0x25   : > { %v2399_v16 = vunpack.c.h.bf16 %v2624_v5  ;;  %v2526_v17 = vunpack.c.l.bf16 %v2655_v6  ;;  %v2527_v18 = vunpack.c.h.bf16 %v2655_v6  ;;  %v710_v21 = vpack.c.bf16 %v3216_v62, %v3214_v61  ;;  %v3291_v6 = vld [vmem:[%s3188_s19 + $0x80] sm:$0xff]  }
  0x26   : > { %v711_v22 = vpack.c.bf16 %v3222_v2, %v3220_v1  ;;  %v3236_v23 = vadd.f32 %v2518_v4, %v2390_v3  ;;  %v2402_v24 = vunpack.c.l.bf16 %v2625_v9  ;;  %v3238_v25 = vadd.f32 %v2519_v8, %v2391_v7  ;;  %v3279_v1 = vld [vmem:[%s3188_s19 + $0x78] sm:$0xff]   ;;  %v2632_v7 = vld [vmem:[%s3188_s19 + $0x88] sm:$0xff]   ;;  %v3008_v8 = vld [vmem:[%s4065_s5 + $0x10] sm:$0xff]  }
  0x27   : > { %2761 = vmatmul.mubr.msk.bf16.gmra.mrb[4].mxu0 %vm760_vm0, %v708_v59  ;;  %v2403_v26 = vunpack.c.h.bf16 %v2625_v9  ;;  %v2530_v27 = vunpack.c.l.bf16 %v2656_v14  ;;  %v2531_v28 = vunpack.c.h.bf16 %v2656_v14  ;;  %v3242_v31 = vadd.f32 %v2522_v12, %v2394_v10  ;;  %v3282_v2 = vld [vmem:[%s3193_s22 + $0x78] sm:$0xff]   ;;  %2909 = vmatpush3.bf16.msra.mxu1 %v3007_v52 }
  0x28   : > { %2764 = vmatprep.mubr.msk.bf16.mxu0 %vm760_vm0, %v709_v60  ;;  %v2406_v32 = vunpack.c.l.bf16 %v2626_v19  ;;  %v2407_v33 = vunpack.c.h.bf16 %v2626_v19  ;;  %v2534_v34 = vunpack.c.l.bf16 %v2657_v20  ;;  %v3245_v36 = vadd.f32 %v2523_v13, %v2395_v11  ;;  %v2663_v13 = vld [vmem:[%s3193_s22 + $0x88] sm:$0xff]   ;;  %v2633_v19 = vld [vmem:[%s3188_s19 + $0x90] sm:$0xff]   ;;  %2823 = vmatpush3.bf16.msra.mxu0 %v3007_v52 }
  0x29   : > { %v3247_v37 = vadd.f32 %v2526_v17, %v2398_v15  ;;  %v3249_v38 = vadd.f32 %v2527_v18, %v2399_v16  ;;  %v2535_v39 = vunpack.c.h.bf16 %v2657_v20  ;;  %v3252_v41 = vadd.f32 %v2530_v27, %v2402_v24  ;;  %v3312_v18 = vld [vmem:[%s3193_s22 + $0x80] sm:$0xff]   ;;  %v2664_v24 = vld [vmem:[%s3193_s22 + $0x90] sm:$0xff]   ;;  %2902 = vmatprep.subr.bf16.mxu1 %v3008_v8  ;;  %2824 = vmatprep.subr.bf16.mxu0 %v3008_v8 }
  0x2a   : > { %v2410_v42 = vunpack.c.l.bf16 %v2627_v29  ;;  %v2411_v43 = vunpack.c.h.bf16 %v2627_v29  ;;  %v2538_v44 = vunpack.c.l.bf16 %v2658_v30  ;;  %v3258_v47 = vadd.f32 %v2531_v28, %v2403_v26  ;;  %v2634_v29 = vld [vmem:[%s3188_s19 + $0x98] sm:$0xff]  }
  0x2b   : > { %v3260_v48 = vadd.f32 %v2534_v34, %v2406_v32  ;;  %v2539_v49 = vunpack.c.h.bf16 %v2658_v30  ;;  %v2414_v50 = vunpack.c.l.bf16 %v2628_v35  ;;  %v3266_v53 = vadd.f32 %v2535_v39, %v2407_v33  ;;  %v2665_v30 = vld [vmem:[%s3193_s22 + $0x98] sm:$0xff]   ;;  %2910 = vmatpush3.bf16.msra.mxu1 %v3008_v8 }
  0x2c   : > { %v2415_v54 = vunpack.c.h.bf16 %v2628_v35  ;;  %v2542_v55 = vunpack.c.l.bf16 %v2659_v40  ;;  %v2543_v56 = vunpack.c.h.bf16 %v2659_v40  ;;  %v3269_v57 = vadd.f32 %v2538_v44, %v2410_v42  ;;  %v2666_v44 = vld [vmem:[%s3193_s22 + $0xa0] sm:$0xff]   ;;  %2825 = vmatpush3.bf16.msra.mxu0 %v3008_v8 }
  0x2d   : > { %v3271_v58 = vadd.f32 %v2539_v49, %v2411_v43  ;;  %v2418_v59 = vunpack.c.l.bf16 %v2629_v45  ;;  %v2419_v60 = vunpack.c.h.bf16 %v2629_v45  ;;  %v2546_v63 = vunpack.c.l.bf16 %v2660_v51  ;;  %v2635_v43 = vld [vmem:[%s3188_s19 + $0xa0] sm:$0xff]  }
  0x2e   : > { %v3274_v61 = vadd.f32 %v2542_v55, %v2414_v50  ;;  %v3276_v62 = vadd.f32 %v2543_v56, %v2415_v54  ;;  %v2547_v0 = vunpack.c.h.bf16 %v2660_v51  ;;  %v712_v3 = vpack.c.bf16 %v3238_v25, %v3236_v23  ;;  %v2636_v51 = vld [vmem:[%s3188_s19 + $0xa8] sm:$0xff]  }
  0x2f   : > { %2765 = vmatmul.mubr.msk.bf16.gmra.mrb[8].mxu0 %vm760_vm0, %v710_v21  ;;  %v713_v4 = vpack.c.bf16 %v3245_v36, %v3242_v31  ;;  %v714_v5 = vpack.c.bf16 %v3249_v38, %v3247_v37  ;;  %v715_v9 = vpack.c.bf16 %v3258_v47, %v3252_v41  ;;  %v716_v10 = vpack.c.bf16 %v3266_v53, %v3260_v48  ;;  %v3009_v31 = vld [vmem:[%s4065_s5 + $0x18] sm:$0xff]   ;;  %v2641_v47 = vld [vmem:[%s3188_s19 + $0xd0] sm:$0xff]  }
  0x30   : > { %2768 = vmatprep.mubr.msk.bf16.mxu0 %vm760_vm0, %v711_v22  ;;  %v3301_v11 = vadd.f32 %v2546_v63, %v2418_v59  ;;  %v3303_v12 = vadd.f32 %v2547_v0, %v2419_v60  ;;  %v717_v14 = vpack.c.bf16 %v3271_v58, %v3269_v57  ;;  %v2422_v15 = vunpack.c.l.bf16 %v3279_v1  ;;  %v2667_v59 = vld [vmem:[%s3193_s22 + $0xa8] sm:$0xff]   ;;  %2826 = vmatprep.subr.bf16.mxu0 %v3009_v31  ;;  %v3010_v60 = vld [vmem:[%s4065_s5 + $0x20] sm:$0xff]  }
  0x31   : > { %v2423_v16 = vunpack.c.h.bf16 %v3279_v1  ;;  %v2550_v17 = vunpack.c.l.bf16 %v3282_v2  ;;  %v718_v20 = vpack.c.bf16 %v3276_v62, %v3274_v61  ;;  %v2551_v21 = vunpack.c.h.bf16 %v3282_v2  ;;  %2903 = vmatprep.subr.bf16.mxu1 %v3009_v31  ;;  %2827 = vmatpush3.bf16.msra.mxu0 %v3009_v31 }
  0x32   : > { %v2426_v22 = vunpack.c.l.bf16 %v3291_v6  ;;  %v2430_v23 = vunpack.c.l.bf16 %v2632_v7  ;;  %v2431_v26 = vunpack.c.h.bf16 %v2632_v7  ;;  %v2558_v27 = vunpack.c.l.bf16 %v2663_v13  ;;  %v2637_v7 = vld [vmem:[%s3188_s19 + $0xb0] sm:$0xff]   ;;  %2911 = vmatpush3.bf16.msra.mxu1 %v3009_v31  ;;  %2828 = vmatprep.subr.bf16.mxu0 %v3010_v60 }
  0x33   : > { %v2559_v28 = vunpack.c.h.bf16 %v2663_v13  ;;  %v719_v32 = vpack.c.bf16 %v3303_v12, %v3301_v11  ;;  %v2434_v34 = vunpack.c.l.bf16 %v2633_v19  ;;  %v2435_v35 = vunpack.c.h.bf16 %v2633_v19  ;;  %2904 = vmatprep.subr.bf16.mxu1 %v3010_v60 }
  0x34   : > { %v3330_v36 = vadd.f32 %v2558_v27, %v2430_v23  ;;  %v2562_v40 = vunpack.c.l.bf16 %v2664_v24  ;;  %v2563_v42 = vunpack.c.h.bf16 %v2664_v24  ;;  %v2438_v46 = vunpack.c.l.bf16 %v2634_v29  ;;  %v2668_v24 = vld [vmem:[%s3193_s22 + $0xb0] sm:$0xff]  }
  0x35   : > { %v3332_v39 = vadd.f32 %v2559_v28, %v2431_v26  ;;  %v2439_v49 = vunpack.c.h.bf16 %v2634_v29  ;;  %v2566_v50 = vunpack.c.l.bf16 %v2665_v30  ;;  %v2567_v56 = vunpack.c.h.bf16 %v2665_v30  ;;  %v2638_v30 = vld [vmem:[%s3188_s19 + $0xb8] sm:$0xff]   ;;  %2829 = vmatpush3.bf16.msra.mxu0 %v3010_v60 }
  0x36   : > { %v3341_v54 = vadd.f32 %v2562_v40, %v2434_v34  ;;  %v3343_v55 = vadd.f32 %v2563_v42, %v2435_v35  ;;  %v2442_v0 = vunpack.c.l.bf16 %v2635_v43  ;;  %v2571_v19 = vunpack.c.h.bf16 %v2666_v44  ;;  %v2669_v34 = vld [vmem:[%s3193_s22 + $0xb8] sm:$0xff]   ;;  %2912 = vmatpush3.bf16.msra.mxu1 %v3010_v60 }
  0x37   : > { %2769 = vmatmul.mubr.msk.bf16.gmra.mrb[12].mxu0 %vm760_vm0, %v712_v3  ;;  %v3349_v63 = vadd.f32 %v2566_v50, %v2438_v46  ;;  %v2443_v3 = vunpack.c.h.bf16 %v2635_v43  ;;  %v3354_v13 = vadd.f32 %v2567_v56, %v2439_v49  ;;  %v2446_v23 = vunpack.c.l.bf16 %v2636_v51  ;;  %v2670_v56 = vld [vmem:[%s3193_s22 + $0xc0] sm:$0xff]  }
  0x38   : > { %2772 = vmatprep.mubr.msk.bf16.mxu0 %vm760_vm0, %v713_v4  ;;  %v2570_v4 = vunpack.c.l.bf16 %v2666_v44  ;;  %v2447_v27 = vunpack.c.h.bf16 %v2636_v51  ;;  %v2574_v28 = vunpack.c.l.bf16 %v2667_v59  ;;  %v2575_v29 = vunpack.c.h.bf16 %v2667_v59  ;;  %v3011_v44 = vld [vmem:[%s4065_s5 + $0x28] sm:$0xff]   ;;  %v2639_v51 = vld [vmem:[%s3188_s19 + $0xc0] sm:$0xff]   ;;  %v2646_v59 = vld [vmem:[%s3188_s19 + $0xf8] sm:$0xff]  }
  0x39   : > { %v3363_v40 = vadd.f32 %v2571_v19, %v2443_v3  ;;  %v2450_v42 = vunpack.c.l.bf16 %v2637_v7  ;;  %v2451_v43 = vunpack.c.h.bf16 %v2637_v7  ;;  %v2578_v50 = vunpack.c.l.bf16 %v2668_v24  ;;  %v2640_v7 = vld [vmem:[%s3188_s19 + $0xc8] sm:$0xff]   ;;  %2830 = vmatprep.subr.bf16.mxu0 %v3011_v44  ;;  %2905 = vmatprep.subr.bf16.mxu1 %v3011_v44  ;;  %v2674_v19 = vld [vmem:[%s3193_s22 + $0xe0] sm:$0xff]  }
  0x3a   : > { %v3357_v26 = vadd.f32 %v2570_v4, %v2442_v0  ;;  %v3368_v46 = vadd.f32 %v2574_v28, %v2446_v23  ;;  %v3370_v49 = vadd.f32 %v2575_v29, %v2447_v27  ;;  %v2579_v31 = vunpack.c.h.bf16 %v2668_v24  ;;  %v2671_v23 = vld [vmem:[%s3193_s22 + $0xc8] sm:$0xff]   ;;  %2913 = vmatpush3.bf16.msra.mxu1 %v3011_v44  ;;  %2831 = vmatpush3.bf16.msra.mxu0 %v3011_v44 }
  0x3b   : > { %v2454_v0 = vunpack.c.l.bf16 %v2638_v30  ;;  %v2455_v3 = vunpack.c.h.bf16 %v2638_v30  ;;  %v2582_v4 = vunpack.c.l.bf16 %v2669_v34  ;;  %v3387_v37 = vadd.f32 %v2578_v50, %v2450_v42 }
  0x3c   : > { %v3389_v38 = vadd.f32 %v2579_v31, %v2451_v43  ;;  %v2458_v27 = vunpack.c.l.bf16 %v2639_v51  ;;  %v2459_v28 = vunpack.c.h.bf16 %v2639_v51  ;;  %v2586_v41 = vunpack.c.l.bf16 %v2670_v56  ;;  %v2642_v51 = vld [vmem:[%s3188_s19 + $0xd8] sm:$0xff]  }
  0x3d   : > { %v3392_v24 = vadd.f32 %v2582_v4, %v2454_v0  ;;  %v2587_v30 = vunpack.c.h.bf16 %v2670_v56  ;;  %v2462_v42 = vunpack.c.l.bf16 %v2640_v7  ;;  %v2463_v60 = vunpack.c.h.bf16 %v2640_v7  ;;  %v2673_v0 = vld [vmem:[%s3193_s22 + $0xd8] sm:$0xff]  }
  0x3e   : > { %v3400_v43 = vadd.f32 %v2586_v41, %v2458_v27  ;;  %v2590_v50 = vunpack.c.l.bf16 %v2671_v23  ;;  %v2591_v31 = vunpack.c.h.bf16 %v2671_v23  ;;  %v2467_v56 = vunpack.c.h.bf16 %v2641_v47  ;;  %v2643_v23 = vld [vmem:[%s3188_s19 + $0xe0] sm:$0xff]  }
  0x3f   : > { %2773 = vmatmul.mubr.msk.bf16.gmra.mrb[16].mxu0 %vm760_vm0, %v714_v5  ;;  %v2583_v5 = vunpack.c.h.bf16 %v2669_v34  ;;  %v2672_v34 = vld [vmem:[%s3193_s22 + $0xd0] sm:$0xff]   ;;  %v2470_v35 = vunpack.c.l.bf16 %v2642_v51  ;;  %v2471_v4 = vunpack.c.h.bf16 %v2642_v51  ;;  %v2474_v53 = vunpack.c.l.bf16 %v2643_v23 }
  0x40   : > { %2776 = vmatprep.mubr.msk.bf16.mxu0 %vm760_vm0, %v715_v9  ;;  %v3406_v9 = vadd.f32 %v2587_v30, %v2459_v28  ;;  %v3410_v27 = vadd.f32 %v2591_v31, %v2463_v60  ;;  %v2594_v7 = vunpack.c.l.bf16 %v2672_v34  ;;  %v2595_v41 = vunpack.c.h.bf16 %v2672_v34  ;;  %v2644_v30 = vld [vmem:[%s3188_s19 + $0xe8] sm:$0xff]   ;;  %v2645_v31 = vld [vmem:[%s3188_s19 + $0xf0] sm:$0xff]  }
  0x41   : > { %v3397_v29 = vadd.f32 %v2583_v5, %v2455_v3  ;;  %v2466_v3 = vunpack.c.l.bf16 %v2641_v47  ;;  %v3408_v5 = vadd.f32 %v2590_v50, %v2462_v42  ;;  %v2598_v28 = vunpack.c.l.bf16 %v2673_v0  ;;  %v2675_v60 = vld [vmem:[%s3193_s22 + $0xe8] sm:$0xff]  }
  0x42   : > { %v3425_v42 = vadd.f32 %v2595_v41, %v2467_v56  ;;  %v2599_v34 = vunpack.c.h.bf16 %v2673_v0  ;;  %v2602_v50 = vunpack.c.l.bf16 %v2674_v19  ;;  %v2603_v56 = vunpack.c.h.bf16 %v2674_v19 }
  0x43   : > { %v3423_v47 = vadd.f32 %v2594_v7, %v2466_v3  ;;  %v3432_v48 = vadd.f32 %v2598_v28, %v2470_v35  ;;  %v2478_v0 = vunpack.c.l.bf16 %v2644_v30  ;;  %v2676_v7 = vld [vmem:[%s3193_s22 + $0xf0] sm:$0xff]   ;;  %v2479_v44 = vunpack.c.h.bf16 %v2644_v30 }
  0x44   : > { %v696_v3 = vadd.f32 %v2599_v34, %v2471_v4  ;;  %v697_v41 = vadd.f32 %v2602_v50, %v2474_v53  ;;  %v2606_v57 = vunpack.c.l.bf16 %v2675_v60  ;;  %v2607_v58 = vunpack.c.h.bf16 %v2675_v60 }
  0x45   : > { %v731_v51 = vpack.c.bf16 %v3425_v42, %v3423_v47  ;;  %v2482_v8 = vunpack.c.l.bf16 %v2645_v31  ;;  %v2610_v25 = vunpack.c.l.bf16 %v2676_v7  ;;  %v2611_v33 = vunpack.c.h.bf16 %v2676_v7 }
  0x46   : > { %v732_v35 = vpack.c.bf16 %v696_v3, %v3432_v48  ;;  %v699_v52 = vadd.f32 %v2606_v57, %v2478_v0  ;;  %v700_v45 = vadd.f32 %v2607_v58, %v2479_v44  ;;  %v2486_v4 = vunpack.c.l.bf16 %v2646_v59 }
  0x47   : > { %2777 = vmatmul.mubr.msk.bf16.gmra.mrb[20].mxu0 %vm760_vm0, %v716_v10  ;;  %v2475_v10 = vunpack.c.h.bf16 %v2643_v23  ;;  %v2483_v23 = vunpack.c.h.bf16 %v2645_v31  ;;  %v2487_v19 = vunpack.c.h.bf16 %v2646_v59  ;;  %v701_v53 = vadd.f32 %v2610_v25, %v2482_v8 }
  0x48   : > { %2780 = vmatprep.mubr.msk.bf16.mxu0 %vm760_vm0, %v717_v14  ;;  %v2677_v14 = vld [vmem:[%s3193_s22 + $0xf8] sm:$0xff]   ;;  %v734_v34 = vpack.c.bf16 %v700_v45, %v699_v52  ;;  %v671_v44 = vadd.f32 %v2550_v17, %v2422_v15  ;;  %v672_v59 = vadd.f32 %v2551_v21, %v2423_v16  ;;  %v4069_v61 = vunpack.c.l.bf16 %v3312_v18  ;;  %s3861_s22 = scalar_lea.vmem (%p3167_p4), %s4067_s7, %s2357_s20  }
  0x49   : > { %v698_v28 = vadd.f32 %v2603_v56, %v2475_v10  ;;  %v2614_v42 = vunpack.c.l.bf16 %v2677_v14  ;;  %v702_v30 = vadd.f32 %v2611_v33, %v2483_v23  ;;  %v2615_v50 = vunpack.c.h.bf16 %v2677_v14  ;;  %v3012_v33 = vld [vmem:[%s4065_s5 + $0x30] sm:$0xff]  }
  0x4a   : > { %v673_v62 = vadd.f32 %v4069_v61, %v2426_v22  ;;  %v4071_v15 = vunpack.c.h.bf16 %v3312_v18  ;;  %v720_v16 = vpack.c.bf16 %v672_v59, %v671_v44  ;;  %v4072_v11 = vpack.c.bf16 %v3332_v39, %v3330_v36  ;;  %2832 = vmatprep.subr.bf16.mxu0 %v3012_v33  ;;  %2906 = vmatprep.subr.bf16.mxu1 %v3012_v33  ;;  %v3013_v39 = vld [vmem:[%s4065_s5 + $0x38] sm:$0xff]  }
  0x4b   : > { %v733_v47 = vpack.c.bf16 %v698_v28, %v697_v41  ;;  %v703_v60 = vadd.f32 %v2614_v42, %v2486_v4  ;;  %v735_v1 = vpack.c.bf16 %v702_v30, %v701_v53  ;;  %v704_v25 = vadd.f32 %v2615_v50, %v2487_v19  ;;  %2833 = vmatpush3.bf16.msra.mxu0 %v3012_v33 }
  0x4c   : > { %v4074_v12 = vpack.c.bf16 %v3354_v13, %v3349_v63  ;;  %v4075_v18 = vpack.c.bf16 %v3363_v40, %v3357_v26  ;;  %v4076_v22 = vpack.c.bf16 %v3370_v49, %v3368_v46  ;;  %2914 = vmatpush3.bf16.msra.mxu1 %v3012_v33  ;;  %v4078_v36 = vpack.c.bf16 %v3397_v29, %v3392_v24 }
  0x4d   : > { %v736_v2 = vpack.c.bf16 %v704_v25, %v703_v60  ;;  %v4079_v45 = vpack.c.bf16 %v3406_v9, %v3400_v43  ;;  %2834 = vmatprep.subr.bf16.mxu0 %v3013_v39  ;;  %2907 = vmatprep.subr.bf16.mxu1 %v3013_v39  ;;  %v4080_v52 = vpack.c.bf16 %v3410_v27, %v3408_v5 }
  0x4f   : > { %2781 = vmatmul.mubr.msk.bf16.gmra.mrb[24].mxu0 %vm760_vm0, %v718_v20  ;;  %v4070_v20 = vunpack.c.h.bf16 %v3291_v6  ;;  %v4073_v6 = vpack.c.bf16 %v3343_v55, %v3341_v54  ;;  %v3518_v54 = vld [vmem:[%s4064_s4] ss:$0 sm:$0xff] }
  0x50   : > { %2784 = vmatprep.mubr.msk.bf16.mxu0 %vm760_vm0, %v719_v32  ;;  %v4077_v32 = vpack.c.bf16 %v3389_v38, %v3387_v37  ;;  %2835 = vmatpush3.bf16.msra.mxu0 %v3013_v39 }
  0x51   : > { %v674_v17 = vadd.f32 %v4071_v15, %v4070_v20  ;;  %2915 = vmatpush3.bf16.msra.mxu1 %v3013_v39 }
  0x53   : > { %v721_v21 = vpack.c.bf16 %v674_v17, %v673_v62 }
  0x57   : > { %2785 = vmatmul.mubr.msk.bf16.gmra.mrb[28].mxu0 %vm760_vm0, %v720_v16 }
  0x58   : > { %2788 = vmatprep.mubr.msk.bf16.mxu0 %vm760_vm0, %v721_v21 }
  0x5f   : > { %2789 = vmatmul.mubr.msk.bf16.gmra.mrb[32].mxu0 %vm760_vm0, %v4072_v11 }
  0x60   : > { %2792 = vmatprep.mubr.msk.bf16.mxu0 %vm760_vm0, %v4073_v6 }
  0x67   : > { %2793 = vmatmul.mubr.msk.bf16.gmra.mrb[36].mxu0 %vm760_vm0, %v4074_v12 }
  0x68   : > { %2796 = vmatprep.mubr.msk.bf16.mxu0 %vm760_vm0, %v4075_v18 }
  0x6f   : > { %2797 = vmatmul.mubr.msk.bf16.gmra.mrb[40].mxu0 %vm760_vm0, %v4076_v22 }
  0x70   : > { %2800 = vmatprep.mubr.msk.bf16.mxu0 %vm760_vm0, %v4077_v32 }
  0x77   : > { %2801 = vmatmul.mubr.msk.bf16.gmra.mrb[44].mxu0 %vm760_vm0, %v4078_v36 }
  0x78   : > { %2804 = vmatprep.mubr.msk.bf16.mxu0 %vm760_vm0, %v4079_v45 }
  0x7f   : > { %2805 = vmatmul.mubr.msk.bf16.gmra.mrb[48].mxu0 %vm760_vm0, %v4080_v52 }
  0x80   : > { %2808 = vmatprep.mubr.msk.bf16.mxu0 %vm760_vm0, %v731_v51 }
  0x87   : > { %2809 = vmatmul.mubr.msk.bf16.gmra.mrb[52].mxu0 %vm760_vm0, %v732_v35 }
  0x88   : > { %2812 = vmatprep.mubr.msk.bf16.mxu0 %vm760_vm0, %v733_v47 }
  0x8f   : > { %2813 = vmatmul.mubr.msk.bf16.gmra.mrb[56].mxu0 %vm760_vm0, %v734_v34 }
  0x90   : > { %2816 = vmatprep.mubr.msk.bf16.mxu0 %vm760_vm0, %v735_v1 }
  0x97   : > { %2817 = vmatmul.mubr.msk.bf16.gmra.mrb[60].mxu0 %vm760_vm0, %v736_v2 }
  0xf2   : > { %v2758_v55 = vpop.f32.mrb[0].mxu0 }
  0xf3   : > { %v900_v63 = vadd.f32 %v2758_v55, %v3518_v54  ;;  %v891_v8 = vpop.f32.mrb[1].mxu0 }
  0xf4   : > { %v892_v13 = vadd.f32 %v3518_v54, %v891_v8  ;;  %v2759_v26 = vpop.f32.mrb[2].mxu0 }
  0xf5   : > { %v903_v40 = vadd.f32 %v2759_v26, %v3518_v54  ;;  %v894_v46 = vpop.f32.mrb[3].mxu0  ;;  %v1148_v37 = vmax.f32 %v900_v63, 0.0 }
  0xf6   : > { %v895_v49 = vadd.f32 %v3518_v54, %v894_v46  ;;  %v1146_v24 = vmax.f32 %v892_v13, 0.0 }
  0xf7   : > { %v1149_v38 = vmax.f32 %v903_v40, 0.0 }
  0xf8   : > { %v1147_v9 = vmax.f32 %v895_v49, 0.0 }
  0xf9   : > { %v1211_v29 = vpack.c.bf16 %v1149_v38, %v1148_v37 }
  0xfa   : > { %v1210_v43 = vpack.c.bf16 %v1147_v9, %v1146_v24  ;;  %v2762_v5 = vpop.f32.mrb[4].mxu0 }
  0xfb   : > { %v916_v27 = vadd.f32 %v2762_v5, %v3518_v54  ;;  %v907_v48 = vpop.f32.mrb[5].mxu0 }
  0xfc   : > { %v908_v10 = vadd.f32 %v3518_v54, %v907_v48  ;;  %v2763_v31 = vpop.f32.mrb[6].mxu0  ;;  %2836 = vmatprep.mubr.bf16.mxu0 %v1210_v43 }
  0xfd   : > { %v919_v51 = vadd.f32 %v2763_v31, %v3518_v54  ;;  %v910_v3 = vpop.f32.mrb[7].mxu0  ;;  %2837 = vmatmul.mubr.bf16.vlgmr.msra.gmra.mrb[64].mxu0 %v1211_v29  ;;  %v1152_v0 = vmax.f32 %v916_v27, 0.0 }
  0xfe   : > { %v911_v56 = vadd.f32 %v3518_v54, %v910_v3  ;;  %v1150_v41 = vmax.f32 %v908_v10, 0.0 }
  0xff   : > { %v1153_v7 = vmax.f32 %v919_v51, 0.0 }
 0x100   : > { %v1151_v57 = vmax.f32 %v911_v56, 0.0 }
 0x101   : > { %v1213_v58 = vpack.c.bf16 %v1153_v7, %v1152_v0 }
 0x102   : > { %v2766_v14 = vpop.f32.mrb[8].mxu0  ;;  %v1212_v35 = vpack.c.bf16 %v1151_v57, %v1150_v41 }
 0x103   : > { %v932_v28 = vadd.f32 %v2766_v14, %v3518_v54  ;;  %v923_v23 = vpop.f32.mrb[9].mxu0 }
 0x104   : > { %v924_v47 = vadd.f32 %v3518_v54, %v923_v23  ;;  %v2767_v4 = vpop.f32.mrb[10].mxu0  ;;  %2840 = vmatprep.mubr.bf16.mxu1 %v1212_v35 }
 0x105   : > { %v935_v19 = vadd.f32 %v2767_v4, %v3518_v54  ;;  %v926_v42 = vpop.f32.mrb[11].mxu0  ;;  %2841 = vmatmul.mubr.bf16.vlgmr.msra.gmra.mrb[0].mxu1 %v1213_v58  ;;  %v1156_v53 = vmax.f32 %v932_v28, 0.0 }
 0x106   : > { %v927_v34 = vadd.f32 %v3518_v54, %v926_v42  ;;  %v1154_v50 = vmax.f32 %v924_v47, 0.0 }
 0x107   : > { %v1157_v30 = vmax.f32 %v935_v19, 0.0 }
 0x108   : > { %v1155_v44 = vmax.f32 %v927_v34, 0.0 }
 0x109   : > { %v1215_v59 = vpack.c.bf16 %v1157_v30, %v1156_v53 }
 0x10a   : > { %v1214_v60 = vpack.c.bf16 %v1155_v44, %v1154_v50  ;;  %v2770_v61 = vpop.f32.mrb[12].mxu0 }
 0x10b   : > { %v948_v62 = vadd.f32 %v2770_v61, %v3518_v54  ;;  %v939_v20 = vpop.f32.mrb[13].mxu0 }
 0x10c   : > { %v940_v15 = vadd.f32 %v3518_v54, %v939_v20  ;;  %v2771_v17 = vpop.f32.mrb[14].mxu0  ;;  %2844 = vmatprep.mubr.bf16.mxu1 %v1214_v60 }
 0x10d   : > { %v951_v1 = vadd.f32 %v2771_v17, %v3518_v54  ;;  %v942_v25 = vpop.f32.mrb[15].mxu0  ;;  %2845 = vmatmul.mubr.bf16.gmra.mrb[4].mxu1 %v1215_v59  ;;  %v1160_v16 = vmax.f32 %v948_v62, 0.0 }
 0x10e   : > { %v943_v2 = vadd.f32 %v3518_v54, %v942_v25  ;;  %v1158_v11 = vmax.f32 %v940_v15, 0.0 }
 0x10f   : > { %v1161_v21 = vmax.f32 %v951_v1, 0.0 }
 0x110   : > { %v1159_v6 = vmax.f32 %v943_v2, 0.0 }
 0x111   : > { %v1217_v12 = vpack.c.bf16 %v1161_v21, %v1160_v16 }
 0x112   : > { %v1216_v18 = vpack.c.bf16 %v1159_v6, %v1158_v11  ;;  %v2774_v22 = vpop.f32.mrb[16].mxu0 }
 0x113   : > { %v964_v32 = vadd.f32 %v2774_v22, %v3518_v54  ;;  %v955_v33 = vpop.f32.mrb[17].mxu0 }
 0x114   : > { %v956_v36 = vadd.f32 %v3518_v54, %v955_v33  ;;  %v2775_v39 = vpop.f32.mrb[18].mxu0  ;;  %2848 = vmatprep.mubr.bf16.mxu1 %v1216_v18 }
 0x115   : > { %v967_v45 = vadd.f32 %v2775_v39, %v3518_v54  ;;  %v958_v52 = vpop.f32.mrb[19].mxu0  ;;  %2849 = vmatmul.mubr.bf16.gmra.mrb[8].mxu1 %v1217_v12  ;;  %v1164_v63 = vmax.f32 %v964_v32, 0.0 }
 0x116   : > { %v959_v55 = vadd.f32 %v3518_v54, %v958_v52  ;;  %v1162_v13 = vmax.f32 %v956_v36, 0.0 }
 0x117   : > { %v1165_v8 = vmax.f32 %v967_v45, 0.0 }
 0x118   : > { %v1163_v26 = vmax.f32 %v959_v55, 0.0 }
 0x119   : > { %v1219_v40 = vpack.c.bf16 %v1165_v8, %v1164_v63 }
 0x11a   : > { %v1218_v46 = vpack.c.bf16 %v1163_v26, %v1162_v13  ;;  %v2778_v49 = vpop.f32.mrb[20].mxu0 }
 0x11b   : > { %v980_v37 = vadd.f32 %v2778_v49, %v3518_v54  ;;  %v971_v38 = vpop.f32.mrb[21].mxu0 }
 0x11c   : > { %v972_v24 = vadd.f32 %v3518_v54, %v971_v38  ;;  %v2779_v9 = vpop.f32.mrb[22].mxu0  ;;  %2852 = vmatprep.mubr.bf16.mxu1 %v1218_v46 }
 0x11d   : > { %v983_v29 = vadd.f32 %v2779_v9, %v3518_v54  ;;  %v974_v43 = vpop.f32.mrb[23].mxu0  ;;  %2853 = vmatmul.mubr.bf16.gmra.mrb[12].mxu1 %v1219_v40  ;;  %v1168_v27 = vmax.f32 %v980_v37, 0.0 }
 0x11e   : > { %v975_v5 = vadd.f32 %v3518_v54, %v974_v43  ;;  %v1166_v10 = vmax.f32 %v972_v24, 0.0 }
 0x11f   : > { %v1169_v48 = vmax.f32 %v983_v29, 0.0 }
 0x120   : > { %v1167_v31 = vmax.f32 %v975_v5, 0.0 }
 0x121   : > { %v1221_v51 = vpack.c.bf16 %v1169_v48, %v1168_v27 }
 0x122   : > { %v1220_v3 = vpack.c.bf16 %v1167_v31, %v1166_v10  ;;  %v2782_v56 = vpop.f32.mrb[24].mxu0 }
 0x123   : > { %v996_v0 = vadd.f32 %v2782_v56, %v3518_v54  ;;  %v987_v7 = vpop.f32.mrb[25].mxu0 }
 0x124   : > { %v988_v41 = vadd.f32 %v3518_v54, %v987_v7  ;;  %v2783_v57 = vpop.f32.mrb[26].mxu0  ;;  %2856 = vmatprep.mubr.bf16.mxu1 %v1220_v3 }
 0x125   : > { %v999_v58 = vadd.f32 %v2783_v57, %v3518_v54  ;;  %v990_v14 = vpop.f32.mrb[27].mxu0  ;;  %2857 = vmatmul.mubr.bf16.gmra.mrb[16].mxu1 %v1221_v51  ;;  %v1172_v28 = vmax.f32 %v996_v0, 0.0 }
 0x126   : > { %v991_v35 = vadd.f32 %v3518_v54, %v990_v14  ;;  %v1170_v47 = vmax.f32 %v988_v41, 0.0 }
 0x127   : > { %v1173_v23 = vmax.f32 %v999_v58, 0.0 }
 0x128   : > { %v1171_v4 = vmax.f32 %v991_v35, 0.0 }
 0x129   : > { %v1223_v19 = vpack.c.bf16 %v1173_v23, %v1172_v28 }
 0x12a   : > { %v1222_v42 = vpack.c.bf16 %v1171_v4, %v1170_v47  ;;  %v2786_v34 = vpop.f32.mrb[28].mxu0 }
 0x12b   : > { %v1012_v53 = vadd.f32 %v2786_v34, %v3518_v54  ;;  %v1003_v30 = vpop.f32.mrb[29].mxu0 }
 0x12c   : > { %v1004_v50 = vadd.f32 %v3518_v54, %v1003_v30  ;;  %v2787_v44 = vpop.f32.mrb[30].mxu0  ;;  %2860 = vmatprep.mubr.bf16.mxu1 %v1222_v42 }
 0x12d   : > { %v1015_v59 = vadd.f32 %v2787_v44, %v3518_v54  ;;  %v1006_v60 = vpop.f32.mrb[31].mxu0  ;;  %2861 = vmatmul.mubr.bf16.gmra.mrb[20].mxu1 %v1223_v19  ;;  %v1176_v62 = vmax.f32 %v1012_v53, 0.0 }
 0x12e   : > { %v1007_v61 = vadd.f32 %v3518_v54, %v1006_v60  ;;  %v1174_v15 = vmax.f32 %v1004_v50, 0.0 }
 0x12f   : > { %v1177_v20 = vmax.f32 %v1015_v59, 0.0 }
 0x130   : > { %v1175_v17 = vmax.f32 %v1007_v61, 0.0 }
 0x131   : > { %v1225_v1 = vpack.c.bf16 %v1177_v20, %v1176_v62 }
 0x132   : > { %v1224_v25 = vpack.c.bf16 %v1175_v17, %v1174_v15  ;;  %v2790_v2 = vpop.f32.mrb[32].mxu0 }
 0x133   : > { %v1028_v16 = vadd.f32 %v2790_v2, %v3518_v54  ;;  %v1019_v21 = vpop.f32.mrb[33].mxu0 }
 0x134   : > { %v1020_v11 = vadd.f32 %v3518_v54, %v1019_v21  ;;  %v2791_v6 = vpop.f32.mrb[34].mxu0  ;;  %2864 = vmatprep.mubr.bf16.mxu1 %v1224_v25 }
 0x135   : > { %v1031_v12 = vadd.f32 %v2791_v6, %v3518_v54  ;;  %v1022_v18 = vpop.f32.mrb[35].mxu0  ;;  %2865 = vmatmul.mubr.bf16.gmra.mrb[24].mxu1 %v1225_v1  ;;  %v1180_v32 = vmax.f32 %v1028_v16, 0.0 }
 0x136   : > { %v1023_v22 = vadd.f32 %v3518_v54, %v1022_v18  ;;  %v1178_v36 = vmax.f32 %v1020_v11, 0.0 }
 0x137   : > { %v1181_v33 = vmax.f32 %v1031_v12, 0.0 }
 0x138   : > { %v1179_v39 = vmax.f32 %v1023_v22, 0.0 }
 0x139   : > { %v1227_v45 = vpack.c.bf16 %v1181_v33, %v1180_v32 }
 0x13a   : > { %v1226_v52 = vpack.c.bf16 %v1179_v39, %v1178_v36  ;;  %v2794_v55 = vpop.f32.mrb[36].mxu0 }
 0x13b   : > { %v1044_v63 = vadd.f32 %v2794_v55, %v3518_v54  ;;  %v1035_v8 = vpop.f32.mrb[37].mxu0 }
 0x13c   : > { %v1036_v13 = vadd.f32 %v3518_v54, %v1035_v8  ;;  %v2795_v26 = vpop.f32.mrb[38].mxu0  ;;  %2868 = vmatprep.mubr.bf16.mxu1 %v1226_v52 }
 0x13d   : > { %v1047_v40 = vadd.f32 %v2795_v26, %v3518_v54  ;;  %v1038_v46 = vpop.f32.mrb[39].mxu0  ;;  %2869 = vmatmul.mubr.bf16.gmra.mrb[28].mxu1 %v1227_v45  ;;  %v1184_v37 = vmax.f32 %v1044_v63, 0.0 }
 0x13e   : > { %v1039_v49 = vadd.f32 %v3518_v54, %v1038_v46  ;;  %v1182_v24 = vmax.f32 %v1036_v13, 0.0 }
 0x13f   : > { %v1185_v38 = vmax.f32 %v1047_v40, 0.0 }
 0x140   : > { %v1183_v9 = vmax.f32 %v1039_v49, 0.0 }
 0x141   : > { %v1229_v29 = vpack.c.bf16 %v1185_v38, %v1184_v37 }
 0x142   : > { %v1228_v43 = vpack.c.bf16 %v1183_v9, %v1182_v24  ;;  %v2798_v5 = vpop.f32.mrb[40].mxu0 }
 0x143   : > { %v1060_v27 = vadd.f32 %v2798_v5, %v3518_v54  ;;  %v1051_v48 = vpop.f32.mrb[41].mxu0 }
 0x144   : > { %v1052_v10 = vadd.f32 %v3518_v54, %v1051_v48  ;;  %v2799_v31 = vpop.f32.mrb[42].mxu0  ;;  %2872 = vmatprep.mubr.bf16.mxu1 %v1228_v43 }
 0x145   : > { %v1063_v51 = vadd.f32 %v2799_v31, %v3518_v54  ;;  %v1054_v3 = vpop.f32.mrb[43].mxu0  ;;  %2873 = vmatmul.mubr.bf16.gmra.mrb[32].mxu1 %v1229_v29  ;;  %v1188_v0 = vmax.f32 %v1060_v27, 0.0 }
 0x146   : > { %v1055_v56 = vadd.f32 %v3518_v54, %v1054_v3  ;;  %v1186_v41 = vmax.f32 %v1052_v10, 0.0 }
 0x147   : > { %v1189_v7 = vmax.f32 %v1063_v51, 0.0 }
 0x148   : > { %v1187_v57 = vmax.f32 %v1055_v56, 0.0 }
 0x149   : > { %v1231_v58 = vpack.c.bf16 %v1189_v7, %v1188_v0 }
 0x14a   : > { %v1230_v14 = vpack.c.bf16 %v1187_v57, %v1186_v41  ;;  %v2802_v35 = vpop.f32.mrb[44].mxu0 }
 0x14b   : > { %v1076_v28 = vadd.f32 %v2802_v35, %v3518_v54  ;;  %v1067_v23 = vpop.f32.mrb[45].mxu0 }
 0x14c   : > { %v1068_v47 = vadd.f32 %v3518_v54, %v1067_v23  ;;  %v2803_v4 = vpop.f32.mrb[46].mxu0  ;;  %2876 = vmatprep.mubr.bf16.mxu1 %v1230_v14 }
 0x14d   : > { %v1079_v19 = vadd.f32 %v2803_v4, %v3518_v54  ;;  %v1070_v42 = vpop.f32.mrb[47].mxu0  ;;  %2877 = vmatmul.mubr.bf16.gmra.mrb[36].mxu1 %v1231_v58  ;;  %v1192_v53 = vmax.f32 %v1076_v28, 0.0 }
 0x14e   : > { %v1071_v34 = vadd.f32 %v3518_v54, %v1070_v42  ;;  %v1190_v50 = vmax.f32 %v1068_v47, 0.0 }
 0x14f   : > { %v1193_v30 = vmax.f32 %v1079_v19, 0.0 }
 0x150   : > { %v1191_v44 = vmax.f32 %v1071_v34, 0.0 }
 0x151   : > { %v1233_v59 = vpack.c.bf16 %v1193_v30, %v1192_v53  ;;  %v1604_v53 = vld [vmem:[%s3589_s14 + $0x10] sm:$0xff] }
 0x152   : > { %v1232_v60 = vpack.c.bf16 %v1191_v44, %v1190_v50  ;;  %v2806_v61 = vpop.f32.mrb[48].mxu0  ;;  %v1602_v44 = vld [vmem:[%s3589_s14] sm:$0xff] }
 0x153   : > { %v1092_v62 = vadd.f32 %v2806_v61, %v3518_v54  ;;  %v1083_v20 = vpop.f32.mrb[49].mxu0  ;;  %v1605_v61 = vld [vmem:[%s3589_s14 + $0x18] sm:$0xff] }
 0x154   : > { %v1084_v15 = vadd.f32 %v3518_v54, %v1083_v20  ;;  %v2807_v17 = vpop.f32.mrb[50].mxu0  ;;  %2880 = vmatprep.mubr.bf16.mxu1 %v1232_v60 }
 0x155   : > { %v1095_v1 = vadd.f32 %v2807_v17, %v3518_v54  ;;  %v1086_v25 = vpop.f32.mrb[51].mxu0  ;;  %2881 = vmatmul.mubr.bf16.gmra.mrb[40].mxu1 %v1233_v59  ;;  %v1196_v16 = vmax.f32 %v1092_v62, 0.0  ;;  %v1603_v17 = vld [vmem:[%s3589_s14 + $0x8] sm:$0xff] }
 0x156   : > { %v1087_v2 = vadd.f32 %v3518_v54, %v1086_v25  ;;  %v1194_v11 = vmax.f32 %v1084_v15, 0.0 }
 0x157   : > { %v1197_v21 = vmax.f32 %v1095_v1, 0.0 }
 0x158   : > { %v1195_v6 = vmax.f32 %v1087_v2, 0.0 }
 0x159   : > { %v1235_v12 = vpack.c.bf16 %v1197_v21, %v1196_v16 }
 0x15a   : > { %v1234_v18 = vpack.c.bf16 %v1195_v6, %v1194_v11  ;;  %v2810_v22 = vpop.f32.mrb[52].mxu0  ;;  %v1608_v11 = vld [vmem:[%s3589_s14 + $0x30] sm:$0xff] }
 0x15b   : > { %v1108_v32 = vadd.f32 %v2810_v22, %v3518_v54  ;;  %v1099_v33 = vpop.f32.mrb[53].mxu0 }
 0x15c   : > { %v1100_v36 = vadd.f32 %v3518_v54, %v1099_v33  ;;  %v2811_v39 = vpop.f32.mrb[54].mxu0  ;;  %2884 = vmatprep.mubr.bf16.mxu1 %v1234_v18  ;;  %v1606_v18 = vld [vmem:[%s3589_s14 + $0x20] sm:$0xff]  ;;  %v1609_v33 = vld [vmem:[%s3589_s14 + $0x38] sm:$0xff] }
 0x15d   : > { %v1111_v45 = vadd.f32 %v2811_v39, %v3518_v54  ;;  %v1102_v52 = vpop.f32.mrb[55].mxu0  ;;  %2885 = vmatmul.mubr.bf16.gmra.mrb[44].mxu1 %v1235_v12  ;;  %v1200_v63 = vmax.f32 %v1108_v32, 0.0 }
 0x15e   : > { %v1103_v55 = vadd.f32 %v3518_v54, %v1102_v52  ;;  %v1198_v13 = vmax.f32 %v1100_v36, 0.0  ;;  %v1607_v52 = vld [vmem:[%s3589_s14 + $0x28] sm:$0xff] }
 0x15f   : > { %v1201_v8 = vmax.f32 %v1111_v45, 0.0 }
 0x160   : > { %v1199_v26 = vmax.f32 %v1103_v55, 0.0 }
 0x161   : > { %v1237_v40 = vpack.c.bf16 %v1201_v8, %v1200_v63 }
 0x162   : > { %v1236_v46 = vpack.c.bf16 %v1199_v26, %v1198_v13  ;;  %v2814_v49 = vpop.f32.mrb[56].mxu0 }
 0x163   : > { %v1124_v37 = vadd.f32 %v2814_v49, %v3518_v54  ;;  %v1115_v38 = vpop.f32.mrb[57].mxu0 }
 0x164   : > { %v1116_v24 = vadd.f32 %v3518_v54, %v1115_v38  ;;  %v2815_v9 = vpop.f32.mrb[58].mxu0  ;;  %2888 = vmatprep.mubr.bf16.mxu1 %v1236_v46 }
 0x165   : > { %v1127_v29 = vadd.f32 %v2815_v9, %v3518_v54  ;;  %v1118_v43 = vpop.f32.mrb[59].mxu0  ;;  %2889 = vmatmul.mubr.bf16.gmra.mrb[48].mxu1 %v1237_v40  ;;  %v1204_v27 = vmax.f32 %v1124_v37, 0.0  ;;  %v1612_v40 = vld [vmem:[%s3589_s14 + $0x50] sm:$0xff]  ;;  %v1610_v37 = vld [vmem:[%s3589_s14 + $0x40] sm:$0xff]  ;;  %v1613_v9 = vld [vmem:[%s3589_s14 + $0x58] sm:$0xff] }
 0x166   : > { %v1119_v5 = vadd.f32 %v3518_v54, %v1118_v43  ;;  %v1202_v10 = vmax.f32 %v1116_v24, 0.0 }
 0x167   : > { %v1205_v48 = vmax.f32 %v1127_v29, 0.0 }
 0x168   : > { %v1203_v31 = vmax.f32 %v1119_v5, 0.0 }
 0x169   : > { %v1239_v51 = vpack.c.bf16 %v1205_v48, %v1204_v27  ;;  %v1611_v27 = vld [vmem:[%s3589_s14 + $0x48] sm:$0xff] }
 0x16a   : > { %v1238_v3 = vpack.c.bf16 %v1203_v31, %v1202_v10  ;;  %v2818_v56 = vpop.f32.mrb[60].mxu0 }
 0x16b   : > { %v1140_v0 = vadd.f32 %v2818_v56, %v3518_v54  ;;  %v1131_v7 = vpop.f32.mrb[61].mxu0  ;;  %v1616_v56 = vld [vmem:[%s3589_s14 + $0x70] sm:$0xff] }
 0x16c   : > { %v1132_v41 = vadd.f32 %v3518_v54, %v1131_v7  ;;  %v2819_v57 = vpop.f32.mrb[62].mxu0  ;;  %2892 = vmatprep.mubr.bf16.mxu1 %v1238_v3 }
 0x16d   : > { %v1143_v58 = vadd.f32 %v2819_v57, %v3518_v54  ;;  %v1134_v14 = vpop.f32.mrb[63].mxu0  ;;  %2893 = vmatmul.mubr.bf16.gmra.mrb[52].mxu1 %v1239_v51  ;;  %v1208_v28 = vmax.f32 %v1140_v0, 0.0 }
 0x16e   : > { %v1135_v35 = vadd.f32 %v3518_v54, %v1134_v14  ;;  %v1206_v47 = vmax.f32 %v1132_v41, 0.0  ;;  %v3594_v54 = vld [vmem:[%s4066_s6] ss:$0 sm:$0xff]  ;;  %v1617_v14 = vld [vmem:[%s3589_s14 + $0x78] sm:$0xff] }
 0x16f   : > { %v1209_v23 = vmax.f32 %v1143_v58, 0.0  ;;  %v1614_v41 = vld [vmem:[%s3589_s14 + $0x60] sm:$0xff] }
 0x170   : > { %v1207_v4 = vmax.f32 %v1135_v35, 0.0 }
 0x171   : > { %v1241_v19 = vpack.c.bf16 %v1209_v23, %v1208_v28 }
 0x172   : > { %v1240_v42 = vpack.c.bf16 %v1207_v4, %v1206_v47  ;;  %v1615_v47 = vld [vmem:[%s3589_s14 + $0x68] sm:$0xff] }
 0x174   : > { %2896 = vmatprep.mubr.bf16.mxu1 %v1240_v42 }
 0x175   : > { %2897 = vmatmul.mubr.bf16.gmra.mrb[56].mxu1 %v1241_v19 }
 0x1d0   : > { %v2838_v34 = vpop.f32.mrb[64].mxu0 }
 0x1d1   : > { %v1356_v30 = vadd.f32 %v2838_v34, %v3594_v54  ;;  %v1347_v50 = vpop.f32.mrb[65].mxu0 }
 0x1d2   : > { %v1348_v59 = vadd.f32 %v3594_v54, %v1347_v50  ;;  %v2839_v60 = vpop.f32.mrb[66].mxu0 }
 0x1d3   : > { %v1668_v62 = vadd.f32 %v1604_v53, %v1356_v30  ;;  %v1359_v20 = vadd.f32 %v2839_v60, %v3594_v54  ;;  %v1350_v15 = vpop.f32.mrb[67].mxu0  ;;  %v1620_v30 = vld [vmem:[%s3589_s14 + $0x90] sm:$0xff] }
 0x1d4   : > { %v1666_v1 = vadd.f32 %v1602_v44, %v1348_v59  ;;  %v1351_v25 = vadd.f32 %v3594_v54, %v1350_v15  ;;  %v1618_v59 = vld [vmem:[%s3589_s14 + $0x80] sm:$0xff] }
 0x1d5   : > { %1732 = vst.msk [vmem:[%s3604_s24 + $0x10] sm:$0xff] %vm760_vm0, %v1668_v62  ;;  %v1669_v2 = vadd.f32 %v1605_v61, %v1359_v20  ;;  %v1621_v62 = vld [vmem:[%s3589_s14 + $0x98] sm:$0xff] }
 0x1d6   : > { %1730 = vst.msk [vmem:[%s3604_s24] sm:$0xff] %vm760_vm0, %v1666_v1  ;;  %v1667_v16 = vadd.f32 %v1603_v17, %v1351_v25  ;;  %v1619_v1 = vld [vmem:[%s3589_s14 + $0x88] sm:$0xff] }
 0x1d7   : > { %1733 = vst.msk [vmem:[%s3604_s24 + $0x18] sm:$0xff] %vm760_vm0, %v1669_v2 }
 0x1d8   : > { %1731 = vst.msk [vmem:[%s3604_s24 + $0x8] sm:$0xff] %vm760_vm0, %v1667_v16  ;;  %v2842_v21 = vpop.f32.mrb[0].mxu1 }
 0x1d9   : > { %v1372_v6 = vadd.f32 %v2842_v21, %v3594_v54  ;;  %v1363_v12 = vpop.f32.mrb[1].mxu1 }
 0x1da   : > { %v1364_v22 = vadd.f32 %v3594_v54, %v1363_v12  ;;  %v2843_v32 = vpop.f32.mrb[2].mxu1 }
 0x1db   : > { %v1672_v36 = vadd.f32 %v1608_v11, %v1372_v6  ;;  %v1375_v39 = vadd.f32 %v2843_v32, %v3594_v54  ;;  %v1366_v45 = vpop.f32.mrb[3].mxu1  ;;  %v1624_v6 = vld [vmem:[%s3589_s14 + $0xb0] sm:$0xff] }
 0x1dc   : > { %v1670_v55 = vadd.f32 %v1606_v18, %v1364_v22  ;;  %v1367_v63 = vadd.f32 %v3594_v54, %v1366_v45  ;;  %v1622_v22 = vld [vmem:[%s3589_s14 + $0xa0] sm:$0xff] }
 0x1dd   : > { %1736 = vst.msk [vmem:[%s3604_s24 + $0x30] sm:$0xff] %vm760_vm0, %v1672_v36  ;;  %v1673_v8 = vadd.f32 %v1609_v33, %v1375_v39  ;;  %v1625_v36 = vld [vmem:[%s3589_s14 + $0xb8] sm:$0xff] }
 0x1de   : > { %1734 = vst.msk [vmem:[%s3604_s24 + $0x20] sm:$0xff] %vm760_vm0, %v1670_v55  ;;  %v1671_v13 = vadd.f32 %v1607_v52, %v1367_v63  ;;  %v1623_v55 = vld [vmem:[%s3589_s14 + $0xa8] sm:$0xff] }
 0x1df   : > { %1737 = vst.msk [vmem:[%s3604_s24 + $0x38] sm:$0xff] %vm760_vm0, %v1673_v8 }
 0x1e0   : > { %1735 = vst.msk [vmem:[%s3604_s24 + $0x28] sm:$0xff] %vm760_vm0, %v1671_v13  ;;  %v2846_v26 = vpop.f32.mrb[4].mxu1 }
 0x1e1   : > { %v1388_v46 = vadd.f32 %v2846_v26, %v3594_v54  ;;  %v1379_v49 = vpop.f32.mrb[5].mxu1 }
 0x1e2   : > { %v1380_v38 = vadd.f32 %v3594_v54, %v1379_v49  ;;  %v2847_v24 = vpop.f32.mrb[6].mxu1 }
 0x1e3   : > { %v1676_v29 = vadd.f32 %v1612_v40, %v1388_v46  ;;  %v1391_v43 = vadd.f32 %v2847_v24, %v3594_v54  ;;  %v1382_v5 = vpop.f32.mrb[7].mxu1  ;;  %v1628_v46 = vld [vmem:[%s3589_s14 + $0xd0] sm:$0xff] }
 0x1e4   : > { %v1674_v48 = vadd.f32 %v1610_v37, %v1380_v38  ;;  %v1383_v10 = vadd.f32 %v3594_v54, %v1382_v5  ;;  %v1626_v38 = vld [vmem:[%s3589_s14 + $0xc0] sm:$0xff] }
 0x1e5   : > { %1740 = vst.msk [vmem:[%s3604_s24 + $0x50] sm:$0xff] %vm760_vm0, %v1676_v29  ;;  %v1677_v31 = vadd.f32 %v1613_v9, %v1391_v43  ;;  %v1629_v29 = vld [vmem:[%s3589_s14 + $0xd8] sm:$0xff] }
 0x1e6   : > { %1738 = vst.msk [vmem:[%s3604_s24 + $0x40] sm:$0xff] %vm760_vm0, %v1674_v48  ;;  %v1675_v51 = vadd.f32 %v1611_v27, %v1383_v10  ;;  %v1627_v48 = vld [vmem:[%s3589_s14 + $0xc8] sm:$0xff] }
 0x1e7   : > { %1741 = vst.msk [vmem:[%s3604_s24 + $0x58] sm:$0xff] %vm760_vm0, %v1677_v31 }
 0x1e8   : > { %1739 = vst.msk [vmem:[%s3604_s24 + $0x48] sm:$0xff] %vm760_vm0, %v1675_v51  ;;  %v2850_v3 = vpop.f32.mrb[8].mxu1 }
 0x1e9   : > { %v1404_v0 = vadd.f32 %v2850_v3, %v3594_v54  ;;  %v1395_v7 = vpop.f32.mrb[9].mxu1 }
 0x1ea   : > { %v1396_v57 = vadd.f32 %v3594_v54, %v1395_v7  ;;  %v2851_v58 = vpop.f32.mrb[10].mxu1 }
 0x1eb   : > { %v1680_v35 = vadd.f32 %v1616_v56, %v1404_v0  ;;  %v1407_v28 = vadd.f32 %v2851_v58, %v3594_v54  ;;  %v1398_v23 = vpop.f32.mrb[11].mxu1  ;;  %v1632_v0 = vld [vmem:[%s3589_s14 + $0xf0] sm:$0xff] }
 0x1ec   : > { %v1678_v4 = vadd.f32 %v1614_v41, %v1396_v57  ;;  %v1399_v19 = vadd.f32 %v3594_v54, %v1398_v23  ;;  %v1630_v57 = vld [vmem:[%s3589_s14 + $0xe0] sm:$0xff] }
 0x1ed   : > { %1744 = vst.msk [vmem:[%s3604_s24 + $0x70] sm:$0xff] %vm760_vm0, %v1680_v35  ;;  %v1681_v42 = vadd.f32 %v1617_v14, %v1407_v28  ;;  %v1633_v35 = vld [vmem:[%s3589_s14 + $0xf8] sm:$0xff] }
 0x1ee   : > { %1742 = vst.msk [vmem:[%s3604_s24 + $0x60] sm:$0xff] %vm760_vm0, %v1678_v4  ;;  %v1679_v34 = vadd.f32 %v1615_v47, %v1399_v19  ;;  %v1631_v4 = vld [vmem:[%s3589_s14 + $0xe8] sm:$0xff] }
 0x1ef   : > { %1745 = vst.msk [vmem:[%s3604_s24 + $0x78] sm:$0xff] %vm760_vm0, %v1681_v42 }
 0x1f0   : > { %1743 = vst.msk [vmem:[%s3604_s24 + $0x68] sm:$0xff] %vm760_vm0, %v1679_v34  ;;  %v2854_v53 = vpop.f32.mrb[12].mxu1 }
 0x1f1   : > { %v1420_v50 = vadd.f32 %v2854_v53, %v3594_v54  ;;  %v1411_v44 = vpop.f32.mrb[13].mxu1 }
 0x1f2   : > { %v1412_v60 = vadd.f32 %v3594_v54, %v1411_v44  ;;  %v2855_v61 = vpop.f32.mrb[14].mxu1 }
 0x1f3   : > { %v1684_v20 = vadd.f32 %v1620_v30, %v1420_v50  ;;  %v1423_v15 = vadd.f32 %v2855_v61, %v3594_v54  ;;  %v1414_v17 = vpop.f32.mrb[15].mxu1  ;;  %v1636_v50 = vld [vmem:[%s3589_s14 + $0x110] sm:$0xff] }
 0x1f4   : > { %v1682_v25 = vadd.f32 %v1618_v59, %v1412_v60  ;;  %v1415_v2 = vadd.f32 %v3594_v54, %v1414_v17  ;;  %v1634_v60 = vld [vmem:[%s3589_s14 + $0x100] sm:$0xff] }
 0x1f5   : > { %1748 = vst.msk [vmem:[%s3604_s24 + $0x90] sm:$0xff] %vm760_vm0, %v1684_v20  ;;  %v1685_v16 = vadd.f32 %v1621_v62, %v1423_v15  ;;  %v1637_v20 = vld [vmem:[%s3589_s14 + $0x118] sm:$0xff] }
 0x1f6   : > { %1746 = vst.msk [vmem:[%s3604_s24 + $0x80] sm:$0xff] %vm760_vm0, %v1682_v25  ;;  %v1683_v21 = vadd.f32 %v1619_v1, %v1415_v2  ;;  %v1635_v25 = vld [vmem:[%s3589_s14 + $0x108] sm:$0xff] }
 0x1f7   : > { %1749 = vst.msk [vmem:[%s3604_s24 + $0x98] sm:$0xff] %vm760_vm0, %v1685_v16 }
 0x1f8   : > { %1747 = vst.msk [vmem:[%s3604_s24 + $0x88] sm:$0xff] %vm760_vm0, %v1683_v21  ;;  %v2858_v11 = vpop.f32.mrb[16].mxu1 }
 0x1f9   : > { %v1436_v12 = vadd.f32 %v2858_v11, %v3594_v54  ;;  %v1427_v18 = vpop.f32.mrb[17].mxu1 }
 0x1fa   : > { %v1428_v32 = vadd.f32 %v3594_v54, %v1427_v18  ;;  %v2859_v33 = vpop.f32.mrb[18].mxu1 }
 0x1fb   : > { %v1688_v39 = vadd.f32 %v1624_v6, %v1436_v12  ;;  %v1439_v45 = vadd.f32 %v2859_v33, %v3594_v54  ;;  %v1430_v52 = vpop.f32.mrb[19].mxu1  ;;  %v1640_v12 = vld [vmem:[%s3589_s14 + $0x130] sm:$0xff] }
 0x1fc   : > { %v1686_v63 = vadd.f32 %v1622_v22, %v1428_v32  ;;  %v1431_v8 = vadd.f32 %v3594_v54, %v1430_v52  ;;  %v1638_v32 = vld [vmem:[%s3589_s14 + $0x120] sm:$0xff] }
 0x1fd   : > { %1752 = vst.msk [vmem:[%s3604_s24 + $0xb0] sm:$0xff] %vm760_vm0, %v1688_v39  ;;  %v1689_v13 = vadd.f32 %v1625_v36, %v1439_v45  ;;  %v1641_v39 = vld [vmem:[%s3589_s14 + $0x138] sm:$0xff] }
 0x1fe   : > { %1750 = vst.msk [vmem:[%s3604_s24 + $0xa0] sm:$0xff] %vm760_vm0, %v1686_v63  ;;  %v1687_v26 = vadd.f32 %v1623_v55, %v1431_v8  ;;  %v1639_v63 = vld [vmem:[%s3589_s14 + $0x128] sm:$0xff] }
 0x1ff   : > { %1753 = vst.msk [vmem:[%s3604_s24 + $0xb8] sm:$0xff] %vm760_vm0, %v1689_v13 }
 0x200   : > { %1751 = vst.msk [vmem:[%s3604_s24 + $0xa8] sm:$0xff] %vm760_vm0, %v1687_v26  ;;  %v2862_v40 = vpop.f32.mrb[20].mxu1 }
 0x201   : > { %v1452_v49 = vadd.f32 %v2862_v40, %v3594_v54  ;;  %v1443_v37 = vpop.f32.mrb[21].mxu1 }
 0x202   : > { %v1444_v24 = vadd.f32 %v3594_v54, %v1443_v37  ;;  %v2863_v9 = vpop.f32.mrb[22].mxu1 }
 0x203   : > { %v1692_v43 = vadd.f32 %v1628_v46, %v1452_v49  ;;  %v1455_v5 = vadd.f32 %v2863_v9, %v3594_v54  ;;  %v1446_v27 = vpop.f32.mrb[23].mxu1  ;;  %v1644_v49 = vld [vmem:[%s3589_s14 + $0x150] sm:$0xff] }
 0x204   : > { %v1690_v10 = vadd.f32 %v1626_v38, %v1444_v24  ;;  %v1447_v31 = vadd.f32 %v3594_v54, %v1446_v27  ;;  %v1642_v24 = vld [vmem:[%s3589_s14 + $0x140] sm:$0xff] }
 0x205   : > { %1756 = vst.msk [vmem:[%s3604_s24 + $0xd0] sm:$0xff] %vm760_vm0, %v1692_v43  ;;  %v1693_v51 = vadd.f32 %v1629_v29, %v1455_v5  ;;  %v1645_v43 = vld [vmem:[%s3589_s14 + $0x158] sm:$0xff] }
 0x206   : > { %1754 = vst.msk [vmem:[%s3604_s24 + $0xc0] sm:$0xff] %vm760_vm0, %v1690_v10  ;;  %v1691_v3 = vadd.f32 %v1627_v48, %v1447_v31  ;;  %v1643_v10 = vld [vmem:[%s3589_s14 + $0x148] sm:$0xff] }
 0x207   : > { %1757 = vst.msk [vmem:[%s3604_s24 + $0xd8] sm:$0xff] %vm760_vm0, %v1693_v51 }
 0x208   : > { %1755 = vst.msk [vmem:[%s3604_s24 + $0xc8] sm:$0xff] %vm760_vm0, %v1691_v3  ;;  %v2866_v56 = vpop.f32.mrb[24].mxu1 }
 0x209   : > { %v1468_v7 = vadd.f32 %v2866_v56, %v3594_v54  ;;  %v1459_v41 = vpop.f32.mrb[25].mxu1 }
 0x20a   : > { %v1460_v58 = vadd.f32 %v3594_v54, %v1459_v41  ;;  %v2867_v14 = vpop.f32.mrb[26].mxu1 }
 0x20b   : > { %v1696_v28 = vadd.f32 %v1632_v0, %v1468_v7  ;;  %v1471_v23 = vadd.f32 %v2867_v14, %v3594_v54  ;;  %v1462_v47 = vpop.f32.mrb[27].mxu1  ;;  %v1648_v7 = vld [vmem:[%s3589_s14 + $0x170] sm:$0xff] }
 0x20c   : > { %v1694_v19 = vadd.f32 %v1630_v57, %v1460_v58  ;;  %v1463_v42 = vadd.f32 %v3594_v54, %v1462_v47  ;;  %v1646_v58 = vld [vmem:[%s3589_s14 + $0x160] sm:$0xff] }
 0x20d   : > { %1760 = vst.msk [vmem:[%s3604_s24 + $0xf0] sm:$0xff] %vm760_vm0, %v1696_v28  ;;  %v1697_v34 = vadd.f32 %v1633_v35, %v1471_v23  ;;  %v1649_v28 = vld [vmem:[%s3589_s14 + $0x178] sm:$0xff] }
 0x20e   : > { %1758 = vst.msk [vmem:[%s3604_s24 + $0xe0] sm:$0xff] %vm760_vm0, %v1694_v19  ;;  %v1695_v53 = vadd.f32 %v1631_v4, %v1463_v42  ;;  %v1647_v19 = vld [vmem:[%s3589_s14 + $0x168] sm:$0xff] }
 0x20f   : > { %1761 = vst.msk [vmem:[%s3604_s24 + $0xf8] sm:$0xff] %vm760_vm0, %v1697_v34 }
 0x210   : > { %1759 = vst.msk [vmem:[%s3604_s24 + $0xe8] sm:$0xff] %vm760_vm0, %v1695_v53  ;;  %v2870_v30 = vpop.f32.mrb[28].mxu1 }
 0x211   : > { %v1484_v44 = vadd.f32 %v2870_v30, %v3594_v54  ;;  %v1475_v59 = vpop.f32.mrb[29].mxu1 }
 0x212   : > { %v1476_v61 = vadd.f32 %v3594_v54, %v1475_v59  ;;  %v2871_v62 = vpop.f32.mrb[30].mxu1 }
 0x213   : > { %v1700_v15 = vadd.f32 %v1636_v50, %v1484_v44  ;;  %v1487_v17 = vadd.f32 %v2871_v62, %v3594_v54  ;;  %v1478_v1 = vpop.f32.mrb[31].mxu1  ;;  %v1652_v44 = vld [vmem:[%s3589_s14 + $0x190] sm:$0xff] }
 0x214   : > { %v1698_v2 = vadd.f32 %v1634_v60, %v1476_v61  ;;  %v1479_v16 = vadd.f32 %v3594_v54, %v1478_v1  ;;  %v1650_v61 = vld [vmem:[%s3589_s14 + $0x180] sm:$0xff] }
 0x215   : > { %1764 = vst.msk [vmem:[%s3604_s24 + $0x110] sm:$0xff] %vm760_vm0, %v1700_v15  ;;  %v1701_v21 = vadd.f32 %v1637_v20, %v1487_v17  ;;  %v1653_v15 = vld [vmem:[%s3589_s14 + $0x198] sm:$0xff] }
 0x216   : > { %1762 = vst.msk [vmem:[%s3604_s24 + $0x100] sm:$0xff] %vm760_vm0, %v1698_v2  ;;  %v1699_v11 = vadd.f32 %v1635_v25, %v1479_v16  ;;  %v1651_v2 = vld [vmem:[%s3589_s14 + $0x188] sm:$0xff] }
 0x217   : > { %1765 = vst.msk [vmem:[%s3604_s24 + $0x118] sm:$0xff] %vm760_vm0, %v1701_v21 }
 0x218   : > { %1763 = vst.msk [vmem:[%s3604_s24 + $0x108] sm:$0xff] %vm760_vm0, %v1699_v11  ;;  %v2874_v6 = vpop.f32.mrb[32].mxu1 }
 0x219   : > { %v1500_v18 = vadd.f32 %v2874_v6, %v3594_v54  ;;  %v1491_v22 = vpop.f32.mrb[33].mxu1 }
 0x21a   : > { %v1492_v33 = vadd.f32 %v3594_v54, %v1491_v22  ;;  %v2875_v36 = vpop.f32.mrb[34].mxu1 }
 0x21b   : > { %v1704_v45 = vadd.f32 %v1640_v12, %v1500_v18  ;;  %v1503_v52 = vadd.f32 %v2875_v36, %v3594_v54  ;;  %v1494_v55 = vpop.f32.mrb[35].mxu1  ;;  %v1656_v18 = vld [vmem:[%s3589_s14 + $0x1b0] sm:$0xff] }
 0x21c   : > { %v1702_v8 = vadd.f32 %v1638_v32, %v1492_v33  ;;  %v1495_v13 = vadd.f32 %v3594_v54, %v1494_v55  ;;  %v1654_v33 = vld [vmem:[%s3589_s14 + $0x1a0] sm:$0xff] }
 0x21d   : > { %1768 = vst.msk [vmem:[%s3604_s24 + $0x130] sm:$0xff] %vm760_vm0, %v1704_v45  ;;  %v1705_v26 = vadd.f32 %v1641_v39, %v1503_v52  ;;  %v1657_v45 = vld [vmem:[%s3589_s14 + $0x1b8] sm:$0xff] }
 0x21e   : > { %1766 = vst.msk [vmem:[%s3604_s24 + $0x120] sm:$0xff] %vm760_vm0, %v1702_v8  ;;  %v1703_v40 = vadd.f32 %v1639_v63, %v1495_v13  ;;  %v1655_v8 = vld [vmem:[%s3589_s14 + $0x1a8] sm:$0xff] }
 0x21f   : > { %1769 = vst.msk [vmem:[%s3604_s24 + $0x138] sm:$0xff] %vm760_vm0, %v1705_v26 }
 0x220   : > { %1767 = vst.msk [vmem:[%s3604_s24 + $0x128] sm:$0xff] %vm760_vm0, %v1703_v40  ;;  %v2878_v46 = vpop.f32.mrb[36].mxu1 }
 0x221   : > { %v1516_v37 = vadd.f32 %v2878_v46, %v3594_v54  ;;  %v1507_v38 = vpop.f32.mrb[37].mxu1 }
 0x222   : > { %v1508_v9 = vadd.f32 %v3594_v54, %v1507_v38  ;;  %v2879_v29 = vpop.f32.mrb[38].mxu1 }
 0x223   : > { %v1708_v5 = vadd.f32 %v1644_v49, %v1516_v37  ;;  %v1519_v27 = vadd.f32 %v2879_v29, %v3594_v54  ;;  %v1510_v48 = vpop.f32.mrb[39].mxu1  ;;  %v1660_v37 = vld [vmem:[%s3589_s14 + $0x1d0] sm:$0xff] }
 0x224   : > { %v1706_v31 = vadd.f32 %v1642_v24, %v1508_v9  ;;  %v1511_v51 = vadd.f32 %v3594_v54, %v1510_v48  ;;  %v1658_v9 = vld [vmem:[%s3589_s14 + $0x1c0] sm:$0xff] }
 0x225   : > { %1772 = vst.msk [vmem:[%s3604_s24 + $0x150] sm:$0xff] %vm760_vm0, %v1708_v5  ;;  %v1709_v3 = vadd.f32 %v1645_v43, %v1519_v27  ;;  %v1661_v5 = vld [vmem:[%s3589_s14 + $0x1d8] sm:$0xff] }
 0x226   : > { %1770 = vst.msk [vmem:[%s3604_s24 + $0x140] sm:$0xff] %vm760_vm0, %v1706_v31  ;;  %v1707_v56 = vadd.f32 %v1643_v10, %v1511_v51  ;;  %v1659_v31 = vld [vmem:[%s3589_s14 + $0x1c8] sm:$0xff] }
 0x227   : > { %1773 = vst.msk [vmem:[%s3604_s24 + $0x158] sm:$0xff] %vm760_vm0, %v1709_v3 }
 0x228   : > { %1771 = vst.msk [vmem:[%s3604_s24 + $0x148] sm:$0xff] %vm760_vm0, %v1707_v56  ;;  %v2882_v0 = vpop.f32.mrb[40].mxu1 }
 0x229   : > { %v1532_v41 = vadd.f32 %v2882_v0, %v3594_v54  ;;  %v1523_v57 = vpop.f32.mrb[41].mxu1 }
 0x22a   : > { %v1524_v14 = vadd.f32 %v3594_v54, %v1523_v57  ;;  %v2883_v35 = vpop.f32.mrb[42].mxu1 }
 0x22b   : > { %v1712_v23 = vadd.f32 %v1648_v7, %v1532_v41  ;;  %v1535_v47 = vadd.f32 %v2883_v35, %v3594_v54  ;;  %v1526_v4 = vpop.f32.mrb[43].mxu1  ;;  %v1664_v41 = vld [vmem:[%s3589_s14 + $0x1f0] sm:$0xff] }
 0x22c   : > { %v1710_v42 = vadd.f32 %v1646_v58, %v1524_v14  ;;  %v1527_v34 = vadd.f32 %v3594_v54, %v1526_v4  ;;  %v1662_v14 = vld [vmem:[%s3589_s14 + $0x1e0] sm:$0xff] }
 0x22d   : > { %1776 = vst.msk [vmem:[%s3604_s24 + $0x170] sm:$0xff] %vm760_vm0, %v1712_v23  ;;  %v1713_v53 = vadd.f32 %v1649_v28, %v1535_v47  ;;  %v1665_v23 = vld [vmem:[%s3589_s14 + $0x1f8] sm:$0xff] }
 0x22e   : > { %1774 = vst.msk [vmem:[%s3604_s24 + $0x160] sm:$0xff] %vm760_vm0, %v1710_v42  ;;  %v1711_v30 = vadd.f32 %v1647_v19, %v1527_v34  ;;  %v1663_v42 = vld [vmem:[%s3589_s14 + $0x1e8] sm:$0xff] }
 0x22f   : > { %1777 = vst.msk [vmem:[%s3604_s24 + $0x178] sm:$0xff] %vm760_vm0, %v1713_v53 }
 0x230   : > { %1775 = vst.msk [vmem:[%s3604_s24 + $0x168] sm:$0xff] %vm760_vm0, %v1711_v30  ;;  %v2886_v50 = vpop.f32.mrb[44].mxu1 }
 0x231   : > { %v1548_v59 = vadd.f32 %v2886_v50, %v3594_v54  ;;  %v1539_v60 = vpop.f32.mrb[45].mxu1 }
 0x232   : > { %v1540_v62 = vadd.f32 %v3594_v54, %v1539_v60  ;;  %v2887_v20 = vpop.f32.mrb[46].mxu1 }
 0x233   : > { %v1716_v17 = vadd.f32 %v1652_v44, %v1548_v59  ;;  %v1551_v1 = vadd.f32 %v2887_v20, %v3594_v54  ;;  %v1542_v25 = vpop.f32.mrb[47].mxu1 }
 0x234   : > { %v1714_v16 = vadd.f32 %v1650_v61, %v1540_v62  ;;  %v1543_v21 = vadd.f32 %v3594_v54, %v1542_v25 }
 0x235   : > { %1780 = vst.msk [vmem:[%s3604_s24 + $0x190] sm:$0xff] %vm760_vm0, %v1716_v17  ;;  %v1717_v11 = vadd.f32 %v1653_v15, %v1551_v1 }
 0x236   : > { %1778 = vst.msk [vmem:[%s3604_s24 + $0x180] sm:$0xff] %vm760_vm0, %v1714_v16  ;;  %v1715_v6 = vadd.f32 %v1651_v2, %v1543_v21 }
 0x237   : > { %1781 = vst.msk [vmem:[%s3604_s24 + $0x198] sm:$0xff] %vm760_vm0, %v1717_v11 }
 0x238   : > { %1779 = vst.msk [vmem:[%s3604_s24 + $0x188] sm:$0xff] %vm760_vm0, %v1715_v6  ;;  %v2890_v12 = vpop.f32.mrb[48].mxu1 }
 0x239   : > { %v1564_v22 = vadd.f32 %v2890_v12, %v3594_v54  ;;  %v1555_v32 = vpop.f32.mrb[49].mxu1 }
 0x23a   : > { %v1556_v36 = vadd.f32 %v3594_v54, %v1555_v32  ;;  %v2891_v39 = vpop.f32.mrb[50].mxu1 }
 0x23b   : > { %v1720_v52 = vadd.f32 %v1656_v18, %v1564_v22  ;;  %v1567_v55 = vadd.f32 %v2891_v39, %v3594_v54  ;;  %v1558_v63 = vpop.f32.mrb[51].mxu1 }
 0x23c   : > { %v1718_v13 = vadd.f32 %v1654_v33, %v1556_v36  ;;  %v1559_v26 = vadd.f32 %v3594_v54, %v1558_v63 }
 0x23d   : > { %1784 = vst.msk [vmem:[%s3604_s24 + $0x1b0] sm:$0xff] %vm760_vm0, %v1720_v52  ;;  %v1721_v40 = vadd.f32 %v1657_v45, %v1567_v55 }
 0x23e   : > { %1782 = vst.msk [vmem:[%s3604_s24 + $0x1a0] sm:$0xff] %vm760_vm0, %v1718_v13  ;;  %v1719_v46 = vadd.f32 %v1655_v8, %v1559_v26 }
 0x23f   : > { %1785 = vst.msk [vmem:[%s3604_s24 + $0x1b8] sm:$0xff] %vm760_vm0, %v1721_v40 }
 0x240   : > { %1783 = vst.msk [vmem:[%s3604_s24 + $0x1a8] sm:$0xff] %vm760_vm0, %v1719_v46  ;;  %v2894_v49 = vpop.f32.mrb[52].mxu1 }
 0x241   : > { %v1580_v38 = vadd.f32 %v2894_v49, %v3594_v54  ;;  %v1571_v24 = vpop.f32.mrb[53].mxu1 }
 0x242   : > { %v1572_v29 = vadd.f32 %v3594_v54, %v1571_v24  ;;  %v2895_v43 = vpop.f32.mrb[54].mxu1 }
 0x243   : > { %v1724_v27 = vadd.f32 %v1660_v37, %v1580_v38  ;;  %v1583_v48 = vadd.f32 %v2895_v43, %v3594_v54  ;;  %v1574_v10 = vpop.f32.mrb[55].mxu1 }
 0x244   : > { %v1722_v51 = vadd.f32 %v1658_v9, %v1572_v29  ;;  %v1575_v3 = vadd.f32 %v3594_v54, %v1574_v10 }
 0x245   : > { %1788 = vst.msk [vmem:[%s3604_s24 + $0x1d0] sm:$0xff] %vm760_vm0, %v1724_v27  ;;  %v1725_v56 = vadd.f32 %v1661_v5, %v1583_v48 }
 0x246   : > { %1786 = vst.msk [vmem:[%s3604_s24 + $0x1c0] sm:$0xff] %vm760_vm0, %v1722_v51  ;;  %v1723_v0 = vadd.f32 %v1659_v31, %v1575_v3 }
 0x247   : > { %1789 = vst.msk [vmem:[%s3604_s24 + $0x1d8] sm:$0xff] %vm760_vm0, %v1725_v56 }
 0x248   : > { %1787 = vst.msk [vmem:[%s3604_s24 + $0x1c8] sm:$0xff] %vm760_vm0, %v1723_v0  ;;  %v2898_v7 = vpop.f32.mrb[56].mxu1 }
 0x249   : > { %v1596_v57 = vadd.f32 %v2898_v7, %v3594_v54  ;;  %v1587_v58 = vpop.f32.mrb[57].mxu1 }
 0x24a   : > { %v1588_v35 = vadd.f32 %v3594_v54, %v1587_v58  ;;  %v2899_v28 = vpop.f32.mrb[58].mxu1  ;;  %1800 = sbr.rel (!%p3167_p4) target bundleno = 665 (0x299), region = 52 }
 0x24b   : > { %v1728_v47 = vadd.f32 %v1664_v41, %v1596_v57  ;;  %v1599_v4 = vadd.f32 %v2899_v28, %v3594_v54  ;;  %v1590_v19 = vpop.f32.mrb[59].mxu1 }
 0x24c   : > { %v1726_v34 = vadd.f32 %v1662_v14, %v1588_v35  ;;  %v1591_v53 = vadd.f32 %v3594_v54, %v1590_v19 }
 0x24d   : > { %1792 = vst.msk [vmem:[%s3604_s24 + $0x1f0] sm:$0xff] %vm760_vm0, %v1728_v47  ;;  %v1729_v30 = vadd.f32 %v1665_v23, %v1599_v4 }
 0x24e   : > { %1790 = vst.msk [vmem:[%s3604_s24 + $0x1e0] sm:$0xff] %vm760_vm0, %v1726_v34  ;;  %v1727_v50 = vadd.f32 %v1663_v42, %v1591_v53 }
 0x24f   : > { %1793 = vst.msk [vmem:[%s3604_s24 + $0x1f8] sm:$0xff] %vm760_vm0, %v1729_v30 }
 0x250   : > { %1791 = vst.msk [vmem:[%s3604_s24 + $0x1e8] sm:$0xff] %vm760_vm0, %v1727_v50 }
 0x251   : > { %s4090_s15 = smov (!%p1803_p8, %s1802_s15), 64 }
 0x252   : > { %s2342_s23 = sshll.u32 %s4090_s15, 7 }
 0x253   : > { %p2345_p9 = scmp.eq.s32.totalorder %s2342_s23, 0 }
 0x254   : > { %s3867_s26 = sshrl.u32 (!%p2345_p9), %s4090_s15, 6 }
 0x255   : > { %1811 = sbr.rel (%p2345_p9) target bundleno = 665 (0x299), region = 56  ;;  %p2346_p10 = scmp.le.s32.totalorder (!%p2345_p9), %s3867_s26, 0 }
 0x25c   : > { %2229 = sbr.rel (%p2346_p10) target bundleno = 644 (0x284), region = 138  ;;  %s4081_s27 = smov (!%p2346_p10), %s3861_s22 }
 0x25d   : > { %s4082_s9 = smov (!%p2346_p10), %s3604_s24  ;;  %s3876_s12 = smov (!%p2346_p10), 0  }
 0x25e   : > { %s3878_s29 = smov (!%p2346_p10), 0  }
 0x263 LB: >> { %v1999_v54 = vld [vmem:[%s3076_s9] sm:$0xff]  ;;  %v2001_v44 = vld [vmem:[%s3076_s9 + $0x8] sm:$0xff]  ;;  %v2003_v59 = vld [vmem:[%s3076_s9 + $0x10] sm:$0xff]  ;;  %s2127_s30 = sadd.s32 1, %s3080_s12  ;;  %s1993_s29 = sadd.s32 1, %s3084_s29   ;;  %s3084_s29 = sphi %s3878_s29, %s1993_s29   ;;  %s3080_s12 = sphi %s3876_s12, %s4085_s12   ;;  %s3076_s9 = sphi %s4082_s9, %s4084_s9   ;;  %s3072_s27 = sphi %s4081_s27, %s4083_s27  }
 0x264   : >> { %2000 = vst [vmem:[%s3072_s27] sm:$0xff] %v1999_v54  ;;  %2002 = vst [vmem:[%s3072_s27 + $0x8] sm:$0xff] %v2001_v44  ;;  %v2005_v60 = vld [vmem:[%s3076_s9 + $0x18] sm:$0xff]  ;;  %v2007_v61 = vld [vmem:[%s3076_s9 + $0x20] sm:$0xff]  ;;  %p2128_p11 = scmp.ge.s32.totalorder %s2127_s30, %s3867_s26  ;;  %p1992_p12 = scmp.ge.s32.totalorder %s1993_s29, %s3867_s26 }
 0x265   : >> { %2004 = vst [vmem:[%s3072_s27 + $0x10] sm:$0xff] %v2003_v59  ;;  %v2009_v62 = vld [vmem:[%s3076_s9 + $0x28] sm:$0xff]  ;;  %2006 = vst [vmem:[%s3072_s27 + $0x18] sm:$0xff] %v2005_v60  ;;  %v2011_v20 = vld [vmem:[%s3076_s9 + $0x30] sm:$0xff] }
 0x266   : >> { %2008 = vst [vmem:[%s3072_s27 + $0x20] sm:$0xff] %v2007_v61  ;;  %2010 = vst [vmem:[%s3072_s27 + $0x28] sm:$0xff] %v2009_v62  ;;  %v2013_v15 = vld [vmem:[%s3076_s9 + $0x38] sm:$0xff]  ;;  %v2015_v17 = vld [vmem:[%s3076_s9 + $0x40] sm:$0xff]  ;;  %s4092_s30 = smov (%p2128_p11, %s2127_s30), 0 }
 0x267   : >> { %2012 = vst [vmem:[%s3072_s27 + $0x30] sm:$0xff] %v2011_v20  ;;  %2014 = vst [vmem:[%s3072_s27 + $0x38] sm:$0xff] %v2013_v15  ;;  %v2017_v1 = vld [vmem:[%s3076_s9 + $0x48] sm:$0xff]  ;;  %v2019_v25 = vld [vmem:[%s3076_s9 + $0x50] sm:$0xff]  ;;  %s2347_s10 = sshll.u32 %s4092_s30, 9  ;;  %s4085_s12 = smov %s4092_s30 }
 0x268   : >> { %2016 = vst [vmem:[%s3072_s27 + $0x40] sm:$0xff] %v2015_v17  ;;  %v2021_v2 = vld [vmem:[%s3076_s9 + $0x58] sm:$0xff]  ;;  %2018 = vst [vmem:[%s3072_s27 + $0x48] sm:$0xff] %v2017_v1  ;;  %v2023_v16 = vld [vmem:[%s3076_s9 + $0x60] sm:$0xff]  ;;  %s3934_s11 = scalar_lea.vmem %s3604_s24, %s2347_s10 [#allocation2]   ;;  %s3937_s13 = scalar_lea.vmem %s3861_s22, %s2347_s10  }
 0x269   : >> { %2020 = vst [vmem:[%s3072_s27 + $0x50] sm:$0xff] %v2019_v25  ;;  %2022 = vst [vmem:[%s3072_s27 + $0x58] sm:$0xff] %v2021_v2  ;;  %v2025_v21 = vld [vmem:[%s3076_s9 + $0x68] sm:$0xff]  ;;  %v2027_v11 = vld [vmem:[%s3076_s9 + $0x70] sm:$0xff] }
 0x26a   : >> { %2024 = vst [vmem:[%s3072_s27 + $0x60] sm:$0xff] %v2023_v16  ;;  %2026 = vst [vmem:[%s3072_s27 + $0x68] sm:$0xff] %v2025_v21  ;;  %v2029_v6 = vld [vmem:[%s3076_s9 + $0x78] sm:$0xff]  ;;  %v2031_v12 = vld [vmem:[%s3076_s9 + $0x80] sm:$0xff] }
 0x26b   : >> { %2028 = vst [vmem:[%s3072_s27 + $0x70] sm:$0xff] %v2027_v11  ;;  %v2033_v18 = vld [vmem:[%s3076_s9 + $0x88] sm:$0xff]  ;;  %2030 = vst [vmem:[%s3072_s27 + $0x78] sm:$0xff] %v2029_v6  ;;  %v2035_v22 = vld [vmem:[%s3076_s9 + $0x90] sm:$0xff] }
 0x26c   : >> { %2032 = vst [vmem:[%s3072_s27 + $0x80] sm:$0xff] %v2031_v12  ;;  %2034 = vst [vmem:[%s3072_s27 + $0x88] sm:$0xff] %v2033_v18  ;;  %v2037_v32 = vld [vmem:[%s3076_s9 + $0x98] sm:$0xff]  ;;  %v2039_v33 = vld [vmem:[%s3076_s9 + $0xa0] sm:$0xff] }
 0x26d   : >> { %2036 = vst [vmem:[%s3072_s27 + $0x90] sm:$0xff] %v2035_v22  ;;  %2038 = vst [vmem:[%s3072_s27 + $0x98] sm:$0xff] %v2037_v32  ;;  %v2041_v36 = vld [vmem:[%s3076_s9 + $0xa8] sm:$0xff]  ;;  %v2043_v39 = vld [vmem:[%s3076_s9 + $0xb0] sm:$0xff] }
 0x26e   : >> { %2040 = vst [vmem:[%s3072_s27 + $0xa0] sm:$0xff] %v2039_v33  ;;  %v2045_v45 = vld [vmem:[%s3076_s9 + $0xb8] sm:$0xff]  ;;  %2042 = vst [vmem:[%s3072_s27 + $0xa8] sm:$0xff] %v2041_v36  ;;  %v2047_v52 = vld [vmem:[%s3076_s9 + $0xc0] sm:$0xff] }
 0x26f   : >> { %2044 = vst [vmem:[%s3072_s27 + $0xb0] sm:$0xff] %v2043_v39  ;;  %2046 = vst [vmem:[%s3072_s27 + $0xb8] sm:$0xff] %v2045_v45  ;;  %v2049_v55 = vld [vmem:[%s3076_s9 + $0xc8] sm:$0xff]  ;;  %v2051_v63 = vld [vmem:[%s3076_s9 + $0xd0] sm:$0xff] }
 0x270   : >> { %2048 = vst [vmem:[%s3072_s27 + $0xc0] sm:$0xff] %v2047_v52  ;;  %2050 = vst [vmem:[%s3072_s27 + $0xc8] sm:$0xff] %v2049_v55  ;;  %v2053_v8 = vld [vmem:[%s3076_s9 + $0xd8] sm:$0xff]  ;;  %v2055_v13 = vld [vmem:[%s3076_s9 + $0xe0] sm:$0xff] }
 0x271   : >> { %2052 = vst [vmem:[%s3072_s27 + $0xd0] sm:$0xff] %v2051_v63  ;;  %v2057_v26 = vld [vmem:[%s3076_s9 + $0xe8] sm:$0xff]  ;;  %2054 = vst [vmem:[%s3072_s27 + $0xd8] sm:$0xff] %v2053_v8  ;;  %v2059_v40 = vld [vmem:[%s3076_s9 + $0xf0] sm:$0xff] }
 0x272   : >> { %2056 = vst [vmem:[%s3072_s27 + $0xe0] sm:$0xff] %v2055_v13  ;;  %2058 = vst [vmem:[%s3072_s27 + $0xe8] sm:$0xff] %v2057_v26  ;;  %v2061_v46 = vld [vmem:[%s3076_s9 + $0xf8] sm:$0xff]  ;;  %v2063_v49 = vld [vmem:[%s3076_s9 + $0x100] sm:$0xff] }
 0x273   : >> { %2060 = vst [vmem:[%s3072_s27 + $0xf0] sm:$0xff] %v2059_v40  ;;  %2062 = vst [vmem:[%s3072_s27 + $0xf8] sm:$0xff] %v2061_v46  ;;  %v2065_v37 = vld [vmem:[%s3076_s9 + $0x108] sm:$0xff]  ;;  %v2067_v38 = vld [vmem:[%s3076_s9 + $0x110] sm:$0xff] }
 0x274   : >> { %2064 = vst [vmem:[%s3072_s27 + $0x100] sm:$0xff] %v2063_v49  ;;  %v2069_v24 = vld [vmem:[%s3076_s9 + $0x118] sm:$0xff]  ;;  %2066 = vst [vmem:[%s3072_s27 + $0x108] sm:$0xff] %v2065_v37  ;;  %v2071_v9 = vld [vmem:[%s3076_s9 + $0x120] sm:$0xff] }
 0x275   : >> { %2068 = vst [vmem:[%s3072_s27 + $0x110] sm:$0xff] %v2067_v38  ;;  %2070 = vst [vmem:[%s3072_s27 + $0x118] sm:$0xff] %v2069_v24  ;;  %v2073_v29 = vld [vmem:[%s3076_s9 + $0x128] sm:$0xff]  ;;  %v2075_v43 = vld [vmem:[%s3076_s9 + $0x130] sm:$0xff] }
 0x276   : >> { %2072 = vst [vmem:[%s3072_s27 + $0x120] sm:$0xff] %v2071_v9  ;;  %2074 = vst [vmem:[%s3072_s27 + $0x128] sm:$0xff] %v2073_v29  ;;  %v2077_v5 = vld [vmem:[%s3076_s9 + $0x138] sm:$0xff]  ;;  %v2079_v27 = vld [vmem:[%s3076_s9 + $0x140] sm:$0xff] }
 0x277   : >> { %2076 = vst [vmem:[%s3072_s27 + $0x130] sm:$0xff] %v2075_v43  ;;  %v2081_v48 = vld [vmem:[%s3076_s9 + $0x148] sm:$0xff]  ;;  %2078 = vst [vmem:[%s3072_s27 + $0x138] sm:$0xff] %v2077_v5  ;;  %v2083_v10 = vld [vmem:[%s3076_s9 + $0x150] sm:$0xff] }
 0x278   : >> { %2080 = vst [vmem:[%s3072_s27 + $0x140] sm:$0xff] %v2079_v27  ;;  %2082 = vst [vmem:[%s3072_s27 + $0x148] sm:$0xff] %v2081_v48  ;;  %v2085_v31 = vld [vmem:[%s3076_s9 + $0x158] sm:$0xff]  ;;  %v2087_v51 = vld [vmem:[%s3076_s9 + $0x160] sm:$0xff] }
 0x279   : >> { %2084 = vst [vmem:[%s3072_s27 + $0x150] sm:$0xff] %v2083_v10  ;;  %2086 = vst [vmem:[%s3072_s27 + $0x158] sm:$0xff] %v2085_v31  ;;  %v2089_v3 = vld [vmem:[%s3076_s9 + $0x168] sm:$0xff]  ;;  %v2091_v56 = vld [vmem:[%s3076_s9 + $0x170] sm:$0xff] }
 0x27a   : >> { %2088 = vst [vmem:[%s3072_s27 + $0x160] sm:$0xff] %v2087_v51  ;;  %v2093_v0 = vld [vmem:[%s3076_s9 + $0x178] sm:$0xff]  ;;  %2090 = vst [vmem:[%s3072_s27 + $0x168] sm:$0xff] %v2089_v3  ;;  %v2095_v7 = vld [vmem:[%s3076_s9 + $0x180] sm:$0xff] }
 0x27b   : >> { %2092 = vst [vmem:[%s3072_s27 + $0x170] sm:$0xff] %v2091_v56  ;;  %2094 = vst [vmem:[%s3072_s27 + $0x178] sm:$0xff] %v2093_v0  ;;  %v2097_v41 = vld [vmem:[%s3076_s9 + $0x188] sm:$0xff]  ;;  %v2099_v57 = vld [vmem:[%s3076_s9 + $0x190] sm:$0xff] }
 0x27c   : >> { %2096 = vst [vmem:[%s3072_s27 + $0x180] sm:$0xff] %v2095_v7  ;;  %2098 = vst [vmem:[%s3072_s27 + $0x188] sm:$0xff] %v2097_v41  ;;  %v2101_v58 = vld [vmem:[%s3076_s9 + $0x198] sm:$0xff]  ;;  %v2103_v14 = vld [vmem:[%s3076_s9 + $0x1a0] sm:$0xff] }
 0x27d   : >> { %2100 = vst [vmem:[%s3072_s27 + $0x190] sm:$0xff] %v2099_v57  ;;  %v2105_v35 = vld [vmem:[%s3076_s9 + $0x1a8] sm:$0xff]  ;;  %2102 = vst [vmem:[%s3072_s27 + $0x198] sm:$0xff] %v2101_v58  ;;  %v2107_v28 = vld [vmem:[%s3076_s9 + $0x1b0] sm:$0xff]  ;;  %1995 = sbr.rel (!%p1992_p12) target bundleno = 611 (0x263), region = 144 }
 0x27e   : >> { %2104 = vst [vmem:[%s3072_s27 + $0x1a0] sm:$0xff] %v2103_v14  ;;  %2106 = vst [vmem:[%s3072_s27 + $0x1a8] sm:$0xff] %v2105_v35  ;;  %v2109_v23 = vld [vmem:[%s3076_s9 + $0x1b8] sm:$0xff]  ;;  %v2111_v47 = vld [vmem:[%s3076_s9 + $0x1c0] sm:$0xff] }
 0x27f   : >> { %2108 = vst [vmem:[%s3072_s27 + $0x1b0] sm:$0xff] %v2107_v28  ;;  %2110 = vst [vmem:[%s3072_s27 + $0x1b8] sm:$0xff] %v2109_v23  ;;  %v2113_v4 = vld [vmem:[%s3076_s9 + $0x1c8] sm:$0xff]  ;;  %v2115_v19 = vld [vmem:[%s3076_s9 + $0x1d0] sm:$0xff] }
 0x280   : >> { %2112 = vst [vmem:[%s3072_s27 + $0x1c0] sm:$0xff] %v2111_v47  ;;  %v2117_v42 = vld [vmem:[%s3076_s9 + $0x1d8] sm:$0xff]  ;;  %2114 = vst [vmem:[%s3072_s27 + $0x1c8] sm:$0xff] %v2113_v4  ;;  %v2119_v34 = vld [vmem:[%s3076_s9 + $0x1e0] sm:$0xff] }
 0x281   : >> { %2116 = vst [vmem:[%s3072_s27 + $0x1d0] sm:$0xff] %v2115_v19  ;;  %2118 = vst [vmem:[%s3072_s27 + $0x1d8] sm:$0xff] %v2117_v42  ;;  %v2121_v53 = vld [vmem:[%s3076_s9 + $0x1e8] sm:$0xff]  ;;  %v2123_v30 = vld [vmem:[%s3076_s9 + $0x1f0] sm:$0xff] }
 0x282   : >> { %2120 = vst [vmem:[%s3072_s27 + $0x1e0] sm:$0xff] %v2119_v34  ;;  %2122 = vst [vmem:[%s3072_s27 + $0x1e8] sm:$0xff] %v2121_v53  ;;  %v2125_v50 = vld [vmem:[%s3076_s9 + $0x1f8] sm:$0xff]  ;;  %s4084_s9 = smov %s3934_s11 }
 0x283   : >> { %2124 = vst [vmem:[%s3072_s27 + $0x1f0] sm:$0xff] %v2123_v30  ;;  %2126 = vst [vmem:[%s3072_s27 + $0x1f8] sm:$0xff] %v2125_v50  ;;  %s4083_s27 = smov %s3937_s13 }
 0x284 PF: > { %s4042_s14 = sand.u32 63, %s4090_s15   ;;  %s2358_s16 = sshll.u32 %s3867_s26, 9 }
 0x285   : > { %s2138_s17 = scalar_lea.vmem %s3604_s24, %s2358_s16 [#allocation2]   ;;  %s2140_s18 = scalar_lea.vmem %s3861_s22, %s2358_s16  }
 0x286   : > { %p2352_p13 = scmp.le.s32.totalorder %s4042_s14, 0 }
 0x287   : > { %s3086_s20 = smov (!%p2352_p13), %s2140_s18   ;;  %s3090_s19 = smov (!%p2352_p13), %s2138_s17  }
 0x288   : > { %2243 = sbr.rel (%p2352_p13) target bundleno = 665 (0x299), region = 149  ;;  %s3094_s21 = smov (!%p2352_p13), 0  }
 0x289   : > { %s3098_s23 = smov (!%p2352_p13), 0  }
 0x28f LB: >> { %v2150_v54 = vld [vmem:[%s3092_s19] sm:$0xff]  ;;  %s2152_s15 = sadd.s32 1, %s3096_s21  ;;  %s2144_s23 = sadd.s32 1, %s3100_s23   ;;  %s3100_s23 = sphi %s3098_s23, %s2144_s23   ;;  %s3096_s21 = sphi %s3094_s21, %s3095_s21   ;;  %s3092_s19 = sphi %s3090_s19, %s2157_s19   ;;  %s3088_s20 = sphi %s3086_s20, %s2158_s20  }
 0x290   : >> { %2151 = vst [vmem:[%s3088_s20] sm:$0xff] %v2150_v54  ;;  %p2153_p0 = scmp.ge.s32.totalorder %s2152_s15, %s4042_s14  ;;  %p2143_p1 = scmp.ge.s32.totalorder %s2144_s23, %s4042_s14 }
 0x292   : >> { %s4094_s15 = smov (%p2153_p0, %s2152_s15), 0  ;;  %2146 = sbr.rel (!%p2143_p1) target bundleno = 655 (0x28f), region = 155 }
 0x293   : >> { %s2353_s24 = sshll.u32 %s4094_s15, 3  ;;  %s3095_s21 = smov %s4094_s15  }
 0x294   : >> { %s2157_s19 = scalar_lea.vmem %s2138_s17, %s2353_s24 [#allocation2]   ;;  %s2158_s20 = scalar_lea.vmem %s2140_s18, %s2353_s24  }
 0x299 PF: > { %p14_p2 = scmp.ge.s32.totalorder %s3157_s28, 5   ;;  %s4086_s24 = smov %s3064_s25 }
 0x29a   : > { %s4087_s25 = smov %s3165_s8  ;;  %s4088_s26 = smov %s3157_s28 }
 0x29b   :  { %16 = sbr.rel (!%p14_p2) target bundleno = 2 (0x2), region = 166 }

// kernel: ffno_forward.30
= control target key start
LH: loop header
LB: loop body
LE: loop exit
PB: predicated region body
PF: predicated region fallthrough
CT: control target
= control target key end

     0   :  { %s3012_s24 = smov 0   ;;  %s3014_s25 = smov 0   ;;  %s3857_s0 = inlined_call_operand.vmem [shape: bf16[1152,32], index: 0, kind: input, shape index: {}]   ;;  %s3858_s1 = inlined_call_operand.vmem [shape: bf16[1152,32], index: 1, kind: input, shape index: {}]   ;;  %s3859_s2 = inlined_call_operand.vmem [shape: f32[1152,32], index: 2, kind: input, shape index: {}]   ;;  %s3860_s3 = inlined_call_operand.vmem [shape: bf16[32,128], index: 3, kind: input, shape index: {}]   ;;  %s3861_s4 = inlined_call_operand.vmem [shape: f32[1,128], index: 4, kind: input, shape index: {}]   ;;  %s3862_s5 = inlined_call_operand.vmem [shape: bf16[128,32], index: 5, kind: input, shape index: {}]   ;;  %s3863_s6 = inlined_call_operand.vmem [shape: f32[1,32], index: 6, kind: input, shape index: {}]   ;;  %s3864_s7 = inlined_call_operand.vmem [shape: f32[1152,32], index: 7, kind: output, shape index: {}]  }
   0x1   :  { %s3016_s2 = smov 0  }
   0x2 LB: > { %s3025_s26 = sadd.s32 4294967295, %s2938_s2   ;;  %s3027_s27 = sadd.s32 1, %s2938_s2   ;;  %s2938_s2 = sphi %s3016_s2, %s3885_s2   ;;  %s2934_s25 = sphi %s3014_s25, %s3884_s25   ;;  %s2930_s24 = sphi %s3012_s24, %s3883_s24  }
   0x3   : > { %s183_s28 = ssub.s32 %s2938_s2, %s3027_s27  ;;  %s186_s29 = sadd.s32 1, %s2934_s25 }
   0x4   : > { %p184_p0 = scmp.eq.s32.totalorder %s183_s28, 0  ;;  %p196_p1 = scmp.ne.s32.totalorder %s2934_s25, %s2930_s24 }
   0x5   : > { %p197_p2 = scmp.eq.s32.totalorder %s3025_s26, 2  ;;  %p2160_p3 = scmp.ge.s32.totalorder %s2938_s2, 1 }
   0x6   : > { %s3035_s30 = scalar_select %p184_p0, %s2934_s25, %s186_s29  }
   0x7   : > { %p3037_p4 = por %p197_p2, %p196_p1  ;;  %p284_p5 = scmp.lt.s32.totalorder %s2938_s2, 4 }
   0x9   : > { %p285_p6 = pnand %p2160_p3, %p284_p5 }
   0xa   : > { %v2874_v0 = vld [vmem:[%s3860_s3] sm:$0xff] (!%p285_p6)   ;;  %s3045_s11 = sshll.u32 (!%p285_p6), %s3025_s26, 6  ;;  %v2875_v1 = vld [vmem:[%s3860_s3 + $0x8] sm:$0xff] (!%p285_p6)   ;;  %vm760_vm0 = vcmask (!%p285_p6), 261120   ;;  %s334_s23 = sand.u32 (!%p285_p6), 1, %s2930_s24  }
   0xb   : > { %288 = sbr.rel (%p285_p6) target bundleno = 663 (0x297), region = 48  ;;  %p342_p7 = scmp.lt.s32.totalorder (!%p285_p6), %s3045_s11, 143  ;;  %2622 = vmatprep.subr.bf16.mxu0 (!%p285_p6), %v2874_v0 }
   0xc   : > { %2623 = vmatpush3.bf16.msra.mxu0 (!%p285_p6), %v2874_v0  ;;  %s2161_s2 = sshll.u32 (!%p285_p6), %s334_s23, 9 }
   0xd   : > { %2624 = vmatprep.subr.bf16.mxu0 (!%p285_p6), %v2875_v1  ;;  %s3459_s9 = scalar_lea.vmem (!%p285_p6), [#allocation2], %s2161_s2  }
  0x10   : > { %2625 = vmatpush3.bf16.msra.mxu0 (!%p285_p6), %v2875_v1 }
  0x12   : > { %s343_s14 = scalar_select %p342_p7, %s3045_s11, 143 }
  0x13   : > { %s1674_s24 = ssub.s32 (%p3037_p4), 144, %s3045_s11  ;;  %s2227_s10 = sshll.u32 (%p3037_p4), %s3025_s26, 9 }
  0x14   : > { %s2163_s15 = sshll.u32 %s343_s14, 2  ;;  %p1675_p8 = scmp.lt.s32.totalorder (%p3037_p4), %s1674_s24, 64 }
  0x15   : > { %s3055_s18 = scalar_lea.vmem %s3857_s0, %s2163_s15  ;;  %s3060_s21 = scalar_lea.vmem %s3858_s1, %s2163_s15 }
  0x16   : > { %v2231_v2 = vld [vmem:[%s3055_s18] sm:$0xff]   ;;  %v2486_v4 = vld [vmem:[%s3055_s18 + $0x8] sm:$0xff]   ;;  %v2487_v10 = vld [vmem:[%s3055_s18 + $0x10] sm:$0xff]   ;;  %s3658_s14 = scalar_lea.vmem (%p3037_p4), %s3864_s7, %s2227_s10  }
  0x17   : > { %v2359_v3 = vld [vmem:[%s3060_s21] sm:$0xff]   ;;  %v2232_v5 = vunpack.c.l.bf16 %v2231_v2  ;;  %v2233_v6 = vunpack.c.h.bf16 %v2231_v2  ;;  %v2517_v9 = vld [vmem:[%s3060_s21 + $0x8] sm:$0xff]   ;;  %v2518_v11 = vld [vmem:[%s3060_s21 + $0x10] sm:$0xff]   ;;  %v2236_v12 = vunpack.c.l.bf16 %v2486_v4  ;;  %v2237_v13 = vunpack.c.h.bf16 %v2486_v4 }
  0x18   : > { %v2360_v7 = vunpack.c.l.bf16 %v2359_v3  ;;  %v2361_v8 = vunpack.c.h.bf16 %v2359_v3  ;;  %v2364_v14 = vunpack.c.l.bf16 %v2517_v9  ;;  %v2365_v15 = vunpack.c.h.bf16 %v2517_v9  ;;  %v2488_v16 = vld [vmem:[%s3055_s18 + $0x18] sm:$0xff]   ;;  %v2489_v26 = vld [vmem:[%s3055_s18 + $0x20] sm:$0xff]   ;;  %v2490_v32 = vld [vmem:[%s3055_s18 + $0x28] sm:$0xff]  }
  0x19   : > { %v2519_v17 = vld [vmem:[%s3060_s21 + $0x18] sm:$0xff]   ;;  %v2240_v20 = vunpack.c.l.bf16 %v2487_v10  ;;  %v2241_v21 = vunpack.c.h.bf16 %v2487_v10  ;;  %v2368_v24 = vunpack.c.l.bf16 %v2518_v11  ;;  %v2369_v25 = vunpack.c.h.bf16 %v2518_v11  ;;  %v2520_v27 = vld [vmem:[%s3060_s21 + $0x20] sm:$0xff]   ;;  %v2521_v37 = vld [vmem:[%s3060_s21 + $0x28] sm:$0xff]  }
  0x1a   : > { %v641_v18 = vadd.f32 %v2360_v7, %v2232_v5  ;;  %v642_v19 = vadd.f32 %v2361_v8, %v2233_v6  ;;  %v643_v22 = vadd.f32 %v2364_v14, %v2236_v12  ;;  %v644_v23 = vadd.f32 %v2365_v15, %v2237_v13  ;;  %v2491_v42 = vld [vmem:[%s3055_s18 + $0x30] sm:$0xff]   ;;  %v2492_v55 = vld [vmem:[%s3055_s18 + $0x38] sm:$0xff]   ;;  %v2493_v63 = vld [vmem:[%s3055_s18 + $0x40] sm:$0xff]  }
  0x1b   : > { %v2244_v29 = vunpack.c.l.bf16 %v2488_v16  ;;  %v2245_v30 = vunpack.c.h.bf16 %v2488_v16  ;;  %v2372_v31 = vunpack.c.l.bf16 %v2519_v17  ;;  %v645_v34 = vadd.f32 %v2368_v24, %v2240_v20  ;;  %v2522_v47 = vld [vmem:[%s3060_s21 + $0x30] sm:$0xff]   ;;  %v2523_v56 = vld [vmem:[%s3060_s21 + $0x38] sm:$0xff]   ;;  %v2524_v0 = vld [vmem:[%s3060_s21 + $0x40] sm:$0xff]  }
  0x1c   : > { %v705_v28 = vpack.c.bf16 %v642_v19, %v641_v18  ;;  %v706_v33 = vpack.c.bf16 %v644_v23, %v643_v22  ;;  %v646_v35 = vadd.f32 %v2369_v25, %v2241_v21  ;;  %v2373_v36 = vunpack.c.h.bf16 %v2519_v17  ;;  %v2494_v5 = vld [vmem:[%s3055_s18 + $0x48] sm:$0xff]   ;;  %v2495_v9 = vld [vmem:[%s3055_s18 + $0x50] sm:$0xff]   ;;  %v2496_v19 = vld [vmem:[%s3055_s18 + $0x58] sm:$0xff]  }
  0x1d   : > { %v647_v38 = vadd.f32 %v2372_v31, %v2244_v29  ;;  %v2248_v39 = vunpack.c.l.bf16 %v2489_v26  ;;  %v2249_v40 = vunpack.c.h.bf16 %v2489_v26  ;;  %v2376_v41 = vunpack.c.l.bf16 %v2520_v27  ;;  %v2525_v6 = vld [vmem:[%s3060_s21 + $0x48] sm:$0xff]   ;;  %v2526_v14 = vld [vmem:[%s3060_s21 + $0x50] sm:$0xff]   ;;  %v2527_v20 = vld [vmem:[%s3060_s21 + $0x58] sm:$0xff]  }
  0x1e   : > { %2626 = vmatprep.mubr.msk.bf16.mxu0 %vm760_vm0, %v705_v28  ;;  %v707_v43 = vpack.c.bf16 %v646_v35, %v645_v34  ;;  %v648_v44 = vadd.f32 %v2373_v36, %v2245_v30  ;;  %v2377_v45 = vunpack.c.h.bf16 %v2520_v27  ;;  %v2252_v46 = vunpack.c.l.bf16 %v2490_v32  ;;  %v2497_v29 = vld [vmem:[%s3055_s18 + $0x60] sm:$0xff]   ;;  %v2498_v35 = vld [vmem:[%s3055_s18 + $0x68] sm:$0xff]  }
  0x1f   : > { %2627 = vmatmul.mubr.msk.bf16.vlgmr.msra.gmra.mrb[0].mxu0 %vm760_vm0, %v706_v33  ;;  %v649_v48 = vadd.f32 %v2376_v41, %v2248_v39  ;;  %v2253_v49 = vunpack.c.h.bf16 %v2490_v32  ;;  %v2380_v50 = vunpack.c.l.bf16 %v2521_v37  ;;  %v2381_v51 = vunpack.c.h.bf16 %v2521_v37  ;;  %v2528_v30 = vld [vmem:[%s3060_s21 + $0x60] sm:$0xff]  }
  0x20   : > { %2630 = vmatprep.mubr.msk.bf16.mxu0 %vm760_vm0, %v707_v43  ;;  %v650_v52 = vadd.f32 %v2377_v45, %v2249_v40  ;;  %v2256_v53 = vunpack.c.l.bf16 %v2491_v42  ;;  %v2257_v54 = vunpack.c.h.bf16 %v2491_v42  ;;  %v2384_v57 = vunpack.c.l.bf16 %v2522_v47  ;;  %v2529_v40 = vld [vmem:[%s3060_s21 + $0x68] sm:$0xff]   ;;  %v2499_v45 = vld [vmem:[%s3055_s18 + $0x70] sm:$0xff]  }
  0x21   : > { %v2385_v58 = vunpack.c.h.bf16 %v2522_v47  ;;  %v708_v59 = vpack.c.bf16 %v648_v44, %v647_v38  ;;  %v3081_v61 = vadd.f32 %v2380_v50, %v2252_v46  ;;  %v3083_v62 = vadd.f32 %v2381_v51, %v2253_v49  ;;  %v2876_v46 = vld [vmem:[%s3862_s5] sm:$0xff]   ;;  %v2530_v51 = vld [vmem:[%s3060_s21 + $0x70] sm:$0xff]  }
  0x22   : > { %v709_v60 = vpack.c.bf16 %v650_v52, %v649_v48  ;;  %v3087_v1 = vadd.f32 %v2384_v57, %v2256_v53  ;;  %v2260_v3 = vunpack.c.l.bf16 %v2492_v55  ;;  %v2388_v4 = vunpack.c.l.bf16 %v2523_v56  ;;  %v2877_v52 = vld [vmem:[%s3862_s5 + $0x8] sm:$0xff]   ;;  %2690 = vmatprep.subr.bf16.mxu0 %v2876_v46  ;;  %2770 = vmatprep.subr.bf16.mxu1 %v2876_v46 }
  0x23   : > { %v3089_v2 = vadd.f32 %v2385_v58, %v2257_v54  ;;  %v2261_v7 = vunpack.c.h.bf16 %v2492_v55  ;;  %v2389_v8 = vunpack.c.h.bf16 %v2523_v56  ;;  %v2264_v10 = vunpack.c.l.bf16 %v2493_v63  ;;  %2778 = vmatpush3.bf16.msra.mxu1 %v2876_v46  ;;  %2691 = vmatpush3.bf16.msra.mxu0 %v2876_v46 }
  0x24   : > { %v2265_v11 = vunpack.c.h.bf16 %v2493_v63  ;;  %v2392_v12 = vunpack.c.l.bf16 %v2524_v0  ;;  %v2393_v13 = vunpack.c.h.bf16 %v2524_v0  ;;  %v2268_v15 = vunpack.c.l.bf16 %v2494_v5  ;;  %2692 = vmatprep.subr.bf16.mxu0 %v2877_v52  ;;  %2771 = vmatprep.subr.bf16.mxu1 %v2877_v52 }
  0x25   : > { %v2269_v16 = vunpack.c.h.bf16 %v2494_v5  ;;  %v2396_v17 = vunpack.c.l.bf16 %v2525_v6  ;;  %v2397_v18 = vunpack.c.h.bf16 %v2525_v6  ;;  %v710_v21 = vpack.c.bf16 %v3083_v62, %v3081_v61  ;;  %v3158_v6 = vld [vmem:[%s3055_s18 + $0x80] sm:$0xff]  }
  0x26   : > { %v711_v22 = vpack.c.bf16 %v3089_v2, %v3087_v1  ;;  %v3103_v23 = vadd.f32 %v2388_v4, %v2260_v3  ;;  %v2272_v24 = vunpack.c.l.bf16 %v2495_v9  ;;  %v3105_v25 = vadd.f32 %v2389_v8, %v2261_v7  ;;  %v3146_v1 = vld [vmem:[%s3055_s18 + $0x78] sm:$0xff]   ;;  %v2502_v7 = vld [vmem:[%s3055_s18 + $0x88] sm:$0xff]   ;;  %v2878_v8 = vld [vmem:[%s3862_s5 + $0x10] sm:$0xff]  }
  0x27   : > { %2631 = vmatmul.mubr.msk.bf16.gmra.mrb[4].mxu0 %vm760_vm0, %v708_v59  ;;  %v2273_v26 = vunpack.c.h.bf16 %v2495_v9  ;;  %v2400_v27 = vunpack.c.l.bf16 %v2526_v14  ;;  %v2401_v28 = vunpack.c.h.bf16 %v2526_v14  ;;  %v3109_v31 = vadd.f32 %v2392_v12, %v2264_v10  ;;  %v3149_v2 = vld [vmem:[%s3060_s21 + $0x78] sm:$0xff]   ;;  %2779 = vmatpush3.bf16.msra.mxu1 %v2877_v52 }
  0x28   : > { %2634 = vmatprep.mubr.msk.bf16.mxu0 %vm760_vm0, %v709_v60  ;;  %v2276_v32 = vunpack.c.l.bf16 %v2496_v19  ;;  %v2277_v33 = vunpack.c.h.bf16 %v2496_v19  ;;  %v2404_v34 = vunpack.c.l.bf16 %v2527_v20  ;;  %v3112_v36 = vadd.f32 %v2393_v13, %v2265_v11  ;;  %v2533_v13 = vld [vmem:[%s3060_s21 + $0x88] sm:$0xff]   ;;  %v2503_v19 = vld [vmem:[%s3055_s18 + $0x90] sm:$0xff]   ;;  %2693 = vmatpush3.bf16.msra.mxu0 %v2877_v52 }
  0x29   : > { %v3114_v37 = vadd.f32 %v2396_v17, %v2268_v15  ;;  %v3116_v38 = vadd.f32 %v2397_v18, %v2269_v16  ;;  %v2405_v39 = vunpack.c.h.bf16 %v2527_v20  ;;  %v3119_v41 = vadd.f32 %v2400_v27, %v2272_v24  ;;  %v3179_v18 = vld [vmem:[%s3060_s21 + $0x80] sm:$0xff]   ;;  %v2534_v24 = vld [vmem:[%s3060_s21 + $0x90] sm:$0xff]   ;;  %2772 = vmatprep.subr.bf16.mxu1 %v2878_v8  ;;  %2694 = vmatprep.subr.bf16.mxu0 %v2878_v8 }
  0x2a   : > { %v2280_v42 = vunpack.c.l.bf16 %v2497_v29  ;;  %v2281_v43 = vunpack.c.h.bf16 %v2497_v29  ;;  %v2408_v44 = vunpack.c.l.bf16 %v2528_v30  ;;  %v3125_v47 = vadd.f32 %v2401_v28, %v2273_v26  ;;  %v2504_v29 = vld [vmem:[%s3055_s18 + $0x98] sm:$0xff]  }
  0x2b   : > { %v3127_v48 = vadd.f32 %v2404_v34, %v2276_v32  ;;  %v2409_v49 = vunpack.c.h.bf16 %v2528_v30  ;;  %v2284_v50 = vunpack.c.l.bf16 %v2498_v35  ;;  %v3133_v53 = vadd.f32 %v2405_v39, %v2277_v33  ;;  %v2535_v30 = vld [vmem:[%s3060_s21 + $0x98] sm:$0xff]   ;;  %2780 = vmatpush3.bf16.msra.mxu1 %v2878_v8 }
  0x2c   : > { %v2285_v54 = vunpack.c.h.bf16 %v2498_v35  ;;  %v2412_v55 = vunpack.c.l.bf16 %v2529_v40  ;;  %v2413_v56 = vunpack.c.h.bf16 %v2529_v40  ;;  %v3136_v57 = vadd.f32 %v2408_v44, %v2280_v42  ;;  %v2536_v44 = vld [vmem:[%s3060_s21 + $0xa0] sm:$0xff]   ;;  %2695 = vmatpush3.bf16.msra.mxu0 %v2878_v8 }
  0x2d   : > { %v3138_v58 = vadd.f32 %v2409_v49, %v2281_v43  ;;  %v2288_v59 = vunpack.c.l.bf16 %v2499_v45  ;;  %v2289_v60 = vunpack.c.h.bf16 %v2499_v45  ;;  %v2416_v63 = vunpack.c.l.bf16 %v2530_v51  ;;  %v2505_v43 = vld [vmem:[%s3055_s18 + $0xa0] sm:$0xff]  }
  0x2e   : > { %v3141_v61 = vadd.f32 %v2412_v55, %v2284_v50  ;;  %v3143_v62 = vadd.f32 %v2413_v56, %v2285_v54  ;;  %v2417_v0 = vunpack.c.h.bf16 %v2530_v51  ;;  %v712_v3 = vpack.c.bf16 %v3105_v25, %v3103_v23  ;;  %v2506_v51 = vld [vmem:[%s3055_s18 + $0xa8] sm:$0xff]  }
  0x2f   : > { %2635 = vmatmul.mubr.msk.bf16.gmra.mrb[8].mxu0 %vm760_vm0, %v710_v21  ;;  %v713_v4 = vpack.c.bf16 %v3112_v36, %v3109_v31  ;;  %v714_v5 = vpack.c.bf16 %v3116_v38, %v3114_v37  ;;  %v715_v9 = vpack.c.bf16 %v3125_v47, %v3119_v41  ;;  %v716_v10 = vpack.c.bf16 %v3133_v53, %v3127_v48  ;;  %v2879_v31 = vld [vmem:[%s3862_s5 + $0x18] sm:$0xff]   ;;  %v2511_v47 = vld [vmem:[%s3055_s18 + $0xd0] sm:$0xff]  }
  0x30   : > { %2638 = vmatprep.mubr.msk.bf16.mxu0 %vm760_vm0, %v711_v22  ;;  %v3168_v11 = vadd.f32 %v2416_v63, %v2288_v59  ;;  %v3170_v12 = vadd.f32 %v2417_v0, %v2289_v60  ;;  %v717_v14 = vpack.c.bf16 %v3138_v58, %v3136_v57  ;;  %v2292_v15 = vunpack.c.l.bf16 %v3146_v1  ;;  %v2537_v59 = vld [vmem:[%s3060_s21 + $0xa8] sm:$0xff]   ;;  %2696 = vmatprep.subr.bf16.mxu0 %v2879_v31  ;;  %v2880_v60 = vld [vmem:[%s3862_s5 + $0x20] sm:$0xff]  }
  0x31   : > { %v2293_v16 = vunpack.c.h.bf16 %v3146_v1  ;;  %v2420_v17 = vunpack.c.l.bf16 %v3149_v2  ;;  %v718_v20 = vpack.c.bf16 %v3143_v62, %v3141_v61  ;;  %v2421_v21 = vunpack.c.h.bf16 %v3149_v2  ;;  %2773 = vmatprep.subr.bf16.mxu1 %v2879_v31  ;;  %2697 = vmatpush3.bf16.msra.mxu0 %v2879_v31 }
  0x32   : > { %v2296_v22 = vunpack.c.l.bf16 %v3158_v6  ;;  %v2300_v23 = vunpack.c.l.bf16 %v2502_v7  ;;  %v2301_v26 = vunpack.c.h.bf16 %v2502_v7  ;;  %v2428_v27 = vunpack.c.l.bf16 %v2533_v13  ;;  %v2507_v7 = vld [vmem:[%s3055_s18 + $0xb0] sm:$0xff]   ;;  %2781 = vmatpush3.bf16.msra.mxu1 %v2879_v31  ;;  %2698 = vmatprep.subr.bf16.mxu0 %v2880_v60 }
  0x33   : > { %v2429_v28 = vunpack.c.h.bf16 %v2533_v13  ;;  %v719_v32 = vpack.c.bf16 %v3170_v12, %v3168_v11  ;;  %v2304_v34 = vunpack.c.l.bf16 %v2503_v19  ;;  %v2305_v35 = vunpack.c.h.bf16 %v2503_v19  ;;  %2774 = vmatprep.subr.bf16.mxu1 %v2880_v60 }
  0x34   : > { %v3197_v36 = vadd.f32 %v2428_v27, %v2300_v23  ;;  %v2432_v40 = vunpack.c.l.bf16 %v2534_v24  ;;  %v2433_v42 = vunpack.c.h.bf16 %v2534_v24  ;;  %v2308_v46 = vunpack.c.l.bf16 %v2504_v29  ;;  %v2538_v24 = vld [vmem:[%s3060_s21 + $0xb0] sm:$0xff]  }
  0x35   : > { %v3199_v39 = vadd.f32 %v2429_v28, %v2301_v26  ;;  %v2309_v49 = vunpack.c.h.bf16 %v2504_v29  ;;  %v2436_v50 = vunpack.c.l.bf16 %v2535_v30  ;;  %v2437_v56 = vunpack.c.h.bf16 %v2535_v30  ;;  %v2508_v30 = vld [vmem:[%s3055_s18 + $0xb8] sm:$0xff]   ;;  %2699 = vmatpush3.bf16.msra.mxu0 %v2880_v60 }
  0x36   : > { %v3208_v54 = vadd.f32 %v2432_v40, %v2304_v34  ;;  %v3210_v55 = vadd.f32 %v2433_v42, %v2305_v35  ;;  %v2312_v0 = vunpack.c.l.bf16 %v2505_v43  ;;  %v2441_v19 = vunpack.c.h.bf16 %v2536_v44  ;;  %v2539_v34 = vld [vmem:[%s3060_s21 + $0xb8] sm:$0xff]   ;;  %2782 = vmatpush3.bf16.msra.mxu1 %v2880_v60 }
  0x37   : > { %2639 = vmatmul.mubr.msk.bf16.gmra.mrb[12].mxu0 %vm760_vm0, %v712_v3  ;;  %v3216_v63 = vadd.f32 %v2436_v50, %v2308_v46  ;;  %v2313_v3 = vunpack.c.h.bf16 %v2505_v43  ;;  %v3221_v13 = vadd.f32 %v2437_v56, %v2309_v49  ;;  %v2316_v23 = vunpack.c.l.bf16 %v2506_v51  ;;  %v2540_v56 = vld [vmem:[%s3060_s21 + $0xc0] sm:$0xff]  }
  0x38   : > { %2642 = vmatprep.mubr.msk.bf16.mxu0 %vm760_vm0, %v713_v4  ;;  %v2440_v4 = vunpack.c.l.bf16 %v2536_v44  ;;  %v2317_v27 = vunpack.c.h.bf16 %v2506_v51  ;;  %v2444_v28 = vunpack.c.l.bf16 %v2537_v59  ;;  %v2445_v29 = vunpack.c.h.bf16 %v2537_v59  ;;  %v2881_v44 = vld [vmem:[%s3862_s5 + $0x28] sm:$0xff]   ;;  %v2509_v51 = vld [vmem:[%s3055_s18 + $0xc0] sm:$0xff]   ;;  %v2516_v59 = vld [vmem:[%s3055_s18 + $0xf8] sm:$0xff]  }
  0x39   : > { %v3230_v40 = vadd.f32 %v2441_v19, %v2313_v3  ;;  %v2320_v42 = vunpack.c.l.bf16 %v2507_v7  ;;  %v2321_v43 = vunpack.c.h.bf16 %v2507_v7  ;;  %v2448_v50 = vunpack.c.l.bf16 %v2538_v24  ;;  %v2510_v7 = vld [vmem:[%s3055_s18 + $0xc8] sm:$0xff]   ;;  %2700 = vmatprep.subr.bf16.mxu0 %v2881_v44  ;;  %2775 = vmatprep.subr.bf16.mxu1 %v2881_v44  ;;  %v2544_v19 = vld [vmem:[%s3060_s21 + $0xe0] sm:$0xff]  }
  0x3a   : > { %v3224_v26 = vadd.f32 %v2440_v4, %v2312_v0  ;;  %v3235_v46 = vadd.f32 %v2444_v28, %v2316_v23  ;;  %v3237_v49 = vadd.f32 %v2445_v29, %v2317_v27  ;;  %v2449_v31 = vunpack.c.h.bf16 %v2538_v24  ;;  %v2541_v23 = vld [vmem:[%s3060_s21 + $0xc8] sm:$0xff]   ;;  %2783 = vmatpush3.bf16.msra.mxu1 %v2881_v44  ;;  %2701 = vmatpush3.bf16.msra.mxu0 %v2881_v44 }
  0x3b   : > { %v2324_v0 = vunpack.c.l.bf16 %v2508_v30  ;;  %v2325_v3 = vunpack.c.h.bf16 %v2508_v30  ;;  %v2452_v4 = vunpack.c.l.bf16 %v2539_v34  ;;  %v3254_v37 = vadd.f32 %v2448_v50, %v2320_v42 }
  0x3c   : > { %v3256_v38 = vadd.f32 %v2449_v31, %v2321_v43  ;;  %v2328_v27 = vunpack.c.l.bf16 %v2509_v51  ;;  %v2329_v28 = vunpack.c.h.bf16 %v2509_v51  ;;  %v2456_v41 = vunpack.c.l.bf16 %v2540_v56  ;;  %v2512_v51 = vld [vmem:[%s3055_s18 + $0xd8] sm:$0xff]  }
  0x3d   : > { %v3259_v24 = vadd.f32 %v2452_v4, %v2324_v0  ;;  %v2457_v30 = vunpack.c.h.bf16 %v2540_v56  ;;  %v2332_v42 = vunpack.c.l.bf16 %v2510_v7  ;;  %v2333_v60 = vunpack.c.h.bf16 %v2510_v7  ;;  %v2543_v0 = vld [vmem:[%s3060_s21 + $0xd8] sm:$0xff]  }
  0x3e   : > { %v3267_v43 = vadd.f32 %v2456_v41, %v2328_v27  ;;  %v2460_v50 = vunpack.c.l.bf16 %v2541_v23  ;;  %v2461_v31 = vunpack.c.h.bf16 %v2541_v23  ;;  %v2337_v56 = vunpack.c.h.bf16 %v2511_v47  ;;  %v2513_v23 = vld [vmem:[%s3055_s18 + $0xe0] sm:$0xff]  }
  0x3f   : > { %2643 = vmatmul.mubr.msk.bf16.gmra.mrb[16].mxu0 %vm760_vm0, %v714_v5  ;;  %v2453_v5 = vunpack.c.h.bf16 %v2539_v34  ;;  %v2542_v34 = vld [vmem:[%s3060_s21 + $0xd0] sm:$0xff]   ;;  %v2340_v35 = vunpack.c.l.bf16 %v2512_v51  ;;  %v2341_v4 = vunpack.c.h.bf16 %v2512_v51  ;;  %v2344_v53 = vunpack.c.l.bf16 %v2513_v23 }
  0x40   : > { %2646 = vmatprep.mubr.msk.bf16.mxu0 %vm760_vm0, %v715_v9  ;;  %v3273_v9 = vadd.f32 %v2457_v30, %v2329_v28  ;;  %v3277_v27 = vadd.f32 %v2461_v31, %v2333_v60  ;;  %v2464_v7 = vunpack.c.l.bf16 %v2542_v34  ;;  %v2465_v41 = vunpack.c.h.bf16 %v2542_v34  ;;  %v2514_v30 = vld [vmem:[%s3055_s18 + $0xe8] sm:$0xff]   ;;  %v2515_v31 = vld [vmem:[%s3055_s18 + $0xf0] sm:$0xff]  }
  0x41   : > { %v3264_v29 = vadd.f32 %v2453_v5, %v2325_v3  ;;  %v2336_v3 = vunpack.c.l.bf16 %v2511_v47  ;;  %v3275_v5 = vadd.f32 %v2460_v50, %v2332_v42  ;;  %v2468_v28 = vunpack.c.l.bf16 %v2543_v0  ;;  %v2545_v60 = vld [vmem:[%s3060_s21 + $0xe8] sm:$0xff]  }
  0x42   : > { %v3292_v42 = vadd.f32 %v2465_v41, %v2337_v56  ;;  %v2469_v34 = vunpack.c.h.bf16 %v2543_v0  ;;  %v2472_v50 = vunpack.c.l.bf16 %v2544_v19  ;;  %v2473_v56 = vunpack.c.h.bf16 %v2544_v19 }
  0x43   : > { %v3290_v47 = vadd.f32 %v2464_v7, %v2336_v3  ;;  %v3299_v48 = vadd.f32 %v2468_v28, %v2340_v35  ;;  %v2348_v0 = vunpack.c.l.bf16 %v2514_v30  ;;  %v2546_v7 = vld [vmem:[%s3060_s21 + $0xf0] sm:$0xff]   ;;  %v2349_v44 = vunpack.c.h.bf16 %v2514_v30 }
  0x44   : > { %v696_v3 = vadd.f32 %v2469_v34, %v2341_v4  ;;  %v697_v41 = vadd.f32 %v2472_v50, %v2344_v53  ;;  %v2476_v57 = vunpack.c.l.bf16 %v2545_v60  ;;  %v2477_v58 = vunpack.c.h.bf16 %v2545_v60 }
  0x45   : > { %v731_v51 = vpack.c.bf16 %v3292_v42, %v3290_v47  ;;  %v2352_v8 = vunpack.c.l.bf16 %v2515_v31  ;;  %v2480_v25 = vunpack.c.l.bf16 %v2546_v7  ;;  %v2481_v33 = vunpack.c.h.bf16 %v2546_v7 }
  0x46   : > { %v732_v35 = vpack.c.bf16 %v696_v3, %v3299_v48  ;;  %v699_v52 = vadd.f32 %v2476_v57, %v2348_v0  ;;  %v700_v45 = vadd.f32 %v2477_v58, %v2349_v44  ;;  %v2356_v4 = vunpack.c.l.bf16 %v2516_v59 }
  0x47   : > { %2647 = vmatmul.mubr.msk.bf16.gmra.mrb[20].mxu0 %vm760_vm0, %v716_v10  ;;  %v2345_v10 = vunpack.c.h.bf16 %v2513_v23  ;;  %v2353_v23 = vunpack.c.h.bf16 %v2515_v31  ;;  %v2357_v19 = vunpack.c.h.bf16 %v2516_v59  ;;  %v701_v53 = vadd.f32 %v2480_v25, %v2352_v8 }
  0x48   : > { %2650 = vmatprep.mubr.msk.bf16.mxu0 %vm760_vm0, %v717_v14  ;;  %v2547_v14 = vld [vmem:[%s3060_s21 + $0xf8] sm:$0xff]   ;;  %v734_v34 = vpack.c.bf16 %v700_v45, %v699_v52  ;;  %v671_v44 = vadd.f32 %v2420_v17, %v2292_v15  ;;  %v672_v59 = vadd.f32 %v2421_v21, %v2293_v16  ;;  %v3866_v61 = vunpack.c.l.bf16 %v3179_v18 }
  0x49   : > { %v698_v28 = vadd.f32 %v2473_v56, %v2345_v10  ;;  %v2484_v42 = vunpack.c.l.bf16 %v2547_v14  ;;  %v702_v30 = vadd.f32 %v2481_v33, %v2353_v23  ;;  %v2485_v50 = vunpack.c.h.bf16 %v2547_v14  ;;  %v2882_v33 = vld [vmem:[%s3862_s5 + $0x30] sm:$0xff]  }
  0x4a   : > { %v673_v62 = vadd.f32 %v3866_v61, %v2296_v22  ;;  %v3868_v15 = vunpack.c.h.bf16 %v3179_v18  ;;  %v720_v16 = vpack.c.bf16 %v672_v59, %v671_v44  ;;  %v3869_v11 = vpack.c.bf16 %v3199_v39, %v3197_v36  ;;  %2702 = vmatprep.subr.bf16.mxu0 %v2882_v33  ;;  %2776 = vmatprep.subr.bf16.mxu1 %v2882_v33  ;;  %v2883_v39 = vld [vmem:[%s3862_s5 + $0x38] sm:$0xff]  }
  0x4b   : > { %v733_v47 = vpack.c.bf16 %v698_v28, %v697_v41  ;;  %v703_v60 = vadd.f32 %v2484_v42, %v2356_v4  ;;  %v735_v1 = vpack.c.bf16 %v702_v30, %v701_v53  ;;  %v704_v25 = vadd.f32 %v2485_v50, %v2357_v19  ;;  %2703 = vmatpush3.bf16.msra.mxu0 %v2882_v33 }
  0x4c   : > { %v3871_v12 = vpack.c.bf16 %v3221_v13, %v3216_v63  ;;  %v3872_v18 = vpack.c.bf16 %v3230_v40, %v3224_v26  ;;  %v3873_v22 = vpack.c.bf16 %v3237_v49, %v3235_v46  ;;  %2784 = vmatpush3.bf16.msra.mxu1 %v2882_v33  ;;  %v3875_v36 = vpack.c.bf16 %v3264_v29, %v3259_v24 }
  0x4d   : > { %v736_v2 = vpack.c.bf16 %v704_v25, %v703_v60  ;;  %v3876_v45 = vpack.c.bf16 %v3273_v9, %v3267_v43  ;;  %2704 = vmatprep.subr.bf16.mxu0 %v2883_v39  ;;  %2777 = vmatprep.subr.bf16.mxu1 %v2883_v39  ;;  %v3877_v52 = vpack.c.bf16 %v3277_v27, %v3275_v5 }
  0x4f   : > { %2651 = vmatmul.mubr.msk.bf16.gmra.mrb[24].mxu0 %vm760_vm0, %v718_v20  ;;  %v3867_v20 = vunpack.c.h.bf16 %v3158_v6  ;;  %v3870_v6 = vpack.c.bf16 %v3210_v55, %v3208_v54  ;;  %v3385_v54 = vld [vmem:[%s3861_s4] ss:$0 sm:$0xff] }
  0x50   : > { %2654 = vmatprep.mubr.msk.bf16.mxu0 %vm760_vm0, %v719_v32  ;;  %v3874_v32 = vpack.c.bf16 %v3256_v38, %v3254_v37  ;;  %2705 = vmatpush3.bf16.msra.mxu0 %v2883_v39 }
  0x51   : > { %v674_v17 = vadd.f32 %v3868_v15, %v3867_v20  ;;  %2785 = vmatpush3.bf16.msra.mxu1 %v2883_v39 }
  0x53   : > { %v721_v21 = vpack.c.bf16 %v674_v17, %v673_v62 }
  0x57   : > { %2655 = vmatmul.mubr.msk.bf16.gmra.mrb[28].mxu0 %vm760_vm0, %v720_v16 }
  0x58   : > { %2658 = vmatprep.mubr.msk.bf16.mxu0 %vm760_vm0, %v721_v21 }
  0x5f   : > { %2659 = vmatmul.mubr.msk.bf16.gmra.mrb[32].mxu0 %vm760_vm0, %v3869_v11 }
  0x60   : > { %2662 = vmatprep.mubr.msk.bf16.mxu0 %vm760_vm0, %v3870_v6 }
  0x67   : > { %2663 = vmatmul.mubr.msk.bf16.gmra.mrb[36].mxu0 %vm760_vm0, %v3871_v12 }
  0x68   : > { %2666 = vmatprep.mubr.msk.bf16.mxu0 %vm760_vm0, %v3872_v18 }
  0x6f   : > { %2667 = vmatmul.mubr.msk.bf16.gmra.mrb[40].mxu0 %vm760_vm0, %v3873_v22 }
  0x70   : > { %2670 = vmatprep.mubr.msk.bf16.mxu0 %vm760_vm0, %v3874_v32 }
  0x77   : > { %2671 = vmatmul.mubr.msk.bf16.gmra.mrb[44].mxu0 %vm760_vm0, %v3875_v36 }
  0x78   : > { %2674 = vmatprep.mubr.msk.bf16.mxu0 %vm760_vm0, %v3876_v45 }
  0x7f   : > { %2675 = vmatmul.mubr.msk.bf16.gmra.mrb[48].mxu0 %vm760_vm0, %v3877_v52 }
  0x80   : > { %2678 = vmatprep.mubr.msk.bf16.mxu0 %vm760_vm0, %v731_v51 }
  0x87   : > { %2679 = vmatmul.mubr.msk.bf16.gmra.mrb[52].mxu0 %vm760_vm0, %v732_v35 }
  0x88   : > { %2682 = vmatprep.mubr.msk.bf16.mxu0 %vm760_vm0, %v733_v47 }
  0x8f   : > { %2683 = vmatmul.mubr.msk.bf16.gmra.mrb[56].mxu0 %vm760_vm0, %v734_v34 }
  0x90   : > { %2686 = vmatprep.mubr.msk.bf16.mxu0 %vm760_vm0, %v735_v1 }
  0x97   : > { %2687 = vmatmul.mubr.msk.bf16.gmra.mrb[60].mxu0 %vm760_vm0, %v736_v2 }
  0xf2   : > { %v2628_v55 = vpop.f32.mrb[0].mxu0 }
  0xf3   : > { %v900_v63 = vadd.f32 %v2628_v55, %v3385_v54  ;;  %v891_v8 = vpop.f32.mrb[1].mxu0 }
  0xf4   : > { %v892_v13 = vadd.f32 %v3385_v54, %v891_v8  ;;  %v2629_v26 = vpop.f32.mrb[2].mxu0 }
  0xf5   : > { %v903_v40 = vadd.f32 %v2629_v26, %v3385_v54  ;;  %v894_v46 = vpop.f32.mrb[3].mxu0  ;;  %v1148_v37 = vmax.f32 %v900_v63, 0.0 }
  0xf6   : > { %v895_v49 = vadd.f32 %v3385_v54, %v894_v46  ;;  %v1146_v24 = vmax.f32 %v892_v13, 0.0 }
  0xf7   : > { %v1149_v38 = vmax.f32 %v903_v40, 0.0 }
  0xf8   : > { %v1147_v9 = vmax.f32 %v895_v49, 0.0 }
  0xf9   : > { %v1211_v29 = vpack.c.bf16 %v1149_v38, %v1148_v37 }
  0xfa   : > { %v1210_v43 = vpack.c.bf16 %v1147_v9, %v1146_v24  ;;  %v2632_v5 = vpop.f32.mrb[4].mxu0 }
  0xfb   : > { %v916_v27 = vadd.f32 %v2632_v5, %v3385_v54  ;;  %v907_v48 = vpop.f32.mrb[5].mxu0 }
  0xfc   : > { %v908_v10 = vadd.f32 %v3385_v54, %v907_v48  ;;  %v2633_v31 = vpop.f32.mrb[6].mxu0  ;;  %2706 = vmatprep.mubr.bf16.mxu0 %v1210_v43 }
  0xfd   : > { %v919_v51 = vadd.f32 %v2633_v31, %v3385_v54  ;;  %v910_v3 = vpop.f32.mrb[7].mxu0  ;;  %2707 = vmatmul.mubr.bf16.vlgmr.msra.gmra.mrb[64].mxu0 %v1211_v29  ;;  %v1152_v0 = vmax.f32 %v916_v27, 0.0 }
  0xfe   : > { %v911_v56 = vadd.f32 %v3385_v54, %v910_v3  ;;  %v1150_v41 = vmax.f32 %v908_v10, 0.0 }
  0xff   : > { %v1153_v7 = vmax.f32 %v919_v51, 0.0 }
 0x100   : > { %v1151_v57 = vmax.f32 %v911_v56, 0.0 }
 0x101   : > { %v1213_v58 = vpack.c.bf16 %v1153_v7, %v1152_v0 }
 0x102   : > { %v2636_v14 = vpop.f32.mrb[8].mxu0  ;;  %v1212_v35 = vpack.c.bf16 %v1151_v57, %v1150_v41 }
 0x103   : > { %v932_v28 = vadd.f32 %v2636_v14, %v3385_v54  ;;  %v923_v23 = vpop.f32.mrb[9].mxu0 }
 0x104   : > { %v924_v47 = vadd.f32 %v3385_v54, %v923_v23  ;;  %v2637_v4 = vpop.f32.mrb[10].mxu0  ;;  %2710 = vmatprep.mubr.bf16.mxu1 %v1212_v35 }
 0x105   : > { %v935_v19 = vadd.f32 %v2637_v4, %v3385_v54  ;;  %v926_v42 = vpop.f32.mrb[11].mxu0  ;;  %2711 = vmatmul.mubr.bf16.vlgmr.msra.gmra.mrb[0].mxu1 %v1213_v58  ;;  %v1156_v53 = vmax.f32 %v932_v28, 0.0 }
 0x106   : > { %v927_v34 = vadd.f32 %v3385_v54, %v926_v42  ;;  %v1154_v50 = vmax.f32 %v924_v47, 0.0 }
 0x107   : > { %v1157_v30 = vmax.f32 %v935_v19, 0.0 }
 0x108   : > { %v1155_v44 = vmax.f32 %v927_v34, 0.0 }
 0x109   : > { %v1215_v59 = vpack.c.bf16 %v1157_v30, %v1156_v53 }
 0x10a   : > { %v1214_v60 = vpack.c.bf16 %v1155_v44, %v1154_v50  ;;  %v2640_v61 = vpop.f32.mrb[12].mxu0 }
 0x10b   : > { %v948_v62 = vadd.f32 %v2640_v61, %v3385_v54  ;;  %v939_v20 = vpop.f32.mrb[13].mxu0 }
 0x10c   : > { %v940_v15 = vadd.f32 %v3385_v54, %v939_v20  ;;  %v2641_v17 = vpop.f32.mrb[14].mxu0  ;;  %2714 = vmatprep.mubr.bf16.mxu1 %v1214_v60 }
 0x10d   : > { %v951_v1 = vadd.f32 %v2641_v17, %v3385_v54  ;;  %v942_v25 = vpop.f32.mrb[15].mxu0  ;;  %2715 = vmatmul.mubr.bf16.gmra.mrb[4].mxu1 %v1215_v59  ;;  %v1160_v16 = vmax.f32 %v948_v62, 0.0 }
 0x10e   : > { %v943_v2 = vadd.f32 %v3385_v54, %v942_v25  ;;  %v1158_v11 = vmax.f32 %v940_v15, 0.0 }
 0x10f   : > { %v1161_v21 = vmax.f32 %v951_v1, 0.0 }
 0x110   : > { %v1159_v6 = vmax.f32 %v943_v2, 0.0 }
 0x111   : > { %v1217_v12 = vpack.c.bf16 %v1161_v21, %v1160_v16 }
 0x112   : > { %v1216_v18 = vpack.c.bf16 %v1159_v6, %v1158_v11  ;;  %v2644_v22 = vpop.f32.mrb[16].mxu0 }
 0x113   : > { %v964_v32 = vadd.f32 %v2644_v22, %v3385_v54  ;;  %v955_v33 = vpop.f32.mrb[17].mxu0 }
 0x114   : > { %v956_v36 = vadd.f32 %v3385_v54, %v955_v33  ;;  %v2645_v39 = vpop.f32.mrb[18].mxu0  ;;  %2718 = vmatprep.mubr.bf16.mxu1 %v1216_v18 }
 0x115   : > { %v967_v45 = vadd.f32 %v2645_v39, %v3385_v54  ;;  %v958_v52 = vpop.f32.mrb[19].mxu0  ;;  %2719 = vmatmul.mubr.bf16.gmra.mrb[8].mxu1 %v1217_v12  ;;  %v1164_v63 = vmax.f32 %v964_v32, 0.0 }
 0x116   : > { %v959_v55 = vadd.f32 %v3385_v54, %v958_v52  ;;  %v1162_v13 = vmax.f32 %v956_v36, 0.0 }
 0x117   : > { %v1165_v8 = vmax.f32 %v967_v45, 0.0 }
 0x118   : > { %v1163_v26 = vmax.f32 %v959_v55, 0.0 }
 0x119   : > { %v1219_v40 = vpack.c.bf16 %v1165_v8, %v1164_v63 }
 0x11a   : > { %v1218_v46 = vpack.c.bf16 %v1163_v26, %v1162_v13  ;;  %v2648_v49 = vpop.f32.mrb[20].mxu0 }
 0x11b   : > { %v980_v37 = vadd.f32 %v2648_v49, %v3385_v54  ;;  %v971_v38 = vpop.f32.mrb[21].mxu0 }
 0x11c   : > { %v972_v24 = vadd.f32 %v3385_v54, %v971_v38  ;;  %v2649_v9 = vpop.f32.mrb[22].mxu0  ;;  %2722 = vmatprep.mubr.bf16.mxu1 %v1218_v46 }
 0x11d   : > { %v983_v29 = vadd.f32 %v2649_v9, %v3385_v54  ;;  %v974_v43 = vpop.f32.mrb[23].mxu0  ;;  %2723 = vmatmul.mubr.bf16.gmra.mrb[12].mxu1 %v1219_v40  ;;  %v1168_v27 = vmax.f32 %v980_v37, 0.0 }
 0x11e   : > { %v975_v5 = vadd.f32 %v3385_v54, %v974_v43  ;;  %v1166_v10 = vmax.f32 %v972_v24, 0.0 }
 0x11f   : > { %v1169_v48 = vmax.f32 %v983_v29, 0.0 }
 0x120   : > { %v1167_v31 = vmax.f32 %v975_v5, 0.0 }
 0x121   : > { %v1221_v51 = vpack.c.bf16 %v1169_v48, %v1168_v27 }
 0x122   : > { %v1220_v3 = vpack.c.bf16 %v1167_v31, %v1166_v10  ;;  %v2652_v56 = vpop.f32.mrb[24].mxu0 }
 0x123   : > { %v996_v0 = vadd.f32 %v2652_v56, %v3385_v54  ;;  %v987_v7 = vpop.f32.mrb[25].mxu0 }
 0x124   : > { %v988_v41 = vadd.f32 %v3385_v54, %v987_v7  ;;  %v2653_v57 = vpop.f32.mrb[26].mxu0  ;;  %2726 = vmatprep.mubr.bf16.mxu1 %v1220_v3 }
 0x125   : > { %v999_v58 = vadd.f32 %v2653_v57, %v3385_v54  ;;  %v990_v14 = vpop.f32.mrb[27].mxu0  ;;  %2727 = vmatmul.mubr.bf16.gmra.mrb[16].mxu1 %v1221_v51  ;;  %v1172_v28 = vmax.f32 %v996_v0, 0.0 }
 0x126   : > { %v991_v35 = vadd.f32 %v3385_v54, %v990_v14  ;;  %v1170_v47 = vmax.f32 %v988_v41, 0.0 }
 0x127   : > { %v1173_v23 = vmax.f32 %v999_v58, 0.0 }
 0x128   : > { %v1171_v4 = vmax.f32 %v991_v35, 0.0 }
 0x129   : > { %v1223_v19 = vpack.c.bf16 %v1173_v23, %v1172_v28 }
 0x12a   : > { %v1222_v42 = vpack.c.bf16 %v1171_v4, %v1170_v47  ;;  %v2656_v34 = vpop.f32.mrb[28].mxu0 }
 0x12b   : > { %v1012_v53 = vadd.f32 %v2656_v34, %v3385_v54  ;;  %v1003_v30 = vpop.f32.mrb[29].mxu0 }
 0x12c   : > { %v1004_v50 = vadd.f32 %v3385_v54, %v1003_v30  ;;  %v2657_v44 = vpop.f32.mrb[30].mxu0  ;;  %2730 = vmatprep.mubr.bf16.mxu1 %v1222_v42 }
 0x12d   : > { %v1015_v59 = vadd.f32 %v2657_v44, %v3385_v54  ;;  %v1006_v60 = vpop.f32.mrb[31].mxu0  ;;  %2731 = vmatmul.mubr.bf16.gmra.mrb[20].mxu1 %v1223_v19  ;;  %v1176_v62 = vmax.f32 %v1012_v53, 0.0 }
 0x12e   : > { %v1007_v61 = vadd.f32 %v3385_v54, %v1006_v60  ;;  %v1174_v15 = vmax.f32 %v1004_v50, 0.0 }
 0x12f   : > { %v1177_v20 = vmax.f32 %v1015_v59, 0.0 }
 0x130   : > { %v1175_v17 = vmax.f32 %v1007_v61, 0.0 }
 0x131   : > { %v1225_v1 = vpack.c.bf16 %v1177_v20, %v1176_v62 }
 0x132   : > { %v1224_v25 = vpack.c.bf16 %v1175_v17, %v1174_v15  ;;  %v2660_v2 = vpop.f32.mrb[32].mxu0 }
 0x133   : > { %v1028_v16 = vadd.f32 %v2660_v2, %v3385_v54  ;;  %v1019_v21 = vpop.f32.mrb[33].mxu0 }
 0x134   : > { %v1020_v11 = vadd.f32 %v3385_v54, %v1019_v21  ;;  %v2661_v6 = vpop.f32.mrb[34].mxu0  ;;  %2734 = vmatprep.mubr.bf16.mxu1 %v1224_v25 }
 0x135   : > { %v1031_v12 = vadd.f32 %v2661_v6, %v3385_v54  ;;  %v1022_v18 = vpop.f32.mrb[35].mxu0  ;;  %2735 = vmatmul.mubr.bf16.gmra.mrb[24].mxu1 %v1225_v1  ;;  %v1180_v32 = vmax.f32 %v1028_v16, 0.0 }
 0x136   : > { %v1023_v22 = vadd.f32 %v3385_v54, %v1022_v18  ;;  %v1178_v36 = vmax.f32 %v1020_v11, 0.0 }
 0x137   : > { %v1181_v33 = vmax.f32 %v1031_v12, 0.0 }
 0x138   : > { %v1179_v39 = vmax.f32 %v1023_v22, 0.0 }
 0x139   : > { %v1227_v45 = vpack.c.bf16 %v1181_v33, %v1180_v32 }
 0x13a   : > { %v1226_v52 = vpack.c.bf16 %v1179_v39, %v1178_v36  ;;  %v2664_v55 = vpop.f32.mrb[36].mxu0 }
 0x13b   : > { %v1044_v63 = vadd.f32 %v2664_v55, %v3385_v54  ;;  %v1035_v8 = vpop.f32.mrb[37].mxu0 }
 0x13c   : > { %v1036_v13 = vadd.f32 %v3385_v54, %v1035_v8  ;;  %v2665_v26 = vpop.f32.mrb[38].mxu0  ;;  %2738 = vmatprep.mubr.bf16.mxu1 %v1226_v52 }
 0x13d   : > { %v1047_v40 = vadd.f32 %v2665_v26, %v3385_v54  ;;  %v1038_v46 = vpop.f32.mrb[39].mxu0  ;;  %2739 = vmatmul.mubr.bf16.gmra.mrb[28].mxu1 %v1227_v45  ;;  %v1184_v37 = vmax.f32 %v1044_v63, 0.0 }
 0x13e   : > { %v1039_v49 = vadd.f32 %v3385_v54, %v1038_v46  ;;  %v1182_v24 = vmax.f32 %v1036_v13, 0.0 }
 0x13f   : > { %v1185_v38 = vmax.f32 %v1047_v40, 0.0 }
 0x140   : > { %v1183_v9 = vmax.f32 %v1039_v49, 0.0 }
 0x141   : > { %v1229_v29 = vpack.c.bf16 %v1185_v38, %v1184_v37 }
 0x142   : > { %v1228_v43 = vpack.c.bf16 %v1183_v9, %v1182_v24  ;;  %v2668_v5 = vpop.f32.mrb[40].mxu0 }
 0x143   : > { %v1060_v27 = vadd.f32 %v2668_v5, %v3385_v54  ;;  %v1051_v48 = vpop.f32.mrb[41].mxu0 }
 0x144   : > { %v1052_v10 = vadd.f32 %v3385_v54, %v1051_v48  ;;  %v2669_v31 = vpop.f32.mrb[42].mxu0  ;;  %2742 = vmatprep.mubr.bf16.mxu1 %v1228_v43 }
 0x145   : > { %v1063_v51 = vadd.f32 %v2669_v31, %v3385_v54  ;;  %v1054_v3 = vpop.f32.mrb[43].mxu0  ;;  %2743 = vmatmul.mubr.bf16.gmra.mrb[32].mxu1 %v1229_v29  ;;  %v1188_v0 = vmax.f32 %v1060_v27, 0.0 }
 0x146   : > { %v1055_v56 = vadd.f32 %v3385_v54, %v1054_v3  ;;  %v1186_v41 = vmax.f32 %v1052_v10, 0.0 }
 0x147   : > { %v1189_v7 = vmax.f32 %v1063_v51, 0.0 }
 0x148   : > { %v1187_v57 = vmax.f32 %v1055_v56, 0.0 }
 0x149   : > { %v1231_v58 = vpack.c.bf16 %v1189_v7, %v1188_v0 }
 0x14a   : > { %v1230_v14 = vpack.c.bf16 %v1187_v57, %v1186_v41  ;;  %v2672_v35 = vpop.f32.mrb[44].mxu0 }
 0x14b   : > { %v1076_v28 = vadd.f32 %v2672_v35, %v3385_v54  ;;  %v1067_v23 = vpop.f32.mrb[45].mxu0 }
 0x14c   : > { %v1068_v47 = vadd.f32 %v3385_v54, %v1067_v23  ;;  %v2673_v4 = vpop.f32.mrb[46].mxu0  ;;  %2746 = vmatprep.mubr.bf16.mxu1 %v1230_v14 }
 0x14d   : > { %v1079_v19 = vadd.f32 %v2673_v4, %v3385_v54  ;;  %v1070_v42 = vpop.f32.mrb[47].mxu0  ;;  %2747 = vmatmul.mubr.bf16.gmra.mrb[36].mxu1 %v1231_v58  ;;  %v1192_v53 = vmax.f32 %v1076_v28, 0.0 }
 0x14e   : > { %v1071_v34 = vadd.f32 %v3385_v54, %v1070_v42  ;;  %v1190_v50 = vmax.f32 %v1068_v47, 0.0 }
 0x14f   : > { %v1193_v30 = vmax.f32 %v1079_v19, 0.0 }
 0x150   : > { %v1191_v44 = vmax.f32 %v1071_v34, 0.0  ;;  %v3455_v34 = vld [vmem:[%s3863_s6] ss:$0 sm:$0xff] }
 0x151   : > { %v1233_v59 = vpack.c.bf16 %v1193_v30, %v1192_v53 }
 0x152   : > { %v1232_v60 = vpack.c.bf16 %v1191_v44, %v1190_v50  ;;  %v2676_v61 = vpop.f32.mrb[48].mxu0 }
 0x153   : > { %v1092_v62 = vadd.f32 %v2676_v61, %v3385_v54  ;;  %v1083_v20 = vpop.f32.mrb[49].mxu0 }
 0x154   : > { %v1084_v15 = vadd.f32 %v3385_v54, %v1083_v20  ;;  %v2677_v17 = vpop.f32.mrb[50].mxu0  ;;  %2750 = vmatprep.mubr.bf16.mxu1 %v1232_v60 }
 0x155   : > { %v1095_v1 = vadd.f32 %v2677_v17, %v3385_v54  ;;  %v1086_v25 = vpop.f32.mrb[51].mxu0  ;;  %2751 = vmatmul.mubr.bf16.gmra.mrb[40].mxu1 %v1233_v59  ;;  %v1196_v16 = vmax.f32 %v1092_v62, 0.0 }
 0x156   : > { %v1087_v2 = vadd.f32 %v3385_v54, %v1086_v25  ;;  %v1194_v11 = vmax.f32 %v1084_v15, 0.0 }
 0x157   : > { %v1197_v21 = vmax.f32 %v1095_v1, 0.0 }
 0x158   : > { %v1195_v6 = vmax.f32 %v1087_v2, 0.0 }
 0x159   : > { %v1235_v12 = vpack.c.bf16 %v1197_v21, %v1196_v16 }
 0x15a   : > { %v1234_v18 = vpack.c.bf16 %v1195_v6, %v1194_v11  ;;  %v2680_v22 = vpop.f32.mrb[52].mxu0 }
 0x15b   : > { %v1108_v32 = vadd.f32 %v2680_v22, %v3385_v54  ;;  %v1099_v33 = vpop.f32.mrb[53].mxu0 }
 0x15c   : > { %v1100_v36 = vadd.f32 %v3385_v54, %v1099_v33  ;;  %v2681_v39 = vpop.f32.mrb[54].mxu0  ;;  %2754 = vmatprep.mubr.bf16.mxu1 %v1234_v18 }
 0x15d   : > { %v1111_v45 = vadd.f32 %v2681_v39, %v3385_v54  ;;  %v1102_v52 = vpop.f32.mrb[55].mxu0  ;;  %2755 = vmatmul.mubr.bf16.gmra.mrb[44].mxu1 %v1235_v12  ;;  %v1200_v63 = vmax.f32 %v1108_v32, 0.0 }
 0x15e   : > { %v1103_v55 = vadd.f32 %v3385_v54, %v1102_v52  ;;  %v1198_v13 = vmax.f32 %v1100_v36, 0.0 }
 0x15f   : > { %v1201_v8 = vmax.f32 %v1111_v45, 0.0 }
 0x160   : > { %v1199_v26 = vmax.f32 %v1103_v55, 0.0 }
 0x161   : > { %v1237_v40 = vpack.c.bf16 %v1201_v8, %v1200_v63 }
 0x162   : > { %v1236_v46 = vpack.c.bf16 %v1199_v26, %v1198_v13  ;;  %v2684_v49 = vpop.f32.mrb[56].mxu0 }
 0x163   : > { %v1124_v37 = vadd.f32 %v2684_v49, %v3385_v54  ;;  %v1115_v38 = vpop.f32.mrb[57].mxu0 }
 0x164   : > { %v1116_v24 = vadd.f32 %v3385_v54, %v1115_v38  ;;  %v2685_v9 = vpop.f32.mrb[58].mxu0  ;;  %2758 = vmatprep.mubr.bf16.mxu1 %v1236_v46 }
 0x165   : > { %v1127_v29 = vadd.f32 %v2685_v9, %v3385_v54  ;;  %v1118_v43 = vpop.f32.mrb[59].mxu0  ;;  %2759 = vmatmul.mubr.bf16.gmra.mrb[48].mxu1 %v1237_v40  ;;  %v1204_v27 = vmax.f32 %v1124_v37, 0.0 }
 0x166   : > { %v1119_v5 = vadd.f32 %v3385_v54, %v1118_v43  ;;  %v1202_v10 = vmax.f32 %v1116_v24, 0.0 }
 0x167   : > { %v1205_v48 = vmax.f32 %v1127_v29, 0.0 }
 0x168   : > { %v1203_v31 = vmax.f32 %v1119_v5, 0.0 }
 0x169   : > { %v1239_v51 = vpack.c.bf16 %v1205_v48, %v1204_v27 }
 0x16a   : > { %v1238_v3 = vpack.c.bf16 %v1203_v31, %v1202_v10  ;;  %v2688_v56 = vpop.f32.mrb[60].mxu0 }
 0x16b   : > { %v1140_v0 = vadd.f32 %v2688_v56, %v3385_v54  ;;  %v1131_v7 = vpop.f32.mrb[61].mxu0 }
 0x16c   : > { %v1132_v41 = vadd.f32 %v3385_v54, %v1131_v7  ;;  %v2689_v57 = vpop.f32.mrb[62].mxu0  ;;  %2762 = vmatprep.mubr.bf16.mxu1 %v1238_v3 }
 0x16d   : > { %v1143_v58 = vadd.f32 %v2689_v57, %v3385_v54  ;;  %v1134_v14 = vpop.f32.mrb[63].mxu0  ;;  %2763 = vmatmul.mubr.bf16.gmra.mrb[52].mxu1 %v1239_v51  ;;  %v1208_v28 = vmax.f32 %v1140_v0, 0.0 }
 0x16e   : > { %v1135_v35 = vadd.f32 %v3385_v54, %v1134_v14  ;;  %v1206_v47 = vmax.f32 %v1132_v41, 0.0 }
 0x16f   : > { %v1209_v23 = vmax.f32 %v1143_v58, 0.0 }
 0x170   : > { %v1207_v4 = vmax.f32 %v1135_v35, 0.0 }
 0x171   : > { %v1241_v19 = vpack.c.bf16 %v1209_v23, %v1208_v28 }
 0x172   : > { %v1240_v42 = vpack.c.bf16 %v1207_v4, %v1206_v47 }
 0x174   : > { %2766 = vmatprep.mubr.bf16.mxu1 %v1240_v42 }
 0x175   : > { %2767 = vmatmul.mubr.bf16.gmra.mrb[56].mxu1 %v1241_v19 }
 0x1d0   : > { %v2708_v53 = vpop.f32.mrb[64].mxu0 }
 0x1d1   : > { %v1356_v30 = vadd.f32 %v2708_v53, %v3455_v34  ;;  %v1347_v50 = vpop.f32.mrb[65].mxu0 }
 0x1d2   : > { %v1348_v54 = vadd.f32 %v3455_v34, %v1347_v50  ;;  %v2709_v44 = vpop.f32.mrb[66].mxu0 }
 0x1d3   : > { %1604 = vst.msk [vmem:[%s3459_s9 + $0x10] sm:$0xff] %vm760_vm0, %v1356_v30  ;;  %v1359_v59 = vadd.f32 %v2709_v44, %v3455_v34  ;;  %v1350_v60 = vpop.f32.mrb[67].mxu0 }
 0x1d4   : > { %1602 = vst.msk [vmem:[%s3459_s9] sm:$0xff] %vm760_vm0, %v1348_v54  ;;  %v1351_v61 = vadd.f32 %v3455_v34, %v1350_v60 }
 0x1d5   : > { %1605 = vst.msk [vmem:[%s3459_s9 + $0x18] sm:$0xff] %vm760_vm0, %v1359_v59 }
 0x1d6   : > { %1603 = vst.msk [vmem:[%s3459_s9 + $0x8] sm:$0xff] %vm760_vm0, %v1351_v61 }
 0x1d8   : > { %v2712_v62 = vpop.f32.mrb[0].mxu1 }
 0x1d9   : > { %v1372_v20 = vadd.f32 %v2712_v62, %v3455_v34  ;;  %v1363_v15 = vpop.f32.mrb[1].mxu1 }
 0x1da   : > { %v1364_v17 = vadd.f32 %v3455_v34, %v1363_v15  ;;  %v2713_v1 = vpop.f32.mrb[2].mxu1 }
 0x1db   : > { %1608 = vst.msk [vmem:[%s3459_s9 + $0x30] sm:$0xff] %vm760_vm0, %v1372_v20  ;;  %v1375_v25 = vadd.f32 %v2713_v1, %v3455_v34  ;;  %v1366_v2 = vpop.f32.mrb[3].mxu1 }
 0x1dc   : > { %1606 = vst.msk [vmem:[%s3459_s9 + $0x20] sm:$0xff] %vm760_vm0, %v1364_v17  ;;  %v1367_v16 = vadd.f32 %v3455_v34, %v1366_v2 }
 0x1dd   : > { %1609 = vst.msk [vmem:[%s3459_s9 + $0x38] sm:$0xff] %vm760_vm0, %v1375_v25 }
 0x1de   : > { %1607 = vst.msk [vmem:[%s3459_s9 + $0x28] sm:$0xff] %vm760_vm0, %v1367_v16 }
 0x1e0   : > { %v2716_v21 = vpop.f32.mrb[4].mxu1 }
 0x1e1   : > { %v1388_v11 = vadd.f32 %v2716_v21, %v3455_v34  ;;  %v1379_v6 = vpop.f32.mrb[5].mxu1 }
 0x1e2   : > { %v1380_v12 = vadd.f32 %v3455_v34, %v1379_v6  ;;  %v2717_v18 = vpop.f32.mrb[6].mxu1 }
 0x1e3   : > { %1612 = vst.msk [vmem:[%s3459_s9 + $0x50] sm:$0xff] %vm760_vm0, %v1388_v11  ;;  %v1391_v22 = vadd.f32 %v2717_v18, %v3455_v34  ;;  %v1382_v32 = vpop.f32.mrb[7].mxu1 }
 0x1e4   : > { %1610 = vst.msk [vmem:[%s3459_s9 + $0x40] sm:$0xff] %vm760_vm0, %v1380_v12  ;;  %v1383_v33 = vadd.f32 %v3455_v34, %v1382_v32 }
 0x1e5   : > { %1613 = vst.msk [vmem:[%s3459_s9 + $0x58] sm:$0xff] %vm760_vm0, %v1391_v22 }
 0x1e6   : > { %1611 = vst.msk [vmem:[%s3459_s9 + $0x48] sm:$0xff] %vm760_vm0, %v1383_v33 }
 0x1e8   : > { %v2720_v36 = vpop.f32.mrb[8].mxu1 }
 0x1e9   : > { %v1404_v39 = vadd.f32 %v2720_v36, %v3455_v34  ;;  %v1395_v45 = vpop.f32.mrb[9].mxu1 }
 0x1ea   : > { %v1396_v52 = vadd.f32 %v3455_v34, %v1395_v45  ;;  %v2721_v55 = vpop.f32.mrb[10].mxu1 }
 0x1eb   : > { %1616 = vst.msk [vmem:[%s3459_s9 + $0x70] sm:$0xff] %vm760_vm0, %v1404_v39  ;;  %v1407_v63 = vadd.f32 %v2721_v55, %v3455_v34  ;;  %v1398_v8 = vpop.f32.mrb[11].mxu1 }
 0x1ec   : > { %1614 = vst.msk [vmem:[%s3459_s9 + $0x60] sm:$0xff] %vm760_vm0, %v1396_v52  ;;  %v1399_v13 = vadd.f32 %v3455_v34, %v1398_v8 }
 0x1ed   : > { %1617 = vst.msk [vmem:[%s3459_s9 + $0x78] sm:$0xff] %vm760_vm0, %v1407_v63 }
 0x1ee   : > { %1615 = vst.msk [vmem:[%s3459_s9 + $0x68] sm:$0xff] %vm760_vm0, %v1399_v13 }
 0x1f0   : > { %v2724_v26 = vpop.f32.mrb[12].mxu1 }
 0x1f1   : > { %v1420_v40 = vadd.f32 %v2724_v26, %v3455_v34  ;;  %v1411_v46 = vpop.f32.mrb[13].mxu1 }
 0x1f2   : > { %v1412_v49 = vadd.f32 %v3455_v34, %v1411_v46  ;;  %v2725_v37 = vpop.f32.mrb[14].mxu1 }
 0x1f3   : > { %1620 = vst.msk [vmem:[%s3459_s9 + $0x90] sm:$0xff] %vm760_vm0, %v1420_v40  ;;  %v1423_v38 = vadd.f32 %v2725_v37, %v3455_v34  ;;  %v1414_v24 = vpop.f32.mrb[15].mxu1 }
 0x1f4   : > { %1618 = vst.msk [vmem:[%s3459_s9 + $0x80] sm:$0xff] %vm760_vm0, %v1412_v49  ;;  %v1415_v9 = vadd.f32 %v3455_v34, %v1414_v24 }
 0x1f5   : > { %1621 = vst.msk [vmem:[%s3459_s9 + $0x98] sm:$0xff] %vm760_vm0, %v1423_v38 }
 0x1f6   : > { %1619 = vst.msk [vmem:[%s3459_s9 + $0x88] sm:$0xff] %vm760_vm0, %v1415_v9 }
 0x1f8   : > { %v2728_v29 = vpop.f32.mrb[16].mxu1 }
 0x1f9   : > { %v1436_v43 = vadd.f32 %v2728_v29, %v3455_v34  ;;  %v1427_v5 = vpop.f32.mrb[17].mxu1 }
 0x1fa   : > { %v1428_v27 = vadd.f32 %v3455_v34, %v1427_v5  ;;  %v2729_v48 = vpop.f32.mrb[18].mxu1 }
 0x1fb   : > { %1624 = vst.msk [vmem:[%s3459_s9 + $0xb0] sm:$0xff] %vm760_vm0, %v1436_v43  ;;  %v1439_v10 = vadd.f32 %v2729_v48, %v3455_v34  ;;  %v1430_v31 = vpop.f32.mrb[19].mxu1 }
 0x1fc   : > { %1622 = vst.msk [vmem:[%s3459_s9 + $0xa0] sm:$0xff] %vm760_vm0, %v1428_v27  ;;  %v1431_v51 = vadd.f32 %v3455_v34, %v1430_v31 }
 0x1fd   : > { %1625 = vst.msk [vmem:[%s3459_s9 + $0xb8] sm:$0xff] %vm760_vm0, %v1439_v10 }
 0x1fe   : > { %1623 = vst.msk [vmem:[%s3459_s9 + $0xa8] sm:$0xff] %vm760_vm0, %v1431_v51 }
 0x200   : > { %v2732_v3 = vpop.f32.mrb[20].mxu1 }
 0x201   : > { %v1452_v56 = vadd.f32 %v2732_v3, %v3455_v34  ;;  %v1443_v0 = vpop.f32.mrb[21].mxu1 }
 0x202   : > { %v1444_v7 = vadd.f32 %v3455_v34, %v1443_v0  ;;  %v2733_v41 = vpop.f32.mrb[22].mxu1 }
 0x203   : > { %1628 = vst.msk [vmem:[%s3459_s9 + $0xd0] sm:$0xff] %vm760_vm0, %v1452_v56  ;;  %v1455_v57 = vadd.f32 %v2733_v41, %v3455_v34  ;;  %v1446_v58 = vpop.f32.mrb[23].mxu1 }
 0x204   : > { %1626 = vst.msk [vmem:[%s3459_s9 + $0xc0] sm:$0xff] %vm760_vm0, %v1444_v7  ;;  %v1447_v14 = vadd.f32 %v3455_v34, %v1446_v58 }
 0x205   : > { %1629 = vst.msk [vmem:[%s3459_s9 + $0xd8] sm:$0xff] %vm760_vm0, %v1455_v57 }
 0x206   : > { %1627 = vst.msk [vmem:[%s3459_s9 + $0xc8] sm:$0xff] %vm760_vm0, %v1447_v14 }
 0x208   : > { %v2736_v35 = vpop.f32.mrb[24].mxu1 }
 0x209   : > { %v1468_v28 = vadd.f32 %v2736_v35, %v3455_v34  ;;  %v1459_v23 = vpop.f32.mrb[25].mxu1 }
 0x20a   : > { %v1460_v47 = vadd.f32 %v3455_v34, %v1459_v23  ;;  %v2737_v4 = vpop.f32.mrb[26].mxu1 }
 0x20b   : > { %1632 = vst.msk [vmem:[%s3459_s9 + $0xf0] sm:$0xff] %vm760_vm0, %v1468_v28  ;;  %v1471_v19 = vadd.f32 %v2737_v4, %v3455_v34  ;;  %v1462_v42 = vpop.f32.mrb[27].mxu1 }
 0x20c   : > { %1630 = vst.msk [vmem:[%s3459_s9 + $0xe0] sm:$0xff] %vm760_vm0, %v1460_v47  ;;  %v1463_v53 = vadd.f32 %v3455_v34, %v1462_v42 }
 0x20d   : > { %1633 = vst.msk [vmem:[%s3459_s9 + $0xf8] sm:$0xff] %vm760_vm0, %v1471_v19 }
 0x20e   : > { %1631 = vst.msk [vmem:[%s3459_s9 + $0xe8] sm:$0xff] %vm760_vm0, %v1463_v53 }
 0x210   : > { %v2740_v30 = vpop.f32.mrb[28].mxu1 }
 0x211   : > { %v1484_v50 = vadd.f32 %v2740_v30, %v3455_v34  ;;  %v1475_v54 = vpop.f32.mrb[29].mxu1 }
 0x212   : > { %v1476_v44 = vadd.f32 %v3455_v34, %v1475_v54  ;;  %v2741_v59 = vpop.f32.mrb[30].mxu1 }
 0x213   : > { %1636 = vst.msk [vmem:[%s3459_s9 + $0x110] sm:$0xff] %vm760_vm0, %v1484_v50  ;;  %v1487_v60 = vadd.f32 %v2741_v59, %v3455_v34  ;;  %v1478_v61 = vpop.f32.mrb[31].mxu1 }
 0x214   : > { %1634 = vst.msk [vmem:[%s3459_s9 + $0x100] sm:$0xff] %vm760_vm0, %v1476_v44  ;;  %v1479_v62 = vadd.f32 %v3455_v34, %v1478_v61 }
 0x215   : > { %1637 = vst.msk [vmem:[%s3459_s9 + $0x118] sm:$0xff] %vm760_vm0, %v1487_v60 }
 0x216   : > { %1635 = vst.msk [vmem:[%s3459_s9 + $0x108] sm:$0xff] %vm760_vm0, %v1479_v62 }
 0x218   : > { %v2744_v20 = vpop.f32.mrb[32].mxu1 }
 0x219   : > { %v1500_v15 = vadd.f32 %v2744_v20, %v3455_v34  ;;  %v1491_v17 = vpop.f32.mrb[33].mxu1 }
 0x21a   : > { %v1492_v1 = vadd.f32 %v3455_v34, %v1491_v17  ;;  %v2745_v25 = vpop.f32.mrb[34].mxu1 }
 0x21b   : > { %1640 = vst.msk [vmem:[%s3459_s9 + $0x130] sm:$0xff] %vm760_vm0, %v1500_v15  ;;  %v1503_v2 = vadd.f32 %v2745_v25, %v3455_v34  ;;  %v1494_v16 = vpop.f32.mrb[35].mxu1 }
 0x21c   : > { %1638 = vst.msk [vmem:[%s3459_s9 + $0x120] sm:$0xff] %vm760_vm0, %v1492_v1  ;;  %v1495_v21 = vadd.f32 %v3455_v34, %v1494_v16 }
 0x21d   : > { %1641 = vst.msk [vmem:[%s3459_s9 + $0x138] sm:$0xff] %vm760_vm0, %v1503_v2 }
 0x21e   : > { %1639 = vst.msk [vmem:[%s3459_s9 + $0x128] sm:$0xff] %vm760_vm0, %v1495_v21 }
 0x220   : > { %v2748_v11 = vpop.f32.mrb[36].mxu1 }
 0x221   : > { %v1516_v6 = vadd.f32 %v2748_v11, %v3455_v34  ;;  %v1507_v12 = vpop.f32.mrb[37].mxu1 }
 0x222   : > { %v1508_v18 = vadd.f32 %v3455_v34, %v1507_v12  ;;  %v2749_v22 = vpop.f32.mrb[38].mxu1 }
 0x223   : > { %1644 = vst.msk [vmem:[%s3459_s9 + $0x150] sm:$0xff] %vm760_vm0, %v1516_v6  ;;  %v1519_v32 = vadd.f32 %v2749_v22, %v3455_v34  ;;  %v1510_v33 = vpop.f32.mrb[39].mxu1 }
 0x224   : > { %1642 = vst.msk [vmem:[%s3459_s9 + $0x140] sm:$0xff] %vm760_vm0, %v1508_v18  ;;  %v1511_v36 = vadd.f32 %v3455_v34, %v1510_v33 }
 0x225   : > { %1645 = vst.msk [vmem:[%s3459_s9 + $0x158] sm:$0xff] %vm760_vm0, %v1519_v32 }
 0x226   : > { %1643 = vst.msk [vmem:[%s3459_s9 + $0x148] sm:$0xff] %vm760_vm0, %v1511_v36 }
 0x228   : > { %v2752_v39 = vpop.f32.mrb[40].mxu1 }
 0x229   : > { %v1532_v45 = vadd.f32 %v2752_v39, %v3455_v34  ;;  %v1523_v52 = vpop.f32.mrb[41].mxu1 }
 0x22a   : > { %v1524_v55 = vadd.f32 %v3455_v34, %v1523_v52  ;;  %v2753_v63 = vpop.f32.mrb[42].mxu1 }
 0x22b   : > { %1648 = vst.msk [vmem:[%s3459_s9 + $0x170] sm:$0xff] %vm760_vm0, %v1532_v45  ;;  %v1535_v8 = vadd.f32 %v2753_v63, %v3455_v34  ;;  %v1526_v13 = vpop.f32.mrb[43].mxu1 }
 0x22c   : > { %1646 = vst.msk [vmem:[%s3459_s9 + $0x160] sm:$0xff] %vm760_vm0, %v1524_v55  ;;  %v1527_v26 = vadd.f32 %v3455_v34, %v1526_v13 }
 0x22d   : > { %1649 = vst.msk [vmem:[%s3459_s9 + $0x178] sm:$0xff] %vm760_vm0, %v1535_v8 }
 0x22e   : > { %1647 = vst.msk [vmem:[%s3459_s9 + $0x168] sm:$0xff] %vm760_vm0, %v1527_v26 }
 0x230   : > { %v2756_v40 = vpop.f32.mrb[44].mxu1 }
 0x231   : > { %v1548_v46 = vadd.f32 %v2756_v40, %v3455_v34  ;;  %v1539_v49 = vpop.f32.mrb[45].mxu1 }
 0x232   : > { %v1540_v37 = vadd.f32 %v3455_v34, %v1539_v49  ;;  %v2757_v38 = vpop.f32.mrb[46].mxu1 }
 0x233   : > { %1652 = vst.msk [vmem:[%s3459_s9 + $0x190] sm:$0xff] %vm760_vm0, %v1548_v46  ;;  %v1551_v24 = vadd.f32 %v2757_v38, %v3455_v34  ;;  %v1542_v9 = vpop.f32.mrb[47].mxu1 }
 0x234   : > { %1650 = vst.msk [vmem:[%s3459_s9 + $0x180] sm:$0xff] %vm760_vm0, %v1540_v37  ;;  %v1543_v29 = vadd.f32 %v3455_v34, %v1542_v9 }
 0x235   : > { %1653 = vst.msk [vmem:[%s3459_s9 + $0x198] sm:$0xff] %vm760_vm0, %v1551_v24 }
 0x236   : > { %1651 = vst.msk [vmem:[%s3459_s9 + $0x188] sm:$0xff] %vm760_vm0, %v1543_v29 }
 0x238   : > { %v2760_v43 = vpop.f32.mrb[48].mxu1 }
 0x239   : > { %v1564_v5 = vadd.f32 %v2760_v43, %v3455_v34  ;;  %v1555_v27 = vpop.f32.mrb[49].mxu1 }
 0x23a   : > { %v1556_v48 = vadd.f32 %v3455_v34, %v1555_v27  ;;  %v2761_v10 = vpop.f32.mrb[50].mxu1 }
 0x23b   : > { %1656 = vst.msk [vmem:[%s3459_s9 + $0x1b0] sm:$0xff] %vm760_vm0, %v1564_v5  ;;  %v1567_v31 = vadd.f32 %v2761_v10, %v3455_v34  ;;  %v1558_v51 = vpop.f32.mrb[51].mxu1 }
 0x23c   : > { %1654 = vst.msk [vmem:[%s3459_s9 + $0x1a0] sm:$0xff] %vm760_vm0, %v1556_v48  ;;  %v1559_v3 = vadd.f32 %v3455_v34, %v1558_v51 }
 0x23d   : > { %1657 = vst.msk [vmem:[%s3459_s9 + $0x1b8] sm:$0xff] %vm760_vm0, %v1567_v31 }
 0x23e   : > { %1655 = vst.msk [vmem:[%s3459_s9 + $0x1a8] sm:$0xff] %vm760_vm0, %v1559_v3 }
 0x240   : > { %v2764_v56 = vpop.f32.mrb[52].mxu1 }
 0x241   : > { %v1580_v0 = vadd.f32 %v2764_v56, %v3455_v34  ;;  %v1571_v7 = vpop.f32.mrb[53].mxu1 }
 0x242   : > { %v1572_v41 = vadd.f32 %v3455_v34, %v1571_v7  ;;  %v2765_v57 = vpop.f32.mrb[54].mxu1 }
 0x243   : > { %1660 = vst.msk [vmem:[%s3459_s9 + $0x1d0] sm:$0xff] %vm760_vm0, %v1580_v0  ;;  %v1583_v58 = vadd.f32 %v2765_v57, %v3455_v34  ;;  %v1574_v14 = vpop.f32.mrb[55].mxu1 }
 0x244   : > { %1658 = vst.msk [vmem:[%s3459_s9 + $0x1c0] sm:$0xff] %vm760_vm0, %v1572_v41  ;;  %v1575_v35 = vadd.f32 %v3455_v34, %v1574_v14 }
 0x245   : > { %1661 = vst.msk [vmem:[%s3459_s9 + $0x1d8] sm:$0xff] %vm760_vm0, %v1583_v58 }
 0x246   : > { %1659 = vst.msk [vmem:[%s3459_s9 + $0x1c8] sm:$0xff] %vm760_vm0, %v1575_v35 }
 0x248   : > { %v2768_v28 = vpop.f32.mrb[56].mxu1  ;;  %1672 = sbr.rel (!%p3037_p4) target bundleno = 663 (0x297), region = 52 }
 0x249   : > { %v1596_v23 = vadd.f32 %v2768_v28, %v3455_v34  ;;  %v1587_v47 = vpop.f32.mrb[57].mxu1 }
 0x24a   : > { %v1588_v4 = vadd.f32 %v3455_v34, %v1587_v47  ;;  %v2769_v19 = vpop.f32.mrb[58].mxu1 }
 0x24b   : > { %1664 = vst.msk [vmem:[%s3459_s9 + $0x1f0] sm:$0xff] %vm760_vm0, %v1596_v23  ;;  %v1599_v42 = vadd.f32 %v2769_v19, %v3455_v34  ;;  %v1590_v53 = vpop.f32.mrb[59].mxu1 }
 0x24c   : > { %1662 = vst.msk [vmem:[%s3459_s9 + $0x1e0] sm:$0xff] %vm760_vm0, %v1588_v4  ;;  %v1591_v30 = vadd.f32 %v3455_v34, %v1590_v53 }
 0x24d   : > { %1665 = vst.msk [vmem:[%s3459_s9 + $0x1f8] sm:$0xff] %vm760_vm0, %v1599_v42 }
 0x24e   : > { %1663 = vst.msk [vmem:[%s3459_s9 + $0x1e8] sm:$0xff] %vm760_vm0, %v1591_v30 }
 0x24f   : > { %s3887_s24 = smov (!%p1675_p8, %s1674_s24), 64 }
 0x250   : > { %s2212_s15 = sshll.u32 %s3887_s24, 7 }
 0x251   : > { %p2215_p9 = scmp.eq.s32.totalorder %s2212_s15, 0 }
 0x252   : > { %s3664_s16 = sshrl.u32 (!%p2215_p9), %s3887_s24, 6 }
 0x253   : > { %1683 = sbr.rel (%p2215_p9) target bundleno = 663 (0x297), region = 56  ;;  %p2216_p10 = scmp.le.s32.totalorder (!%p2215_p9), %s3664_s16, 0 }
 0x25a   : > { %2101 = sbr.rel (%p2216_p10) target bundleno = 642 (0x282), region = 138  ;;  %s3878_s26 = smov (!%p2216_p10), %s3658_s14 }
 0x25b   : > { %s3879_s8 = smov (!%p2216_p10), %s3459_s9  ;;  %s3673_s11 = smov (!%p2216_p10), 0  }
 0x25c   : > { %s3675_s17 = smov (!%p2216_p10), 0  }
 0x261 LB: >> { %v1871_v34 = vld [vmem:[%s2946_s8] sm:$0xff]  ;;  %v1873_v50 = vld [vmem:[%s2946_s8 + $0x8] sm:$0xff]  ;;  %v1875_v54 = vld [vmem:[%s2946_s8 + $0x10] sm:$0xff]  ;;  %s1999_s18 = sadd.s32 1, %s2950_s11  ;;  %s1865_s17 = sadd.s32 1, %s2954_s17   ;;  %s2954_s17 = sphi %s3675_s17, %s1865_s17   ;;  %s2950_s11 = sphi %s3673_s11, %s3882_s11   ;;  %s2946_s8 = sphi %s3879_s8, %s3881_s8   ;;  %s2942_s26 = sphi %s3878_s26, %s3880_s26  }
 0x262   : >> { %1872 = vst [vmem:[%s2942_s26] sm:$0xff] %v1871_v34  ;;  %1874 = vst [vmem:[%s2942_s26 + $0x8] sm:$0xff] %v1873_v50  ;;  %v1877_v44 = vld [vmem:[%s2946_s8 + $0x18] sm:$0xff]  ;;  %v1879_v59 = vld [vmem:[%s2946_s8 + $0x20] sm:$0xff]  ;;  %p2000_p11 = scmp.ge.s32.totalorder %s1999_s18, %s3664_s16  ;;  %p1864_p12 = scmp.ge.s32.totalorder %s1865_s17, %s3664_s16 }
 0x263   : >> { %1876 = vst [vmem:[%s2942_s26 + $0x10] sm:$0xff] %v1875_v54  ;;  %v1881_v60 = vld [vmem:[%s2946_s8 + $0x28] sm:$0xff]  ;;  %1878 = vst [vmem:[%s2942_s26 + $0x18] sm:$0xff] %v1877_v44  ;;  %v1883_v61 = vld [vmem:[%s2946_s8 + $0x30] sm:$0xff] }
 0x264   : >> { %1880 = vst [vmem:[%s2942_s26 + $0x20] sm:$0xff] %v1879_v59  ;;  %1882 = vst [vmem:[%s2942_s26 + $0x28] sm:$0xff] %v1881_v60  ;;  %v1885_v62 = vld [vmem:[%s2946_s8 + $0x38] sm:$0xff]  ;;  %v1887_v20 = vld [vmem:[%s2946_s8 + $0x40] sm:$0xff]  ;;  %s3889_s18 = smov (%p2000_p11, %s1999_s18), 0 }
 0x265   : >> { %1884 = vst [vmem:[%s2942_s26 + $0x30] sm:$0xff] %v1883_v61  ;;  %1886 = vst [vmem:[%s2942_s26 + $0x38] sm:$0xff] %v1885_v62  ;;  %v1889_v15 = vld [vmem:[%s2946_s8 + $0x48] sm:$0xff]  ;;  %v1891_v17 = vld [vmem:[%s2946_s8 + $0x50] sm:$0xff]  ;;  %s2217_s19 = sshll.u32 %s3889_s18, 9  ;;  %s3882_s11 = smov %s3889_s18 }
 0x266   : >> { %1888 = vst [vmem:[%s2942_s26 + $0x40] sm:$0xff] %v1887_v20  ;;  %v1893_v1 = vld [vmem:[%s2946_s8 + $0x58] sm:$0xff]  ;;  %1890 = vst [vmem:[%s2942_s26 + $0x48] sm:$0xff] %v1889_v15  ;;  %v1895_v25 = vld [vmem:[%s2946_s8 + $0x60] sm:$0xff]  ;;  %s3731_s20 = scalar_lea.vmem %s3459_s9, %s2217_s19 [#allocation2]   ;;  %s3734_s21 = scalar_lea.vmem %s3658_s14, %s2217_s19  }
 0x267   : >> { %1892 = vst [vmem:[%s2942_s26 + $0x50] sm:$0xff] %v1891_v17  ;;  %1894 = vst [vmem:[%s2942_s26 + $0x58] sm:$0xff] %v1893_v1  ;;  %v1897_v2 = vld [vmem:[%s2946_s8 + $0x68] sm:$0xff]  ;;  %v1899_v16 = vld [vmem:[%s2946_s8 + $0x70] sm:$0xff] }
 0x268   : >> { %1896 = vst [vmem:[%s2942_s26 + $0x60] sm:$0xff] %v1895_v25  ;;  %1898 = vst [vmem:[%s2942_s26 + $0x68] sm:$0xff] %v1897_v2  ;;  %v1901_v21 = vld [vmem:[%s2946_s8 + $0x78] sm:$0xff]  ;;  %v1903_v11 = vld [vmem:[%s2946_s8 + $0x80] sm:$0xff] }
 0x269   : >> { %1900 = vst [vmem:[%s2942_s26 + $0x70] sm:$0xff] %v1899_v16  ;;  %v1905_v6 = vld [vmem:[%s2946_s8 + $0x88] sm:$0xff]  ;;  %1902 = vst [vmem:[%s2942_s26 + $0x78] sm:$0xff] %v1901_v21  ;;  %v1907_v12 = vld [vmem:[%s2946_s8 + $0x90] sm:$0xff] }
 0x26a   : >> { %1904 = vst [vmem:[%s2942_s26 + $0x80] sm:$0xff] %v1903_v11  ;;  %1906 = vst [vmem:[%s2942_s26 + $0x88] sm:$0xff] %v1905_v6  ;;  %v1909_v18 = vld [vmem:[%s2946_s8 + $0x98] sm:$0xff]  ;;  %v1911_v22 = vld [vmem:[%s2946_s8 + $0xa0] sm:$0xff] }
 0x26b   : >> { %1908 = vst [vmem:[%s2942_s26 + $0x90] sm:$0xff] %v1907_v12  ;;  %1910 = vst [vmem:[%s2942_s26 + $0x98] sm:$0xff] %v1909_v18  ;;  %v1913_v32 = vld [vmem:[%s2946_s8 + $0xa8] sm:$0xff]  ;;  %v1915_v33 = vld [vmem:[%s2946_s8 + $0xb0] sm:$0xff] }
 0x26c   : >> { %1912 = vst [vmem:[%s2942_s26 + $0xa0] sm:$0xff] %v1911_v22  ;;  %v1917_v36 = vld [vmem:[%s2946_s8 + $0xb8] sm:$0xff]  ;;  %1914 = vst [vmem:[%s2942_s26 + $0xa8] sm:$0xff] %v1913_v32  ;;  %v1919_v39 = vld [vmem:[%s2946_s8 + $0xc0] sm:$0xff] }
 0x26d   : >> { %1916 = vst [vmem:[%s2942_s26 + $0xb0] sm:$0xff] %v1915_v33  ;;  %1918 = vst [vmem:[%s2942_s26 + $0xb8] sm:$0xff] %v1917_v36  ;;  %v1921_v45 = vld [vmem:[%s2946_s8 + $0xc8] sm:$0xff]  ;;  %v1923_v52 = vld [vmem:[%s2946_s8 + $0xd0] sm:$0xff] }
 0x26e   : >> { %1920 = vst [vmem:[%s2942_s26 + $0xc0] sm:$0xff] %v1919_v39  ;;  %1922 = vst [vmem:[%s2942_s26 + $0xc8] sm:$0xff] %v1921_v45  ;;  %v1925_v55 = vld [vmem:[%s2946_s8 + $0xd8] sm:$0xff]  ;;  %v1927_v63 = vld [vmem:[%s2946_s8 + $0xe0] sm:$0xff] }
 0x26f   : >> { %1924 = vst [vmem:[%s2942_s26 + $0xd0] sm:$0xff] %v1923_v52  ;;  %v1929_v8 = vld [vmem:[%s2946_s8 + $0xe8] sm:$0xff]  ;;  %1926 = vst [vmem:[%s2942_s26 + $0xd8] sm:$0xff] %v1925_v55  ;;  %v1931_v13 = vld [vmem:[%s2946_s8 + $0xf0] sm:$0xff] }
 0x270   : >> { %1928 = vst [vmem:[%s2942_s26 + $0xe0] sm:$0xff] %v1927_v63  ;;  %1930 = vst [vmem:[%s2942_s26 + $0xe8] sm:$0xff] %v1929_v8  ;;  %v1933_v26 = vld [vmem:[%s2946_s8 + $0xf8] sm:$0xff]  ;;  %v1935_v40 = vld [vmem:[%s2946_s8 + $0x100] sm:$0xff] }
 0x271   : >> { %1932 = vst [vmem:[%s2942_s26 + $0xf0] sm:$0xff] %v1931_v13  ;;  %1934 = vst [vmem:[%s2942_s26 + $0xf8] sm:$0xff] %v1933_v26  ;;  %v1937_v46 = vld [vmem:[%s2946_s8 + $0x108] sm:$0xff]  ;;  %v1939_v49 = vld [vmem:[%s2946_s8 + $0x110] sm:$0xff] }
 0x272   : >> { %1936 = vst [vmem:[%s2942_s26 + $0x100] sm:$0xff] %v1935_v40  ;;  %v1941_v37 = vld [vmem:[%s2946_s8 + $0x118] sm:$0xff]  ;;  %1938 = vst [vmem:[%s2942_s26 + $0x108] sm:$0xff] %v1937_v46  ;;  %v1943_v38 = vld [vmem:[%s2946_s8 + $0x120] sm:$0xff] }
 0x273   : >> { %1940 = vst [vmem:[%s2942_s26 + $0x110] sm:$0xff] %v1939_v49  ;;  %1942 = vst [vmem:[%s2942_s26 + $0x118] sm:$0xff] %v1941_v37  ;;  %v1945_v24 = vld [vmem:[%s2946_s8 + $0x128] sm:$0xff]  ;;  %v1947_v9 = vld [vmem:[%s2946_s8 + $0x130] sm:$0xff] }
 0x274   : >> { %1944 = vst [vmem:[%s2942_s26 + $0x120] sm:$0xff] %v1943_v38  ;;  %1946 = vst [vmem:[%s2942_s26 + $0x128] sm:$0xff] %v1945_v24  ;;  %v1949_v29 = vld [vmem:[%s2946_s8 + $0x138] sm:$0xff]  ;;  %v1951_v43 = vld [vmem:[%s2946_s8 + $0x140] sm:$0xff] }
 0x275   : >> { %1948 = vst [vmem:[%s2942_s26 + $0x130] sm:$0xff] %v1947_v9  ;;  %v1953_v5 = vld [vmem:[%s2946_s8 + $0x148] sm:$0xff]  ;;  %1950 = vst [vmem:[%s2942_s26 + $0x138] sm:$0xff] %v1949_v29  ;;  %v1955_v27 = vld [vmem:[%s2946_s8 + $0x150] sm:$0xff] }
 0x276   : >> { %1952 = vst [vmem:[%s2942_s26 + $0x140] sm:$0xff] %v1951_v43  ;;  %1954 = vst [vmem:[%s2942_s26 + $0x148] sm:$0xff] %v1953_v5  ;;  %v1957_v48 = vld [vmem:[%s2946_s8 + $0x158] sm:$0xff]  ;;  %v1959_v10 = vld [vmem:[%s2946_s8 + $0x160] sm:$0xff] }
 0x277   : >> { %1956 = vst [vmem:[%s2942_s26 + $0x150] sm:$0xff] %v1955_v27  ;;  %1958 = vst [vmem:[%s2942_s26 + $0x158] sm:$0xff] %v1957_v48  ;;  %v1961_v31 = vld [vmem:[%s2946_s8 + $0x168] sm:$0xff]  ;;  %v1963_v51 = vld [vmem:[%s2946_s8 + $0x170] sm:$0xff] }
 0x278   : >> { %1960 = vst [vmem:[%s2942_s26 + $0x160] sm:$0xff] %v1959_v10  ;;  %v1965_v3 = vld [vmem:[%s2946_s8 + $0x178] sm:$0xff]  ;;  %1962 = vst [vmem:[%s2942_s26 + $0x168] sm:$0xff] %v1961_v31  ;;  %v1967_v56 = vld [vmem:[%s2946_s8 + $0x180] sm:$0xff] }
 0x279   : >> { %1964 = vst [vmem:[%s2942_s26 + $0x170] sm:$0xff] %v1963_v51  ;;  %1966 = vst [vmem:[%s2942_s26 + $0x178] sm:$0xff] %v1965_v3  ;;  %v1969_v0 = vld [vmem:[%s2946_s8 + $0x188] sm:$0xff]  ;;  %v1971_v7 = vld [vmem:[%s2946_s8 + $0x190] sm:$0xff] }
 0x27a   : >> { %1968 = vst [vmem:[%s2942_s26 + $0x180] sm:$0xff] %v1967_v56  ;;  %1970 = vst [vmem:[%s2942_s26 + $0x188] sm:$0xff] %v1969_v0  ;;  %v1973_v41 = vld [vmem:[%s2946_s8 + $0x198] sm:$0xff]  ;;  %v1975_v57 = vld [vmem:[%s2946_s8 + $0x1a0] sm:$0xff] }
 0x27b   : >> { %1972 = vst [vmem:[%s2942_s26 + $0x190] sm:$0xff] %v1971_v7  ;;  %v1977_v58 = vld [vmem:[%s2946_s8 + $0x1a8] sm:$0xff]  ;;  %1974 = vst [vmem:[%s2942_s26 + $0x198] sm:$0xff] %v1973_v41  ;;  %v1979_v14 = vld [vmem:[%s2946_s8 + $0x1b0] sm:$0xff]  ;;  %1867 = sbr.rel (!%p1864_p12) target bundleno = 609 (0x261), region = 144 }
 0x27c   : >> { %1976 = vst [vmem:[%s2942_s26 + $0x1a0] sm:$0xff] %v1975_v57  ;;  %1978 = vst [vmem:[%s2942_s26 + $0x1a8] sm:$0xff] %v1977_v58  ;;  %v1981_v35 = vld [vmem:[%s2946_s8 + $0x1b8] sm:$0xff]  ;;  %v1983_v28 = vld [vmem:[%s2946_s8 + $0x1c0] sm:$0xff] }
 0x27d   : >> { %1980 = vst [vmem:[%s2942_s26 + $0x1b0] sm:$0xff] %v1979_v14  ;;  %1982 = vst [vmem:[%s2942_s26 + $0x1b8] sm:$0xff] %v1981_v35  ;;  %v1985_v23 = vld [vmem:[%s2946_s8 + $0x1c8] sm:$0xff]  ;;  %v1987_v47 = vld [vmem:[%s2946_s8 + $0x1d0] sm:$0xff] }
 0x27e   : >> { %1984 = vst [vmem:[%s2942_s26 + $0x1c0] sm:$0xff] %v1983_v28  ;;  %v1989_v4 = vld [vmem:[%s2946_s8 + $0x1d8] sm:$0xff]  ;;  %1986 = vst [vmem:[%s2942_s26 + $0x1c8] sm:$0xff] %v1985_v23  ;;  %v1991_v19 = vld [vmem:[%s2946_s8 + $0x1e0] sm:$0xff] }
 0x27f   : >> { %1988 = vst [vmem:[%s2942_s26 + $0x1d0] sm:$0xff] %v1987_v47  ;;  %1990 = vst [vmem:[%s2942_s26 + $0x1d8] sm:$0xff] %v1989_v4  ;;  %v1993_v42 = vld [vmem:[%s2946_s8 + $0x1e8] sm:$0xff]  ;;  %v1995_v53 = vld [vmem:[%s2946_s8 + $0x1f0] sm:$0xff] }
 0x280   : >> { %1992 = vst [vmem:[%s2942_s26 + $0x1e0] sm:$0xff] %v1991_v19  ;;  %1994 = vst [vmem:[%s2942_s26 + $0x1e8] sm:$0xff] %v1993_v42  ;;  %v1997_v30 = vld [vmem:[%s2946_s8 + $0x1f8] sm:$0xff]  ;;  %s3881_s8 = smov %s3731_s20 }
 0x281   : >> { %1996 = vst [vmem:[%s2942_s26 + $0x1f0] sm:$0xff] %v1995_v53  ;;  %1998 = vst [vmem:[%s2942_s26 + $0x1f8] sm:$0xff] %v1997_v30  ;;  %s3880_s26 = smov %s3734_s21 }
 0x282 PF: > { %s3839_s22 = sand.u32 63, %s3887_s24   ;;  %s2228_s23 = sshll.u32 %s3664_s16, 9 }
 0x283   : > { %s2010_s2 = scalar_lea.vmem %s3459_s9, %s2228_s23 [#allocation2]   ;;  %s2012_s28 = scalar_lea.vmem %s3658_s14, %s2228_s23  }
 0x284   : > { %p2222_p13 = scmp.le.s32.totalorder %s3839_s22, 0 }
 0x285   : > { %s2956_s29 = smov (!%p2222_p13), %s2012_s28   ;;  %s2960_s10 = smov (!%p2222_p13), %s2010_s2  }
 0x286   : > { %2115 = sbr.rel (%p2222_p13) target bundleno = 663 (0x297), region = 149  ;;  %s2964_s12 = smov (!%p2222_p13), 0  }
 0x287   : > { %s2968_s13 = smov (!%p2222_p13), 0  }
 0x28d LB: >> { %v2022_v34 = vld [vmem:[%s2962_s10] sm:$0xff]  ;;  %s2024_s24 = sadd.s32 1, %s2966_s12  ;;  %s2016_s13 = sadd.s32 1, %s2970_s13   ;;  %s2970_s13 = sphi %s2968_s13, %s2016_s13   ;;  %s2966_s12 = sphi %s2964_s12, %s2965_s12   ;;  %s2962_s10 = sphi %s2960_s10, %s2029_s10   ;;  %s2958_s29 = sphi %s2956_s29, %s2030_s29  }
 0x28e   : >> { %2023 = vst [vmem:[%s2958_s29] sm:$0xff] %v2022_v34  ;;  %p2025_p0 = scmp.ge.s32.totalorder %s2024_s24, %s3839_s22  ;;  %p2015_p1 = scmp.ge.s32.totalorder %s2016_s13, %s3839_s22 }
 0x290   : >> { %s3891_s24 = smov (%p2025_p0, %s2024_s24), 0  ;;  %2018 = sbr.rel (!%p2015_p1) target bundleno = 653 (0x28d), region = 155 }
 0x291   : >> { %s2223_s9 = sshll.u32 %s3891_s24, 3  ;;  %s2965_s12 = smov %s3891_s24  }
 0x292   : >> { %s2029_s10 = scalar_lea.vmem %s2010_s2, %s2223_s9 [#allocation2]   ;;  %s2030_s29 = scalar_lea.vmem %s2012_s28, %s2223_s9  }
 0x297 PF: > { %p14_p2 = scmp.ge.s32.totalorder %s3027_s27, 5   ;;  %s3883_s24 = smov %s2934_s25 }
 0x298   : > { %s3884_s25 = smov %s3035_s30  ;;  %s3885_s2 = smov %s3027_s27 }
 0x299   :  { %16 = sbr.rel (!%p14_p2) target bundleno = 2 (0x2), region = 166 }

// kernel: ffno_forward.31
= control target key start
LH: loop header
LB: loop body
LE: loop exit
PB: predicated region body
PF: predicated region fallthrough
CT: control target
= control target key end

     0   :  { %vm142_vm0 = vcmask 261120   ;;  %vm920_vm1 = vcmask 7168   ;;  %s1959_s1 = inlined_call_operand.vmem [shape: bf16[32,128], index: 1, kind: input, shape index: {}]   ;;  %s1960_s0 = inlined_call_operand.vmem [shape: f32[512,32], index: 0, kind: input, shape index: {}]   ;;  %s1961_s3 = inlined_call_operand.vmem [shape: bf16[128,1], index: 3, kind: input, shape index: {}]   ;;  %s1962_s2 = inlined_call_operand.vmem [shape: f32[1,128], index: 2, kind: input, shape index: {}]   ;;  %s1963_s4 = inlined_call_operand.<no memory space> [shape: f32[1,1], index: 4, kind: input, shape index: {}]   ;;  %s1964_s5 = inlined_call_operand.vmem [shape: f32[512,1], index: 5, kind: output, shape index: {}]  }
   0x1   :  { %v1271_v0 = vld [vmem:[%s1959_s1] sm:$0xff]   ;;  %v1272_v1 = vld [vmem:[%s1959_s1 + $0x8] sm:$0xff]   ;;  %v25_v5 = vld [vmem:[%s1960_s0 + $0x10] sm:$0xff] }
   0x2   :  { %1107 = vmatprep.subr.bf16.mxu0 %v1271_v0  ;;  %v23_v2 = vld [vmem:[%s1960_s0] sm:$0xff]  ;;  %v24_v3 = vld [vmem:[%s1960_s0 + $0x8] sm:$0xff]  ;;  %v26_v6 = vld [vmem:[%s1960_s0 + $0x18] sm:$0xff] }
   0x3   :  { %1108 = vmatpush3.bf16.msra.mxu0 %v1271_v0  ;;  %v87_v4 = vpack.c.bf16 %v24_v3, %v23_v2  ;;  %v27_v7 = vld [vmem:[%s1960_s0 + $0x20] sm:$0xff]  ;;  %v28_v8 = vld [vmem:[%s1960_s0 + $0x28] sm:$0xff]  ;;  %v88_v9 = vpack.c.bf16 %v26_v6, %v25_v5  ;;  %v29_v11 = vld [vmem:[%s1960_s0 + $0x30] sm:$0xff] }
   0x4   :  { %1109 = vmatprep.subr.bf16.mxu0 %v1272_v1  ;;  %v89_v10 = vpack.c.bf16 %v28_v8, %v27_v7  ;;  %v30_v12 = vld [vmem:[%s1960_s0 + $0x38] sm:$0xff]  ;;  %v31_v13 = vld [vmem:[%s1960_s0 + $0x40] sm:$0xff]  ;;  %v32_v14 = vld [vmem:[%s1960_s0 + $0x48] sm:$0xff] }
   0x5   :  { %1111 = vmatprep.mubr.msk.bf16.mxu0 %vm142_vm0, %v87_v4  ;;  %v90_v15 = vpack.c.bf16 %v30_v12, %v29_v11  ;;  %v91_v16 = vpack.c.bf16 %v32_v14, %v31_v13  ;;  %v33_v17 = vld [vmem:[%s1960_s0 + $0x50] sm:$0xff]  ;;  %v34_v18 = vld [vmem:[%s1960_s0 + $0x58] sm:$0xff]  ;;  %v35_v19 = vld [vmem:[%s1960_s0 + $0x60] sm:$0xff] }
   0x6   :  { %v36_v20 = vld [vmem:[%s1960_s0 + $0x68] sm:$0xff]  ;;  %v92_v21 = vpack.c.bf16 %v34_v18, %v33_v17  ;;  %v1273_v23 = vld [vmem:[%s1961_s3] sm:$0xff]   ;;  %v37_v24 = vld [vmem:[%s1960_s0 + $0x70] sm:$0xff] }
   0x7   :  { %1110 = vmatpush3.bf16.msra.mxu0 %v1272_v1  ;;  %v93_v22 = vpack.c.bf16 %v36_v20, %v35_v19  ;;  %v38_v25 = vld [vmem:[%s1960_s0 + $0x78] sm:$0xff]  ;;  %v1274_v26 = vld [vmem:[%s1961_s3 + $0x8] sm:$0xff]   ;;  %v39_v27 = vld [vmem:[%s1960_s0 + $0x80] sm:$0xff]  ;;  %1255 = vmatprep.subr.bf16.mxu1 %v1273_v23 }
   0x8   :  { %1175 = vmatprep.subr.bf16.mxu0 %v1273_v23  ;;  %v40_v28 = vld [vmem:[%s1960_s0 + $0x88] sm:$0xff]  ;;  %v1275_v29 = vld [vmem:[%s1961_s3 + $0x10] sm:$0xff]   ;;  %1263 = vmatpush3.bf16.msra.mxu1 %v1273_v23  ;;  %v94_v30 = vpack.c.bf16 %v38_v25, %v37_v24  ;;  %v1276_v32 = vld [vmem:[%s1961_s3 + $0x18] sm:$0xff]  }
   0x9   :  { %1256 = vmatprep.subr.bf16.mxu1 %v1274_v26  ;;  %v95_v31 = vpack.c.bf16 %v40_v28, %v39_v27  ;;  %v41_v33 = vld [vmem:[%s1960_s0 + $0x90] sm:$0xff]  ;;  %v42_v34 = vld [vmem:[%s1960_s0 + $0x98] sm:$0xff]  ;;  %v43_v35 = vld [vmem:[%s1960_s0 + $0xa0] sm:$0xff] }
   0xa   :  { %1112 = vmatmul.mubr.msk.bf16.vlgmr.msra.gmra.mrb[0].mxu0 %vm142_vm0, %v88_v9  ;;  %v44_v36 = vld [vmem:[%s1960_s0 + $0xa8] sm:$0xff]  ;;  %v1277_v37 = vld [vmem:[%s1961_s3 + $0x20] sm:$0xff]   ;;  %v96_v38 = vpack.c.bf16 %v42_v34, %v41_v33  ;;  %v45_v41 = vld [vmem:[%s1960_s0 + $0xb0] sm:$0xff] }
   0xb   :  { %1115 = vmatprep.mubr.msk.bf16.mxu0 %vm142_vm0, %v89_v10  ;;  %1176 = vmatpush3.bf16.msra.mxu0 %v1273_v23  ;;  %v97_v39 = vpack.c.bf16 %v44_v36, %v43_v35  ;;  %v1278_v40 = vld [vmem:[%s1961_s3 + $0x28] sm:$0xff]   ;;  %v46_v42 = vld [vmem:[%s1960_s0 + $0xb8] sm:$0xff]  ;;  %v47_v43 = vld [vmem:[%s1960_s0 + $0xc0] sm:$0xff] }
   0xc   :  { %1177 = vmatprep.subr.bf16.mxu0 %v1274_v26  ;;  %1264 = vmatpush3.bf16.msra.mxu1 %v1274_v26  ;;  %v48_v44 = vld [vmem:[%s1960_s0 + $0xc8] sm:$0xff]  ;;  %v98_v45 = vpack.c.bf16 %v46_v42, %v45_v41  ;;  %v49_v47 = vld [vmem:[%s1960_s0 + $0xd0] sm:$0xff]  ;;  %v50_v48 = vld [vmem:[%s1960_s0 + $0xd8] sm:$0xff] }
   0xd   :  { %1257 = vmatprep.subr.bf16.mxu1 %v1275_v29  ;;  %v99_v46 = vpack.c.bf16 %v48_v44, %v47_v43  ;;  %v51_v49 = vld [vmem:[%s1960_s0 + $0xe0] sm:$0xff]  ;;  %v52_v50 = vld [vmem:[%s1960_s0 + $0xe8] sm:$0xff]  ;;  %v100_v51 = vpack.c.bf16 %v50_v48, %v49_v47  ;;  %v53_v53 = vld [vmem:[%s1960_s0 + $0xf0] sm:$0xff] }
   0xe   :  { %v101_v52 = vpack.c.bf16 %v52_v50, %v51_v49  ;;  %v54_v54 = vld [vmem:[%s1960_s0 + $0xf8] sm:$0xff]  ;;  %v55_v55 = vld [vmem:[%s1960_s0 + $0x100] sm:$0xff]  ;;  %v56_v56 = vld [vmem:[%s1960_s0 + $0x108] sm:$0xff] }
   0xf   :  { %1178 = vmatpush3.bf16.msra.mxu0 %v1274_v26  ;;  %v102_v57 = vpack.c.bf16 %v54_v54, %v53_v53  ;;  %v103_v58 = vpack.c.bf16 %v56_v56, %v55_v55  ;;  %v57_v59 = vld [vmem:[%s1960_s0 + $0x110] sm:$0xff]  ;;  %v58_v60 = vld [vmem:[%s1960_s0 + $0x118] sm:$0xff]  ;;  %v59_v61 = vld [vmem:[%s1960_s0 + $0x120] sm:$0xff] }
  0x10   :  { %1179 = vmatprep.subr.bf16.mxu0 %v1275_v29  ;;  %1265 = vmatpush3.bf16.msra.mxu1 %v1275_v29  ;;  %v60_v62 = vld [vmem:[%s1960_s0 + $0x128] sm:$0xff]  ;;  %v104_v63 = vpack.c.bf16 %v58_v60, %v57_v59  ;;  %v61_v1 = vld [vmem:[%s1960_s0 + $0x130] sm:$0xff]  ;;  %v62_v2 = vld [vmem:[%s1960_s0 + $0x138] sm:$0xff] }
  0x11   :  { %1258 = vmatprep.subr.bf16.mxu1 %v1276_v32  ;;  %v105_v0 = vpack.c.bf16 %v60_v62, %v59_v61  ;;  %v63_v3 = vld [vmem:[%s1960_s0 + $0x140] sm:$0xff]  ;;  %v64_v4 = vld [vmem:[%s1960_s0 + $0x148] sm:$0xff]  ;;  %v106_v5 = vpack.c.bf16 %v62_v2, %v61_v1  ;;  %v65_v7 = vld [vmem:[%s1960_s0 + $0x150] sm:$0xff] }
  0x12   :  { %1116 = vmatmul.mubr.msk.bf16.gmra.mrb[4].mxu0 %vm142_vm0, %v90_v15  ;;  %v107_v6 = vpack.c.bf16 %v64_v4, %v63_v3  ;;  %v66_v8 = vld [vmem:[%s1960_s0 + $0x158] sm:$0xff]  ;;  %v67_v9 = vld [vmem:[%s1960_s0 + $0x160] sm:$0xff]  ;;  %v68_v10 = vld [vmem:[%s1960_s0 + $0x168] sm:$0xff] }
  0x13   :  { %1119 = vmatprep.mubr.msk.bf16.mxu0 %vm142_vm0, %v91_v16  ;;  %1180 = vmatpush3.bf16.msra.mxu0 %v1275_v29  ;;  %v108_v11 = vpack.c.bf16 %v66_v8, %v65_v7  ;;  %v109_v12 = vpack.c.bf16 %v68_v10, %v67_v9  ;;  %v69_v13 = vld [vmem:[%s1960_s0 + $0x170] sm:$0xff]  ;;  %v70_v14 = vld [vmem:[%s1960_s0 + $0x178] sm:$0xff]  ;;  %v71_v15 = vld [vmem:[%s1960_s0 + $0x180] sm:$0xff] }
  0x14   :  { %1181 = vmatprep.subr.bf16.mxu0 %v1276_v32  ;;  %1266 = vmatpush3.bf16.msra.mxu1 %v1276_v32  ;;  %v72_v16 = vld [vmem:[%s1960_s0 + $0x188] sm:$0xff]  ;;  %v1279_v17 = vld [vmem:[%s1961_s3 + $0x30] sm:$0xff]   ;;  %v110_v18 = vpack.c.bf16 %v70_v14, %v69_v13  ;;  %v1280_v20 = vld [vmem:[%s1961_s3 + $0x38] sm:$0xff]  }
  0x15   :  { %1259 = vmatprep.subr.bf16.mxu1 %v1277_v37  ;;  %v111_v19 = vpack.c.bf16 %v72_v16, %v71_v15  ;;  %v75_v23 = vld [vmem:[%s1960_s0 + $0x1a0] sm:$0xff]  ;;  %v76_v24 = vld [vmem:[%s1960_s0 + $0x1a8] sm:$0xff]  ;;  %v77_v27 = vld [vmem:[%s1960_s0 + $0x1b0] sm:$0xff] }
  0x16   :  { %v113_v26 = vpack.c.bf16 %v76_v24, %v75_v23  ;;  %v78_v28 = vld [vmem:[%s1960_s0 + $0x1b8] sm:$0xff]  ;;  %v79_v29 = vld [vmem:[%s1960_s0 + $0x1c0] sm:$0xff]  ;;  %v81_v33 = vld [vmem:[%s1960_s0 + $0x1d0] sm:$0xff] }
  0x17   :  { %1182 = vmatpush3.bf16.msra.mxu0 %v1276_v32  ;;  %v82_v34 = vld [vmem:[%s1960_s0 + $0x1d8] sm:$0xff]  ;;  %v83_v35 = vld [vmem:[%s1960_s0 + $0x1e0] sm:$0xff]  ;;  %v84_v36 = vld [vmem:[%s1960_s0 + $0x1e8] sm:$0xff] }
  0x18   :  { %1183 = vmatprep.subr.bf16.mxu0 %v1277_v37  ;;  %1267 = vmatpush3.bf16.msra.mxu1 %v1277_v37  ;;  %v1568_v43 = vld [vmem:[%s1962_s2] ss:$0 sm:$0xff] }
  0x19   :  { %1260 = vmatprep.subr.bf16.mxu1 %v1278_v40 }
  0x1a   :  { %1120 = vmatmul.mubr.msk.bf16.gmra.mrb[8].mxu0 %vm142_vm0, %v92_v21  ;;  %v73_v21 = vld [vmem:[%s1960_s0 + $0x190] sm:$0xff] }
  0x1b   :  { %1123 = vmatprep.mubr.msk.bf16.mxu0 %vm142_vm0, %v93_v22  ;;  %1184 = vmatpush3.bf16.msra.mxu0 %v1277_v37  ;;  %v74_v22 = vld [vmem:[%s1960_s0 + $0x198] sm:$0xff]  ;;  %v116_v37 = vpack.c.bf16 %v82_v34, %v81_v33 }
  0x1c   :  { %1185 = vmatprep.subr.bf16.mxu0 %v1278_v40  ;;  %1268 = vmatpush3.bf16.msra.mxu1 %v1278_v40  ;;  %v112_v25 = vpack.c.bf16 %v74_v22, %v73_v21 }
  0x1d   :  { %1261 = vmatprep.subr.bf16.mxu1 %v1279_v17 }
  0x1f   :  { %1186 = vmatpush3.bf16.msra.mxu0 %v1278_v40  ;;  %v86_v40 = vld [vmem:[%s1960_s0 + $0x1f8] sm:$0xff] }
  0x20   :  { %1187 = vmatprep.subr.bf16.mxu0 %v1279_v17  ;;  %1269 = vmatpush3.bf16.msra.mxu1 %v1279_v17 }
  0x21   :  { %1262 = vmatprep.subr.bf16.mxu1 %v1280_v20 }
  0x22   :  { %1124 = vmatmul.mubr.msk.bf16.gmra.mrb[12].mxu0 %vm142_vm0, %v94_v30  ;;  %v80_v30 = vld [vmem:[%s1960_s0 + $0x1c8] sm:$0xff] }
  0x23   :  { %1127 = vmatprep.mubr.msk.bf16.mxu0 %vm142_vm0, %v95_v31  ;;  %1188 = vmatpush3.bf16.msra.mxu0 %v1279_v17  ;;  %v114_v31 = vpack.c.bf16 %v78_v28, %v77_v27  ;;  %v115_v32 = vpack.c.bf16 %v80_v30, %v79_v29 }
  0x24   :  { %1189 = vmatprep.subr.bf16.mxu0 %v1280_v20  ;;  %1270 = vmatpush3.bf16.msra.mxu1 %v1280_v20 }
  0x27   :  { %1190 = vmatpush3.bf16.msra.mxu0 %v1280_v20 }
  0x2a   :  { %1128 = vmatmul.mubr.msk.bf16.gmra.mrb[16].mxu0 %vm142_vm0, %v96_v38  ;;  %v117_v38 = vpack.c.bf16 %v84_v36, %v83_v35 }
  0x2b   :  { %1131 = vmatprep.mubr.msk.bf16.mxu0 %vm142_vm0, %v97_v39  ;;  %v85_v39 = vld [vmem:[%s1960_s0 + $0x1f0] sm:$0xff] }
  0x2c   :  { %v118_v41 = vpack.c.bf16 %v86_v40, %v85_v39 }
  0x32   :  { %1132 = vmatmul.mubr.msk.bf16.gmra.mrb[20].mxu0 %vm142_vm0, %v98_v45 }
  0x33   :  { %1135 = vmatprep.mubr.msk.bf16.mxu0 %vm142_vm0, %v99_v46  ;;  %v10_v46 = vstv %s1963_s4 }
  0x34   :  { %11 = vst [vmem:[#allocation2] sm:$0x1] %v10_v46 }
  0x3a   :  { %1136 = vmatmul.mubr.msk.bf16.gmra.mrb[24].mxu0 %vm142_vm0, %v100_v51 }
  0x3b   :  { %1139 = vmatprep.mubr.msk.bf16.mxu0 %vm142_vm0, %v101_v52 }
  0x42   :  { %1140 = vmatmul.mubr.msk.bf16.gmra.mrb[28].mxu0 %vm142_vm0, %v102_v57 }
  0x43   :  { %1143 = vmatprep.mubr.msk.bf16.mxu0 %vm142_vm0, %v103_v58 }
  0x4a   :  { %1144 = vmatmul.mubr.msk.bf16.gmra.mrb[32].mxu0 %vm142_vm0, %v104_v63 }
  0x4b   :  { %1147 = vmatprep.mubr.msk.bf16.mxu0 %vm142_vm0, %v105_v0 }
  0x52   :  { %1148 = vmatmul.mubr.msk.bf16.gmra.mrb[36].mxu0 %vm142_vm0, %v106_v5 }
  0x53   :  { %1151 = vmatprep.mubr.msk.bf16.mxu0 %vm142_vm0, %v107_v6 }
  0x5a   :  { %1152 = vmatmul.mubr.msk.bf16.gmra.mrb[40].mxu0 %vm142_vm0, %v108_v11 }
  0x5b   :  { %1155 = vmatprep.mubr.msk.bf16.mxu0 %vm142_vm0, %v109_v12 }
  0x62   :  { %1156 = vmatmul.mubr.msk.bf16.gmra.mrb[44].mxu0 %vm142_vm0, %v110_v18 }
  0x63   :  { %1159 = vmatprep.mubr.msk.bf16.mxu0 %vm142_vm0, %v111_v19 }
  0x6a   :  { %1160 = vmatmul.mubr.msk.bf16.gmra.mrb[48].mxu0 %vm142_vm0, %v112_v25 }
  0x6b   :  { %1163 = vmatprep.mubr.msk.bf16.mxu0 %vm142_vm0, %v113_v26 }
  0x72   :  { %1164 = vmatmul.mubr.msk.bf16.gmra.mrb[52].mxu0 %vm142_vm0, %v114_v31 }
  0x73   :  { %1167 = vmatprep.mubr.msk.bf16.mxu0 %vm142_vm0, %v115_v32 }
  0x7a   :  { %1168 = vmatmul.mubr.msk.bf16.gmra.mrb[56].mxu0 %vm142_vm0, %v116_v37 }
  0x7b   :  { %1171 = vmatprep.mubr.msk.bf16.mxu0 %vm142_vm0, %v117_v38 }
  0x82   :  { %1172 = vmatmul.mubr.msk.bf16.gmra.mrb[60].mxu0 %vm142_vm0, %v118_v41 }
  0xdd   :  { %v1113_v42 = vpop.f32.mrb[0].mxu0 }
  0xde   :  { %v273_v44 = vpop.f32.mrb[1].mxu0  ;;  %v282_v47 = vadd.f32 %v1113_v42, %v1568_v43 }
  0xdf   :  { %v1114_v45 = vpop.f32.mrb[2].mxu0  ;;  %v274_v50 = vadd.f32 %v1568_v43, %v273_v44 }
  0xe0   :  { %v285_v48 = vadd.f32 %v1114_v45, %v1568_v43  ;;  %v276_v49 = vpop.f32.mrb[3].mxu0 }
  0xe1   :  { %v277_v51 = vadd.f32 %v1568_v43, %v276_v49 }
  0xe2   :  { %v529_v52 = vpack.c.bf16 %v285_v48, %v282_v47 }
  0xe3   :  { %v528_v53 = vpack.c.bf16 %v277_v51, %v274_v50 }
  0xe5   :  { %v1117_v54 = vpop.f32.mrb[4].mxu0  ;;  %1191 = vmatprep.mubr.bf16.mxu0 %v528_v53 }
  0xe6   :  { %v289_v55 = vpop.f32.mrb[5].mxu0  ;;  %1192 = vmatmul.mubr.bf16.vlgmr.msra.gmra.mrb[64].mxu0 %v529_v52  ;;  %v298_v57 = vadd.f32 %v1117_v54, %v1568_v43 }
  0xe7   :  { %v1118_v56 = vpop.f32.mrb[6].mxu0  ;;  %v290_v60 = vadd.f32 %v1568_v43, %v289_v55 }
  0xe8   :  { %v301_v58 = vadd.f32 %v1118_v56, %v1568_v43  ;;  %v292_v59 = vpop.f32.mrb[7].mxu0 }
  0xe9   :  { %v293_v61 = vadd.f32 %v1568_v43, %v292_v59 }
  0xea   :  { %v531_v62 = vpack.c.bf16 %v301_v58, %v298_v57 }
  0xeb   :  { %v530_v63 = vpack.c.bf16 %v293_v61, %v290_v60 }
  0xed   :  { %v1121_v0 = vpop.f32.mrb[8].mxu0  ;;  %1195 = vmatprep.mubr.bf16.mxu1 %v530_v63 }
  0xee   :  { %v305_v1 = vpop.f32.mrb[9].mxu0  ;;  %1196 = vmatmul.mubr.bf16.vlgmr.msra.gmra.mrb[0].mxu1 %v531_v62  ;;  %v314_v3 = vadd.f32 %v1121_v0, %v1568_v43 }
  0xef   :  { %v1122_v2 = vpop.f32.mrb[10].mxu0  ;;  %v306_v6 = vadd.f32 %v1568_v43, %v305_v1 }
  0xf0   :  { %v317_v4 = vadd.f32 %v1122_v2, %v1568_v43  ;;  %v308_v5 = vpop.f32.mrb[11].mxu0 }
  0xf1   :  { %v309_v7 = vadd.f32 %v1568_v43, %v308_v5 }
  0xf2   :  { %v533_v8 = vpack.c.bf16 %v317_v4, %v314_v3 }
  0xf3   :  { %v532_v9 = vpack.c.bf16 %v309_v7, %v306_v6 }
  0xf5   :  { %v1125_v10 = vpop.f32.mrb[12].mxu0  ;;  %1199 = vmatprep.mubr.bf16.mxu1 %v532_v9 }
  0xf6   :  { %v321_v11 = vpop.f32.mrb[13].mxu0  ;;  %1200 = vmatmul.mubr.bf16.gmra.mrb[4].mxu1 %v533_v8  ;;  %v330_v13 = vadd.f32 %v1125_v10, %v1568_v43 }
  0xf7   :  { %v1126_v12 = vpop.f32.mrb[14].mxu0  ;;  %v322_v16 = vadd.f32 %v1568_v43, %v321_v11 }
  0xf8   :  { %v333_v14 = vadd.f32 %v1126_v12, %v1568_v43  ;;  %v324_v15 = vpop.f32.mrb[15].mxu0 }
  0xf9   :  { %v325_v17 = vadd.f32 %v1568_v43, %v324_v15 }
  0xfa   :  { %v535_v18 = vpack.c.bf16 %v333_v14, %v330_v13 }
  0xfb   :  { %v534_v19 = vpack.c.bf16 %v325_v17, %v322_v16 }
  0xfd   :  { %v1129_v20 = vpop.f32.mrb[16].mxu0  ;;  %1203 = vmatprep.mubr.bf16.mxu1 %v534_v19 }
  0xfe   :  { %v337_v21 = vpop.f32.mrb[17].mxu0  ;;  %1204 = vmatmul.mubr.bf16.gmra.mrb[8].mxu1 %v535_v18  ;;  %v346_v23 = vadd.f32 %v1129_v20, %v1568_v43 }
  0xff   :  { %v1130_v22 = vpop.f32.mrb[18].mxu0  ;;  %v338_v26 = vadd.f32 %v1568_v43, %v337_v21 }
 0x100   :  { %v349_v24 = vadd.f32 %v1130_v22, %v1568_v43  ;;  %v340_v25 = vpop.f32.mrb[19].mxu0 }
 0x101   :  { %v341_v27 = vadd.f32 %v1568_v43, %v340_v25 }
 0x102   :  { %v537_v28 = vpack.c.bf16 %v349_v24, %v346_v23 }
 0x103   :  { %v536_v29 = vpack.c.bf16 %v341_v27, %v338_v26 }
 0x105   :  { %v1133_v30 = vpop.f32.mrb[20].mxu0  ;;  %1207 = vmatprep.mubr.bf16.mxu1 %v536_v29 }
 0x106   :  { %v353_v31 = vpop.f32.mrb[21].mxu0  ;;  %1208 = vmatmul.mubr.bf16.gmra.mrb[12].mxu1 %v537_v28  ;;  %v362_v33 = vadd.f32 %v1133_v30, %v1568_v43 }
 0x107   :  { %v1134_v32 = vpop.f32.mrb[22].mxu0  ;;  %v354_v36 = vadd.f32 %v1568_v43, %v353_v31 }
 0x108   :  { %v365_v34 = vadd.f32 %v1134_v32, %v1568_v43  ;;  %v356_v35 = vpop.f32.mrb[23].mxu0 }
 0x109   :  { %v357_v37 = vadd.f32 %v1568_v43, %v356_v35 }
 0x10a   :  { %v539_v38 = vpack.c.bf16 %v365_v34, %v362_v33 }
 0x10b   :  { %v538_v39 = vpack.c.bf16 %v357_v37, %v354_v36 }
 0x10d   :  { %v1137_v40 = vpop.f32.mrb[24].mxu0  ;;  %1211 = vmatprep.mubr.bf16.mxu1 %v538_v39 }
 0x10e   :  { %v369_v41 = vpop.f32.mrb[25].mxu0  ;;  %1212 = vmatmul.mubr.bf16.gmra.mrb[16].mxu1 %v539_v38  ;;  %v378_v44 = vadd.f32 %v1137_v40, %v1568_v43 }
 0x10f   :  { %v1138_v42 = vpop.f32.mrb[26].mxu0  ;;  %v370_v47 = vadd.f32 %v1568_v43, %v369_v41 }
 0x110   :  { %v381_v45 = vadd.f32 %v1138_v42, %v1568_v43  ;;  %v372_v46 = vpop.f32.mrb[27].mxu0 }
 0x111   :  { %v373_v48 = vadd.f32 %v1568_v43, %v372_v46 }
 0x112   :  { %v541_v49 = vpack.c.bf16 %v381_v45, %v378_v44 }
 0x113   :  { %v540_v50 = vpack.c.bf16 %v373_v48, %v370_v47 }
 0x115   :  { %v1141_v51 = vpop.f32.mrb[28].mxu0  ;;  %1215 = vmatprep.mubr.bf16.mxu1 %v540_v50 }
 0x116   :  { %v385_v52 = vpop.f32.mrb[29].mxu0  ;;  %1216 = vmatmul.mubr.bf16.gmra.mrb[20].mxu1 %v541_v49  ;;  %v394_v54 = vadd.f32 %v1141_v51, %v1568_v43 }
 0x117   :  { %v1142_v53 = vpop.f32.mrb[30].mxu0  ;;  %v386_v57 = vadd.f32 %v1568_v43, %v385_v52 }
 0x118   :  { %v397_v55 = vadd.f32 %v1142_v53, %v1568_v43  ;;  %v388_v56 = vpop.f32.mrb[31].mxu0 }
 0x119   :  { %v389_v58 = vadd.f32 %v1568_v43, %v388_v56 }
 0x11a   :  { %v543_v59 = vpack.c.bf16 %v397_v55, %v394_v54 }
 0x11b   :  { %v542_v60 = vpack.c.bf16 %v389_v58, %v386_v57 }
 0x11d   :  { %v1145_v61 = vpop.f32.mrb[32].mxu0  ;;  %1219 = vmatprep.mubr.bf16.mxu1 %v542_v60 }
 0x11e   :  { %v401_v62 = vpop.f32.mrb[33].mxu0  ;;  %1220 = vmatmul.mubr.bf16.gmra.mrb[24].mxu1 %v543_v59  ;;  %v410_v0 = vadd.f32 %v1145_v61, %v1568_v43 }
 0x11f   :  { %v1146_v63 = vpop.f32.mrb[34].mxu0  ;;  %v402_v3 = vadd.f32 %v1568_v43, %v401_v62 }
 0x120   :  { %v413_v1 = vadd.f32 %v1146_v63, %v1568_v43  ;;  %v404_v2 = vpop.f32.mrb[35].mxu0 }
 0x121   :  { %v405_v4 = vadd.f32 %v1568_v43, %v404_v2 }
 0x122   :  { %v545_v5 = vpack.c.bf16 %v413_v1, %v410_v0 }
 0x123   :  { %v544_v6 = vpack.c.bf16 %v405_v4, %v402_v3 }
 0x125   :  { %v1149_v7 = vpop.f32.mrb[36].mxu0  ;;  %1223 = vmatprep.mubr.bf16.mxu1 %v544_v6 }
 0x126   :  { %v417_v8 = vpop.f32.mrb[37].mxu0  ;;  %1224 = vmatmul.mubr.bf16.gmra.mrb[28].mxu1 %v545_v5  ;;  %v426_v10 = vadd.f32 %v1149_v7, %v1568_v43 }
 0x127   :  { %v1150_v9 = vpop.f32.mrb[38].mxu0  ;;  %v418_v13 = vadd.f32 %v1568_v43, %v417_v8 }
 0x128   :  { %v429_v11 = vadd.f32 %v1150_v9, %v1568_v43  ;;  %v420_v12 = vpop.f32.mrb[39].mxu0 }
 0x129   :  { %v421_v14 = vadd.f32 %v1568_v43, %v420_v12 }
 0x12a   :  { %v547_v15 = vpack.c.bf16 %v429_v11, %v426_v10 }
 0x12b   :  { %v546_v16 = vpack.c.bf16 %v421_v14, %v418_v13  ;;  %v1637_v14 = vld [vmem:[#allocation2] ss:$0 sm:$0xff] }
 0x12d   :  { %v1153_v17 = vpop.f32.mrb[40].mxu0  ;;  %1227 = vmatprep.mubr.bf16.mxu1 %v546_v16 }
 0x12e   :  { %v433_v18 = vpop.f32.mrb[41].mxu0  ;;  %1228 = vmatmul.mubr.bf16.gmra.mrb[32].mxu1 %v547_v15  ;;  %v442_v20 = vadd.f32 %v1153_v17, %v1568_v43 }
 0x12f   :  { %v1154_v19 = vpop.f32.mrb[42].mxu0  ;;  %v434_v23 = vadd.f32 %v1568_v43, %v433_v18 }
 0x130   :  { %v445_v21 = vadd.f32 %v1154_v19, %v1568_v43  ;;  %v436_v22 = vpop.f32.mrb[43].mxu0 }
 0x131   :  { %v437_v24 = vadd.f32 %v1568_v43, %v436_v22 }
 0x132   :  { %v549_v25 = vpack.c.bf16 %v445_v21, %v442_v20 }
 0x133   :  { %v548_v26 = vpack.c.bf16 %v437_v24, %v434_v23 }
 0x135   :  { %v1157_v27 = vpop.f32.mrb[44].mxu0  ;;  %1231 = vmatprep.mubr.bf16.mxu1 %v548_v26 }
 0x136   :  { %v449_v28 = vpop.f32.mrb[45].mxu0  ;;  %1232 = vmatmul.mubr.bf16.gmra.mrb[36].mxu1 %v549_v25  ;;  %v458_v30 = vadd.f32 %v1157_v27, %v1568_v43 }
 0x137   :  { %v1158_v29 = vpop.f32.mrb[46].mxu0  ;;  %v450_v33 = vadd.f32 %v1568_v43, %v449_v28 }
 0x138   :  { %v461_v31 = vadd.f32 %v1158_v29, %v1568_v43  ;;  %v452_v32 = vpop.f32.mrb[47].mxu0 }
 0x139   :  { %v453_v34 = vadd.f32 %v1568_v43, %v452_v32 }
 0x13a   :  { %v551_v35 = vpack.c.bf16 %v461_v31, %v458_v30 }
 0x13b   :  { %v550_v36 = vpack.c.bf16 %v453_v34, %v450_v33 }
 0x13d   :  { %v1161_v37 = vpop.f32.mrb[48].mxu0  ;;  %1235 = vmatprep.mubr.bf16.mxu1 %v550_v36 }
 0x13e   :  { %v465_v38 = vpop.f32.mrb[49].mxu0  ;;  %1236 = vmatmul.mubr.bf16.gmra.mrb[40].mxu1 %v551_v35  ;;  %v474_v40 = vadd.f32 %v1161_v37, %v1568_v43 }
 0x13f   :  { %v1162_v39 = vpop.f32.mrb[50].mxu0  ;;  %v466_v44 = vadd.f32 %v1568_v43, %v465_v38 }
 0x140   :  { %v477_v41 = vadd.f32 %v1162_v39, %v1568_v43  ;;  %v468_v42 = vpop.f32.mrb[51].mxu0 }
 0x141   :  { %v469_v45 = vadd.f32 %v1568_v43, %v468_v42 }
 0x142   :  { %v553_v46 = vpack.c.bf16 %v477_v41, %v474_v40 }
 0x143   :  { %v552_v47 = vpack.c.bf16 %v469_v45, %v466_v44 }
 0x145   :  { %v1165_v48 = vpop.f32.mrb[52].mxu0  ;;  %1239 = vmatprep.mubr.bf16.mxu1 %v552_v47 }
 0x146   :  { %v481_v49 = vpop.f32.mrb[53].mxu0  ;;  %1240 = vmatmul.mubr.bf16.gmra.mrb[44].mxu1 %v553_v46  ;;  %v490_v51 = vadd.f32 %v1165_v48, %v1568_v43 }
 0x147   :  { %v1166_v50 = vpop.f32.mrb[54].mxu0  ;;  %v482_v54 = vadd.f32 %v1568_v43, %v481_v49 }
 0x148   :  { %v493_v52 = vadd.f32 %v1166_v50, %v1568_v43  ;;  %v484_v53 = vpop.f32.mrb[55].mxu0 }
 0x149   :  { %v485_v55 = vadd.f32 %v1568_v43, %v484_v53 }
 0x14a   :  { %v555_v56 = vpack.c.bf16 %v493_v52, %v490_v51 }
 0x14b   :  { %v554_v57 = vpack.c.bf16 %v485_v55, %v482_v54 }
 0x14d   :  { %v1169_v58 = vpop.f32.mrb[56].mxu0  ;;  %1243 = vmatprep.mubr.bf16.mxu1 %v554_v57 }
 0x14e   :  { %v497_v59 = vpop.f32.mrb[57].mxu0  ;;  %1244 = vmatmul.mubr.bf16.gmra.mrb[48].mxu1 %v555_v56  ;;  %v506_v61 = vadd.f32 %v1169_v58, %v1568_v43 }
 0x14f   :  { %v1170_v60 = vpop.f32.mrb[58].mxu0  ;;  %v498_v0 = vadd.f32 %v1568_v43, %v497_v59 }
 0x150   :  { %v509_v62 = vadd.f32 %v1170_v60, %v1568_v43  ;;  %v500_v63 = vpop.f32.mrb[59].mxu0 }
 0x151   :  { %v501_v1 = vadd.f32 %v1568_v43, %v500_v63 }
 0x152   :  { %v557_v2 = vpack.c.bf16 %v509_v62, %v506_v61 }
 0x153   :  { %v556_v3 = vpack.c.bf16 %v501_v1, %v498_v0 }
 0x155   :  { %v1173_v4 = vpop.f32.mrb[60].mxu0  ;;  %1247 = vmatprep.mubr.bf16.mxu1 %v556_v3 }
 0x156   :  { %v513_v5 = vpop.f32.mrb[61].mxu0  ;;  %1248 = vmatmul.mubr.bf16.gmra.mrb[52].mxu1 %v557_v2  ;;  %v522_v7 = vadd.f32 %v1173_v4, %v1568_v43 }
 0x157   :  { %v1174_v6 = vpop.f32.mrb[62].mxu0  ;;  %v514_v10 = vadd.f32 %v1568_v43, %v513_v5 }
 0x158   :  { %v525_v8 = vadd.f32 %v1174_v6, %v1568_v43  ;;  %v516_v9 = vpop.f32.mrb[63].mxu0 }
 0x159   :  { %v517_v11 = vadd.f32 %v1568_v43, %v516_v9 }
 0x15a   :  { %v559_v12 = vpack.c.bf16 %v525_v8, %v522_v7 }
 0x15b   :  { %v558_v13 = vpack.c.bf16 %v517_v11, %v514_v10 }
 0x15d   :  { %1251 = vmatprep.mubr.bf16.mxu1 %v558_v13 }
 0x15e   :  { %1252 = vmatmul.mubr.bf16.gmra.mrb[56].mxu1 %v559_v12 }
 0x1b9   :  { %v1193_v15 = vpop.f32.mrb[64].mxu0 }
 0x1ba   :  { %v674_v16 = vadd.f32 %v1193_v15, %v1637_v14  ;;  %v665_v17 = vpop.f32.mrb[65].mxu0 }
 0x1bb   :  { %v666_v18 = vadd.f32 %v1637_v14, %v665_v17  ;;  %v1194_v19 = vpop.f32.mrb[66].mxu0 }
 0x1bc   :  { %923 = vst.msk [vmem:[%s1964_s5 + $0x10] sm:$0xff] %vm920_vm1, %v674_v16  ;;  %v677_v43 = vadd.f32 %v1194_v19, %v1637_v14  ;;  %v668_v20 = vpop.f32.mrb[67].mxu0 }
 0x1bd   :  { %921 = vst.msk [vmem:[%s1964_s5] sm:$0xff] %vm920_vm1, %v666_v18  ;;  %v669_v21 = vadd.f32 %v1637_v14, %v668_v20 }
 0x1be   :  { %924 = vst.msk [vmem:[%s1964_s5 + $0x18] sm:$0xff] %vm920_vm1, %v677_v43 }
 0x1bf   :  { %922 = vst.msk [vmem:[%s1964_s5 + $0x8] sm:$0xff] %vm920_vm1, %v669_v21 }
 0x1c1   :  { %v1197_v22 = vpop.f32.mrb[0].mxu1 }
 0x1c2   :  { %v690_v23 = vadd.f32 %v1197_v22, %v1637_v14  ;;  %v681_v24 = vpop.f32.mrb[1].mxu1 }
 0x1c3   :  { %v682_v25 = vadd.f32 %v1637_v14, %v681_v24  ;;  %v1198_v26 = vpop.f32.mrb[2].mxu1 }
 0x1c4   :  { %927 = vst.msk [vmem:[%s1964_s5 + $0x30] sm:$0xff] %vm920_vm1, %v690_v23  ;;  %v693_v27 = vadd.f32 %v1198_v26, %v1637_v14  ;;  %v684_v28 = vpop.f32.mrb[3].mxu1 }
 0x1c5   :  { %925 = vst.msk [vmem:[%s1964_s5 + $0x20] sm:$0xff] %vm920_vm1, %v682_v25  ;;  %v685_v29 = vadd.f32 %v1637_v14, %v684_v28 }
 0x1c6   :  { %928 = vst.msk [vmem:[%s1964_s5 + $0x38] sm:$0xff] %vm920_vm1, %v693_v27 }
 0x1c7   :  { %926 = vst.msk [vmem:[%s1964_s5 + $0x28] sm:$0xff] %vm920_vm1, %v685_v29 }
 0x1c9   :  { %v1201_v30 = vpop.f32.mrb[4].mxu1 }
 0x1ca   :  { %v706_v31 = vadd.f32 %v1201_v30, %v1637_v14  ;;  %v697_v32 = vpop.f32.mrb[5].mxu1 }
 0x1cb   :  { %v698_v33 = vadd.f32 %v1637_v14, %v697_v32  ;;  %v1202_v34 = vpop.f32.mrb[6].mxu1 }
 0x1cc   :  { %931 = vst.msk [vmem:[%s1964_s5 + $0x50] sm:$0xff] %vm920_vm1, %v706_v31  ;;  %v709_v35 = vadd.f32 %v1202_v34, %v1637_v14  ;;  %v700_v36 = vpop.f32.mrb[7].mxu1 }
 0x1cd   :  { %929 = vst.msk [vmem:[%s1964_s5 + $0x40] sm:$0xff] %vm920_vm1, %v698_v33  ;;  %v701_v37 = vadd.f32 %v1637_v14, %v700_v36 }
 0x1ce   :  { %932 = vst.msk [vmem:[%s1964_s5 + $0x58] sm:$0xff] %vm920_vm1, %v709_v35 }
 0x1cf   :  { %930 = vst.msk [vmem:[%s1964_s5 + $0x48] sm:$0xff] %vm920_vm1, %v701_v37 }
 0x1d1   :  { %v1205_v38 = vpop.f32.mrb[8].mxu1 }
 0x1d2   :  { %v722_v39 = vadd.f32 %v1205_v38, %v1637_v14  ;;  %v713_v40 = vpop.f32.mrb[9].mxu1 }
 0x1d3   :  { %v714_v41 = vadd.f32 %v1637_v14, %v713_v40  ;;  %v1206_v42 = vpop.f32.mrb[10].mxu1 }
 0x1d4   :  { %935 = vst.msk [vmem:[%s1964_s5 + $0x70] sm:$0xff] %vm920_vm1, %v722_v39  ;;  %v725_v44 = vadd.f32 %v1206_v42, %v1637_v14  ;;  %v716_v45 = vpop.f32.mrb[11].mxu1 }
 0x1d5   :  { %933 = vst.msk [vmem:[%s1964_s5 + $0x60] sm:$0xff] %vm920_vm1, %v714_v41  ;;  %v717_v46 = vadd.f32 %v1637_v14, %v716_v45 }
 0x1d6   :  { %936 = vst.msk [vmem:[%s1964_s5 + $0x78] sm:$0xff] %vm920_vm1, %v725_v44 }
 0x1d7   :  { %934 = vst.msk [vmem:[%s1964_s5 + $0x68] sm:$0xff] %vm920_vm1, %v717_v46 }
 0x1d9   :  { %v1209_v47 = vpop.f32.mrb[12].mxu1 }
 0x1da   :  { %v738_v48 = vadd.f32 %v1209_v47, %v1637_v14  ;;  %v729_v49 = vpop.f32.mrb[13].mxu1 }
 0x1db   :  { %v730_v50 = vadd.f32 %v1637_v14, %v729_v49  ;;  %v1210_v51 = vpop.f32.mrb[14].mxu1 }
 0x1dc   :  { %939 = vst.msk [vmem:[%s1964_s5 + $0x90] sm:$0xff] %vm920_vm1, %v738_v48  ;;  %v741_v52 = vadd.f32 %v1210_v51, %v1637_v14  ;;  %v732_v53 = vpop.f32.mrb[15].mxu1 }
 0x1dd   :  { %937 = vst.msk [vmem:[%s1964_s5 + $0x80] sm:$0xff] %vm920_vm1, %v730_v50  ;;  %v733_v54 = vadd.f32 %v1637_v14, %v732_v53 }
 0x1de   :  { %940 = vst.msk [vmem:[%s1964_s5 + $0x98] sm:$0xff] %vm920_vm1, %v741_v52 }
 0x1df   :  { %938 = vst.msk [vmem:[%s1964_s5 + $0x88] sm:$0xff] %vm920_vm1, %v733_v54 }
 0x1e1   :  { %v1213_v55 = vpop.f32.mrb[16].mxu1 }
 0x1e2   :  { %v754_v56 = vadd.f32 %v1213_v55, %v1637_v14  ;;  %v745_v57 = vpop.f32.mrb[17].mxu1 }
 0x1e3   :  { %v746_v58 = vadd.f32 %v1637_v14, %v745_v57  ;;  %v1214_v59 = vpop.f32.mrb[18].mxu1 }
 0x1e4   :  { %943 = vst.msk [vmem:[%s1964_s5 + $0xb0] sm:$0xff] %vm920_vm1, %v754_v56  ;;  %v757_v60 = vadd.f32 %v1214_v59, %v1637_v14  ;;  %v748_v61 = vpop.f32.mrb[19].mxu1 }
 0x1e5   :  { %941 = vst.msk [vmem:[%s1964_s5 + $0xa0] sm:$0xff] %vm920_vm1, %v746_v58  ;;  %v749_v62 = vadd.f32 %v1637_v14, %v748_v61 }
 0x1e6   :  { %944 = vst.msk [vmem:[%s1964_s5 + $0xb8] sm:$0xff] %vm920_vm1, %v757_v60 }
 0x1e7   :  { %942 = vst.msk [vmem:[%s1964_s5 + $0xa8] sm:$0xff] %vm920_vm1, %v749_v62 }
 0x1e9   :  { %v1217_v63 = vpop.f32.mrb[20].mxu1 }
 0x1ea   :  { %v770_v0 = vadd.f32 %v1217_v63, %v1637_v14  ;;  %v761_v1 = vpop.f32.mrb[21].mxu1 }
 0x1eb   :  { %v762_v2 = vadd.f32 %v1637_v14, %v761_v1  ;;  %v1218_v3 = vpop.f32.mrb[22].mxu1 }
 0x1ec   :  { %947 = vst.msk [vmem:[%s1964_s5 + $0xd0] sm:$0xff] %vm920_vm1, %v770_v0  ;;  %v773_v4 = vadd.f32 %v1218_v3, %v1637_v14  ;;  %v764_v5 = vpop.f32.mrb[23].mxu1 }
 0x1ed   :  { %945 = vst.msk [vmem:[%s1964_s5 + $0xc0] sm:$0xff] %vm920_vm1, %v762_v2  ;;  %v765_v6 = vadd.f32 %v1637_v14, %v764_v5 }
 0x1ee   :  { %948 = vst.msk [vmem:[%s1964_s5 + $0xd8] sm:$0xff] %vm920_vm1, %v773_v4 }
 0x1ef   :  { %946 = vst.msk [vmem:[%s1964_s5 + $0xc8] sm:$0xff] %vm920_vm1, %v765_v6 }
 0x1f1   :  { %v1221_v7 = vpop.f32.mrb[24].mxu1 }
 0x1f2   :  { %v786_v8 = vadd.f32 %v1221_v7, %v1637_v14  ;;  %v777_v9 = vpop.f32.mrb[25].mxu1 }
 0x1f3   :  { %v778_v10 = vadd.f32 %v1637_v14, %v777_v9  ;;  %v1222_v11 = vpop.f32.mrb[26].mxu1 }
 0x1f4   :  { %951 = vst.msk [vmem:[%s1964_s5 + $0xf0] sm:$0xff] %vm920_vm1, %v786_v8  ;;  %v789_v12 = vadd.f32 %v1222_v11, %v1637_v14  ;;  %v780_v13 = vpop.f32.mrb[27].mxu1 }
 0x1f5   :  { %949 = vst.msk [vmem:[%s1964_s5 + $0xe0] sm:$0xff] %vm920_vm1, %v778_v10  ;;  %v781_v15 = vadd.f32 %v1637_v14, %v780_v13 }
 0x1f6   :  { %952 = vst.msk [vmem:[%s1964_s5 + $0xf8] sm:$0xff] %vm920_vm1, %v789_v12 }
 0x1f7   :  { %950 = vst.msk [vmem:[%s1964_s5 + $0xe8] sm:$0xff] %vm920_vm1, %v781_v15 }
 0x1f9   :  { %v1225_v16 = vpop.f32.mrb[28].mxu1 }
 0x1fa   :  { %v802_v17 = vadd.f32 %v1225_v16, %v1637_v14  ;;  %v793_v18 = vpop.f32.mrb[29].mxu1 }
 0x1fb   :  { %v794_v19 = vadd.f32 %v1637_v14, %v793_v18  ;;  %v1226_v43 = vpop.f32.mrb[30].mxu1 }
 0x1fc   :  { %955 = vst.msk [vmem:[%s1964_s5 + $0x110] sm:$0xff] %vm920_vm1, %v802_v17  ;;  %v805_v20 = vadd.f32 %v1226_v43, %v1637_v14  ;;  %v796_v21 = vpop.f32.mrb[31].mxu1 }
 0x1fd   :  { %953 = vst.msk [vmem:[%s1964_s5 + $0x100] sm:$0xff] %vm920_vm1, %v794_v19  ;;  %v797_v22 = vadd.f32 %v1637_v14, %v796_v21 }
 0x1fe   :  { %956 = vst.msk [vmem:[%s1964_s5 + $0x118] sm:$0xff] %vm920_vm1, %v805_v20 }
 0x1ff   :  { %954 = vst.msk [vmem:[%s1964_s5 + $0x108] sm:$0xff] %vm920_vm1, %v797_v22 }
 0x201   :  { %v1229_v23 = vpop.f32.mrb[32].mxu1 }
 0x202   :  { %v818_v24 = vadd.f32 %v1229_v23, %v1637_v14  ;;  %v809_v25 = vpop.f32.mrb[33].mxu1 }
 0x203   :  { %v810_v26 = vadd.f32 %v1637_v14, %v809_v25  ;;  %v1230_v27 = vpop.f32.mrb[34].mxu1 }
 0x204   :  { %959 = vst.msk [vmem:[%s1964_s5 + $0x130] sm:$0xff] %vm920_vm1, %v818_v24  ;;  %v821_v28 = vadd.f32 %v1230_v27, %v1637_v14  ;;  %v812_v29 = vpop.f32.mrb[35].mxu1 }
 0x205   :  { %957 = vst.msk [vmem:[%s1964_s5 + $0x120] sm:$0xff] %vm920_vm1, %v810_v26  ;;  %v813_v30 = vadd.f32 %v1637_v14, %v812_v29 }
 0x206   :  { %960 = vst.msk [vmem:[%s1964_s5 + $0x138] sm:$0xff] %vm920_vm1, %v821_v28 }
 0x207   :  { %958 = vst.msk [vmem:[%s1964_s5 + $0x128] sm:$0xff] %vm920_vm1, %v813_v30 }
 0x209   :  { %v1233_v31 = vpop.f32.mrb[36].mxu1 }
 0x20a   :  { %v834_v32 = vadd.f32 %v1233_v31, %v1637_v14  ;;  %v825_v33 = vpop.f32.mrb[37].mxu1 }
 0x20b   :  { %v826_v34 = vadd.f32 %v1637_v14, %v825_v33  ;;  %v1234_v35 = vpop.f32.mrb[38].mxu1 }
 0x20c   :  { %963 = vst.msk [vmem:[%s1964_s5 + $0x150] sm:$0xff] %vm920_vm1, %v834_v32  ;;  %v837_v36 = vadd.f32 %v1234_v35, %v1637_v14  ;;  %v828_v37 = vpop.f32.mrb[39].mxu1 }
 0x20d   :  { %961 = vst.msk [vmem:[%s1964_s5 + $0x140] sm:$0xff] %vm920_vm1, %v826_v34  ;;  %v829_v38 = vadd.f32 %v1637_v14, %v828_v37 }
 0x20e   :  { %964 = vst.msk [vmem:[%s1964_s5 + $0x158] sm:$0xff] %vm920_vm1, %v837_v36 }
 0x20f   :  { %962 = vst.msk [vmem:[%s1964_s5 + $0x148] sm:$0xff] %vm920_vm1, %v829_v38 }
 0x211   :  { %v1237_v39 = vpop.f32.mrb[40].mxu1 }
 0x212   :  { %v850_v40 = vadd.f32 %v1237_v39, %v1637_v14  ;;  %v841_v41 = vpop.f32.mrb[41].mxu1 }
 0x213   :  { %v842_v42 = vadd.f32 %v1637_v14, %v841_v41  ;;  %v1238_v44 = vpop.f32.mrb[42].mxu1 }
 0x214   :  { %967 = vst.msk [vmem:[%s1964_s5 + $0x170] sm:$0xff] %vm920_vm1, %v850_v40  ;;  %v853_v45 = vadd.f32 %v1238_v44, %v1637_v14  ;;  %v844_v46 = vpop.f32.mrb[43].mxu1 }
 0x215   :  { %965 = vst.msk [vmem:[%s1964_s5 + $0x160] sm:$0xff] %vm920_vm1, %v842_v42  ;;  %v845_v47 = vadd.f32 %v1637_v14, %v844_v46 }
 0x216   :  { %968 = vst.msk [vmem:[%s1964_s5 + $0x178] sm:$0xff] %vm920_vm1, %v853_v45 }
 0x217   :  { %966 = vst.msk [vmem:[%s1964_s5 + $0x168] sm:$0xff] %vm920_vm1, %v845_v47 }
 0x219   :  { %v1241_v48 = vpop.f32.mrb[44].mxu1 }
 0x21a   :  { %v866_v49 = vadd.f32 %v1241_v48, %v1637_v14  ;;  %v857_v50 = vpop.f32.mrb[45].mxu1 }
 0x21b   :  { %v858_v51 = vadd.f32 %v1637_v14, %v857_v50  ;;  %v1242_v52 = vpop.f32.mrb[46].mxu1 }
 0x21c   :  { %971 = vst.msk [vmem:[%s1964_s5 + $0x190] sm:$0xff] %vm920_vm1, %v866_v49  ;;  %v869_v53 = vadd.f32 %v1242_v52, %v1637_v14  ;;  %v860_v54 = vpop.f32.mrb[47].mxu1 }
 0x21d   :  { %969 = vst.msk [vmem:[%s1964_s5 + $0x180] sm:$0xff] %vm920_vm1, %v858_v51  ;;  %v861_v55 = vadd.f32 %v1637_v14, %v860_v54 }
 0x21e   :  { %972 = vst.msk [vmem:[%s1964_s5 + $0x198] sm:$0xff] %vm920_vm1, %v869_v53 }
 0x21f   :  { %970 = vst.msk [vmem:[%s1964_s5 + $0x188] sm:$0xff] %vm920_vm1, %v861_v55 }
 0x221   :  { %v1245_v56 = vpop.f32.mrb[48].mxu1 }
 0x222   :  { %v882_v57 = vadd.f32 %v1245_v56, %v1637_v14  ;;  %v873_v58 = vpop.f32.mrb[49].mxu1 }
 0x223   :  { %v874_v59 = vadd.f32 %v1637_v14, %v873_v58  ;;  %v1246_v60 = vpop.f32.mrb[50].mxu1 }
 0x224   :  { %975 = vst.msk [vmem:[%s1964_s5 + $0x1b0] sm:$0xff] %vm920_vm1, %v882_v57  ;;  %v885_v61 = vadd.f32 %v1246_v60, %v1637_v14  ;;  %v876_v62 = vpop.f32.mrb[51].mxu1 }
 0x225   :  { %973 = vst.msk [vmem:[%s1964_s5 + $0x1a0] sm:$0xff] %vm920_vm1, %v874_v59  ;;  %v877_v63 = vadd.f32 %v1637_v14, %v876_v62 }
 0x226   :  { %976 = vst.msk [vmem:[%s1964_s5 + $0x1b8] sm:$0xff] %vm920_vm1, %v885_v61 }
 0x227   :  { %974 = vst.msk [vmem:[%s1964_s5 + $0x1a8] sm:$0xff] %vm920_vm1, %v877_v63 }
 0x229   :  { %v1249_v0 = vpop.f32.mrb[52].mxu1 }
 0x22a   :  { %v898_v1 = vadd.f32 %v1249_v0, %v1637_v14  ;;  %v889_v2 = vpop.f32.mrb[53].mxu1 }
 0x22b   :  { %v890_v3 = vadd.f32 %v1637_v14, %v889_v2  ;;  %v1250_v4 = vpop.f32.mrb[54].mxu1 }
 0x22c   :  { %979 = vst.msk [vmem:[%s1964_s5 + $0x1d0] sm:$0xff] %vm920_vm1, %v898_v1  ;;  %v901_v5 = vadd.f32 %v1250_v4, %v1637_v14  ;;  %v892_v6 = vpop.f32.mrb[55].mxu1 }
 0x22d   :  { %977 = vst.msk [vmem:[%s1964_s5 + $0x1c0] sm:$0xff] %vm920_vm1, %v890_v3  ;;  %v893_v7 = vadd.f32 %v1637_v14, %v892_v6 }
 0x22e   :  { %980 = vst.msk [vmem:[%s1964_s5 + $0x1d8] sm:$0xff] %vm920_vm1, %v901_v5 }
 0x22f   :  { %978 = vst.msk [vmem:[%s1964_s5 + $0x1c8] sm:$0xff] %vm920_vm1, %v893_v7 }
 0x231   :  { %v1253_v8 = vpop.f32.mrb[56].mxu1 }
 0x232   :  { %v914_v9 = vadd.f32 %v1253_v8, %v1637_v14  ;;  %v905_v10 = vpop.f32.mrb[57].mxu1 }
 0x233   :  { %v906_v11 = vadd.f32 %v1637_v14, %v905_v10  ;;  %v1254_v12 = vpop.f32.mrb[58].mxu1 }
 0x234   :  { %983 = vst.msk [vmem:[%s1964_s5 + $0x1f0] sm:$0xff] %vm920_vm1, %v914_v9  ;;  %v917_v13 = vadd.f32 %v1254_v12, %v1637_v14  ;;  %v908_v15 = vpop.f32.mrb[59].mxu1 }
 0x235   :  { %981 = vst.msk [vmem:[%s1964_s5 + $0x1e0] sm:$0xff] %vm920_vm1, %v906_v11  ;;  %v909_v16 = vadd.f32 %v1637_v14, %v908_v15 }
 0x236   :  { %984 = vst.msk [vmem:[%s1964_s5 + $0x1f8] sm:$0xff] %vm920_vm1, %v917_v13 }
 0x237   :  { %982 = vst.msk [vmem:[%s1964_s5 + $0x1e8] sm:$0xff] %vm920_vm1, %v909_v16 }

</bundles_post_ra>
